<compile_context>
chip_gen: v7x
topology: tpu7x:2x2x1
jax: 0.10.0
libtpu: 0.0.40
codegen_flags: <defaults>
</compile_context>

<pallas_src>
import jax
import jax.numpy as jnp
from jax import lax
from jax.experimental import pallas as pl
from jax.experimental.pallas import tpu as pltpu


def _build_fused_kernel(strides, batch):
    """Builds the fused forward kernel body (layer strides / batch are static)."""
    n_conv = len(strides)

    def kernel(*refs):
        x_ref = refs[0]                                     # (B, L0, C0) f32, VMEM
        conv_refs = refs[1:1 + 3 * n_conv]                  # per layer: w(bf16), scale, bias
        fc1_w_ref, fc1_b_ref, fc2_w_ref, fc2_b_ref = refs[1 + 3 * n_conv:5 + 3 * n_conv]
        o_ref = refs[5 + 3 * n_conv]                        # (B, num_classes) f32 output
        act_scr = refs[6 + 3 * n_conv]                      # VMEM staging for strided taps

        pooled_rows = []
        for b in range(batch):                              # B is tiny -> fully unrolled
            xb = x_ref[b]                                   # (L, C) f32 value
            for li in range(n_conv):
                w_ref = conv_refs[3 * li]                   # (K, Ci, Co) bf16
                s_ref = conv_refs[3 * li + 1]               # (1, Co) f32  gamma/sqrt(var+eps)
                bias_ref = conv_refs[3 * li + 2]            # (1, Co) f32  beta - mean*scale
                K, Ci, Co = w_ref.shape
                stride = strides[li]
                L_in = xb.shape[0]
                L_out = (L_in - K) // stride + 1

                if stride == 1:
                    taps = [xb[k:k + L_out, :] for k in range(K)]
                else:
                    # Stage through VMEM scratch so stride-2 taps are dense
                    # strided ref loads instead of strided value ops.
                    act_scr[:L_in, :Ci] = xb
                    taps = [act_scr[pl.ds(k, L_out, stride=stride), :Ci]
                            for k in range(K)]

                # K per-tap MXU matmuls: bf16 operands, f32 accumulation.
                # TODO(synk): a single (L_out, K*Ci) @ (K*Ci, Co) im2col contraction
                # would fill the MXU depth better; kept per-tap to avoid lane-dim
                # concatenation of narrow (32/64-wide) slices.
                acc = jnp.dot(taps[0].astype(jnp.bfloat16), w_ref[0],
                              preferred_element_type=jnp.float32)
                for k in range(1, K):
                    acc = acc + jnp.dot(taps[k].astype(jnp.bfloat16), w_ref[k],
                                        preferred_element_type=jnp.float32)

                y = acc * s_ref[...] + bias_ref[...]        # folded BatchNorm (eval mode)
                xb = jnp.maximum(y, 0.0)                    # ReLU (always present here)

            # AdaptiveAvgPool1d(1): mean over the remaining length axis.
            pooled_rows.append(jnp.mean(xb, axis=0, keepdims=True))   # (1, C_last)

        # Head epilogue: flatten(GAP) -> fc1 -> fc2, fused in the same kernel.
        pooled = jnp.concatenate(pooled_rows, axis=0)                 # (B, C_last)
        h = jnp.dot(pooled.astype(jnp.bfloat16), fc1_w_ref[...],
                    preferred_element_type=jnp.float32) + fc1_b_ref[...]
        logits = jnp.dot(h.astype(jnp.bfloat16), fc2_w_ref[...],
                         preferred_element_type=jnp.float32) + fc2_b_ref[...]
        o_ref[...] = logits.astype(o_ref.dtype)

    return kernel


def classifier_forward(x_ncl, conv_params, fc_params):
    """Fused Classifier forward: one pallas_call for the whole network.

    TODO(synk): BatchNorm is implemented in eval mode (running stats); the
    train-mode batch-statistics path is not reproduced.
    """
    x = jnp.transpose(x_ncl, (0, 2, 1)).astype(jnp.float32)  # NCL -> NLC (channels-last)
    B, L0, _ = x.shape
    strides = tuple(int(p["stride"]) for p in conv_params)
    num_classes = fc_params[2].shape[1]

    # Size the single VMEM staging buffer used by the stride>1 layers.
    scr_L, scr_C, cur_L = 8, 128, L0
    for p in conv_params:
        K, Ci, _ = p["w"].shape
        s = int(p["stride"])
        if s != 1:
            scr_L = max(scr_L, cur_L)
            scr_C = max(scr_C, Ci)
        cur_L = (cur_L - K) // s + 1
    scr_L = ((scr_L + 7) // 8) * 8
    scr_C = ((scr_C + 127) // 128) * 128

    args = [x]
    for p in conv_params:
        args += [p["w"].astype(jnp.bfloat16), p["scale"], p["bias"]]
    fc1_w, fc1_b, fc2_w, fc2_b = fc_params
    args += [fc1_w.astype(jnp.bfloat16), fc1_b, fc2_w.astype(jnp.bfloat16), fc2_b]

    # No grid: single invocation, every operand resident whole in VMEM.  Total
    # working set is < 2 MiB, far below VMEM on every generation (per review,
    # no extra tiling is added for v7x's smaller 64 MiB VMEM; a batch grid axis
    # for v7x's 2 TCs is not worth re-DMAing weights at B=2).
    return pl.pallas_call(
        _build_fused_kernel(strides, B),
        out_shape=jax.ShapeDtypeStruct((B, num_classes), jnp.float32),
        scratch_shapes=[pltpu.VMEM((scr_L, scr_C), jnp.float32)],
    )(*args)


def init_params(key, num_classes=2, in_channels=12):
    """Deterministic synthetic parameters matching the module's shapes."""
    # (C_in, C_out, stride) for the 9 Conv1d layers, kernel_size=5, padding=0.
    conv_defs = [
        (in_channels, 32, 1),               # block1
        (32, 32, 1), (32, 32, 1),           # block2
        (32, 64, 2), (64, 64, 1),           # block3
        (64, 64, 1), (64, 64, 1),           # block4
        (64, 128, 2), (128, 128, 1),        # block5
    ]
    K, eps = 5, 1e-5
    conv_params = []
    for ci, co, stride in conv_defs:
        key, kw, kg, kb, km, kv = jax.random.split(key, 6)
        w = jax.random.normal(kw, (K, ci, co), jnp.float32) / jnp.sqrt(ci * K)
        gamma = 1.0 + 0.1 * jax.random.normal(kg, (co,), jnp.float32)
        beta = 0.1 * jax.random.normal(kb, (co,), jnp.float32)
        rmean = 0.1 * jax.random.normal(km, (co,), jnp.float32)
        rvar = 1.0 + 0.5 * jax.random.uniform(kv, (co,), jnp.float32)
        scale = gamma / jnp.sqrt(rvar + eps)
        bias = beta - rmean * scale
        conv_params.append(dict(w=w, scale=scale.reshape(1, co),
                                bias=bias.reshape(1, co), stride=stride))
    key, k1, k2, k3, k4 = jax.random.split(key, 5)
    fc1_w = jax.random.normal(k1, (128, 128), jnp.float32) / jnp.sqrt(128.0)
    fc1_b = 0.1 * jax.random.normal(k2, (1, 128), jnp.float32)
    fc2_w = jax.random.normal(k3, (128, num_classes), jnp.float32) / jnp.sqrt(128.0)
    fc2_b = 0.1 * jax.random.normal(k4, (1, num_classes), jnp.float32)
    return conv_params, (fc1_w, fc1_b, fc2_w, fc2_b)


def reference_forward(x_ncl, conv_params, fc_params):
    """Pure-JAX reference (XLA conv, NCL layout like PyTorch) for verification.

    Applies the same bf16 operand rounding (with f32 accumulation) that the
    kernel uses, so the comparison isolates structural/indexing correctness.
    """
    x = x_ncl.astype(jnp.float32)
    for p in conv_params:
        w_oik = jnp.transpose(p["w"], (2, 1, 0)).astype(jnp.bfloat16)  # (Co, Ci, K)
        y = lax.conv_general_dilated(
            x.astype(jnp.bfloat16), w_oik, window_strides=(p["stride"],),
            padding="VALID", dimension_numbers=("NCH", "OIH", "NCH"),
            preferred_element_type=jnp.float32)
        y = y * p["scale"].reshape(1, -1, 1) + p["bias"].reshape(1, -1, 1)
        x = jnp.maximum(y, 0.0)
    pooled = jnp.mean(x, axis=-1)  # AdaptiveAvgPool1d(1) + flatten
    fc1_w, fc1_b, fc2_w, fc2_b = fc_params
    h = jnp.dot(pooled.astype(jnp.bfloat16), fc1_w.astype(jnp.bfloat16),
                preferred_element_type=jnp.float32) + fc1_b
    return jnp.dot(h.astype(jnp.bfloat16), fc2_w.astype(jnp.bfloat16),
                   preferred_element_type=jnp.float32) + fc2_b


if __name__ == "__main__":
    key = jax.random.PRNGKey(0)
    key, kx, kp = jax.random.split(key, 3)

    B, C_IN, L, NUM_CLASSES = 2, 12, 128, 2
    x = jax.random.normal(kx, (B, C_IN, L), jnp.float32)  # PyTorch NCL input

    conv_params, fc_params = init_params(kp, num_classes=NUM_CLASSES, in_channels=C_IN)

    y = classifier_forward(x, conv_params, fc_params)
    y = jax.block_until_ready(y)

    y_ref = reference_forward(x, conv_params, fc_params)
    assert y.shape == (B, NUM_CLASSES), y.shape
    assert jnp.allclose(y, y_ref, rtol=2e-3, atol=2e-3), (y, y_ref)

    print("KERNEL_OK")
</pallas_src>

<mosaic_0001>
module attributes {stable_mosaic.version = 11 : i64} {
  func.func @kernel(%arg0: memref<2x128x12xf32, #tpu.memory_space<vmem>>, %arg1: memref<5x12x32xbf16, #tpu.memory_space<vmem>>, %arg2: memref<1x32xf32, #tpu.memory_space<vmem>>, %arg3: memref<1x32xf32, #tpu.memory_space<vmem>>, %arg4: memref<5x32x32xbf16, #tpu.memory_space<vmem>>, %arg5: memref<1x32xf32, #tpu.memory_space<vmem>>, %arg6: memref<1x32xf32, #tpu.memory_space<vmem>>, %arg7: memref<5x32x32xbf16, #tpu.memory_space<vmem>>, %arg8: memref<1x32xf32, #tpu.memory_space<vmem>>, %arg9: memref<1x32xf32, #tpu.memory_space<vmem>>, %arg10: memref<5x32x64xbf16, #tpu.memory_space<vmem>>, %arg11: memref<1x64xf32, #tpu.memory_space<vmem>>, %arg12: memref<1x64xf32, #tpu.memory_space<vmem>>, %arg13: memref<5x64x64xbf16, #tpu.memory_space<vmem>>, %arg14: memref<1x64xf32, #tpu.memory_space<vmem>>, %arg15: memref<1x64xf32, #tpu.memory_space<vmem>>, %arg16: memref<5x64x64xbf16, #tpu.memory_space<vmem>>, %arg17: memref<1x64xf32, #tpu.memory_space<vmem>>, %arg18: memref<1x64xf32, #tpu.memory_space<vmem>>, %arg19: memref<5x64x64xbf16, #tpu.memory_space<vmem>>, %arg20: memref<1x64xf32, #tpu.memory_space<vmem>>, %arg21: memref<1x64xf32, #tpu.memory_space<vmem>>, %arg22: memref<5x64x128xbf16, #tpu.memory_space<vmem>>, %arg23: memref<1x128xf32, #tpu.memory_space<vmem>>, %arg24: memref<1x128xf32, #tpu.memory_space<vmem>>, %arg25: memref<5x128x128xbf16, #tpu.memory_space<vmem>>, %arg26: memref<1x128xf32, #tpu.memory_space<vmem>>, %arg27: memref<1x128xf32, #tpu.memory_space<vmem>>, %arg28: memref<128x128xbf16, #tpu.memory_space<vmem>>, %arg29: memref<1x128xf32, #tpu.memory_space<vmem>>, %arg30: memref<128x2xbf16, #tpu.memory_space<vmem>>, %arg31: memref<1x2xf32, #tpu.memory_space<vmem>>, %arg32: memref<2x2xf32, #tpu.memory_space<vmem>>, %arg33: memref<120x128xf32, #tpu.memory_space<vmem>>) attributes {dimension_semantics = [], scalar_prefetch = 0 : i64, scratch_operands = 1 : i64, tpu.core_type = #tpu.core_type<tc>} {
    %c0 = arith.constant 0 : index
    %c0_0 = arith.constant 0 : index
    %c0_1 = arith.constant 0 : index
    %0 = vector.load %arg0[%c0, %c0_0, %c0_1] : memref<2x128x12xf32, #tpu.memory_space<vmem>>, vector<1x128x12xf32>
    %1 = vector.shape_cast %0 : vector<1x128x12xf32> to vector<128x12xf32>
    %2 = vector.extract_strided_slice %1 {offsets = [0, 0], sizes = [124, 12], strides = [1, 1]} : vector<128x12xf32> to vector<124x12xf32>
    %3 = vector.extract_strided_slice %1 {offsets = [1, 0], sizes = [124, 12], strides = [1, 1]} : vector<128x12xf32> to vector<124x12xf32>
    %4 = vector.extract_strided_slice %1 {offsets = [2, 0], sizes = [124, 12], strides = [1, 1]} : vector<128x12xf32> to vector<124x12xf32>
    %5 = vector.extract_strided_slice %1 {offsets = [3, 0], sizes = [124, 12], strides = [1, 1]} : vector<128x12xf32> to vector<124x12xf32>
    %6 = vector.extract_strided_slice %1 {offsets = [4, 0], sizes = [124, 12], strides = [1, 1]} : vector<128x12xf32> to vector<124x12xf32>
    %7 = arith.truncf %2 : vector<124x12xf32> to vector<124x12xbf16>
    %c0_2 = arith.constant 0 : index
    %c0_3 = arith.constant 0 : index
    %c0_4 = arith.constant 0 : index
    %8 = vector.load %arg1[%c0_2, %c0_3, %c0_4] : memref<5x12x32xbf16, #tpu.memory_space<vmem>>, vector<1x12x32xbf16>
    %9 = vector.shape_cast %8 : vector<1x12x32xbf16> to vector<12x32xbf16>
    %cst = arith.constant dense<0.000000e+00> : vector<124x32xf32>
    %10 = tpu.matmul %7, %9, %cst {dimension_numbers = #tpu.dot_dimension_numbers<[1], [0], [0], [1], [0, 0, 1, 1], [], []>} : vector<124x12xbf16>, vector<12x32xbf16>, vector<124x32xf32> -> vector<124x32xf32>
    %11 = arith.truncf %3 : vector<124x12xf32> to vector<124x12xbf16>
    %c1 = arith.constant 1 : index
    %c0_5 = arith.constant 0 : index
    %c0_6 = arith.constant 0 : index
    %12 = vector.load %arg1[%c1, %c0_5, %c0_6] : memref<5x12x32xbf16, #tpu.memory_space<vmem>>, vector<1x12x32xbf16>
    %13 = vector.shape_cast %12 : vector<1x12x32xbf16> to vector<12x32xbf16>
    %cst_7 = arith.constant dense<0.000000e+00> : vector<124x32xf32>
    %14 = tpu.matmul %11, %13, %cst_7 {dimension_numbers = #tpu.dot_dimension_numbers<[1], [0], [0], [1], [0, 0, 1, 1], [], []>} : vector<124x12xbf16>, vector<12x32xbf16>, vector<124x32xf32> -> vector<124x32xf32>
    %15 = arith.addf %10, %14 : vector<124x32xf32>
    %16 = arith.truncf %4 : vector<124x12xf32> to vector<124x12xbf16>
    %c2 = arith.constant 2 : index
    %c0_8 = arith.constant 0 : index
    %c0_9 = arith.constant 0 : index
    %17 = vector.load %arg1[%c2, %c0_8, %c0_9] : memref<5x12x32xbf16, #tpu.memory_space<vmem>>, vector<1x12x32xbf16>
    %18 = vector.shape_cast %17 : vector<1x12x32xbf16> to vector<12x32xbf16>
    %cst_10 = arith.constant dense<0.000000e+00> : vector<124x32xf32>
    %19 = tpu.matmul %16, %18, %cst_10 {dimension_numbers = #tpu.dot_dimension_numbers<[1], [0], [0], [1], [0, 0, 1, 1], [], []>} : vector<124x12xbf16>, vector<12x32xbf16>, vector<124x32xf32> -> vector<124x32xf32>
    %20 = arith.addf %15, %19 : vector<124x32xf32>
    %21 = arith.truncf %5 : vector<124x12xf32> to vector<124x12xbf16>
    %c3 = arith.constant 3 : index
    %c0_11 = arith.constant 0 : index
    %c0_12 = arith.constant 0 : index
    %22 = vector.load %arg1[%c3, %c0_11, %c0_12] : memref<5x12x32xbf16, #tpu.memory_space<vmem>>, vector<1x12x32xbf16>
    %23 = vector.shape_cast %22 : vector<1x12x32xbf16> to vector<12x32xbf16>
    %cst_13 = arith.constant dense<0.000000e+00> : vector<124x32xf32>
    %24 = tpu.matmul %21, %23, %cst_13 {dimension_numbers = #tpu.dot_dimension_numbers<[1], [0], [0], [1], [0, 0, 1, 1], [], []>} : vector<124x12xbf16>, vector<12x32xbf16>, vector<124x32xf32> -> vector<124x32xf32>
    %25 = arith.addf %20, %24 : vector<124x32xf32>
    %26 = arith.truncf %6 : vector<124x12xf32> to vector<124x12xbf16>
    %c4 = arith.constant 4 : index
    %c0_14 = arith.constant 0 : index
    %c0_15 = arith.constant 0 : index
    %27 = vector.load %arg1[%c4, %c0_14, %c0_15] : memref<5x12x32xbf16, #tpu.memory_space<vmem>>, vector<1x12x32xbf16>
    %28 = vector.shape_cast %27 : vector<1x12x32xbf16> to vector<12x32xbf16>
    %cst_16 = arith.constant dense<0.000000e+00> : vector<124x32xf32>
    %29 = tpu.matmul %26, %28, %cst_16 {dimension_numbers = #tpu.dot_dimension_numbers<[1], [0], [0], [1], [0, 0, 1, 1], [], []>} : vector<124x12xbf16>, vector<12x32xbf16>, vector<124x32xf32> -> vector<124x32xf32>
    %30 = arith.addf %25, %29 : vector<124x32xf32>
    %c0_17 = arith.constant 0 : index
    %c0_18 = arith.constant 0 : index
    %31 = vector.load %arg2[%c0_17, %c0_18] : memref<1x32xf32, #tpu.memory_space<vmem>>, vector<1x32xf32>
    %32 = vector.broadcast %31 : vector<1x32xf32> to vector<124x32xf32>
    %33 = arith.mulf %30, %32 : vector<124x32xf32>
    %c0_19 = arith.constant 0 : index
    %c0_20 = arith.constant 0 : index
    %34 = vector.load %arg3[%c0_19, %c0_20] : memref<1x32xf32, #tpu.memory_space<vmem>>, vector<1x32xf32>
    %35 = vector.broadcast %34 : vector<1x32xf32> to vector<124x32xf32>
    %36 = arith.addf %33, %35 : vector<124x32xf32>
    %cst_21 = arith.constant 0.000000e+00 : f32
    %37 = vector.broadcast %cst_21 : f32 to vector<124x32xf32>
    %38 = arith.maximumf %36, %37 : vector<124x32xf32>
    %39 = vector.extract_strided_slice %38 {offsets = [0, 0], sizes = [120, 32], strides = [1, 1]} : vector<124x32xf32> to vector<120x32xf32>
    %40 = vector.extract_strided_slice %38 {offsets = [1, 0], sizes = [120, 32], strides = [1, 1]} : vector<124x32xf32> to vector<120x32xf32>
    %41 = vector.extract_strided_slice %38 {offsets = [2, 0], sizes = [120, 32], strides = [1, 1]} : vector<124x32xf32> to vector<120x32xf32>
    %42 = vector.extract_strided_slice %38 {offsets = [3, 0], sizes = [120, 32], strides = [1, 1]} : vector<124x32xf32> to vector<120x32xf32>
    %43 = vector.extract_strided_slice %38 {offsets = [4, 0], sizes = [120, 32], strides = [1, 1]} : vector<124x32xf32> to vector<120x32xf32>
    %44 = arith.truncf %39 : vector<120x32xf32> to vector<120x32xbf16>
    %c0_22 = arith.constant 0 : index
    %c0_23 = arith.constant 0 : index
    %c0_24 = arith.constant 0 : index
    %45 = vector.load %arg4[%c0_22, %c0_23, %c0_24] : memref<5x32x32xbf16, #tpu.memory_space<vmem>>, vector<1x32x32xbf16>
    %46 = vector.shape_cast %45 : vector<1x32x32xbf16> to vector<32x32xbf16>
    %cst_25 = arith.constant dense<0.000000e+00> : vector<120x32xf32>
    %47 = tpu.matmul %44, %46, %cst_25 {dimension_numbers = #tpu.dot_dimension_numbers<[1], [0], [0], [1], [0, 0, 1, 1], [], []>} : vector<120x32xbf16>, vector<32x32xbf16>, vector<120x32xf32> -> vector<120x32xf32>
    %48 = arith.truncf %40 : vector<120x32xf32> to vector<120x32xbf16>
    %c1_26 = arith.constant 1 : index
    %c0_27 = arith.constant 0 : index
    %c0_28 = arith.constant 0 : index
    %49 = vector.load %arg4[%c1_26, %c0_27, %c0_28] : memref<5x32x32xbf16, #tpu.memory_space<vmem>>, vector<1x32x32xbf16>
    %50 = vector.shape_cast %49 : vector<1x32x32xbf16> to vector<32x32xbf16>
    %cst_29 = arith.constant dense<0.000000e+00> : vector<120x32xf32>
    %51 = tpu.matmul %48, %50, %cst_29 {dimension_numbers = #tpu.dot_dimension_numbers<[1], [0], [0], [1], [0, 0, 1, 1], [], []>} : vector<120x32xbf16>, vector<32x32xbf16>, vector<120x32xf32> -> vector<120x32xf32>
    %52 = arith.addf %47, %51 : vector<120x32xf32>
    %53 = arith.truncf %41 : vector<120x32xf32> to vector<120x32xbf16>
    %c2_30 = arith.constant 2 : index
    %c0_31 = arith.constant 0 : index
    %c0_32 = arith.constant 0 : index
    %54 = vector.load %arg4[%c2_30, %c0_31, %c0_32] : memref<5x32x32xbf16, #tpu.memory_space<vmem>>, vector<1x32x32xbf16>
    %55 = vector.shape_cast %54 : vector<1x32x32xbf16> to vector<32x32xbf16>
    %cst_33 = arith.constant dense<0.000000e+00> : vector<120x32xf32>
    %56 = tpu.matmul %53, %55, %cst_33 {dimension_numbers = #tpu.dot_dimension_numbers<[1], [0], [0], [1], [0, 0, 1, 1], [], []>} : vector<120x32xbf16>, vector<32x32xbf16>, vector<120x32xf32> -> vector<120x32xf32>
    %57 = arith.addf %52, %56 : vector<120x32xf32>
    %58 = arith.truncf %42 : vector<120x32xf32> to vector<120x32xbf16>
    %c3_34 = arith.constant 3 : index
    %c0_35 = arith.constant 0 : index
    %c0_36 = arith.constant 0 : index
    %59 = vector.load %arg4[%c3_34, %c0_35, %c0_36] : memref<5x32x32xbf16, #tpu.memory_space<vmem>>, vector<1x32x32xbf16>
    %60 = vector.shape_cast %59 : vector<1x32x32xbf16> to vector<32x32xbf16>
    %cst_37 = arith.constant dense<0.000000e+00> : vector<120x32xf32>
    %61 = tpu.matmul %58, %60, %cst_37 {dimension_numbers = #tpu.dot_dimension_numbers<[1], [0], [0], [1], [0, 0, 1, 1], [], []>} : vector<120x32xbf16>, vector<32x32xbf16>, vector<120x32xf32> -> vector<120x32xf32>
    %62 = arith.addf %57, %61 : vector<120x32xf32>
    %63 = arith.truncf %43 : vector<120x32xf32> to vector<120x32xbf16>
    %c4_38 = arith.constant 4 : index
    %c0_39 = arith.constant 0 : index
    %c0_40 = arith.constant 0 : index
    %64 = vector.load %arg4[%c4_38, %c0_39, %c0_40] : memref<5x32x32xbf16, #tpu.memory_space<vmem>>, vector<1x32x32xbf16>
    %65 = vector.shape_cast %64 : vector<1x32x32xbf16> to vector<32x32xbf16>
    %cst_41 = arith.constant dense<0.000000e+00> : vector<120x32xf32>
    %66 = tpu.matmul %63, %65, %cst_41 {dimension_numbers = #tpu.dot_dimension_numbers<[1], [0], [0], [1], [0, 0, 1, 1], [], []>} : vector<120x32xbf16>, vector<32x32xbf16>, vector<120x32xf32> -> vector<120x32xf32>
    %67 = arith.addf %62, %66 : vector<120x32xf32>
    %c0_42 = arith.constant 0 : index
    %c0_43 = arith.constant 0 : index
    %68 = vector.load %arg5[%c0_42, %c0_43] : memref<1x32xf32, #tpu.memory_space<vmem>>, vector<1x32xf32>
    %69 = vector.broadcast %68 : vector<1x32xf32> to vector<120x32xf32>
    %70 = arith.mulf %67, %69 : vector<120x32xf32>
    %c0_44 = arith.constant 0 : index
    %c0_45 = arith.constant 0 : index
    %71 = vector.load %arg6[%c0_44, %c0_45] : memref<1x32xf32, #tpu.memory_space<vmem>>, vector<1x32xf32>
    %72 = vector.broadcast %71 : vector<1x32xf32> to vector<120x32xf32>
    %73 = arith.addf %70, %72 : vector<120x32xf32>
    %cst_46 = arith.constant 0.000000e+00 : f32
    %74 = vector.broadcast %cst_46 : f32 to vector<120x32xf32>
    %75 = arith.maximumf %73, %74 : vector<120x32xf32>
    %76 = vector.extract_strided_slice %75 {offsets = [0, 0], sizes = [116, 32], strides = [1, 1]} : vector<120x32xf32> to vector<116x32xf32>
    %77 = vector.extract_strided_slice %75 {offsets = [1, 0], sizes = [116, 32], strides = [1, 1]} : vector<120x32xf32> to vector<116x32xf32>
    %78 = vector.extract_strided_slice %75 {offsets = [2, 0], sizes = [116, 32], strides = [1, 1]} : vector<120x32xf32> to vector<116x32xf32>
    %79 = vector.extract_strided_slice %75 {offsets = [3, 0], sizes = [116, 32], strides = [1, 1]} : vector<120x32xf32> to vector<116x32xf32>
    %80 = vector.extract_strided_slice %75 {offsets = [4, 0], sizes = [116, 32], strides = [1, 1]} : vector<120x32xf32> to vector<116x32xf32>
    %81 = arith.truncf %76 : vector<116x32xf32> to vector<116x32xbf16>
    %c0_47 = arith.constant 0 : index
    %c0_48 = arith.constant 0 : index
    %c0_49 = arith.constant 0 : index
    %82 = vector.load %arg7[%c0_47, %c0_48, %c0_49] : memref<5x32x32xbf16, #tpu.memory_space<vmem>>, vector<1x32x32xbf16>
    %83 = vector.shape_cast %82 : vector<1x32x32xbf16> to vector<32x32xbf16>
    %cst_50 = arith.constant dense<0.000000e+00> : vector<116x32xf32>
    %84 = tpu.matmul %81, %83, %cst_50 {dimension_numbers = #tpu.dot_dimension_numbers<[1], [0], [0], [1], [0, 0, 1, 1], [], []>} : vector<116x32xbf16>, vector<32x32xbf16>, vector<116x32xf32> -> vector<116x32xf32>
    %85 = arith.truncf %77 : vector<116x32xf32> to vector<116x32xbf16>
    %c1_51 = arith.constant 1 : index
    %c0_52 = arith.constant 0 : index
    %c0_53 = arith.constant 0 : index
    %86 = vector.load %arg7[%c1_51, %c0_52, %c0_53] : memref<5x32x32xbf16, #tpu.memory_space<vmem>>, vector<1x32x32xbf16>
    %87 = vector.shape_cast %86 : vector<1x32x32xbf16> to vector<32x32xbf16>
    %cst_54 = arith.constant dense<0.000000e+00> : vector<116x32xf32>
    %88 = tpu.matmul %85, %87, %cst_54 {dimension_numbers = #tpu.dot_dimension_numbers<[1], [0], [0], [1], [0, 0, 1, 1], [], []>} : vector<116x32xbf16>, vector<32x32xbf16>, vector<116x32xf32> -> vector<116x32xf32>
    %89 = arith.addf %84, %88 : vector<116x32xf32>
    %90 = arith.truncf %78 : vector<116x32xf32> to vector<116x32xbf16>
    %c2_55 = arith.constant 2 : index
    %c0_56 = arith.constant 0 : index
    %c0_57 = arith.constant 0 : index
    %91 = vector.load %arg7[%c2_55, %c0_56, %c0_57] : memref<5x32x32xbf16, #tpu.memory_space<vmem>>, vector<1x32x32xbf16>
    %92 = vector.shape_cast %91 : vector<1x32x32xbf16> to vector<32x32xbf16>
    %cst_58 = arith.constant dense<0.000000e+00> : vector<116x32xf32>
    %93 = tpu.matmul %90, %92, %cst_58 {dimension_numbers = #tpu.dot_dimension_numbers<[1], [0], [0], [1], [0, 0, 1, 1], [], []>} : vector<116x32xbf16>, vector<32x32xbf16>, vector<116x32xf32> -> vector<116x32xf32>
    %94 = arith.addf %89, %93 : vector<116x32xf32>
    %95 = arith.truncf %79 : vector<116x32xf32> to vector<116x32xbf16>
    %c3_59 = arith.constant 3 : index
    %c0_60 = arith.constant 0 : index
    %c0_61 = arith.constant 0 : index
    %96 = vector.load %arg7[%c3_59, %c0_60, %c0_61] : memref<5x32x32xbf16, #tpu.memory_space<vmem>>, vector<1x32x32xbf16>
    %97 = vector.shape_cast %96 : vector<1x32x32xbf16> to vector<32x32xbf16>
    %cst_62 = arith.constant dense<0.000000e+00> : vector<116x32xf32>
    %98 = tpu.matmul %95, %97, %cst_62 {dimension_numbers = #tpu.dot_dimension_numbers<[1], [0], [0], [1], [0, 0, 1, 1], [], []>} : vector<116x32xbf16>, vector<32x32xbf16>, vector<116x32xf32> -> vector<116x32xf32>
    %99 = arith.addf %94, %98 : vector<116x32xf32>
    %100 = arith.truncf %80 : vector<116x32xf32> to vector<116x32xbf16>
    %c4_63 = arith.constant 4 : index
    %c0_64 = arith.constant 0 : index
    %c0_65 = arith.constant 0 : index
    %101 = vector.load %arg7[%c4_63, %c0_64, %c0_65] : memref<5x32x32xbf16, #tpu.memory_space<vmem>>, vector<1x32x32xbf16>
    %102 = vector.shape_cast %101 : vector<1x32x32xbf16> to vector<32x32xbf16>
    %cst_66 = arith.constant dense<0.000000e+00> : vector<116x32xf32>
    %103 = tpu.matmul %100, %102, %cst_66 {dimension_numbers = #tpu.dot_dimension_numbers<[1], [0], [0], [1], [0, 0, 1, 1], [], []>} : vector<116x32xbf16>, vector<32x32xbf16>, vector<116x32xf32> -> vector<116x32xf32>
    %104 = arith.addf %99, %103 : vector<116x32xf32>
    %c0_67 = arith.constant 0 : index
    %c0_68 = arith.constant 0 : index
    %105 = vector.load %arg8[%c0_67, %c0_68] : memref<1x32xf32, #tpu.memory_space<vmem>>, vector<1x32xf32>
    %106 = vector.broadcast %105 : vector<1x32xf32> to vector<116x32xf32>
    %107 = arith.mulf %104, %106 : vector<116x32xf32>
    %c0_69 = arith.constant 0 : index
    %c0_70 = arith.constant 0 : index
    %108 = vector.load %arg9[%c0_69, %c0_70] : memref<1x32xf32, #tpu.memory_space<vmem>>, vector<1x32xf32>
    %109 = vector.broadcast %108 : vector<1x32xf32> to vector<116x32xf32>
    %110 = arith.addf %107, %109 : vector<116x32xf32>
    %cst_71 = arith.constant 0.000000e+00 : f32
    %111 = vector.broadcast %cst_71 : f32 to vector<116x32xf32>
    %112 = arith.maximumf %110, %111 : vector<116x32xf32>
    %c0_72 = arith.constant 0 : index
    %c0_73 = arith.constant 0 : index
    %113 = vector.load %arg33[%c0_72, %c0_73] : memref<120x128xf32, #tpu.memory_space<vmem>>, vector<116x32xf32>
    tpu.vector_store %arg33[%c0_72, %c0_73], %112 {strides = array<i32>} : memref<120x128xf32, #tpu.memory_space<vmem>>, vector<116x32xf32>,
    %c0_74 = arith.constant 0 : index
    %c0_75 = arith.constant 0 : index
    %114 = tpu.strided_load %arg33[%c0_74, %c0_75] {strides = array<i32: 2, 1>} : memref<120x128xf32, #tpu.memory_space<vmem>>, vector<56x32xf32>
    %c1_76 = arith.constant 1 : index
    %c0_77 = arith.constant 0 : index
    %115 = tpu.strided_load %arg33[%c1_76, %c0_77] {strides = array<i32: 2, 1>} : memref<120x128xf32, #tpu.memory_space<vmem>>, vector<56x32xf32>
    %c2_78 = arith.constant 2 : index
    %c0_79 = arith.constant 0 : index
    %116 = tpu.strided_load %arg33[%c2_78, %c0_79] {strides = array<i32: 2, 1>} : memref<120x128xf32, #tpu.memory_space<vmem>>, vector<56x32xf32>
    %c3_80 = arith.constant 3 : index
    %c0_81 = arith.constant 0 : index
    %117 = tpu.strided_load %arg33[%c3_80, %c0_81] {strides = array<i32: 2, 1>} : memref<120x128xf32, #tpu.memory_space<vmem>>, vector<56x32xf32>
    %c4_82 = arith.constant 4 : index
    %c0_83 = arith.constant 0 : index
    %118 = tpu.strided_load %arg33[%c4_82, %c0_83] {strides = array<i32: 2, 1>} : memref<120x128xf32, #tpu.memory_space<vmem>>, vector<56x32xf32>
    %119 = arith.truncf %114 : vector<56x32xf32> to vector<56x32xbf16>
    %c0_84 = arith.constant 0 : index
    %c0_85 = arith.constant 0 : index
    %c0_86 = arith.constant 0 : index
    %120 = vector.load %arg10[%c0_84, %c0_85, %c0_86] : memref<5x32x64xbf16, #tpu.memory_space<vmem>>, vector<1x32x64xbf16>
    %121 = vector.shape_cast %120 : vector<1x32x64xbf16> to vector<32x64xbf16>
    %cst_87 = arith.constant dense<0.000000e+00> : vector<56x64xf32>
    %122 = tpu.matmul %119, %121, %cst_87 {dimension_numbers = #tpu.dot_dimension_numbers<[1], [0], [0], [1], [0, 0, 1, 1], [], []>} : vector<56x32xbf16>, vector<32x64xbf16>, vector<56x64xf32> -> vector<56x64xf32>
    %123 = arith.truncf %115 : vector<56x32xf32> to vector<56x32xbf16>
    %c1_88 = arith.constant 1 : index
    %c0_89 = arith.constant 0 : index
    %c0_90 = arith.constant 0 : index
    %124 = vector.load %arg10[%c1_88, %c0_89, %c0_90] : memref<5x32x64xbf16, #tpu.memory_space<vmem>>, vector<1x32x64xbf16>
    %125 = vector.shape_cast %124 : vector<1x32x64xbf16> to vector<32x64xbf16>
    %cst_91 = arith.constant dense<0.000000e+00> : vector<56x64xf32>
    %126 = tpu.matmul %123, %125, %cst_91 {dimension_numbers = #tpu.dot_dimension_numbers<[1], [0], [0], [1], [0, 0, 1, 1], [], []>} : vector<56x32xbf16>, vector<32x64xbf16>, vector<56x64xf32> -> vector<56x64xf32>
    %127 = arith.addf %122, %126 : vector<56x64xf32>
    %128 = arith.truncf %116 : vector<56x32xf32> to vector<56x32xbf16>
    %c2_92 = arith.constant 2 : index
    %c0_93 = arith.constant 0 : index
    %c0_94 = arith.constant 0 : index
    %129 = vector.load %arg10[%c2_92, %c0_93, %c0_94] : memref<5x32x64xbf16, #tpu.memory_space<vmem>>, vector<1x32x64xbf16>
    %130 = vector.shape_cast %129 : vector<1x32x64xbf16> to vector<32x64xbf16>
    %cst_95 = arith.constant dense<0.000000e+00> : vector<56x64xf32>
    %131 = tpu.matmul %128, %130, %cst_95 {dimension_numbers = #tpu.dot_dimension_numbers<[1], [0], [0], [1], [0, 0, 1, 1], [], []>} : vector<56x32xbf16>, vector<32x64xbf16>, vector<56x64xf32> -> vector<56x64xf32>
    %132 = arith.addf %127, %131 : vector<56x64xf32>
    %133 = arith.truncf %117 : vector<56x32xf32> to vector<56x32xbf16>
    %c3_96 = arith.constant 3 : index
    %c0_97 = arith.constant 0 : index
    %c0_98 = arith.constant 0 : index
    %134 = vector.load %arg10[%c3_96, %c0_97, %c0_98] : memref<5x32x64xbf16, #tpu.memory_space<vmem>>, vector<1x32x64xbf16>
    %135 = vector.shape_cast %134 : vector<1x32x64xbf16> to vector<32x64xbf16>
    %cst_99 = arith.constant dense<0.000000e+00> : vector<56x64xf32>
    %136 = tpu.matmul %133, %135, %cst_99 {dimension_numbers = #tpu.dot_dimension_numbers<[1], [0], [0], [1], [0, 0, 1, 1], [], []>} : vector<56x32xbf16>, vector<32x64xbf16>, vector<56x64xf32> -> vector<56x64xf32>
    %137 = arith.addf %132, %136 : vector<56x64xf32>
    %138 = arith.truncf %118 : vector<56x32xf32> to vector<56x32xbf16>
    %c4_100 = arith.constant 4 : index
    %c0_101 = arith.constant 0 : index
    %c0_102 = arith.constant 0 : index
    %139 = vector.load %arg10[%c4_100, %c0_101, %c0_102] : memref<5x32x64xbf16, #tpu.memory_space<vmem>>, vector<1x32x64xbf16>
    %140 = vector.shape_cast %139 : vector<1x32x64xbf16> to vector<32x64xbf16>
    %cst_103 = arith.constant dense<0.000000e+00> : vector<56x64xf32>
    %141 = tpu.matmul %138, %140, %cst_103 {dimension_numbers = #tpu.dot_dimension_numbers<[1], [0], [0], [1], [0, 0, 1, 1], [], []>} : vector<56x32xbf16>, vector<32x64xbf16>, vector<56x64xf32> -> vector<56x64xf32>
    %142 = arith.addf %137, %141 : vector<56x64xf32>
    %c0_104 = arith.constant 0 : index
    %c0_105 = arith.constant 0 : index
    %143 = vector.load %arg11[%c0_104, %c0_105] : memref<1x64xf32, #tpu.memory_space<vmem>>, vector<1x64xf32>
    %144 = vector.broadcast %143 : vector<1x64xf32> to vector<56x64xf32>
    %145 = arith.mulf %142, %144 : vector<56x64xf32>
    %c0_106 = arith.constant 0 : index
    %c0_107 = arith.constant 0 : index
    %146 = vector.load %arg12[%c0_106, %c0_107] : memref<1x64xf32, #tpu.memory_space<vmem>>, vector<1x64xf32>
    %147 = vector.broadcast %146 : vector<1x64xf32> to vector<56x64xf32>
    %148 = arith.addf %145, %147 : vector<56x64xf32>
    %cst_108 = arith.constant 0.000000e+00 : f32
    %149 = vector.broadcast %cst_108 : f32 to vector<56x64xf32>
    %150 = arith.maximumf %148, %149 : vector<56x64xf32>
    %151 = vector.extract_strided_slice %150 {offsets = [0, 0], sizes = [52, 64], strides = [1, 1]} : vector<56x64xf32> to vector<52x64xf32>
    %152 = vector.extract_strided_slice %150 {offsets = [1, 0], sizes = [52, 64], strides = [1, 1]} : vector<56x64xf32> to vector<52x64xf32>
    %153 = vector.extract_strided_slice %150 {offsets = [2, 0], sizes = [52, 64], strides = [1, 1]} : vector<56x64xf32> to vector<52x64xf32>
    %154 = vector.extract_strided_slice %150 {offsets = [3, 0], sizes = [52, 64], strides = [1, 1]} : vector<56x64xf32> to vector<52x64xf32>
    %155 = vector.extract_strided_slice %150 {offsets = [4, 0], sizes = [52, 64], strides = [1, 1]} : vector<56x64xf32> to vector<52x64xf32>
    %156 = arith.truncf %151 : vector<52x64xf32> to vector<52x64xbf16>
    %c0_109 = arith.constant 0 : index
    %c0_110 = arith.constant 0 : index
    %c0_111 = arith.constant 0 : index
    %157 = vector.load %arg13[%c0_109, %c0_110, %c0_111] : memref<5x64x64xbf16, #tpu.memory_space<vmem>>, vector<1x64x64xbf16>
    %158 = vector.shape_cast %157 : vector<1x64x64xbf16> to vector<64x64xbf16>
    %cst_112 = arith.constant dense<0.000000e+00> : vector<52x64xf32>
    %159 = tpu.matmul %156, %158, %cst_112 {dimension_numbers = #tpu.dot_dimension_numbers<[1], [0], [0], [1], [0, 0, 1, 1], [], []>} : vector<52x64xbf16>, vector<64x64xbf16>, vector<52x64xf32> -> vector<52x64xf32>
    %160 = arith.truncf %152 : vector<52x64xf32> to vector<52x64xbf16>
    %c1_113 = arith.constant 1 : index
    %c0_114 = arith.constant 0 : index
    %c0_115 = arith.constant 0 : index
    %161 = vector.load %arg13[%c1_113, %c0_114, %c0_115] : memref<5x64x64xbf16, #tpu.memory_space<vmem>>, vector<1x64x64xbf16>
    %162 = vector.shape_cast %161 : vector<1x64x64xbf16> to vector<64x64xbf16>
    %cst_116 = arith.constant dense<0.000000e+00> : vector<52x64xf32>
    %163 = tpu.matmul %160, %162, %cst_116 {dimension_numbers = #tpu.dot_dimension_numbers<[1], [0], [0], [1], [0, 0, 1, 1], [], []>} : vector<52x64xbf16>, vector<64x64xbf16>, vector<52x64xf32> -> vector<52x64xf32>
    %164 = arith.addf %159, %163 : vector<52x64xf32>
    %165 = arith.truncf %153 : vector<52x64xf32> to vector<52x64xbf16>
    %c2_117 = arith.constant 2 : index
    %c0_118 = arith.constant 0 : index
    %c0_119 = arith.constant 0 : index
    %166 = vector.load %arg13[%c2_117, %c0_118, %c0_119] : memref<5x64x64xbf16, #tpu.memory_space<vmem>>, vector<1x64x64xbf16>
    %167 = vector.shape_cast %166 : vector<1x64x64xbf16> to vector<64x64xbf16>
    %cst_120 = arith.constant dense<0.000000e+00> : vector<52x64xf32>
    %168 = tpu.matmul %165, %167, %cst_120 {dimension_numbers = #tpu.dot_dimension_numbers<[1], [0], [0], [1], [0, 0, 1, 1], [], []>} : vector<52x64xbf16>, vector<64x64xbf16>, vector<52x64xf32> -> vector<52x64xf32>
    %169 = arith.addf %164, %168 : vector<52x64xf32>
    %170 = arith.truncf %154 : vector<52x64xf32> to vector<52x64xbf16>
    %c3_121 = arith.constant 3 : index
    %c0_122 = arith.constant 0 : index
    %c0_123 = arith.constant 0 : index
    %171 = vector.load %arg13[%c3_121, %c0_122, %c0_123] : memref<5x64x64xbf16, #tpu.memory_space<vmem>>, vector<1x64x64xbf16>
    %172 = vector.shape_cast %171 : vector<1x64x64xbf16> to vector<64x64xbf16>
    %cst_124 = arith.constant dense<0.000000e+00> : vector<52x64xf32>
    %173 = tpu.matmul %170, %172, %cst_124 {dimension_numbers = #tpu.dot_dimension_numbers<[1], [0], [0], [1], [0, 0, 1, 1], [], []>} : vector<52x64xbf16>, vector<64x64xbf16>, vector<52x64xf32> -> vector<52x64xf32>
    %174 = arith.addf %169, %173 : vector<52x64xf32>
    %175 = arith.truncf %155 : vector<52x64xf32> to vector<52x64xbf16>
    %c4_125 = arith.constant 4 : index
    %c0_126 = arith.constant 0 : index
    %c0_127 = arith.constant 0 : index
    %176 = vector.load %arg13[%c4_125, %c0_126, %c0_127] : memref<5x64x64xbf16, #tpu.memory_space<vmem>>, vector<1x64x64xbf16>
    %177 = vector.shape_cast %176 : vector<1x64x64xbf16> to vector<64x64xbf16>
    %cst_128 = arith.constant dense<0.000000e+00> : vector<52x64xf32>
    %178 = tpu.matmul %175, %177, %cst_128 {dimension_numbers = #tpu.dot_dimension_numbers<[1], [0], [0], [1], [0, 0, 1, 1], [], []>} : vector<52x64xbf16>, vector<64x64xbf16>, vector<52x64xf32> -> vector<52x64xf32>
    %179 = arith.addf %174, %178 : vector<52x64xf32>
    %c0_129 = arith.constant 0 : index
    %c0_130 = arith.constant 0 : index
    %180 = vector.load %arg14[%c0_129, %c0_130] : memref<1x64xf32, #tpu.memory_space<vmem>>, vector<1x64xf32>
    %181 = vector.broadcast %180 : vector<1x64xf32> to vector<52x64xf32>
    %182 = arith.mulf %179, %181 : vector<52x64xf32>
    %c0_131 = arith.constant 0 : index
    %c0_132 = arith.constant 0 : index
    %183 = vector.load %arg15[%c0_131, %c0_132] : memref<1x64xf32, #tpu.memory_space<vmem>>, vector<1x64xf32>
    %184 = vector.broadcast %183 : vector<1x64xf32> to vector<52x64xf32>
    %185 = arith.addf %182, %184 : vector<52x64xf32>
    %cst_133 = arith.constant 0.000000e+00 : f32
    %186 = vector.broadcast %cst_133 : f32 to vector<52x64xf32>
    %187 = arith.maximumf %185, %186 : vector<52x64xf32>
    %188 = vector.extract_strided_slice %187 {offsets = [0, 0], sizes = [48, 64], strides = [1, 1]} : vector<52x64xf32> to vector<48x64xf32>
    %189 = vector.extract_strided_slice %187 {offsets = [1, 0], sizes = [48, 64], strides = [1, 1]} : vector<52x64xf32> to vector<48x64xf32>
    %190 = vector.extract_strided_slice %187 {offsets = [2, 0], sizes = [48, 64], strides = [1, 1]} : vector<52x64xf32> to vector<48x64xf32>
    %191 = vector.extract_strided_slice %187 {offsets = [3, 0], sizes = [48, 64], strides = [1, 1]} : vector<52x64xf32> to vector<48x64xf32>
    %192 = vector.extract_strided_slice %187 {offsets = [4, 0], sizes = [48, 64], strides = [1, 1]} : vector<52x64xf32> to vector<48x64xf32>
    %193 = arith.truncf %188 : vector<48x64xf32> to vector<48x64xbf16>
    %c0_134 = arith.constant 0 : index
    %c0_135 = arith.constant 0 : index
    %c0_136 = arith.constant 0 : index
    %194 = vector.load %arg16[%c0_134, %c0_135, %c0_136] : memref<5x64x64xbf16, #tpu.memory_space<vmem>>, vector<1x64x64xbf16>
    %195 = vector.shape_cast %194 : vector<1x64x64xbf16> to vector<64x64xbf16>
    %cst_137 = arith.constant dense<0.000000e+00> : vector<48x64xf32>
    %196 = tpu.matmul %193, %195, %cst_137 {dimension_numbers = #tpu.dot_dimension_numbers<[1], [0], [0], [1], [0, 0, 1, 1], [], []>} : vector<48x64xbf16>, vector<64x64xbf16>, vector<48x64xf32> -> vector<48x64xf32>
    %197 = arith.truncf %189 : vector<48x64xf32> to vector<48x64xbf16>
    %c1_138 = arith.constant 1 : index
    %c0_139 = arith.constant 0 : index
    %c0_140 = arith.constant 0 : index
    %198 = vector.load %arg16[%c1_138, %c0_139, %c0_140] : memref<5x64x64xbf16, #tpu.memory_space<vmem>>, vector<1x64x64xbf16>
    %199 = vector.shape_cast %198 : vector<1x64x64xbf16> to vector<64x64xbf16>
    %cst_141 = arith.constant dense<0.000000e+00> : vector<48x64xf32>
    %200 = tpu.matmul %197, %199, %cst_141 {dimension_numbers = #tpu.dot_dimension_numbers<[1], [0], [0], [1], [0, 0, 1, 1], [], []>} : vector<48x64xbf16>, vector<64x64xbf16>, vector<48x64xf32> -> vector<48x64xf32>
    %201 = arith.addf %196, %200 : vector<48x64xf32>
    %202 = arith.truncf %190 : vector<48x64xf32> to vector<48x64xbf16>
    %c2_142 = arith.constant 2 : index
    %c0_143 = arith.constant 0 : index
    %c0_144 = arith.constant 0 : index
    %203 = vector.load %arg16[%c2_142, %c0_143, %c0_144] : memref<5x64x64xbf16, #tpu.memory_space<vmem>>, vector<1x64x64xbf16>
    %204 = vector.shape_cast %203 : vector<1x64x64xbf16> to vector<64x64xbf16>
    %cst_145 = arith.constant dense<0.000000e+00> : vector<48x64xf32>
    %205 = tpu.matmul %202, %204, %cst_145 {dimension_numbers = #tpu.dot_dimension_numbers<[1], [0], [0], [1], [0, 0, 1, 1], [], []>} : vector<48x64xbf16>, vector<64x64xbf16>, vector<48x64xf32> -> vector<48x64xf32>
    %206 = arith.addf %201, %205 : vector<48x64xf32>
    %207 = arith.truncf %191 : vector<48x64xf32> to vector<48x64xbf16>
    %c3_146 = arith.constant 3 : index
    %c0_147 = arith.constant 0 : index
    %c0_148 = arith.constant 0 : index
    %208 = vector.load %arg16[%c3_146, %c0_147, %c0_148] : memref<5x64x64xbf16, #tpu.memory_space<vmem>>, vector<1x64x64xbf16>
    %209 = vector.shape_cast %208 : vector<1x64x64xbf16> to vector<64x64xbf16>
    %cst_149 = arith.constant dense<0.000000e+00> : vector<48x64xf32>
    %210 = tpu.matmul %207, %209, %cst_149 {dimension_numbers = #tpu.dot_dimension_numbers<[1], [0], [0], [1], [0, 0, 1, 1], [], []>} : vector<48x64xbf16>, vector<64x64xbf16>, vector<48x64xf32> -> vector<48x64xf32>
    %211 = arith.addf %206, %210 : vector<48x64xf32>
    %212 = arith.truncf %192 : vector<48x64xf32> to vector<48x64xbf16>
    %c4_150 = arith.constant 4 : index
    %c0_151 = arith.constant 0 : index
    %c0_152 = arith.constant 0 : index
    %213 = vector.load %arg16[%c4_150, %c0_151, %c0_152] : memref<5x64x64xbf16, #tpu.memory_space<vmem>>, vector<1x64x64xbf16>
    %214 = vector.shape_cast %213 : vector<1x64x64xbf16> to vector<64x64xbf16>
    %cst_153 = arith.constant dense<0.000000e+00> : vector<48x64xf32>
    %215 = tpu.matmul %212, %214, %cst_153 {dimension_numbers = #tpu.dot_dimension_numbers<[1], [0], [0], [1], [0, 0, 1, 1], [], []>} : vector<48x64xbf16>, vector<64x64xbf16>, vector<48x64xf32> -> vector<48x64xf32>
    %216 = arith.addf %211, %215 : vector<48x64xf32>
    %c0_154 = arith.constant 0 : index
    %c0_155 = arith.constant 0 : index
    %217 = vector.load %arg17[%c0_154, %c0_155] : memref<1x64xf32, #tpu.memory_space<vmem>>, vector<1x64xf32>
    %218 = vector.broadcast %217 : vector<1x64xf32> to vector<48x64xf32>
    %219 = arith.mulf %216, %218 : vector<48x64xf32>
    %c0_156 = arith.constant 0 : index
    %c0_157 = arith.constant 0 : index
    %220 = vector.load %arg18[%c0_156, %c0_157] : memref<1x64xf32, #tpu.memory_space<vmem>>, vector<1x64xf32>
    %221 = vector.broadcast %220 : vector<1x64xf32> to vector<48x64xf32>
    %222 = arith.addf %219, %221 : vector<48x64xf32>
    %cst_158 = arith.constant 0.000000e+00 : f32
    %223 = vector.broadcast %cst_158 : f32 to vector<48x64xf32>
    %224 = arith.maximumf %222, %223 : vector<48x64xf32>
    %225 = vector.extract_strided_slice %224 {offsets = [0, 0], sizes = [44, 64], strides = [1, 1]} : vector<48x64xf32> to vector<44x64xf32>
    %226 = vector.extract_strided_slice %224 {offsets = [1, 0], sizes = [44, 64], strides = [1, 1]} : vector<48x64xf32> to vector<44x64xf32>
    %227 = vector.extract_strided_slice %224 {offsets = [2, 0], sizes = [44, 64], strides = [1, 1]} : vector<48x64xf32> to vector<44x64xf32>
    %228 = vector.extract_strided_slice %224 {offsets = [3, 0], sizes = [44, 64], strides = [1, 1]} : vector<48x64xf32> to vector<44x64xf32>
    %229 = vector.extract_strided_slice %224 {offsets = [4, 0], sizes = [44, 64], strides = [1, 1]} : vector<48x64xf32> to vector<44x64xf32>
    %230 = arith.truncf %225 : vector<44x64xf32> to vector<44x64xbf16>
    %c0_159 = arith.constant 0 : index
    %c0_160 = arith.constant 0 : index
    %c0_161 = arith.constant 0 : index
    %231 = vector.load %arg19[%c0_159, %c0_160, %c0_161] : memref<5x64x64xbf16, #tpu.memory_space<vmem>>, vector<1x64x64xbf16>
    %232 = vector.shape_cast %231 : vector<1x64x64xbf16> to vector<64x64xbf16>
    %cst_162 = arith.constant dense<0.000000e+00> : vector<44x64xf32>
    %233 = tpu.matmul %230, %232, %cst_162 {dimension_numbers = #tpu.dot_dimension_numbers<[1], [0], [0], [1], [0, 0, 1, 1], [], []>} : vector<44x64xbf16>, vector<64x64xbf16>, vector<44x64xf32> -> vector<44x64xf32>
    %234 = arith.truncf %226 : vector<44x64xf32> to vector<44x64xbf16>
    %c1_163 = arith.constant 1 : index
    %c0_164 = arith.constant 0 : index
    %c0_165 = arith.constant 0 : index
    %235 = vector.load %arg19[%c1_163, %c0_164, %c0_165] : memref<5x64x64xbf16, #tpu.memory_space<vmem>>, vector<1x64x64xbf16>
    %236 = vector.shape_cast %235 : vector<1x64x64xbf16> to vector<64x64xbf16>
    %cst_166 = arith.constant dense<0.000000e+00> : vector<44x64xf32>
    %237 = tpu.matmul %234, %236, %cst_166 {dimension_numbers = #tpu.dot_dimension_numbers<[1], [0], [0], [1], [0, 0, 1, 1], [], []>} : vector<44x64xbf16>, vector<64x64xbf16>, vector<44x64xf32> -> vector<44x64xf32>
    %238 = arith.addf %233, %237 : vector<44x64xf32>
    %239 = arith.truncf %227 : vector<44x64xf32> to vector<44x64xbf16>
    %c2_167 = arith.constant 2 : index
    %c0_168 = arith.constant 0 : index
    %c0_169 = arith.constant 0 : index
    %240 = vector.load %arg19[%c2_167, %c0_168, %c0_169] : memref<5x64x64xbf16, #tpu.memory_space<vmem>>, vector<1x64x64xbf16>
    %241 = vector.shape_cast %240 : vector<1x64x64xbf16> to vector<64x64xbf16>
    %cst_170 = arith.constant dense<0.000000e+00> : vector<44x64xf32>
    %242 = tpu.matmul %239, %241, %cst_170 {dimension_numbers = #tpu.dot_dimension_numbers<[1], [0], [0], [1], [0, 0, 1, 1], [], []>} : vector<44x64xbf16>, vector<64x64xbf16>, vector<44x64xf32> -> vector<44x64xf32>
    %243 = arith.addf %238, %242 : vector<44x64xf32>
    %244 = arith.truncf %228 : vector<44x64xf32> to vector<44x64xbf16>
    %c3_171 = arith.constant 3 : index
    %c0_172 = arith.constant 0 : index
    %c0_173 = arith.constant 0 : index
    %245 = vector.load %arg19[%c3_171, %c0_172, %c0_173] : memref<5x64x64xbf16, #tpu.memory_space<vmem>>, vector<1x64x64xbf16>
    %246 = vector.shape_cast %245 : vector<1x64x64xbf16> to vector<64x64xbf16>
    %cst_174 = arith.constant dense<0.000000e+00> : vector<44x64xf32>
    %247 = tpu.matmul %244, %246, %cst_174 {dimension_numbers = #tpu.dot_dimension_numbers<[1], [0], [0], [1], [0, 0, 1, 1], [], []>} : vector<44x64xbf16>, vector<64x64xbf16>, vector<44x64xf32> -> vector<44x64xf32>
    %248 = arith.addf %243, %247 : vector<44x64xf32>
    %249 = arith.truncf %229 : vector<44x64xf32> to vector<44x64xbf16>
    %c4_175 = arith.constant 4 : index
    %c0_176 = arith.constant 0 : index
    %c0_177 = arith.constant 0 : index
    %250 = vector.load %arg19[%c4_175, %c0_176, %c0_177] : memref<5x64x64xbf16, #tpu.memory_space<vmem>>, vector<1x64x64xbf16>
    %251 = vector.shape_cast %250 : vector<1x64x64xbf16> to vector<64x64xbf16>
    %cst_178 = arith.constant dense<0.000000e+00> : vector<44x64xf32>
    %252 = tpu.matmul %249, %251, %cst_178 {dimension_numbers = #tpu.dot_dimension_numbers<[1], [0], [0], [1], [0, 0, 1, 1], [], []>} : vector<44x64xbf16>, vector<64x64xbf16>, vector<44x64xf32> -> vector<44x64xf32>
    %253 = arith.addf %248, %252 : vector<44x64xf32>
    %c0_179 = arith.constant 0 : index
    %c0_180 = arith.constant 0 : index
    %254 = vector.load %arg20[%c0_179, %c0_180] : memref<1x64xf32, #tpu.memory_space<vmem>>, vector<1x64xf32>
    %255 = vector.broadcast %254 : vector<1x64xf32> to vector<44x64xf32>
    %256 = arith.mulf %253, %255 : vector<44x64xf32>
    %c0_181 = arith.constant 0 : index
    %c0_182 = arith.constant 0 : index
    %257 = vector.load %arg21[%c0_181, %c0_182] : memref<1x64xf32, #tpu.memory_space<vmem>>, vector<1x64xf32>
    %258 = vector.broadcast %257 : vector<1x64xf32> to vector<44x64xf32>
    %259 = arith.addf %256, %258 : vector<44x64xf32>
    %cst_183 = arith.constant 0.000000e+00 : f32
    %260 = vector.broadcast %cst_183 : f32 to vector<44x64xf32>
    %261 = arith.maximumf %259, %260 : vector<44x64xf32>
    %c0_184 = arith.constant 0 : index
    %c0_185 = arith.constant 0 : index
    %262 = vector.load %arg33[%c0_184, %c0_185] : memref<120x128xf32, #tpu.memory_space<vmem>>, vector<44x64xf32>
    tpu.vector_store %arg33[%c0_184, %c0_185], %261 {strides = array<i32>} : memref<120x128xf32, #tpu.memory_space<vmem>>, vector<44x64xf32>,
    %c0_186 = arith.constant 0 : index
    %c0_187 = arith.constant 0 : index
    %263 = tpu.strided_load %arg33[%c0_186, %c0_187] {strides = array<i32: 2, 1>} : memref<120x128xf32, #tpu.memory_space<vmem>>, vector<20x64xf32>
    %c1_188 = arith.constant 1 : index
    %c0_189 = arith.constant 0 : index
    %264 = tpu.strided_load %arg33[%c1_188, %c0_189] {strides = array<i32: 2, 1>} : memref<120x128xf32, #tpu.memory_space<vmem>>, vector<20x64xf32>
    %c2_190 = arith.constant 2 : index
    %c0_191 = arith.constant 0 : index
    %265 = tpu.strided_load %arg33[%c2_190, %c0_191] {strides = array<i32: 2, 1>} : memref<120x128xf32, #tpu.memory_space<vmem>>, vector<20x64xf32>
    %c3_192 = arith.constant 3 : index
    %c0_193 = arith.constant 0 : index
    %266 = tpu.strided_load %arg33[%c3_192, %c0_193] {strides = array<i32: 2, 1>} : memref<120x128xf32, #tpu.memory_space<vmem>>, vector<20x64xf32>
    %c4_194 = arith.constant 4 : index
    %c0_195 = arith.constant 0 : index
    %267 = tpu.strided_load %arg33[%c4_194, %c0_195] {strides = array<i32: 2, 1>} : memref<120x128xf32, #tpu.memory_space<vmem>>, vector<20x64xf32>
    %268 = arith.truncf %263 : vector<20x64xf32> to vector<20x64xbf16>
    %c0_196 = arith.constant 0 : index
    %c0_197 = arith.constant 0 : index
    %c0_198 = arith.constant 0 : index
    %269 = vector.load %arg22[%c0_196, %c0_197, %c0_198] : memref<5x64x128xbf16, #tpu.memory_space<vmem>>, vector<1x64x128xbf16>
    %270 = vector.shape_cast %269 : vector<1x64x128xbf16> to vector<64x128xbf16>
    %cst_199 = arith.constant dense<0.000000e+00> : vector<20x128xf32>
    %271 = tpu.matmul %268, %270, %cst_199 {dimension_numbers = #tpu.dot_dimension_numbers<[1], [0], [0], [1], [0, 0, 1, 1], [], []>} : vector<20x64xbf16>, vector<64x128xbf16>, vector<20x128xf32> -> vector<20x128xf32>
    %272 = arith.truncf %264 : vector<20x64xf32> to vector<20x64xbf16>
    %c1_200 = arith.constant 1 : index
    %c0_201 = arith.constant 0 : index
    %c0_202 = arith.constant 0 : index
    %273 = vector.load %arg22[%c1_200, %c0_201, %c0_202] : memref<5x64x128xbf16, #tpu.memory_space<vmem>>, vector<1x64x128xbf16>
    %274 = vector.shape_cast %273 : vector<1x64x128xbf16> to vector<64x128xbf16>
    %cst_203 = arith.constant dense<0.000000e+00> : vector<20x128xf32>
    %275 = tpu.matmul %272, %274, %cst_203 {dimension_numbers = #tpu.dot_dimension_numbers<[1], [0], [0], [1], [0, 0, 1, 1], [], []>} : vector<20x64xbf16>, vector<64x128xbf16>, vector<20x128xf32> -> vector<20x128xf32>
    %276 = arith.addf %271, %275 : vector<20x128xf32>
    %277 = arith.truncf %265 : vector<20x64xf32> to vector<20x64xbf16>
    %c2_204 = arith.constant 2 : index
    %c0_205 = arith.constant 0 : index
    %c0_206 = arith.constant 0 : index
    %278 = vector.load %arg22[%c2_204, %c0_205, %c0_206] : memref<5x64x128xbf16, #tpu.memory_space<vmem>>, vector<1x64x128xbf16>
    %279 = vector.shape_cast %278 : vector<1x64x128xbf16> to vector<64x128xbf16>
    %cst_207 = arith.constant dense<0.000000e+00> : vector<20x128xf32>
    %280 = tpu.matmul %277, %279, %cst_207 {dimension_numbers = #tpu.dot_dimension_numbers<[1], [0], [0], [1], [0, 0, 1, 1], [], []>} : vector<20x64xbf16>, vector<64x128xbf16>, vector<20x128xf32> -> vector<20x128xf32>
    %281 = arith.addf %276, %280 : vector<20x128xf32>
    %282 = arith.truncf %266 : vector<20x64xf32> to vector<20x64xbf16>
    %c3_208 = arith.constant 3 : index
    %c0_209 = arith.constant 0 : index
    %c0_210 = arith.constant 0 : index
    %283 = vector.load %arg22[%c3_208, %c0_209, %c0_210] : memref<5x64x128xbf16, #tpu.memory_space<vmem>>, vector<1x64x128xbf16>
    %284 = vector.shape_cast %283 : vector<1x64x128xbf16> to vector<64x128xbf16>
    %cst_211 = arith.constant dense<0.000000e+00> : vector<20x128xf32>
    %285 = tpu.matmul %282, %284, %cst_211 {dimension_numbers = #tpu.dot_dimension_numbers<[1], [0], [0], [1], [0, 0, 1, 1], [], []>} : vector<20x64xbf16>, vector<64x128xbf16>, vector<20x128xf32> -> vector<20x128xf32>
    %286 = arith.addf %281, %285 : vector<20x128xf32>
    %287 = arith.truncf %267 : vector<20x64xf32> to vector<20x64xbf16>
    %c4_212 = arith.constant 4 : index
    %c0_213 = arith.constant 0 : index
    %c0_214 = arith.constant 0 : index
    %288 = vector.load %arg22[%c4_212, %c0_213, %c0_214] : memref<5x64x128xbf16, #tpu.memory_space<vmem>>, vector<1x64x128xbf16>
    %289 = vector.shape_cast %288 : vector<1x64x128xbf16> to vector<64x128xbf16>
    %cst_215 = arith.constant dense<0.000000e+00> : vector<20x128xf32>
    %290 = tpu.matmul %287, %289, %cst_215 {dimension_numbers = #tpu.dot_dimension_numbers<[1], [0], [0], [1], [0, 0, 1, 1], [], []>} : vector<20x64xbf16>, vector<64x128xbf16>, vector<20x128xf32> -> vector<20x128xf32>
    %291 = arith.addf %286, %290 : vector<20x128xf32>
    %c0_216 = arith.constant 0 : index
    %c0_217 = arith.constant 0 : index
    %292 = vector.load %arg23[%c0_216, %c0_217] : memref<1x128xf32, #tpu.memory_space<vmem>>, vector<1x128xf32>
    %293 = vector.broadcast %292 : vector<1x128xf32> to vector<20x128xf32>
    %294 = arith.mulf %291, %293 : vector<20x128xf32>
    %c0_218 = arith.constant 0 : index
    %c0_219 = arith.constant 0 : index
    %295 = vector.load %arg24[%c0_218, %c0_219] : memref<1x128xf32, #tpu.memory_space<vmem>>, vector<1x128xf32>
    %296 = vector.broadcast %295 : vector<1x128xf32> to vector<20x128xf32>
    %297 = arith.addf %294, %296 : vector<20x128xf32>
    %cst_220 = arith.constant 0.000000e+00 : f32
    %298 = vector.broadcast %cst_220 : f32 to vector<20x128xf32>
    %299 = arith.maximumf %297, %298 : vector<20x128xf32>
    %300 = vector.extract_strided_slice %299 {offsets = [0, 0], sizes = [16, 128], strides = [1, 1]} : vector<20x128xf32> to vector<16x128xf32>
    %301 = vector.extract_strided_slice %299 {offsets = [1, 0], sizes = [16, 128], strides = [1, 1]} : vector<20x128xf32> to vector<16x128xf32>
    %302 = vector.extract_strided_slice %299 {offsets = [2, 0], sizes = [16, 128], strides = [1, 1]} : vector<20x128xf32> to vector<16x128xf32>
    %303 = vector.extract_strided_slice %299 {offsets = [3, 0], sizes = [16, 128], strides = [1, 1]} : vector<20x128xf32> to vector<16x128xf32>
    %304 = vector.extract_strided_slice %299 {offsets = [4, 0], sizes = [16, 128], strides = [1, 1]} : vector<20x128xf32> to vector<16x128xf32>
    %305 = arith.truncf %300 : vector<16x128xf32> to vector<16x128xbf16>
    %c0_221 = arith.constant 0 : index
    %c0_222 = arith.constant 0 : index
    %c0_223 = arith.constant 0 : index
    %306 = vector.load %arg25[%c0_221, %c0_222, %c0_223] : memref<5x128x128xbf16, #tpu.memory_space<vmem>>, vector<1x128x128xbf16>
    %307 = vector.shape_cast %306 : vector<1x128x128xbf16> to vector<128x128xbf16>
    %cst_224 = arith.constant dense<0.000000e+00> : vector<16x128xf32>
    %308 = tpu.matmul %305, %307, %cst_224 {dimension_numbers = #tpu.dot_dimension_numbers<[1], [0], [0], [1], [0, 0, 1, 1], [], []>} : vector<16x128xbf16>, vector<128x128xbf16>, vector<16x128xf32> -> vector<16x128xf32>
    %309 = arith.truncf %301 : vector<16x128xf32> to vector<16x128xbf16>
    %c1_225 = arith.constant 1 : index
    %c0_226 = arith.constant 0 : index
    %c0_227 = arith.constant 0 : index
    %310 = vector.load %arg25[%c1_225, %c0_226, %c0_227] : memref<5x128x128xbf16, #tpu.memory_space<vmem>>, vector<1x128x128xbf16>
    %311 = vector.shape_cast %310 : vector<1x128x128xbf16> to vector<128x128xbf16>
    %cst_228 = arith.constant dense<0.000000e+00> : vector<16x128xf32>
    %312 = tpu.matmul %309, %311, %cst_228 {dimension_numbers = #tpu.dot_dimension_numbers<[1], [0], [0], [1], [0, 0, 1, 1], [], []>} : vector<16x128xbf16>, vector<128x128xbf16>, vector<16x128xf32> -> vector<16x128xf32>
    %313 = arith.addf %308, %312 : vector<16x128xf32>
    %314 = arith.truncf %302 : vector<16x128xf32> to vector<16x128xbf16>
    %c2_229 = arith.constant 2 : index
    %c0_230 = arith.constant 0 : index
    %c0_231 = arith.constant 0 : index
    %315 = vector.load %arg25[%c2_229, %c0_230, %c0_231] : memref<5x128x128xbf16, #tpu.memory_space<vmem>>, vector<1x128x128xbf16>
    %316 = vector.shape_cast %315 : vector<1x128x128xbf16> to vector<128x128xbf16>
    %cst_232 = arith.constant dense<0.000000e+00> : vector<16x128xf32>
    %317 = tpu.matmul %314, %316, %cst_232 {dimension_numbers = #tpu.dot_dimension_numbers<[1], [0], [0], [1], [0, 0, 1, 1], [], []>} : vector<16x128xbf16>, vector<128x128xbf16>, vector<16x128xf32> -> vector<16x128xf32>
    %318 = arith.addf %313, %317 : vector<16x128xf32>
    %319 = arith.truncf %303 : vector<16x128xf32> to vector<16x128xbf16>
    %c3_233 = arith.constant 3 : index
    %c0_234 = arith.constant 0 : index
    %c0_235 = arith.constant 0 : index
    %320 = vector.load %arg25[%c3_233, %c0_234, %c0_235] : memref<5x128x128xbf16, #tpu.memory_space<vmem>>, vector<1x128x128xbf16>
    %321 = vector.shape_cast %320 : vector<1x128x128xbf16> to vector<128x128xbf16>
    %cst_236 = arith.constant dense<0.000000e+00> : vector<16x128xf32>
    %322 = tpu.matmul %319, %321, %cst_236 {dimension_numbers = #tpu.dot_dimension_numbers<[1], [0], [0], [1], [0, 0, 1, 1], [], []>} : vector<16x128xbf16>, vector<128x128xbf16>, vector<16x128xf32> -> vector<16x128xf32>
    %323 = arith.addf %318, %322 : vector<16x128xf32>
    %324 = arith.truncf %304 : vector<16x128xf32> to vector<16x128xbf16>
    %c4_237 = arith.constant 4 : index
    %c0_238 = arith.constant 0 : index
    %c0_239 = arith.constant 0 : index
    %325 = vector.load %arg25[%c4_237, %c0_238, %c0_239] : memref<5x128x128xbf16, #tpu.memory_space<vmem>>, vector<1x128x128xbf16>
    %326 = vector.shape_cast %325 : vector<1x128x128xbf16> to vector<128x128xbf16>
    %cst_240 = arith.constant dense<0.000000e+00> : vector<16x128xf32>
    %327 = tpu.matmul %324, %326, %cst_240 {dimension_numbers = #tpu.dot_dimension_numbers<[1], [0], [0], [1], [0, 0, 1, 1], [], []>} : vector<16x128xbf16>, vector<128x128xbf16>, vector<16x128xf32> -> vector<16x128xf32>
    %328 = arith.addf %323, %327 : vector<16x128xf32>
    %c0_241 = arith.constant 0 : index
    %c0_242 = arith.constant 0 : index
    %329 = vector.load %arg26[%c0_241, %c0_242] : memref<1x128xf32, #tpu.memory_space<vmem>>, vector<1x128xf32>
    %330 = vector.broadcast %329 : vector<1x128xf32> to vector<16x128xf32>
    %331 = arith.mulf %328, %330 : vector<16x128xf32>
    %c0_243 = arith.constant 0 : index
    %c0_244 = arith.constant 0 : index
    %332 = vector.load %arg27[%c0_243, %c0_244] : memref<1x128xf32, #tpu.memory_space<vmem>>, vector<1x128xf32>
    %333 = vector.broadcast %332 : vector<1x128xf32> to vector<16x128xf32>
    %334 = arith.addf %331, %333 : vector<16x128xf32>
    %cst_245 = arith.constant 0.000000e+00 : f32
    %335 = vector.broadcast %cst_245 : f32 to vector<16x128xf32>
    %336 = arith.maximumf %334, %335 : vector<16x128xf32>
    %cst_246 = arith.constant dense<0.000000e+00> : vector<128xf32>
    %337 = vector.multi_reduction <add>, %336, %cst_246 [0] : vector<16x128xf32> to vector<128xf32>
    %338 = vector.shape_cast %337 : vector<128xf32> to vector<1x128xf32>
    %cst_247 = arith.constant 1.600000e+01 : f32
    %339 = vector.broadcast %cst_247 : f32 to vector<1x128xf32>
    %340 = arith.divf %338, %339 : vector<1x128xf32>
    %c1_248 = arith.constant 1 : index
    %c0_249 = arith.constant 0 : index
    %c0_250 = arith.constant 0 : index
    %341 = vector.load %arg0[%c1_248, %c0_249, %c0_250] : memref<2x128x12xf32, #tpu.memory_space<vmem>>, vector<1x128x12xf32>
    %342 = vector.shape_cast %341 : vector<1x128x12xf32> to vector<128x12xf32>
    %343 = vector.extract_strided_slice %342 {offsets = [0, 0], sizes = [124, 12], strides = [1, 1]} : vector<128x12xf32> to vector<124x12xf32>
    %344 = vector.extract_strided_slice %342 {offsets = [1, 0], sizes = [124, 12], strides = [1, 1]} : vector<128x12xf32> to vector<124x12xf32>
    %345 = vector.extract_strided_slice %342 {offsets = [2, 0], sizes = [124, 12], strides = [1, 1]} : vector<128x12xf32> to vector<124x12xf32>
    %346 = vector.extract_strided_slice %342 {offsets = [3, 0], sizes = [124, 12], strides = [1, 1]} : vector<128x12xf32> to vector<124x12xf32>
    %347 = vector.extract_strided_slice %342 {offsets = [4, 0], sizes = [124, 12], strides = [1, 1]} : vector<128x12xf32> to vector<124x12xf32>
    %348 = arith.truncf %343 : vector<124x12xf32> to vector<124x12xbf16>
    %c0_251 = arith.constant 0 : index
    %c0_252 = arith.constant 0 : index
    %c0_253 = arith.constant 0 : index
    %349 = vector.load %arg1[%c0_251, %c0_252, %c0_253] : memref<5x12x32xbf16, #tpu.memory_space<vmem>>, vector<1x12x32xbf16>
    %350 = vector.shape_cast %349 : vector<1x12x32xbf16> to vector<12x32xbf16>
    %cst_254 = arith.constant dense<0.000000e+00> : vector<124x32xf32>
    %351 = tpu.matmul %348, %350, %cst_254 {dimension_numbers = #tpu.dot_dimension_numbers<[1], [0], [0], [1], [0, 0, 1, 1], [], []>} : vector<124x12xbf16>, vector<12x32xbf16>, vector<124x32xf32> -> vector<124x32xf32>
    %352 = arith.truncf %344 : vector<124x12xf32> to vector<124x12xbf16>
    %c1_255 = arith.constant 1 : index
    %c0_256 = arith.constant 0 : index
    %c0_257 = arith.constant 0 : index
    %353 = vector.load %arg1[%c1_255, %c0_256, %c0_257] : memref<5x12x32xbf16, #tpu.memory_space<vmem>>, vector<1x12x32xbf16>
    %354 = vector.shape_cast %353 : vector<1x12x32xbf16> to vector<12x32xbf16>
    %cst_258 = arith.constant dense<0.000000e+00> : vector<124x32xf32>
    %355 = tpu.matmul %352, %354, %cst_258 {dimension_numbers = #tpu.dot_dimension_numbers<[1], [0], [0], [1], [0, 0, 1, 1], [], []>} : vector<124x12xbf16>, vector<12x32xbf16>, vector<124x32xf32> -> vector<124x32xf32>
    %356 = arith.addf %351, %355 : vector<124x32xf32>
    %357 = arith.truncf %345 : vector<124x12xf32> to vector<124x12xbf16>
    %c2_259 = arith.constant 2 : index
    %c0_260 = arith.constant 0 : index
    %c0_261 = arith.constant 0 : index
    %358 = vector.load %arg1[%c2_259, %c0_260, %c0_261] : memref<5x12x32xbf16, #tpu.memory_space<vmem>>, vector<1x12x32xbf16>
    %359 = vector.shape_cast %358 : vector<1x12x32xbf16> to vector<12x32xbf16>
    %cst_262 = arith.constant dense<0.000000e+00> : vector<124x32xf32>
    %360 = tpu.matmul %357, %359, %cst_262 {dimension_numbers = #tpu.dot_dimension_numbers<[1], [0], [0], [1], [0, 0, 1, 1], [], []>} : vector<124x12xbf16>, vector<12x32xbf16>, vector<124x32xf32> -> vector<124x32xf32>
    %361 = arith.addf %356, %360 : vector<124x32xf32>
    %362 = arith.truncf %346 : vector<124x12xf32> to vector<124x12xbf16>
    %c3_263 = arith.constant 3 : index
    %c0_264 = arith.constant 0 : index
    %c0_265 = arith.constant 0 : index
    %363 = vector.load %arg1[%c3_263, %c0_264, %c0_265] : memref<5x12x32xbf16, #tpu.memory_space<vmem>>, vector<1x12x32xbf16>
    %364 = vector.shape_cast %363 : vector<1x12x32xbf16> to vector<12x32xbf16>
    %cst_266 = arith.constant dense<0.000000e+00> : vector<124x32xf32>
    %365 = tpu.matmul %362, %364, %cst_266 {dimension_numbers = #tpu.dot_dimension_numbers<[1], [0], [0], [1], [0, 0, 1, 1], [], []>} : vector<124x12xbf16>, vector<12x32xbf16>, vector<124x32xf32> -> vector<124x32xf32>
    %366 = arith.addf %361, %365 : vector<124x32xf32>
    %367 = arith.truncf %347 : vector<124x12xf32> to vector<124x12xbf16>
    %c4_267 = arith.constant 4 : index
    %c0_268 = arith.constant 0 : index
    %c0_269 = arith.constant 0 : index
    %368 = vector.load %arg1[%c4_267, %c0_268, %c0_269] : memref<5x12x32xbf16, #tpu.memory_space<vmem>>, vector<1x12x32xbf16>
    %369 = vector.shape_cast %368 : vector<1x12x32xbf16> to vector<12x32xbf16>
    %cst_270 = arith.constant dense<0.000000e+00> : vector<124x32xf32>
    %370 = tpu.matmul %367, %369, %cst_270 {dimension_numbers = #tpu.dot_dimension_numbers<[1], [0], [0], [1], [0, 0, 1, 1], [], []>} : vector<124x12xbf16>, vector<12x32xbf16>, vector<124x32xf32> -> vector<124x32xf32>
    %371 = arith.addf %366, %370 : vector<124x32xf32>
    %c0_271 = arith.constant 0 : index
    %c0_272 = arith.constant 0 : index
    %372 = vector.load %arg2[%c0_271, %c0_272] : memref<1x32xf32, #tpu.memory_space<vmem>>, vector<1x32xf32>
    %373 = vector.broadcast %372 : vector<1x32xf32> to vector<124x32xf32>
    %374 = arith.mulf %371, %373 : vector<124x32xf32>
    %c0_273 = arith.constant 0 : index
    %c0_274 = arith.constant 0 : index
    %375 = vector.load %arg3[%c0_273, %c0_274] : memref<1x32xf32, #tpu.memory_space<vmem>>, vector<1x32xf32>
    %376 = vector.broadcast %375 : vector<1x32xf32> to vector<124x32xf32>
    %377 = arith.addf %374, %376 : vector<124x32xf32>
    %cst_275 = arith.constant 0.000000e+00 : f32
    %378 = vector.broadcast %cst_275 : f32 to vector<124x32xf32>
    %379 = arith.maximumf %377, %378 : vector<124x32xf32>
    %380 = vector.extract_strided_slice %379 {offsets = [0, 0], sizes = [120, 32], strides = [1, 1]} : vector<124x32xf32> to vector<120x32xf32>
    %381 = vector.extract_strided_slice %379 {offsets = [1, 0], sizes = [120, 32], strides = [1, 1]} : vector<124x32xf32> to vector<120x32xf32>
    %382 = vector.extract_strided_slice %379 {offsets = [2, 0], sizes = [120, 32], strides = [1, 1]} : vector<124x32xf32> to vector<120x32xf32>
    %383 = vector.extract_strided_slice %379 {offsets = [3, 0], sizes = [120, 32], strides = [1, 1]} : vector<124x32xf32> to vector<120x32xf32>
    %384 = vector.extract_strided_slice %379 {offsets = [4, 0], sizes = [120, 32], strides = [1, 1]} : vector<124x32xf32> to vector<120x32xf32>
    %385 = arith.truncf %380 : vector<120x32xf32> to vector<120x32xbf16>
    %c0_276 = arith.constant 0 : index
    %c0_277 = arith.constant 0 : index
    %c0_278 = arith.constant 0 : index
    %386 = vector.load %arg4[%c0_276, %c0_277, %c0_278] : memref<5x32x32xbf16, #tpu.memory_space<vmem>>, vector<1x32x32xbf16>
    %387 = vector.shape_cast %386 : vector<1x32x32xbf16> to vector<32x32xbf16>
    %cst_279 = arith.constant dense<0.000000e+00> : vector<120x32xf32>
    %388 = tpu.matmul %385, %387, %cst_279 {dimension_numbers = #tpu.dot_dimension_numbers<[1], [0], [0], [1], [0, 0, 1, 1], [], []>} : vector<120x32xbf16>, vector<32x32xbf16>, vector<120x32xf32> -> vector<120x32xf32>
    %389 = arith.truncf %381 : vector<120x32xf32> to vector<120x32xbf16>
    %c1_280 = arith.constant 1 : index
    %c0_281 = arith.constant 0 : index
    %c0_282 = arith.constant 0 : index
    %390 = vector.load %arg4[%c1_280, %c0_281, %c0_282] : memref<5x32x32xbf16, #tpu.memory_space<vmem>>, vector<1x32x32xbf16>
    %391 = vector.shape_cast %390 : vector<1x32x32xbf16> to vector<32x32xbf16>
    %cst_283 = arith.constant dense<0.000000e+00> : vector<120x32xf32>
    %392 = tpu.matmul %389, %391, %cst_283 {dimension_numbers = #tpu.dot_dimension_numbers<[1], [0], [0], [1], [0, 0, 1, 1], [], []>} : vector<120x32xbf16>, vector<32x32xbf16>, vector<120x32xf32> -> vector<120x32xf32>
    %393 = arith.addf %388, %392 : vector<120x32xf32>
    %394 = arith.truncf %382 : vector<120x32xf32> to vector<120x32xbf16>
    %c2_284 = arith.constant 2 : index
    %c0_285 = arith.constant 0 : index
    %c0_286 = arith.constant 0 : index
    %395 = vector.load %arg4[%c2_284, %c0_285, %c0_286] : memref<5x32x32xbf16, #tpu.memory_space<vmem>>, vector<1x32x32xbf16>
    %396 = vector.shape_cast %395 : vector<1x32x32xbf16> to vector<32x32xbf16>
    %cst_287 = arith.constant dense<0.000000e+00> : vector<120x32xf32>
    %397 = tpu.matmul %394, %396, %cst_287 {dimension_numbers = #tpu.dot_dimension_numbers<[1], [0], [0], [1], [0, 0, 1, 1], [], []>} : vector<120x32xbf16>, vector<32x32xbf16>, vector<120x32xf32> -> vector<120x32xf32>
    %398 = arith.addf %393, %397 : vector<120x32xf32>
    %399 = arith.truncf %383 : vector<120x32xf32> to vector<120x32xbf16>
    %c3_288 = arith.constant 3 : index
    %c0_289 = arith.constant 0 : index
    %c0_290 = arith.constant 0 : index
    %400 = vector.load %arg4[%c3_288, %c0_289, %c0_290] : memref<5x32x32xbf16, #tpu.memory_space<vmem>>, vector<1x32x32xbf16>
    %401 = vector.shape_cast %400 : vector<1x32x32xbf16> to vector<32x32xbf16>
    %cst_291 = arith.constant dense<0.000000e+00> : vector<120x32xf32>
    %402 = tpu.matmul %399, %401, %cst_291 {dimension_numbers = #tpu.dot_dimension_numbers<[1], [0], [0], [1], [0, 0, 1, 1], [], []>} : vector<120x32xbf16>, vector<32x32xbf16>, vector<120x32xf32> -> vector<120x32xf32>
    %403 = arith.addf %398, %402 : vector<120x32xf32>
    %404 = arith.truncf %384 : vector<120x32xf32> to vector<120x32xbf16>
    %c4_292 = arith.constant 4 : index
    %c0_293 = arith.constant 0 : index
    %c0_294 = arith.constant 0 : index
    %405 = vector.load %arg4[%c4_292, %c0_293, %c0_294] : memref<5x32x32xbf16, #tpu.memory_space<vmem>>, vector<1x32x32xbf16>
    %406 = vector.shape_cast %405 : vector<1x32x32xbf16> to vector<32x32xbf16>
    %cst_295 = arith.constant dense<0.000000e+00> : vector<120x32xf32>
    %407 = tpu.matmul %404, %406, %cst_295 {dimension_numbers = #tpu.dot_dimension_numbers<[1], [0], [0], [1], [0, 0, 1, 1], [], []>} : vector<120x32xbf16>, vector<32x32xbf16>, vector<120x32xf32> -> vector<120x32xf32>
    %408 = arith.addf %403, %407 : vector<120x32xf32>
    %c0_296 = arith.constant 0 : index
    %c0_297 = arith.constant 0 : index
    %409 = vector.load %arg5[%c0_296, %c0_297] : memref<1x32xf32, #tpu.memory_space<vmem>>, vector<1x32xf32>
    %410 = vector.broadcast %409 : vector<1x32xf32> to vector<120x32xf32>
    %411 = arith.mulf %408, %410 : vector<120x32xf32>
    %c0_298 = arith.constant 0 : index
    %c0_299 = arith.constant 0 : index
    %412 = vector.load %arg6[%c0_298, %c0_299] : memref<1x32xf32, #tpu.memory_space<vmem>>, vector<1x32xf32>
    %413 = vector.broadcast %412 : vector<1x32xf32> to vector<120x32xf32>
    %414 = arith.addf %411, %413 : vector<120x32xf32>
    %cst_300 = arith.constant 0.000000e+00 : f32
    %415 = vector.broadcast %cst_300 : f32 to vector<120x32xf32>
    %416 = arith.maximumf %414, %415 : vector<120x32xf32>
    %417 = vector.extract_strided_slice %416 {offsets = [0, 0], sizes = [116, 32], strides = [1, 1]} : vector<120x32xf32> to vector<116x32xf32>
    %418 = vector.extract_strided_slice %416 {offsets = [1, 0], sizes = [116, 32], strides = [1, 1]} : vector<120x32xf32> to vector<116x32xf32>
    %419 = vector.extract_strided_slice %416 {offsets = [2, 0], sizes = [116, 32], strides = [1, 1]} : vector<120x32xf32> to vector<116x32xf32>
    %420 = vector.extract_strided_slice %416 {offsets = [3, 0], sizes = [116, 32], strides = [1, 1]} : vector<120x32xf32> to vector<116x32xf32>
    %421 = vector.extract_strided_slice %416 {offsets = [4, 0], sizes = [116, 32], strides = [1, 1]} : vector<120x32xf32> to vector<116x32xf32>
    %422 = arith.truncf %417 : vector<116x32xf32> to vector<116x32xbf16>
    %c0_301 = arith.constant 0 : index
    %c0_302 = arith.constant 0 : index
    %c0_303 = arith.constant 0 : index
    %423 = vector.load %arg7[%c0_301, %c0_302, %c0_303] : memref<5x32x32xbf16, #tpu.memory_space<vmem>>, vector<1x32x32xbf16>
    %424 = vector.shape_cast %423 : vector<1x32x32xbf16> to vector<32x32xbf16>
    %cst_304 = arith.constant dense<0.000000e+00> : vector<116x32xf32>
    %425 = tpu.matmul %422, %424, %cst_304 {dimension_numbers = #tpu.dot_dimension_numbers<[1], [0], [0], [1], [0, 0, 1, 1], [], []>} : vector<116x32xbf16>, vector<32x32xbf16>, vector<116x32xf32> -> vector<116x32xf32>
    %426 = arith.truncf %418 : vector<116x32xf32> to vector<116x32xbf16>
    %c1_305 = arith.constant 1 : index
    %c0_306 = arith.constant 0 : index
    %c0_307 = arith.constant 0 : index
    %427 = vector.load %arg7[%c1_305, %c0_306, %c0_307] : memref<5x32x32xbf16, #tpu.memory_space<vmem>>, vector<1x32x32xbf16>
    %428 = vector.shape_cast %427 : vector<1x32x32xbf16> to vector<32x32xbf16>
    %cst_308 = arith.constant dense<0.000000e+00> : vector<116x32xf32>
    %429 = tpu.matmul %426, %428, %cst_308 {dimension_numbers = #tpu.dot_dimension_numbers<[1], [0], [0], [1], [0, 0, 1, 1], [], []>} : vector<116x32xbf16>, vector<32x32xbf16>, vector<116x32xf32> -> vector<116x32xf32>
    %430 = arith.addf %425, %429 : vector<116x32xf32>
    %431 = arith.truncf %419 : vector<116x32xf32> to vector<116x32xbf16>
    %c2_309 = arith.constant 2 : index
    %c0_310 = arith.constant 0 : index
    %c0_311 = arith.constant 0 : index
    %432 = vector.load %arg7[%c2_309, %c0_310, %c0_311] : memref<5x32x32xbf16, #tpu.memory_space<vmem>>, vector<1x32x32xbf16>
    %433 = vector.shape_cast %432 : vector<1x32x32xbf16> to vector<32x32xbf16>
    %cst_312 = arith.constant dense<0.000000e+00> : vector<116x32xf32>
    %434 = tpu.matmul %431, %433, %cst_312 {dimension_numbers = #tpu.dot_dimension_numbers<[1], [0], [0], [1], [0, 0, 1, 1], [], []>} : vector<116x32xbf16>, vector<32x32xbf16>, vector<116x32xf32> -> vector<116x32xf32>
    %435 = arith.addf %430, %434 : vector<116x32xf32>
    %436 = arith.truncf %420 : vector<116x32xf32> to vector<116x32xbf16>
    %c3_313 = arith.constant 3 : index
    %c0_314 = arith.constant 0 : index
    %c0_315 = arith.constant 0 : index
    %437 = vector.load %arg7[%c3_313, %c0_314, %c0_315] : memref<5x32x32xbf16, #tpu.memory_space<vmem>>, vector<1x32x32xbf16>
    %438 = vector.shape_cast %437 : vector<1x32x32xbf16> to vector<32x32xbf16>
    %cst_316 = arith.constant dense<0.000000e+00> : vector<116x32xf32>
    %439 = tpu.matmul %436, %438, %cst_316 {dimension_numbers = #tpu.dot_dimension_numbers<[1], [0], [0], [1], [0, 0, 1, 1], [], []>} : vector<116x32xbf16>, vector<32x32xbf16>, vector<116x32xf32> -> vector<116x32xf32>
    %440 = arith.addf %435, %439 : vector<116x32xf32>
    %441 = arith.truncf %421 : vector<116x32xf32> to vector<116x32xbf16>
    %c4_317 = arith.constant 4 : index
    %c0_318 = arith.constant 0 : index
    %c0_319 = arith.constant 0 : index
    %442 = vector.load %arg7[%c4_317, %c0_318, %c0_319] : memref<5x32x32xbf16, #tpu.memory_space<vmem>>, vector<1x32x32xbf16>
    %443 = vector.shape_cast %442 : vector<1x32x32xbf16> to vector<32x32xbf16>
    %cst_320 = arith.constant dense<0.000000e+00> : vector<116x32xf32>
    %444 = tpu.matmul %441, %443, %cst_320 {dimension_numbers = #tpu.dot_dimension_numbers<[1], [0], [0], [1], [0, 0, 1, 1], [], []>} : vector<116x32xbf16>, vector<32x32xbf16>, vector<116x32xf32> -> vector<116x32xf32>
    %445 = arith.addf %440, %444 : vector<116x32xf32>
    %c0_321 = arith.constant 0 : index
    %c0_322 = arith.constant 0 : index
    %446 = vector.load %arg8[%c0_321, %c0_322] : memref<1x32xf32, #tpu.memory_space<vmem>>, vector<1x32xf32>
    %447 = vector.broadcast %446 : vector<1x32xf32> to vector<116x32xf32>
    %448 = arith.mulf %445, %447 : vector<116x32xf32>
    %c0_323 = arith.constant 0 : index
    %c0_324 = arith.constant 0 : index
    %449 = vector.load %arg9[%c0_323, %c0_324] : memref<1x32xf32, #tpu.memory_space<vmem>>, vector<1x32xf32>
    %450 = vector.broadcast %449 : vector<1x32xf32> to vector<116x32xf32>
    %451 = arith.addf %448, %450 : vector<116x32xf32>
    %cst_325 = arith.constant 0.000000e+00 : f32
    %452 = vector.broadcast %cst_325 : f32 to vector<116x32xf32>
    %453 = arith.maximumf %451, %452 : vector<116x32xf32>
    %c0_326 = arith.constant 0 : index
    %c0_327 = arith.constant 0 : index
    %454 = vector.load %arg33[%c0_326, %c0_327] : memref<120x128xf32, #tpu.memory_space<vmem>>, vector<116x32xf32>
    tpu.vector_store %arg33[%c0_326, %c0_327], %453 {strides = array<i32>} : memref<120x128xf32, #tpu.memory_space<vmem>>, vector<116x32xf32>,
    %c0_328 = arith.constant 0 : index
    %c0_329 = arith.constant 0 : index
    %455 = tpu.strided_load %arg33[%c0_328, %c0_329] {strides = array<i32: 2, 1>} : memref<120x128xf32, #tpu.memory_space<vmem>>, vector<56x32xf32>
    %c1_330 = arith.constant 1 : index
    %c0_331 = arith.constant 0 : index
    %456 = tpu.strided_load %arg33[%c1_330, %c0_331] {strides = array<i32: 2, 1>} : memref<120x128xf32, #tpu.memory_space<vmem>>, vector<56x32xf32>
    %c2_332 = arith.constant 2 : index
    %c0_333 = arith.constant 0 : index
    %457 = tpu.strided_load %arg33[%c2_332, %c0_333] {strides = array<i32: 2, 1>} : memref<120x128xf32, #tpu.memory_space<vmem>>, vector<56x32xf32>
    %c3_334 = arith.constant 3 : index
    %c0_335 = arith.constant 0 : index
    %458 = tpu.strided_load %arg33[%c3_334, %c0_335] {strides = array<i32: 2, 1>} : memref<120x128xf32, #tpu.memory_space<vmem>>, vector<56x32xf32>
    %c4_336 = arith.constant 4 : index
    %c0_337 = arith.constant 0 : index
    %459 = tpu.strided_load %arg33[%c4_336, %c0_337] {strides = array<i32: 2, 1>} : memref<120x128xf32, #tpu.memory_space<vmem>>, vector<56x32xf32>
    %460 = arith.truncf %455 : vector<56x32xf32> to vector<56x32xbf16>
    %c0_338 = arith.constant 0 : index
    %c0_339 = arith.constant 0 : index
    %c0_340 = arith.constant 0 : index
    %461 = vector.load %arg10[%c0_338, %c0_339, %c0_340] : memref<5x32x64xbf16, #tpu.memory_space<vmem>>, vector<1x32x64xbf16>
    %462 = vector.shape_cast %461 : vector<1x32x64xbf16> to vector<32x64xbf16>
    %cst_341 = arith.constant dense<0.000000e+00> : vector<56x64xf32>
    %463 = tpu.matmul %460, %462, %cst_341 {dimension_numbers = #tpu.dot_dimension_numbers<[1], [0], [0], [1], [0, 0, 1, 1], [], []>} : vector<56x32xbf16>, vector<32x64xbf16>, vector<56x64xf32> -> vector<56x64xf32>
    %464 = arith.truncf %456 : vector<56x32xf32> to vector<56x32xbf16>
    %c1_342 = arith.constant 1 : index
    %c0_343 = arith.constant 0 : index
    %c0_344 = arith.constant 0 : index
    %465 = vector.load %arg10[%c1_342, %c0_343, %c0_344] : memref<5x32x64xbf16, #tpu.memory_space<vmem>>, vector<1x32x64xbf16>
    %466 = vector.shape_cast %465 : vector<1x32x64xbf16> to vector<32x64xbf16>
    %cst_345 = arith.constant dense<0.000000e+00> : vector<56x64xf32>
    %467 = tpu.matmul %464, %466, %cst_345 {dimension_numbers = #tpu.dot_dimension_numbers<[1], [0], [0], [1], [0, 0, 1, 1], [], []>} : vector<56x32xbf16>, vector<32x64xbf16>, vector<56x64xf32> -> vector<56x64xf32>
    %468 = arith.addf %463, %467 : vector<56x64xf32>
    %469 = arith.truncf %457 : vector<56x32xf32> to vector<56x32xbf16>
    %c2_346 = arith.constant 2 : index
    %c0_347 = arith.constant 0 : index
    %c0_348 = arith.constant 0 : index
    %470 = vector.load %arg10[%c2_346, %c0_347, %c0_348] : memref<5x32x64xbf16, #tpu.memory_space<vmem>>, vector<1x32x64xbf16>
    %471 = vector.shape_cast %470 : vector<1x32x64xbf16> to vector<32x64xbf16>
    %cst_349 = arith.constant dense<0.000000e+00> : vector<56x64xf32>
    %472 = tpu.matmul %469, %471, %cst_349 {dimension_numbers = #tpu.dot_dimension_numbers<[1], [0], [0], [1], [0, 0, 1, 1], [], []>} : vector<56x32xbf16>, vector<32x64xbf16>, vector<56x64xf32> -> vector<56x64xf32>
    %473 = arith.addf %468, %472 : vector<56x64xf32>
    %474 = arith.truncf %458 : vector<56x32xf32> to vector<56x32xbf16>
    %c3_350 = arith.constant 3 : index
    %c0_351 = arith.constant 0 : index
    %c0_352 = arith.constant 0 : index
    %475 = vector.load %arg10[%c3_350, %c0_351, %c0_352] : memref<5x32x64xbf16, #tpu.memory_space<vmem>>, vector<1x32x64xbf16>
    %476 = vector.shape_cast %475 : vector<1x32x64xbf16> to vector<32x64xbf16>
    %cst_353 = arith.constant dense<0.000000e+00> : vector<56x64xf32>
    %477 = tpu.matmul %474, %476, %cst_353 {dimension_numbers = #tpu.dot_dimension_numbers<[1], [0], [0], [1], [0, 0, 1, 1], [], []>} : vector<56x32xbf16>, vector<32x64xbf16>, vector<56x64xf32> -> vector<56x64xf32>
    %478 = arith.addf %473, %477 : vector<56x64xf32>
    %479 = arith.truncf %459 : vector<56x32xf32> to vector<56x32xbf16>
    %c4_354 = arith.constant 4 : index
    %c0_355 = arith.constant 0 : index
    %c0_356 = arith.constant 0 : index
    %480 = vector.load %arg10[%c4_354, %c0_355, %c0_356] : memref<5x32x64xbf16, #tpu.memory_space<vmem>>, vector<1x32x64xbf16>
    %481 = vector.shape_cast %480 : vector<1x32x64xbf16> to vector<32x64xbf16>
    %cst_357 = arith.constant dense<0.000000e+00> : vector<56x64xf32>
    %482 = tpu.matmul %479, %481, %cst_357 {dimension_numbers = #tpu.dot_dimension_numbers<[1], [0], [0], [1], [0, 0, 1, 1], [], []>} : vector<56x32xbf16>, vector<32x64xbf16>, vector<56x64xf32> -> vector<56x64xf32>
    %483 = arith.addf %478, %482 : vector<56x64xf32>
    %c0_358 = arith.constant 0 : index
    %c0_359 = arith.constant 0 : index
    %484 = vector.load %arg11[%c0_358, %c0_359] : memref<1x64xf32, #tpu.memory_space<vmem>>, vector<1x64xf32>
    %485 = vector.broadcast %484 : vector<1x64xf32> to vector<56x64xf32>
    %486 = arith.mulf %483, %485 : vector<56x64xf32>
    %c0_360 = arith.constant 0 : index
    %c0_361 = arith.constant 0 : index
    %487 = vector.load %arg12[%c0_360, %c0_361] : memref<1x64xf32, #tpu.memory_space<vmem>>, vector<1x64xf32>
    %488 = vector.broadcast %487 : vector<1x64xf32> to vector<56x64xf32>
    %489 = arith.addf %486, %488 : vector<56x64xf32>
    %cst_362 = arith.constant 0.000000e+00 : f32
    %490 = vector.broadcast %cst_362 : f32 to vector<56x64xf32>
    %491 = arith.maximumf %489, %490 : vector<56x64xf32>
    %492 = vector.extract_strided_slice %491 {offsets = [0, 0], sizes = [52, 64], strides = [1, 1]} : vector<56x64xf32> to vector<52x64xf32>
    %493 = vector.extract_strided_slice %491 {offsets = [1, 0], sizes = [52, 64], strides = [1, 1]} : vector<56x64xf32> to vector<52x64xf32>
    %494 = vector.extract_strided_slice %491 {offsets = [2, 0], sizes = [52, 64], strides = [1, 1]} : vector<56x64xf32> to vector<52x64xf32>
    %495 = vector.extract_strided_slice %491 {offsets = [3, 0], sizes = [52, 64], strides = [1, 1]} : vector<56x64xf32> to vector<52x64xf32>
    %496 = vector.extract_strided_slice %491 {offsets = [4, 0], sizes = [52, 64], strides = [1, 1]} : vector<56x64xf32> to vector<52x64xf32>
    %497 = arith.truncf %492 : vector<52x64xf32> to vector<52x64xbf16>
    %c0_363 = arith.constant 0 : index
    %c0_364 = arith.constant 0 : index
    %c0_365 = arith.constant 0 : index
    %498 = vector.load %arg13[%c0_363, %c0_364, %c0_365] : memref<5x64x64xbf16, #tpu.memory_space<vmem>>, vector<1x64x64xbf16>
    %499 = vector.shape_cast %498 : vector<1x64x64xbf16> to vector<64x64xbf16>
    %cst_366 = arith.constant dense<0.000000e+00> : vector<52x64xf32>
    %500 = tpu.matmul %497, %499, %cst_366 {dimension_numbers = #tpu.dot_dimension_numbers<[1], [0], [0], [1], [0, 0, 1, 1], [], []>} : vector<52x64xbf16>, vector<64x64xbf16>, vector<52x64xf32> -> vector<52x64xf32>
    %501 = arith.truncf %493 : vector<52x64xf32> to vector<52x64xbf16>
    %c1_367 = arith.constant 1 : index
    %c0_368 = arith.constant 0 : index
    %c0_369 = arith.constant 0 : index
    %502 = vector.load %arg13[%c1_367, %c0_368, %c0_369] : memref<5x64x64xbf16, #tpu.memory_space<vmem>>, vector<1x64x64xbf16>
    %503 = vector.shape_cast %502 : vector<1x64x64xbf16> to vector<64x64xbf16>
    %cst_370 = arith.constant dense<0.000000e+00> : vector<52x64xf32>
    %504 = tpu.matmul %501, %503, %cst_370 {dimension_numbers = #tpu.dot_dimension_numbers<[1], [0], [0], [1], [0, 0, 1, 1], [], []>} : vector<52x64xbf16>, vector<64x64xbf16>, vector<52x64xf32> -> vector<52x64xf32>
    %505 = arith.addf %500, %504 : vector<52x64xf32>
    %506 = arith.truncf %494 : vector<52x64xf32> to vector<52x64xbf16>
    %c2_371 = arith.constant 2 : index
    %c0_372 = arith.constant 0 : index
    %c0_373 = arith.constant 0 : index
    %507 = vector.load %arg13[%c2_371, %c0_372, %c0_373] : memref<5x64x64xbf16, #tpu.memory_space<vmem>>, vector<1x64x64xbf16>
    %508 = vector.shape_cast %507 : vector<1x64x64xbf16> to vector<64x64xbf16>
    %cst_374 = arith.constant dense<0.000000e+00> : vector<52x64xf32>
    %509 = tpu.matmul %506, %508, %cst_374 {dimension_numbers = #tpu.dot_dimension_numbers<[1], [0], [0], [1], [0, 0, 1, 1], [], []>} : vector<52x64xbf16>, vector<64x64xbf16>, vector<52x64xf32> -> vector<52x64xf32>
    %510 = arith.addf %505, %509 : vector<52x64xf32>
    %511 = arith.truncf %495 : vector<52x64xf32> to vector<52x64xbf16>
    %c3_375 = arith.constant 3 : index
    %c0_376 = arith.constant 0 : index
    %c0_377 = arith.constant 0 : index
    %512 = vector.load %arg13[%c3_375, %c0_376, %c0_377] : memref<5x64x64xbf16, #tpu.memory_space<vmem>>, vector<1x64x64xbf16>
    %513 = vector.shape_cast %512 : vector<1x64x64xbf16> to vector<64x64xbf16>
    %cst_378 = arith.constant dense<0.000000e+00> : vector<52x64xf32>
    %514 = tpu.matmul %511, %513, %cst_378 {dimension_numbers = #tpu.dot_dimension_numbers<[1], [0], [0], [1], [0, 0, 1, 1], [], []>} : vector<52x64xbf16>, vector<64x64xbf16>, vector<52x64xf32> -> vector<52x64xf32>
    %515 = arith.addf %510, %514 : vector<52x64xf32>
    %516 = arith.truncf %496 : vector<52x64xf32> to vector<52x64xbf16>
    %c4_379 = arith.constant 4 : index
    %c0_380 = arith.constant 0 : index
    %c0_381 = arith.constant 0 : index
    %517 = vector.load %arg13[%c4_379, %c0_380, %c0_381] : memref<5x64x64xbf16, #tpu.memory_space<vmem>>, vector<1x64x64xbf16>
    %518 = vector.shape_cast %517 : vector<1x64x64xbf16> to vector<64x64xbf16>
    %cst_382 = arith.constant dense<0.000000e+00> : vector<52x64xf32>
    %519 = tpu.matmul %516, %518, %cst_382 {dimension_numbers = #tpu.dot_dimension_numbers<[1], [0], [0], [1], [0, 0, 1, 1], [], []>} : vector<52x64xbf16>, vector<64x64xbf16>, vector<52x64xf32> -> vector<52x64xf32>
    %520 = arith.addf %515, %519 : vector<52x64xf32>
    %c0_383 = arith.constant 0 : index
    %c0_384 = arith.constant 0 : index
    %521 = vector.load %arg14[%c0_383, %c0_384] : memref<1x64xf32, #tpu.memory_space<vmem>>, vector<1x64xf32>
    %522 = vector.broadcast %521 : vector<1x64xf32> to vector<52x64xf32>
    %523 = arith.mulf %520, %522 : vector<52x64xf32>
    %c0_385 = arith.constant 0 : index
    %c0_386 = arith.constant 0 : index
    %524 = vector.load %arg15[%c0_385, %c0_386] : memref<1x64xf32, #tpu.memory_space<vmem>>, vector<1x64xf32>
    %525 = vector.broadcast %524 : vector<1x64xf32> to vector<52x64xf32>
    %526 = arith.addf %523, %525 : vector<52x64xf32>
    %cst_387 = arith.constant 0.000000e+00 : f32
    %527 = vector.broadcast %cst_387 : f32 to vector<52x64xf32>
    %528 = arith.maximumf %526, %527 : vector<52x64xf32>
    %529 = vector.extract_strided_slice %528 {offsets = [0, 0], sizes = [48, 64], strides = [1, 1]} : vector<52x64xf32> to vector<48x64xf32>
    %530 = vector.extract_strided_slice %528 {offsets = [1, 0], sizes = [48, 64], strides = [1, 1]} : vector<52x64xf32> to vector<48x64xf32>
    %531 = vector.extract_strided_slice %528 {offsets = [2, 0], sizes = [48, 64], strides = [1, 1]} : vector<52x64xf32> to vector<48x64xf32>
    %532 = vector.extract_strided_slice %528 {offsets = [3, 0], sizes = [48, 64], strides = [1, 1]} : vector<52x64xf32> to vector<48x64xf32>
    %533 = vector.extract_strided_slice %528 {offsets = [4, 0], sizes = [48, 64], strides = [1, 1]} : vector<52x64xf32> to vector<48x64xf32>
    %534 = arith.truncf %529 : vector<48x64xf32> to vector<48x64xbf16>
    %c0_388 = arith.constant 0 : index
    %c0_389 = arith.constant 0 : index
    %c0_390 = arith.constant 0 : index
    %535 = vector.load %arg16[%c0_388, %c0_389, %c0_390] : memref<5x64x64xbf16, #tpu.memory_space<vmem>>, vector<1x64x64xbf16>
    %536 = vector.shape_cast %535 : vector<1x64x64xbf16> to vector<64x64xbf16>
    %cst_391 = arith.constant dense<0.000000e+00> : vector<48x64xf32>
    %537 = tpu.matmul %534, %536, %cst_391 {dimension_numbers = #tpu.dot_dimension_numbers<[1], [0], [0], [1], [0, 0, 1, 1], [], []>} : vector<48x64xbf16>, vector<64x64xbf16>, vector<48x64xf32> -> vector<48x64xf32>
    %538 = arith.truncf %530 : vector<48x64xf32> to vector<48x64xbf16>
    %c1_392 = arith.constant 1 : index
    %c0_393 = arith.constant 0 : index
    %c0_394 = arith.constant 0 : index
    %539 = vector.load %arg16[%c1_392, %c0_393, %c0_394] : memref<5x64x64xbf16, #tpu.memory_space<vmem>>, vector<1x64x64xbf16>
    %540 = vector.shape_cast %539 : vector<1x64x64xbf16> to vector<64x64xbf16>
    %cst_395 = arith.constant dense<0.000000e+00> : vector<48x64xf32>
    %541 = tpu.matmul %538, %540, %cst_395 {dimension_numbers = #tpu.dot_dimension_numbers<[1], [0], [0], [1], [0, 0, 1, 1], [], []>} : vector<48x64xbf16>, vector<64x64xbf16>, vector<48x64xf32> -> vector<48x64xf32>
    %542 = arith.addf %537, %541 : vector<48x64xf32>
    %543 = arith.truncf %531 : vector<48x64xf32> to vector<48x64xbf16>
    %c2_396 = arith.constant 2 : index
    %c0_397 = arith.constant 0 : index
    %c0_398 = arith.constant 0 : index
    %544 = vector.load %arg16[%c2_396, %c0_397, %c0_398] : memref<5x64x64xbf16, #tpu.memory_space<vmem>>, vector<1x64x64xbf16>
    %545 = vector.shape_cast %544 : vector<1x64x64xbf16> to vector<64x64xbf16>
    %cst_399 = arith.constant dense<0.000000e+00> : vector<48x64xf32>
    %546 = tpu.matmul %543, %545, %cst_399 {dimension_numbers = #tpu.dot_dimension_numbers<[1], [0], [0], [1], [0, 0, 1, 1], [], []>} : vector<48x64xbf16>, vector<64x64xbf16>, vector<48x64xf32> -> vector<48x64xf32>
    %547 = arith.addf %542, %546 : vector<48x64xf32>
    %548 = arith.truncf %532 : vector<48x64xf32> to vector<48x64xbf16>
    %c3_400 = arith.constant 3 : index
    %c0_401 = arith.constant 0 : index
    %c0_402 = arith.constant 0 : index
    %549 = vector.load %arg16[%c3_400, %c0_401, %c0_402] : memref<5x64x64xbf16, #tpu.memory_space<vmem>>, vector<1x64x64xbf16>
    %550 = vector.shape_cast %549 : vector<1x64x64xbf16> to vector<64x64xbf16>
    %cst_403 = arith.constant dense<0.000000e+00> : vector<48x64xf32>
    %551 = tpu.matmul %548, %550, %cst_403 {dimension_numbers = #tpu.dot_dimension_numbers<[1], [0], [0], [1], [0, 0, 1, 1], [], []>} : vector<48x64xbf16>, vector<64x64xbf16>, vector<48x64xf32> -> vector<48x64xf32>
    %552 = arith.addf %547, %551 : vector<48x64xf32>
    %553 = arith.truncf %533 : vector<48x64xf32> to vector<48x64xbf16>
    %c4_404 = arith.constant 4 : index
    %c0_405 = arith.constant 0 : index
    %c0_406 = arith.constant 0 : index
    %554 = vector.load %arg16[%c4_404, %c0_405, %c0_406] : memref<5x64x64xbf16, #tpu.memory_space<vmem>>, vector<1x64x64xbf16>
    %555 = vector.shape_cast %554 : vector<1x64x64xbf16> to vector<64x64xbf16>
    %cst_407 = arith.constant dense<0.000000e+00> : vector<48x64xf32>
    %556 = tpu.matmul %553, %555, %cst_407 {dimension_numbers = #tpu.dot_dimension_numbers<[1], [0], [0], [1], [0, 0, 1, 1], [], []>} : vector<48x64xbf16>, vector<64x64xbf16>, vector<48x64xf32> -> vector<48x64xf32>
    %557 = arith.addf %552, %556 : vector<48x64xf32>
    %c0_408 = arith.constant 0 : index
    %c0_409 = arith.constant 0 : index
    %558 = vector.load %arg17[%c0_408, %c0_409] : memref<1x64xf32, #tpu.memory_space<vmem>>, vector<1x64xf32>
    %559 = vector.broadcast %558 : vector<1x64xf32> to vector<48x64xf32>
    %560 = arith.mulf %557, %559 : vector<48x64xf32>
    %c0_410 = arith.constant 0 : index
    %c0_411 = arith.constant 0 : index
    %561 = vector.load %arg18[%c0_410, %c0_411] : memref<1x64xf32, #tpu.memory_space<vmem>>, vector<1x64xf32>
    %562 = vector.broadcast %561 : vector<1x64xf32> to vector<48x64xf32>
    %563 = arith.addf %560, %562 : vector<48x64xf32>
    %cst_412 = arith.constant 0.000000e+00 : f32
    %564 = vector.broadcast %cst_412 : f32 to vector<48x64xf32>
    %565 = arith.maximumf %563, %564 : vector<48x64xf32>
    %566 = vector.extract_strided_slice %565 {offsets = [0, 0], sizes = [44, 64], strides = [1, 1]} : vector<48x64xf32> to vector<44x64xf32>
    %567 = vector.extract_strided_slice %565 {offsets = [1, 0], sizes = [44, 64], strides = [1, 1]} : vector<48x64xf32> to vector<44x64xf32>
    %568 = vector.extract_strided_slice %565 {offsets = [2, 0], sizes = [44, 64], strides = [1, 1]} : vector<48x64xf32> to vector<44x64xf32>
    %569 = vector.extract_strided_slice %565 {offsets = [3, 0], sizes = [44, 64], strides = [1, 1]} : vector<48x64xf32> to vector<44x64xf32>
    %570 = vector.extract_strided_slice %565 {offsets = [4, 0], sizes = [44, 64], strides = [1, 1]} : vector<48x64xf32> to vector<44x64xf32>
    %571 = arith.truncf %566 : vector<44x64xf32> to vector<44x64xbf16>
    %c0_413 = arith.constant 0 : index
    %c0_414 = arith.constant 0 : index
    %c0_415 = arith.constant 0 : index
    %572 = vector.load %arg19[%c0_413, %c0_414, %c0_415] : memref<5x64x64xbf16, #tpu.memory_space<vmem>>, vector<1x64x64xbf16>
    %573 = vector.shape_cast %572 : vector<1x64x64xbf16> to vector<64x64xbf16>
    %cst_416 = arith.constant dense<0.000000e+00> : vector<44x64xf32>
    %574 = tpu.matmul %571, %573, %cst_416 {dimension_numbers = #tpu.dot_dimension_numbers<[1], [0], [0], [1], [0, 0, 1, 1], [], []>} : vector<44x64xbf16>, vector<64x64xbf16>, vector<44x64xf32> -> vector<44x64xf32>
    %575 = arith.truncf %567 : vector<44x64xf32> to vector<44x64xbf16>
    %c1_417 = arith.constant 1 : index
    %c0_418 = arith.constant 0 : index
    %c0_419 = arith.constant 0 : index
    %576 = vector.load %arg19[%c1_417, %c0_418, %c0_419] : memref<5x64x64xbf16, #tpu.memory_space<vmem>>, vector<1x64x64xbf16>
    %577 = vector.shape_cast %576 : vector<1x64x64xbf16> to vector<64x64xbf16>
    %cst_420 = arith.constant dense<0.000000e+00> : vector<44x64xf32>
    %578 = tpu.matmul %575, %577, %cst_420 {dimension_numbers = #tpu.dot_dimension_numbers<[1], [0], [0], [1], [0, 0, 1, 1], [], []>} : vector<44x64xbf16>, vector<64x64xbf16>, vector<44x64xf32> -> vector<44x64xf32>
    %579 = arith.addf %574, %578 : vector<44x64xf32>
    %580 = arith.truncf %568 : vector<44x64xf32> to vector<44x64xbf16>
    %c2_421 = arith.constant 2 : index
    %c0_422 = arith.constant 0 : index
    %c0_423 = arith.constant 0 : index
    %581 = vector.load %arg19[%c2_421, %c0_422, %c0_423] : memref<5x64x64xbf16, #tpu.memory_space<vmem>>, vector<1x64x64xbf16>
    %582 = vector.shape_cast %581 : vector<1x64x64xbf16> to vector<64x64xbf16>
    %cst_424 = arith.constant dense<0.000000e+00> : vector<44x64xf32>
    %583 = tpu.matmul %580, %582, %cst_424 {dimension_numbers = #tpu.dot_dimension_numbers<[1], [0], [0], [1], [0, 0, 1, 1], [], []>} : vector<44x64xbf16>, vector<64x64xbf16>, vector<44x64xf32> -> vector<44x64xf32>
    %584 = arith.addf %579, %583 : vector<44x64xf32>
    %585 = arith.truncf %569 : vector<44x64xf32> to vector<44x64xbf16>
    %c3_425 = arith.constant 3 : index
    %c0_426 = arith.constant 0 : index
    %c0_427 = arith.constant 0 : index
    %586 = vector.load %arg19[%c3_425, %c0_426, %c0_427] : memref<5x64x64xbf16, #tpu.memory_space<vmem>>, vector<1x64x64xbf16>
    %587 = vector.shape_cast %586 : vector<1x64x64xbf16> to vector<64x64xbf16>
    %cst_428 = arith.constant dense<0.000000e+00> : vector<44x64xf32>
    %588 = tpu.matmul %585, %587, %cst_428 {dimension_numbers = #tpu.dot_dimension_numbers<[1], [0], [0], [1], [0, 0, 1, 1], [], []>} : vector<44x64xbf16>, vector<64x64xbf16>, vector<44x64xf32> -> vector<44x64xf32>
    %589 = arith.addf %584, %588 : vector<44x64xf32>
    %590 = arith.truncf %570 : vector<44x64xf32> to vector<44x64xbf16>
    %c4_429 = arith.constant 4 : index
    %c0_430 = arith.constant 0 : index
    %c0_431 = arith.constant 0 : index
    %591 = vector.load %arg19[%c4_429, %c0_430, %c0_431] : memref<5x64x64xbf16, #tpu.memory_space<vmem>>, vector<1x64x64xbf16>
    %592 = vector.shape_cast %591 : vector<1x64x64xbf16> to vector<64x64xbf16>
    %cst_432 = arith.constant dense<0.000000e+00> : vector<44x64xf32>
    %593 = tpu.matmul %590, %592, %cst_432 {dimension_numbers = #tpu.dot_dimension_numbers<[1], [0], [0], [1], [0, 0, 1, 1], [], []>} : vector<44x64xbf16>, vector<64x64xbf16>, vector<44x64xf32> -> vector<44x64xf32>
    %594 = arith.addf %589, %593 : vector<44x64xf32>
    %c0_433 = arith.constant 0 : index
    %c0_434 = arith.constant 0 : index
    %595 = vector.load %arg20[%c0_433, %c0_434] : memref<1x64xf32, #tpu.memory_space<vmem>>, vector<1x64xf32>
    %596 = vector.broadcast %595 : vector<1x64xf32> to vector<44x64xf32>
    %597 = arith.mulf %594, %596 : vector<44x64xf32>
    %c0_435 = arith.constant 0 : index
    %c0_436 = arith.constant 0 : index
    %598 = vector.load %arg21[%c0_435, %c0_436] : memref<1x64xf32, #tpu.memory_space<vmem>>, vector<1x64xf32>
    %599 = vector.broadcast %598 : vector<1x64xf32> to vector<44x64xf32>
    %600 = arith.addf %597, %599 : vector<44x64xf32>
    %cst_437 = arith.constant 0.000000e+00 : f32
    %601 = vector.broadcast %cst_437 : f32 to vector<44x64xf32>
    %602 = arith.maximumf %600, %601 : vector<44x64xf32>
    %c0_438 = arith.constant 0 : index
    %c0_439 = arith.constant 0 : index
    %603 = vector.load %arg33[%c0_438, %c0_439] : memref<120x128xf32, #tpu.memory_space<vmem>>, vector<44x64xf32>
    tpu.vector_store %arg33[%c0_438, %c0_439], %602 {strides = array<i32>} : memref<120x128xf32, #tpu.memory_space<vmem>>, vector<44x64xf32>,
    %c0_440 = arith.constant 0 : index
    %c0_441 = arith.constant 0 : index
    %604 = tpu.strided_load %arg33[%c0_440, %c0_441] {strides = array<i32: 2, 1>} : memref<120x128xf32, #tpu.memory_space<vmem>>, vector<20x64xf32>
    %c1_442 = arith.constant 1 : index
    %c0_443 = arith.constant 0 : index
    %605 = tpu.strided_load %arg33[%c1_442, %c0_443] {strides = array<i32: 2, 1>} : memref<120x128xf32, #tpu.memory_space<vmem>>, vector<20x64xf32>
    %c2_444 = arith.constant 2 : index
    %c0_445 = arith.constant 0 : index
    %606 = tpu.strided_load %arg33[%c2_444, %c0_445] {strides = array<i32: 2, 1>} : memref<120x128xf32, #tpu.memory_space<vmem>>, vector<20x64xf32>
    %c3_446 = arith.constant 3 : index
    %c0_447 = arith.constant 0 : index
    %607 = tpu.strided_load %arg33[%c3_446, %c0_447] {strides = array<i32: 2, 1>} : memref<120x128xf32, #tpu.memory_space<vmem>>, vector<20x64xf32>
    %c4_448 = arith.constant 4 : index
    %c0_449 = arith.constant 0 : index
    %608 = tpu.strided_load %arg33[%c4_448, %c0_449] {strides = array<i32: 2, 1>} : memref<120x128xf32, #tpu.memory_space<vmem>>, vector<20x64xf32>
    %609 = arith.truncf %604 : vector<20x64xf32> to vector<20x64xbf16>
    %c0_450 = arith.constant 0 : index
    %c0_451 = arith.constant 0 : index
    %c0_452 = arith.constant 0 : index
    %610 = vector.load %arg22[%c0_450, %c0_451, %c0_452] : memref<5x64x128xbf16, #tpu.memory_space<vmem>>, vector<1x64x128xbf16>
    %611 = vector.shape_cast %610 : vector<1x64x128xbf16> to vector<64x128xbf16>
    %cst_453 = arith.constant dense<0.000000e+00> : vector<20x128xf32>
    %612 = tpu.matmul %609, %611, %cst_453 {dimension_numbers = #tpu.dot_dimension_numbers<[1], [0], [0], [1], [0, 0, 1, 1], [], []>} : vector<20x64xbf16>, vector<64x128xbf16>, vector<20x128xf32> -> vector<20x128xf32>
    %613 = arith.truncf %605 : vector<20x64xf32> to vector<20x64xbf16>
    %c1_454 = arith.constant 1 : index
    %c0_455 = arith.constant 0 : index
    %c0_456 = arith.constant 0 : index
    %614 = vector.load %arg22[%c1_454, %c0_455, %c0_456] : memref<5x64x128xbf16, #tpu.memory_space<vmem>>, vector<1x64x128xbf16>
    %615 = vector.shape_cast %614 : vector<1x64x128xbf16> to vector<64x128xbf16>
    %cst_457 = arith.constant dense<0.000000e+00> : vector<20x128xf32>
    %616 = tpu.matmul %613, %615, %cst_457 {dimension_numbers = #tpu.dot_dimension_numbers<[1], [0], [0], [1], [0, 0, 1, 1], [], []>} : vector<20x64xbf16>, vector<64x128xbf16>, vector<20x128xf32> -> vector<20x128xf32>
    %617 = arith.addf %612, %616 : vector<20x128xf32>
    %618 = arith.truncf %606 : vector<20x64xf32> to vector<20x64xbf16>
    %c2_458 = arith.constant 2 : index
    %c0_459 = arith.constant 0 : index
    %c0_460 = arith.constant 0 : index
    %619 = vector.load %arg22[%c2_458, %c0_459, %c0_460] : memref<5x64x128xbf16, #tpu.memory_space<vmem>>, vector<1x64x128xbf16>
    %620 = vector.shape_cast %619 : vector<1x64x128xbf16> to vector<64x128xbf16>
    %cst_461 = arith.constant dense<0.000000e+00> : vector<20x128xf32>
    %621 = tpu.matmul %618, %620, %cst_461 {dimension_numbers = #tpu.dot_dimension_numbers<[1], [0], [0], [1], [0, 0, 1, 1], [], []>} : vector<20x64xbf16>, vector<64x128xbf16>, vector<20x128xf32> -> vector<20x128xf32>
    %622 = arith.addf %617, %621 : vector<20x128xf32>
    %623 = arith.truncf %607 : vector<20x64xf32> to vector<20x64xbf16>
    %c3_462 = arith.constant 3 : index
    %c0_463 = arith.constant 0 : index
    %c0_464 = arith.constant 0 : index
    %624 = vector.load %arg22[%c3_462, %c0_463, %c0_464] : memref<5x64x128xbf16, #tpu.memory_space<vmem>>, vector<1x64x128xbf16>
    %625 = vector.shape_cast %624 : vector<1x64x128xbf16> to vector<64x128xbf16>
    %cst_465 = arith.constant dense<0.000000e+00> : vector<20x128xf32>
    %626 = tpu.matmul %623, %625, %cst_465 {dimension_numbers = #tpu.dot_dimension_numbers<[1], [0], [0], [1], [0, 0, 1, 1], [], []>} : vector<20x64xbf16>, vector<64x128xbf16>, vector<20x128xf32> -> vector<20x128xf32>
    %627 = arith.addf %622, %626 : vector<20x128xf32>
    %628 = arith.truncf %608 : vector<20x64xf32> to vector<20x64xbf16>
    %c4_466 = arith.constant 4 : index
    %c0_467 = arith.constant 0 : index
    %c0_468 = arith.constant 0 : index
    %629 = vector.load %arg22[%c4_466, %c0_467, %c0_468] : memref<5x64x128xbf16, #tpu.memory_space<vmem>>, vector<1x64x128xbf16>
    %630 = vector.shape_cast %629 : vector<1x64x128xbf16> to vector<64x128xbf16>
    %cst_469 = arith.constant dense<0.000000e+00> : vector<20x128xf32>
    %631 = tpu.matmul %628, %630, %cst_469 {dimension_numbers = #tpu.dot_dimension_numbers<[1], [0], [0], [1], [0, 0, 1, 1], [], []>} : vector<20x64xbf16>, vector<64x128xbf16>, vector<20x128xf32> -> vector<20x128xf32>
    %632 = arith.addf %627, %631 : vector<20x128xf32>
    %c0_470 = arith.constant 0 : index
    %c0_471 = arith.constant 0 : index
    %633 = vector.load %arg23[%c0_470, %c0_471] : memref<1x128xf32, #tpu.memory_space<vmem>>, vector<1x128xf32>
    %634 = vector.broadcast %633 : vector<1x128xf32> to vector<20x128xf32>
    %635 = arith.mulf %632, %634 : vector<20x128xf32>
    %c0_472 = arith.constant 0 : index
    %c0_473 = arith.constant 0 : index
    %636 = vector.load %arg24[%c0_472, %c0_473] : memref<1x128xf32, #tpu.memory_space<vmem>>, vector<1x128xf32>
    %637 = vector.broadcast %636 : vector<1x128xf32> to vector<20x128xf32>
    %638 = arith.addf %635, %637 : vector<20x128xf32>
    %cst_474 = arith.constant 0.000000e+00 : f32
    %639 = vector.broadcast %cst_474 : f32 to vector<20x128xf32>
    %640 = arith.maximumf %638, %639 : vector<20x128xf32>
    %641 = vector.extract_strided_slice %640 {offsets = [0, 0], sizes = [16, 128], strides = [1, 1]} : vector<20x128xf32> to vector<16x128xf32>
    %642 = vector.extract_strided_slice %640 {offsets = [1, 0], sizes = [16, 128], strides = [1, 1]} : vector<20x128xf32> to vector<16x128xf32>
    %643 = vector.extract_strided_slice %640 {offsets = [2, 0], sizes = [16, 128], strides = [1, 1]} : vector<20x128xf32> to vector<16x128xf32>
    %644 = vector.extract_strided_slice %640 {offsets = [3, 0], sizes = [16, 128], strides = [1, 1]} : vector<20x128xf32> to vector<16x128xf32>
    %645 = vector.extract_strided_slice %640 {offsets = [4, 0], sizes = [16, 128], strides = [1, 1]} : vector<20x128xf32> to vector<16x128xf32>
    %646 = arith.truncf %641 : vector<16x128xf32> to vector<16x128xbf16>
    %c0_475 = arith.constant 0 : index
    %c0_476 = arith.constant 0 : index
    %c0_477 = arith.constant 0 : index
    %647 = vector.load %arg25[%c0_475, %c0_476, %c0_477] : memref<5x128x128xbf16, #tpu.memory_space<vmem>>, vector<1x128x128xbf16>
    %648 = vector.shape_cast %647 : vector<1x128x128xbf16> to vector<128x128xbf16>
    %cst_478 = arith.constant dense<0.000000e+00> : vector<16x128xf32>
    %649 = tpu.matmul %646, %648, %cst_478 {dimension_numbers = #tpu.dot_dimension_numbers<[1], [0], [0], [1], [0, 0, 1, 1], [], []>} : vector<16x128xbf16>, vector<128x128xbf16>, vector<16x128xf32> -> vector<16x128xf32>
    %650 = arith.truncf %642 : vector<16x128xf32> to vector<16x128xbf16>
    %c1_479 = arith.constant 1 : index
    %c0_480 = arith.constant 0 : index
    %c0_481 = arith.constant 0 : index
    %651 = vector.load %arg25[%c1_479, %c0_480, %c0_481] : memref<5x128x128xbf16, #tpu.memory_space<vmem>>, vector<1x128x128xbf16>
    %652 = vector.shape_cast %651 : vector<1x128x128xbf16> to vector<128x128xbf16>
    %cst_482 = arith.constant dense<0.000000e+00> : vector<16x128xf32>
    %653 = tpu.matmul %650, %652, %cst_482 {dimension_numbers = #tpu.dot_dimension_numbers<[1], [0], [0], [1], [0, 0, 1, 1], [], []>} : vector<16x128xbf16>, vector<128x128xbf16>, vector<16x128xf32> -> vector<16x128xf32>
    %654 = arith.addf %649, %653 : vector<16x128xf32>
    %655 = arith.truncf %643 : vector<16x128xf32> to vector<16x128xbf16>
    %c2_483 = arith.constant 2 : index
    %c0_484 = arith.constant 0 : index
    %c0_485 = arith.constant 0 : index
    %656 = vector.load %arg25[%c2_483, %c0_484, %c0_485] : memref<5x128x128xbf16, #tpu.memory_space<vmem>>, vector<1x128x128xbf16>
    %657 = vector.shape_cast %656 : vector<1x128x128xbf16> to vector<128x128xbf16>
    %cst_486 = arith.constant dense<0.000000e+00> : vector<16x128xf32>
    %658 = tpu.matmul %655, %657, %cst_486 {dimension_numbers = #tpu.dot_dimension_numbers<[1], [0], [0], [1], [0, 0, 1, 1], [], []>} : vector<16x128xbf16>, vector<128x128xbf16>, vector<16x128xf32> -> vector<16x128xf32>
    %659 = arith.addf %654, %658 : vector<16x128xf32>
    %660 = arith.truncf %644 : vector<16x128xf32> to vector<16x128xbf16>
    %c3_487 = arith.constant 3 : index
    %c0_488 = arith.constant 0 : index
    %c0_489 = arith.constant 0 : index
    %661 = vector.load %arg25[%c3_487, %c0_488, %c0_489] : memref<5x128x128xbf16, #tpu.memory_space<vmem>>, vector<1x128x128xbf16>
    %662 = vector.shape_cast %661 : vector<1x128x128xbf16> to vector<128x128xbf16>
    %cst_490 = arith.constant dense<0.000000e+00> : vector<16x128xf32>
    %663 = tpu.matmul %660, %662, %cst_490 {dimension_numbers = #tpu.dot_dimension_numbers<[1], [0], [0], [1], [0, 0, 1, 1], [], []>} : vector<16x128xbf16>, vector<128x128xbf16>, vector<16x128xf32> -> vector<16x128xf32>
    %664 = arith.addf %659, %663 : vector<16x128xf32>
    %665 = arith.truncf %645 : vector<16x128xf32> to vector<16x128xbf16>
    %c4_491 = arith.constant 4 : index
    %c0_492 = arith.constant 0 : index
    %c0_493 = arith.constant 0 : index
    %666 = vector.load %arg25[%c4_491, %c0_492, %c0_493] : memref<5x128x128xbf16, #tpu.memory_space<vmem>>, vector<1x128x128xbf16>
    %667 = vector.shape_cast %666 : vector<1x128x128xbf16> to vector<128x128xbf16>
    %cst_494 = arith.constant dense<0.000000e+00> : vector<16x128xf32>
    %668 = tpu.matmul %665, %667, %cst_494 {dimension_numbers = #tpu.dot_dimension_numbers<[1], [0], [0], [1], [0, 0, 1, 1], [], []>} : vector<16x128xbf16>, vector<128x128xbf16>, vector<16x128xf32> -> vector<16x128xf32>
    %669 = arith.addf %664, %668 : vector<16x128xf32>
    %c0_495 = arith.constant 0 : index
    %c0_496 = arith.constant 0 : index
    %670 = vector.load %arg26[%c0_495, %c0_496] : memref<1x128xf32, #tpu.memory_space<vmem>>, vector<1x128xf32>
    %671 = vector.broadcast %670 : vector<1x128xf32> to vector<16x128xf32>
    %672 = arith.mulf %669, %671 : vector<16x128xf32>
    %c0_497 = arith.constant 0 : index
    %c0_498 = arith.constant 0 : index
    %673 = vector.load %arg27[%c0_497, %c0_498] : memref<1x128xf32, #tpu.memory_space<vmem>>, vector<1x128xf32>
    %674 = vector.broadcast %673 : vector<1x128xf32> to vector<16x128xf32>
    %675 = arith.addf %672, %674 : vector<16x128xf32>
    %cst_499 = arith.constant 0.000000e+00 : f32
    %676 = vector.broadcast %cst_499 : f32 to vector<16x128xf32>
    %677 = arith.maximumf %675, %676 : vector<16x128xf32>
    %cst_500 = arith.constant dense<0.000000e+00> : vector<128xf32>
    %678 = vector.multi_reduction <add>, %677, %cst_500 [0] : vector<16x128xf32> to vector<128xf32>
    %679 = vector.shape_cast %678 : vector<128xf32> to vector<1x128xf32>
    %cst_501 = arith.constant 1.600000e+01 : f32
    %680 = vector.broadcast %cst_501 : f32 to vector<1x128xf32>
    %681 = arith.divf %679, %680 : vector<1x128xf32>
    %682 = tpu.concatenate %340, %681 in 0 : vector<1x128xf32>, vector<1x128xf32> -> vector<2x128xf32>
    %683 = arith.truncf %682 : vector<2x128xf32> to vector<2x128xbf16>
    %c0_502 = arith.constant 0 : index
    %c0_503 = arith.constant 0 : index
    %684 = vector.load %arg28[%c0_502, %c0_503] : memref<128x128xbf16, #tpu.memory_space<vmem>>, vector<128x128xbf16>
    %cst_504 = arith.constant dense<0.000000e+00> : vector<2x128xf32>
    %685 = tpu.matmul %683, %684, %cst_504 {dimension_numbers = #tpu.dot_dimension_numbers<[1], [0], [0], [1], [0, 0, 1, 1], [], []>} : vector<2x128xbf16>, vector<128x128xbf16>, vector<2x128xf32> -> vector<2x128xf32>
    %c0_505 = arith.constant 0 : index
    %c0_506 = arith.constant 0 : index
    %686 = vector.load %arg29[%c0_505, %c0_506] : memref<1x128xf32, #tpu.memory_space<vmem>>, vector<1x128xf32>
    %687 = vector.broadcast %686 : vector<1x128xf32> to vector<2x128xf32>
    %688 = arith.addf %685, %687 : vector<2x128xf32>
    %689 = arith.truncf %688 : vector<2x128xf32> to vector<2x128xbf16>
    %c0_507 = arith.constant 0 : index
    %c0_508 = arith.constant 0 : index
    %690 = vector.load %arg30[%c0_507, %c0_508] : memref<128x2xbf16, #tpu.memory_space<vmem>>, vector<128x2xbf16>
    %cst_509 = arith.constant dense<0.000000e+00> : vector<2x2xf32>
    %691 = tpu.matmul %689, %690, %cst_509 {dimension_numbers = #tpu.dot_dimension_numbers<[1], [0], [0], [1], [0, 0, 1, 1], [], []>} : vector<2x128xbf16>, vector<128x2xbf16>, vector<2x2xf32> -> vector<2x2xf32>
    %c0_510 = arith.constant 0 : index
    %c0_511 = arith.constant 0 : index
    %692 = vector.load %arg31[%c0_510, %c0_511] : memref<1x2xf32, #tpu.memory_space<vmem>>, vector<1x2xf32>
    %693 = vector.broadcast %692 : vector<1x2xf32> to vector<2x2xf32>
    %694 = arith.addf %691, %693 : vector<2x2xf32>
    %c0_512 = arith.constant 0 : index
    %c0_513 = arith.constant 0 : index
    %695 = vector.load %arg32[%c0_512, %c0_513] : memref<2x2xf32, #tpu.memory_space<vmem>>, vector<2x2xf32>
    tpu.vector_store %arg32[%c0_512, %c0_513], %694 {strides = array<i32>} : memref<2x2xf32, #tpu.memory_space<vmem>>, vector<2x2xf32>,
    return
  }
}

</mosaic_0001>

<bundles_post_ra>
// kernel: tpu_custom_call.1
= control target key start
LH: loop header
LB: loop body
LE: loop exit
PB: predicated region body
PF: predicated region fallthrough
CT: control target
= control target key end

     0   :  { %s17808_s6 = smov 1   ;;  %s17809_s10 = smov 2   ;;  %s20520_s0 = inlined_call_operand.smem [shape: u32[33], index: -1, kind: input, shape index: {}] }
   0x1   :  { %s17861_s5 = sld [smem:[%s20520_s0]]   ;;  %s17810_s14 = smov 3  }
   0x2   :  { %s17866_s9 = sld [smem:[%s20520_s0 + %s17808_s6]]   ;;  %s17811_s18 = smov 4  }
   0x3   :  { %s17871_s13 = sld [smem:[%s20520_s0 + %s17809_s10]]   ;;  %s17812_s22 = smov 5  }
   0x4   :  { %s17876_s17 = sld [smem:[%s20520_s0 + %s17810_s14]]   ;;  %s17813_s26 = smov 6  }
   0x5   :  { %s17881_s21 = sld [smem:[%s20520_s0 + %s17811_s18]]   ;;  %s17814_s30 = smov 7  }
   0x6   :  { %s17886_s25 = sld [smem:[%s20520_s0 + %s17812_s22]]   ;;  %s17815_s4 = smov 8  }
   0x7   :  { %s17891_s29 = sld [smem:[%s20520_s0 + %s17813_s26]]   ;;  %s17816_s10 = smov 9  }
   0x8   :  { %s17896_s3 = sld [smem:[%s20520_s0 + %s17814_s30]]   ;;  %s17817_s15 = smov 10  }
   0x9   :  { %s17901_s8 = sld [smem:[%s20520_s0 + %s17815_s4]]   ;;  %s17818_s20 = smov 11  }
   0xa   :  { %s17906_s14 = sld [smem:[%s20520_s0 + %s17816_s10]]   ;;  %s17819_s26 = smov 12  }
   0xb   :  { %s17911_s19 = sld [smem:[%s20520_s0 + %s17817_s15]]   ;;  %s17820_s1 = smov 13  }
   0xc   :  { %s17916_s24 = sld [smem:[%s20520_s0 + %s17818_s20]]   ;;  %s17821_s7 = smov 14  }
   0xd   :  { %s17921_s30 = sld [smem:[%s20520_s0 + %s17819_s26]]   ;;  %s17822_s15 = smov 15  }
   0xe   :  { %s17926_s6 = sld [smem:[%s20520_s0 + %s17820_s1]]   ;;  %s17823_s22 = smov 16  }
   0xf   :  { %20536 = sst [smem:[#allocation24_spill]] %s17901_s8  ;;  %s17824_s28 = smov 17  }
  0x10   :  { %20537 = sst [smem:[#allocation25_spill]] %s17906_s14 }
  0x11   :  { %s17931_s12 = sld [smem:[%s20520_s0 + %s17821_s7]]   ;;  %s17825_s7 = smov 18  }
  0x12   :  { %20538 = sst [smem:[#allocation26_spill]] %s17916_s24 }
  0x13   :  { %20539 = sst [smem:[#allocation27_spill]] %s17921_s30 }
  0x14   :  { %s17936_s20 = sld [smem:[%s20520_s0 + %s17822_s15]]   ;;  %s17826_s15 = smov 19  }
  0x15   :  { %s17941_s27 = sld [smem:[%s20520_s0 + %s17823_s22]]   ;;  %s17827_s22 = smov 20  }
  0x16   :  { %s17946_s4 = sld [smem:[%s20520_s0 + %s17824_s28]]   ;;  %s17828_s28 = smov 21  }
  0x17   :  { %20540 = sst [smem:[#allocation28_spill]] %s17931_s12 }
  0x18   :  { %s17951_s12 = sld [smem:[%s20520_s0 + %s17825_s7]]   ;;  %s17829_s7 = smov 22  }
  0x19   :  { %s17961_s30 = sld [smem:[%s20520_s0 + %s17827_s22]]   ;;  %s17831_s22 = smov 24  }
  0x1a   :  { %20541 = sst [smem:[#allocation29_spill]] %s17936_s20 }
  0x1b   :  { %s17956_s20 = sld [smem:[%s20520_s0 + %s17826_s15]]   ;;  %s17830_s15 = smov 23  }
  0x1c   :  { %20542 = sst [smem:[#allocation30_spill]] %s17946_s4 }
  0x1d   :  { %s17966_s4 = sld [smem:[%s20520_s0 + %s17828_s28]]   ;;  %s17832_s28 = smov 25  }
  0x1e   :  { %20543 = sst [smem:[#allocation31_spill]] %s17951_s12 }
  0x1f   :  { %20544 = sst [smem:[#allocation32_spill]] %s17961_s30 }
  0x20   :  { %s17971_s12 = sld [smem:[%s20520_s0 + %s17829_s7]]   ;;  %s17833_s7 = smov 26  }
  0x21   :  { %s17976_s24 = sld [smem:[%s20520_s0 + %s17830_s15]]   ;;  %s17834_s15 = smov 27  }
  0x22   :  { %s17981_s30 = sld [smem:[%s20520_s0 + %s17831_s22]]   ;;  %s17835_s22 = smov 28  }
  0x23   :  { %20545 = sst [smem:[#allocation33_spill]] %s17966_s4 }
  0x24   :  { %s17986_s4 = sld [smem:[%s20520_s0 + %s17832_s28]]   ;;  %s17836_s28 = smov 29  }
  0x25   :  { %s17991_s14 = sld [smem:[%s20520_s0 + %s17833_s7]]   ;;  %s17837_s7 = smov 30  }
  0x27   :  { %20546 = sst [smem:[#allocation34_spill]] %s17976_s24 }
  0x28   :  { %20547 = sst [smem:[#allocation35_spill]] %s17981_s30 }
  0x29   :  { %s17996_s24 = sld [smem:[%s20520_s0 + %s17834_s15]]   ;;  %s17838_s15 = smov 31  }
  0x2a   :  { %20548 = sst [smem:[#allocation36_spill]] %s17986_s4 }
  0x2b   :  { %20549 = sst [smem:[#allocation37_spill]] %s17991_s14 }
  0x2c   :  { %s18001_s30 = sld [smem:[%s20520_s0 + %s17835_s22]]   ;;  %s17839_s22 = smov 32  }
  0x2d   :  { %s18006_s4 = sld [smem:[%s20520_s0 + %s17836_s28]]  }
  0x2e   :  { %s18011_s14 = sld [smem:[%s20520_s0 + %s17837_s7]]  }
  0x2f   :  { %20550 = sst [smem:[#allocation38_spill]] %s17996_s24 }
  0x30   :  { %s18016_s24 = sld [smem:[%s20520_s0 + %s17838_s15]]  }
  0x31   :  { %s18021_s8 = sld [smem:[%s20520_s0 + %s17839_s22]]  }
  0x32   :  { %70 = vsyncpa [#allocation4], 0 }
  0x33   :  { %71 = vsyncpa [#allocation7], 0 }
  0x34   :  { %72 = vsyncpa [#allocation10], 0 }
  0x35   :  { %73 = vsyncpa [#allocation13], 0 }
  0x36   :  { %74 = vsyncpa [#allocation16], 0 }
  0x37   :  { %75 = vsyncpa [#allocation5], 0  ;;  %s17840_s28 = smov [#allocation6]   ;;  %s17841_s2 = smov [#allocation9]  }
  0x38   :  { %s105_s1 = sshll.u32 %s17840_s28, 4  ;;  %s137_s7 = sshll.u32 %s17841_s2, 4  ;;  %s106_s1 = int_to_ptr.vmem [resolvable:$true] %s105_s1  ;;  %s18023_s7 = int_to_ptr.vmem [resolvable:$true] %s137_s7 }
  0x39   :  { %s17598_s10 = scalar_lea.hbm %s17896_s3, 1280 }
  0x3a   :  { %p17599_p0 = scmp.ne.s32.totalorder %s17896_s3, %s17598_s10  ;;  %p17602_p1 = scmp.lt.u32.totalorder %s17598_s10, %s17896_s3 }
  0x3c   :  { %p17604_p2 = pnand %p17602_p1, %p17599_p0 }
  0x3e   :  { %17607 = shalt.err (!%p17604_p2)
}
  0x3f   :  { %s17608_s0 = scalar_lea.vmem %s106_s1, 1280  ;;  %p17613_p4 = scmp.lt.s32.totalorder %s106_s1, %s106_s1 }
  0x40   :  { %p17609_p3 = scmp.ne.s32.totalorder %s106_s1, %s17608_s0  ;;  %p17614_p5 = scmp.lt.s32.totalorder %s17608_s0, %s17608_s0 }
  0x42   :  { %p17615_p6 = por %p17614_p5, %p17613_p4 }
  0x44   :  { %p17616_p7 = pnand %p17615_p6, %p17609_p3 }
  0x46   :  { %17619 = shalt.err (!%p17616_p7)
}
  0x47   :  { %s17842_s11 = smov 64   ;;  %s17843_s15 = smov 4  }
  0x48   :  { %111 = dma.hbm_to_vmem [thread:$0]  %s17896_s3, 1280, %s106_s1, [#allocation7], %s17842_s11, %s17842_s11, %s17843_s15  }
  0x49   :  { %s17620_s16 = scalar_lea.hbm %s17926_s6, 2560 }
  0x4a   :  { %p17621_p8 = scmp.ne.s32.totalorder %s17926_s6, %s17620_s16  ;;  %p17624_p9 = scmp.lt.u32.totalorder %s17620_s16, %s17926_s6 }
  0x4c   :  { %p17626_p10 = pnand %p17624_p9, %p17621_p8 }
  0x4e   :  { %17629 = shalt.err (!%p17626_p10)
}
  0x4f   :  { %s17630_s18 = scalar_lea.vmem %s18023_s7, 2560  ;;  %p17635_p12 = scmp.lt.s32.totalorder %s18023_s7, %s18023_s7 }
  0x50   :  { %p17631_p11 = scmp.ne.s32.totalorder %s18023_s7, %s17630_s18  ;;  %p17636_p13 = scmp.lt.s32.totalorder %s17630_s18, %s17630_s18 }
  0x52   :  { %p17637_p0 = por %p17636_p13, %p17635_p12 }
  0x54   :  { %p17638_p1 = pnand %p17637_p0, %p17631_p11 }
  0x56   :  { %17641 = shalt.err (!%p17638_p1)
}
  0x57   :  { %143 = dma.hbm_to_vmem [thread:$0]  %s17926_s6, 2560, %s18023_s7, [#allocation10], %s17842_s11, %s17842_s11, %s17843_s15  }
  0x58   :  { %s17844_s3 = smov [#allocation12]   ;;  %s17845_s23 = smov [#allocation3]  }
  0x59   :  { %s169_s22 = sshll.u32 %s17844_s3, 4  ;;  %s83_s26 = sshll.u32 %s17845_s23, 4  ;;  %s170_s22 = int_to_ptr.vmem [resolvable:$true] %s169_s22  ;;  %s18044_s26 = int_to_ptr.vmem [resolvable:$true] %s83_s26 }
  0x5a   :  { %s17642_s28 = scalar_lea.hbm %s17956_s20, 2560 }
  0x5b   :  { %p17643_p2 = scmp.ne.s32.totalorder %s17956_s20, %s17642_s28  ;;  %p17646_p3 = scmp.lt.u32.totalorder %s17642_s28, %s17956_s20 }
  0x5d   :  { %p17648_p4 = pnand %p17646_p3, %p17643_p2 }
  0x5f   :  { %17651 = shalt.err (!%p17648_p4)
}
  0x60   :  { %s17652_s1 = scalar_lea.vmem %s170_s22, 2560  ;;  %p17657_p6 = scmp.lt.s32.totalorder %s170_s22, %s170_s22 }
  0x61   :  { %p17653_p5 = scmp.ne.s32.totalorder %s170_s22, %s17652_s1  ;;  %p17658_p7 = scmp.lt.s32.totalorder %s17652_s1, %s17652_s1 }
  0x63   :  { %p17659_p8 = por %p17658_p7, %p17657_p6 }
  0x65   :  { %p17660_p9 = pnand %p17659_p8, %p17653_p5 }
  0x67   :  { %17663 = shalt.err (!%p17660_p9)
}
  0x68   :  { %175 = dma.hbm_to_vmem [thread:$0]  %s17956_s20, 2560, %s170_s22, [#allocation13], %s17842_s11, %s17842_s11, %s17843_s15  }
  0x69   :  { %s17664_s6 = scalar_lea.hbm %s17866_s9, 640 }
  0x6a   :  { %p17665_p10 = scmp.ne.s32.totalorder %s17866_s9, %s17664_s6  ;;  %p17668_p11 = scmp.lt.u32.totalorder %s17664_s6, %s17866_s9 }
  0x6c   :  { %p17670_p12 = pnand %p17668_p11, %p17665_p10 }
  0x6e   :  { %17673 = shalt.err (!%p17670_p12)
}
  0x6f   :  { %s17674_s2 = scalar_lea.vmem %s18044_s26, 640  ;;  %p17679_p0 = scmp.lt.s32.totalorder %s18044_s26, %s18044_s26 }
  0x70   :  { %p17675_p13 = scmp.ne.s32.totalorder %s18044_s26, %s17674_s2  ;;  %p17680_p1 = scmp.lt.s32.totalorder %s17674_s2, %s17674_s2 }
  0x72   :  { %p17681_p2 = por %p17680_p1, %p17679_p0 }
  0x74   :  { %p17682_p3 = pnand %p17681_p2, %p17675_p13 }
  0x76   :  { %17685 = shalt.err (!%p17682_p3)
}
  0x77   :  { %89 = dma.hbm_to_vmem [thread:$0]  %s17866_s9, 640, %s18044_s26, [#allocation4], %s17842_s11, %s17842_s11, %s17843_s15  }
  0x78   :  { %s17846_s20 = smov [#allocation8]   ;;  %s17847_s10 = smov [#allocation11]  }
  0x79   :  { %s121_s7 = sshll.u32 %s17846_s20, 4  ;;  %s153_s0 = sshll.u32 %s17847_s10, 4  ;;  %s122_s7 = int_to_ptr.vmem [resolvable:$true] %s121_s7  ;;  %s18065_s0 = int_to_ptr.vmem [resolvable:$true] %s153_s0 }
  0x7a   :  { %s17686_s16 = scalar_lea.hbm %s17911_s19, 1280 }
  0x7b   :  { %p17687_p4 = scmp.ne.s32.totalorder %s17911_s19, %s17686_s16  ;;  %p17690_p5 = scmp.lt.u32.totalorder %s17686_s16, %s17911_s19 }
  0x7d   :  { %p17692_p6 = pnand %p17690_p5, %p17687_p4 }
  0x7f   :  { %17695 = shalt.err (!%p17692_p6)
}
  0x80   :  { %s17696_s18 = scalar_lea.vmem %s122_s7, 1280  ;;  %p17701_p8 = scmp.lt.s32.totalorder %s122_s7, %s122_s7 }
  0x81   :  { %p17697_p7 = scmp.ne.s32.totalorder %s122_s7, %s17696_s18  ;;  %p17702_p9 = scmp.lt.s32.totalorder %s17696_s18, %s17696_s18 }
  0x83   :  { %p17703_p10 = por %p17702_p9, %p17701_p8 }
  0x85   :  { %p17704_p11 = pnand %p17703_p10, %p17697_p7 }
  0x87   :  { %17707 = shalt.err (!%p17704_p11)
}
  0x88   :  { %127 = dma.hbm_to_vmem [thread:$0]  %s17911_s19, 1280, %s122_s7, [#allocation7], %s17842_s11, %s17842_s11, %s17843_s15  }
  0x89   :  { %s17708_s9 = scalar_lea.hbm %s17941_s27, 2560 }
  0x8a   :  { %p17709_p12 = scmp.ne.s32.totalorder %s17941_s27, %s17708_s9  ;;  %p17712_p13 = scmp.lt.u32.totalorder %s17708_s9, %s17941_s27 }
  0x8c   :  { %p17714_p0 = pnand %p17712_p13, %p17709_p12 }
  0x8e   :  { %17717 = shalt.err (!%p17714_p0)
}
  0x8f   :  { %s17718_s3 = scalar_lea.vmem %s18065_s0, 2560  ;;  %p17723_p2 = scmp.lt.s32.totalorder %s18065_s0, %s18065_s0 }
  0x90   :  { %p17719_p1 = scmp.ne.s32.totalorder %s18065_s0, %s17718_s3  ;;  %p17724_p3 = scmp.lt.s32.totalorder %s17718_s3, %s17718_s3 }
  0x92   :  { %p17725_p4 = por %p17724_p3, %p17723_p2 }
  0x94   :  { %p17726_p5 = pnand %p17725_p4, %p17719_p1 }
  0x96   :  { %17729 = shalt.err (!%p17726_p5)
}
  0x97   :  { %159 = dma.hbm_to_vmem [thread:$0]  %s17941_s27, 2560, %s18065_s0, [#allocation10], %s17842_s11, %s17842_s11, %s17843_s15  }
  0x98   :  { %s17848_s19 = smov [#allocation14]   ;;  %s17849_s23 = smov [#allocation15]  }
  0x99   :  { %s185_s22 = sshll.u32 %s17848_s19, 4  ;;  %s207_s26 = sshll.u32 %s17849_s23, 4  ;;  %s186_s22 = int_to_ptr.vmem [resolvable:$true] %s185_s22  ;;  %s18086_s26 = int_to_ptr.vmem [resolvable:$true] %s207_s26 }
  0x9a   :  { %s17730_s28 = scalar_lea.hbm %s17971_s12, 2560 }
  0x9b   :  { %p17731_p6 = scmp.ne.s32.totalorder %s17971_s12, %s17730_s28  ;;  %p17734_p7 = scmp.lt.u32.totalorder %s17730_s28, %s17971_s12 }
  0x9d   :  { %p17736_p8 = pnand %p17734_p7, %p17731_p6 }
  0x9f   :  { %17739 = shalt.err (!%p17736_p8)
}
  0xa0   :  { %s17740_s1 = scalar_lea.vmem %s186_s22, 2560  ;;  %p17745_p10 = scmp.lt.s32.totalorder %s186_s22, %s186_s22 }
  0xa1   :  { %p17741_p9 = scmp.ne.s32.totalorder %s186_s22, %s17740_s1  ;;  %p17746_p11 = scmp.lt.s32.totalorder %s17740_s1, %s17740_s1 }
  0xa3   :  { %p17747_p12 = por %p17746_p11, %p17745_p10 }
  0xa5   :  { %p17748_p13 = pnand %p17747_p12, %p17741_p9 }
  0xa7   :  { %17751 = shalt.err (!%p17748_p13)
}
  0xa8   :  { %191 = dma.hbm_to_vmem [thread:$0]  %s17971_s12, 2560, %s186_s22, [#allocation13], %s17842_s11, %s17842_s11, %s17843_s15  }
  0xa9   :  { %s17752_s27 = scalar_lea.hbm %s18001_s30, 1024 }
  0xaa   :  { %p17753_p0 = scmp.ne.s32.totalorder %s18001_s30, %s17752_s27  ;;  %p17756_p1 = scmp.lt.u32.totalorder %s17752_s27, %s18001_s30 }
  0xac   :  { %p17758_p2 = pnand %p17756_p1, %p17753_p0 }
  0xae   :  { %17761 = shalt.err (!%p17758_p2)
}
  0xaf   :  { %s17762_s6 = scalar_lea.vmem %s18086_s26, 1024  ;;  %p17767_p4 = scmp.lt.s32.totalorder %s18086_s26, %s18086_s26 }
  0xb0   :  { %p17763_p3 = scmp.ne.s32.totalorder %s18086_s26, %s17762_s6  ;;  %p17768_p5 = scmp.lt.s32.totalorder %s17762_s6, %s17762_s6 }
  0xb2   :  { %p17769_p6 = por %p17768_p5, %p17767_p4 }
  0xb4   :  { %p17770_p7 = pnand %p17769_p6, %p17763_p3 }
  0xb6   :  { %17773 = shalt.err (!%p17770_p7)
}
  0xb7   :  { %213 = dma.hbm_to_vmem [thread:$0]  %s18001_s30, 1024, %s18086_s26, [#allocation16], %s17842_s11, %s17842_s11, %s17843_s15  }
  0xb8   :  { %17796 = dma.done.wait [#allocation4], 640  }
  0xb9   :  { %17797 = vsyncadd [#allocation4], 4294966656 }
  0xba   :  { %17798 = dma.done.wait [#allocation7], 2560  }
  0xbb   :  { %17799 = vsyncadd [#allocation7], 4294964736 }
  0xbc   :  { %17800 = dma.done.wait [#allocation10], 5120  }
  0xbd   :  { %17801 = vsyncadd [#allocation10], 4294962176 }
  0xbe   :  { %17802 = dma.done.wait [#allocation13], 5120  }
  0xbf   :  { %17803 = vsyncadd [#allocation13], 4294962176 }
  0xc0   :  { %17804 = dma.done.wait [#allocation16], 1024  }
  0xc1   :  { %17805 = vsyncadd [#allocation16], 4294966272  ;;  %vm368_vm0 = vcmask 1045504   ;;  %v17272_v0 = vld [vmem:[#allocation3 + $0x8] sm:$0x3f]   ;;  %v246_v2 = vld [vmem:[%s17861_s5 + $0x8] sm:$0xff] }
  0xc2   :  { %v245_v1 = vld [vmem:[%s17861_s5] sm:$0xff]  ;;  %v247_v3 = vld [vmem:[%s17861_s5 + $0x10] sm:$0xff]  ;;  %17217 = vmatprep.subr.msk.bf16.mxu0 %vm368_vm0, %v17272_v0  ;;  %v370_v4 = vsel %vm368_vm0, %v17272_v0, 0  ;;  %v248_v5 = vld [vmem:[%s17861_s5 + $0x18] sm:$0xff]  ;;  %vm274_vm1 = vsmask.f32 7424 }
  0xc3   :  { %v18113_v6 = vpack.c.bf16 %v246_v2, %v245_v1  ;;  %v249_v7 = vld [vmem:[%s17861_s5 + $0x20] sm:$0xff]  ;;  %v250_v8 = vld [vmem:[%s17861_s5 + $0x28] sm:$0xff]  ;;  %14827 = vmatpush3.bf16.msra.mxu0 %v370_v4  ;;  %v18117_v9 = vpack.c.bf16 %v248_v5, %v247_v3  ;;  %v17273_v11 = vld [vmem:[#allocation3] sm:$0x3f]   ;;  %vm343_vm2 = vcmask 97280   ;;  %vm601_vm3 = vcmask 1046528  }
  0xc4   :  { %v18119_v10 = vpack.c.bf16 %v250_v8, %v249_v7  ;;  %v251_v14 = vld [vmem:[%s17861_s5 + $0x30] sm:$0xff]  ;;  %v252_v15 = vld [vmem:[%s17861_s5 + $0x38] sm:$0xff]  ;;  %17218 = vmatprep.subr.msk.bf16.mxu0 %vm368_vm0, %v17273_v11  ;;  %v491_v20 = vsel %vm368_vm0, %v17273_v11, 0  ;;  %v253_v21 = vld [vmem:[%s17861_s5 + $0x40] sm:$0xff]  ;;  %vm765_vm4 = vsmask.f32 6400 }
  0xc5   :  { %v276_v12 = vshrl.u32 %v18113_v6, 16  ;;  %v278_v13 = vshll.u32 %v18113_v6, 16  ;;  %v602_v16 = vrot.slane %v18113_v6, 1  ;;  %v283_v17 = vshll.u32 %v18117_v9, 16  ;;  %v254_v22 = vld [vmem:[%s17861_s5 + $0x48] sm:$0xff]  ;;  %v255_v27 = vld [vmem:[%s17861_s5 + $0x50] sm:$0xff] }
  0xc6   :  { %v287_v18 = vshrl.u32 %v18117_v9, 16  ;;  %v291_v19 = vshll.u32 %v18119_v10, 16  ;;  %v18137_v25 = vpack.c.bf16 %v252_v15, %v251_v14  ;;  %v295_v26 = vshrl.u32 %v18119_v10, 16  ;;  %v256_v28 = vld [vmem:[%s17861_s5 + $0x58] sm:$0xff]  ;;  %v257_v33 = vld [vmem:[%s17861_s5 + $0x60] sm:$0xff]  ;;  %v258_v34 = vld [vmem:[%s17861_s5 + $0x68] sm:$0xff] }
  0xc7   :  { %v280_v23 = vrot.slane %v278_v13, 1  ;;  %v18135_v24 = vrot.slane %v276_v12, 1  ;;  %v285_v29 = vrot.slane %v283_v17, 1  ;;  %v18142_v30 = vrot.slane %v283_v17, 2  ;;  %v259_v38 = vld [vmem:[%s17861_s5 + $0x70] sm:$0xff]  ;;  %v260_v43 = vld [vmem:[%s17861_s5 + $0x78] sm:$0xff] }
  0xc8   :  { %v293_v31 = vrot.slane %v291_v19, 1  ;;  %v774_v32 = vrot.slane %v291_v19, 2  ;;  %v299_v36 = vshll.u32 %v18137_v25, 16  ;;  %v18147_v37 = vpack.c.bf16 %v254_v22, %v253_v21  ;;  %v17274_v44 = vld [vmem:[#allocation3 + $0x10] sm:$0x3f]   ;;  %s20551_s30 = sld [smem:[#allocation24_spill]] }
  0xc9   :  { %v281_v35 = vor.u32 %v280_v23, %v276_v12  ;;  %v289_v39 = vor.u32 %v287_v18, %v285_v29  ;;  %v303_v41 = vshrl.u32 %v18137_v25, 16  ;;  %v18153_v42 = vpack.c.bf16 %v256_v28, %v255_v27  ;;  %v18171_v57 = vld [vmem:[#allocation3 + $0x18] sm:$0x3f]   ;;  %s20552_s12 = sld [smem:[#allocation25_spill]]  ;;  %s20553_s11 = sld [smem:[#allocation26_spill]] }
  0xca   :  { %v297_v40 = vor.u32 %v295_v26, %v293_v31  ;;  %v301_v46 = vrot.slane %v299_v36, 1  ;;  %v307_v47 = vshll.u32 %v18147_v37, 16  ;;  %v311_v48 = vshrl.u32 %v18147_v37, 16  ;;  %s20554_s15 = sld [smem:[#allocation27_spill]]  ;;  %s20555_s2 = sld [smem:[#allocation28_spill]] }
  0xcb   :  { %v286_v45 = vsel %vm274_vm1, %v281_v35, %v285_v29  ;;  %v294_v49 = vsel %vm274_vm1, %v289_v39, %v293_v31  ;;  %v315_v50 = vshll.u32 %v18153_v42, 16  ;;  %v18164_v51 = vpack.c.bf16 %v258_v34, %v257_v33  ;;  %s20556_s20 = sld [smem:[#allocation29_spill]]  ;;  %s20557_s7 = sld [smem:[#allocation30_spill]] }
  0xcc   :  { %14828 = vmatprep.mubr.msk.bf16.mxu0 %vm343_vm2, %v286_v45  ;;  %v319_v52 = vshrl.u32 %v18153_v42, 16  ;;  %v302_v53 = vsel %vm274_vm1, %v297_v40, %v301_v46  ;;  %v773_v54 = vrot.slane %v295_v26, 1  ;;  %v309_v55 = vrot.slane %v307_v47, 1  ;;  %s20558_s10 = sld [smem:[#allocation31_spill]]  ;;  %s20559_s0 = sld [smem:[#allocation32_spill]] }
  0xcd   :  { %14829 = vmatmul.mubr.msk.bf16.vlgmr.msra.gmra.mrb[0].mxu0 %vm343_vm2, %v294_v49  ;;  %v18169_v56 = vpack.c.bf16 %v260_v43, %v259_v38  ;;  %v305_v58 = vor.u32 %v303_v41, %v301_v46  ;;  %v317_v59 = vrot.slane %v315_v50, 1  ;;  %v323_v60 = vshll.u32 %v18164_v51, 16  ;;  %s20560_s16 = sld [smem:[#allocation33_spill]]  ;;  %s20562_s18 = sld [smem:[#allocation34_spill]] }
  0xce   :  { %14845 = vmatpush3.bf16.msra.mxu0 %v491_v20  ;;  %14832 = vmatprep.mubr.msk.bf16.mxu0 %vm343_vm2, %v302_v53  ;;  %v327_v61 = vshrl.u32 %v18164_v51, 16  ;;  %v313_v62 = vor.u32 %v311_v48, %v309_v55  ;;  %v18179_v0 = vsel %vm368_vm0, %v17274_v44, 0  ;;  %v603_v4 = vrot.slane %v18117_v9, 1  ;;  %v17276_v53 = vld [vmem:[#allocation3 + $0x20] sm:$0x3f]   ;;  %s20563_s9 = sld [smem:[#allocation35_spill]] }
  0xcf   :  { %v331_v63 = vshll.u32 %v18169_v56, 16  ;;  %17219 = vmatprep.subr.msk.bf16.mxu0 %vm368_vm0, %v17274_v44  ;;  %v321_v1 = vor.u32 %v319_v52, %v317_v59  ;;  %v325_v2 = vrot.slane %v323_v60, 1  ;;  %v335_v3 = vshrl.u32 %v18169_v56, 16 }
  0xd0   :  { %v605_v7 = vrot.slane %v18119_v10, 1  ;;  %v18188_v8 = vsel %vm368_vm0, %v18171_v57, 0  ;;  %v607_v11 = vrot.slane %v18137_v25, 1  ;;  %v310_v12 = vsel %vm274_vm1, %v305_v58, %v309_v55 }
  0xd1   :  { %v18183_v5 = vrot.slane %v331_v63, 1  ;;  %v329_v14 = vor.u32 %v327_v61, %v325_v2  ;;  %v318_v15 = vsel %vm274_vm1, %v313_v62, %v317_v59  ;;  %v609_v19 = vrot.slane %v18147_v37, 1 }
  0xd2   :  { %v18196_v17 = vsel %vm601_vm3, %v605_v7, %v607_v11  ;;  %v611_v20 = vrot.slane %v18153_v42, 1  ;;  %v326_v21 = vsel %vm274_vm1, %v321_v1, %v325_v2  ;;  %v613_v22 = vrot.slane %v18164_v51, 1 }
  0xd3   :  { %v615_v23 = vrot.slane %v18169_v56, 1  ;;  %v767_v26 = vrot.slane %v278_v13, 2  ;;  %v18207_v27 = vsel %vm601_vm3, %v607_v11, %v609_v19  ;;  %v769_v29 = vrot.slane %v287_v18, 1 }
  0xd4   :  { %v18210_v28 = vsel %vm601_vm3, %v609_v19, %v611_v20  ;;  %v775_v31 = vor.u32 %v774_v32, %v773_v54  ;;  %v334_v33 = vsel %vm274_vm1, %v329_v14, %v18183_v5  ;;  %v18218_v34 = vsel %vm601_vm3, %v611_v20, %v613_v22 }
  0xd5   :  { %14833 = vmatmul.mubr.msk.bf16.gmra.mrb[4].mxu0 %vm343_vm2, %v310_v12  ;;  %v18223_v13 = vsel %vm601_vm3, %v613_v22, %v615_v23  ;;  %v768_v35 = vor.u32 %v767_v26, %v18135_v24  ;;  %v771_v38 = vor.u32 %v18142_v30, %v769_v29  ;;  %v777_v39 = vrot.slane %v303_v41, 1 }
  0xd6   :  { %14836 = vmatprep.mubr.msk.bf16.mxu0 %vm343_vm2, %v318_v15  ;;  %v778_v18 = vrot.slane %v299_v36, 2  ;;  %v781_v32 = vrot.slane %v311_v48, 1  ;;  %v782_v40 = vrot.slane %v307_v47, 2  ;;  %v785_v43 = vrot.slane %v319_v52, 1 }
  0xd7   :  { %v786_v44 = vrot.slane %v315_v50, 2  ;;  %v789_v45 = vrot.slane %v327_v61, 1  ;;  %v772_v46 = vsel %vm765_vm4, %v768_v35, %v771_v38  ;;  %v776_v49 = vsel %vm765_vm4, %v771_v38, %v775_v31 }
  0xd8   :  { %v779_v54 = vor.u32 %v778_v18, %v777_v39  ;;  %v790_v55 = vrot.slane %v323_v60, 2  ;;  %v783_v58 = vor.u32 %v782_v40, %v781_v32  ;;  %v793_v30 = vrot.slane %v335_v3, 1 }
  0xd9   :  { %v787_v24 = vor.u32 %v786_v44, %v785_v43  ;;  %v794_v41 = vrot.slane %v331_v63, 2  ;;  %v946_v47 = vrot.slane %v18113_v6, 2  ;;  %v947_v50 = vrot.slane %v18117_v9, 2 }
  0xda   :  { %v780_v36 = vsel %vm765_vm4, %v775_v31, %v779_v54  ;;  %v791_v48 = vor.u32 %v790_v55, %v789_v45  ;;  %v784_v52 = vsel %vm765_vm4, %v779_v54, %v783_v58  ;;  %v949_v60 = vrot.slane %v18119_v10, 2 }
  0xdb   :  { %v788_v59 = vsel %vm765_vm4, %v783_v58, %v787_v24  ;;  %v795_v61 = vor.u32 %v794_v41, %v793_v30  ;;  %v948_v63 = vsel %vm368_vm0, %v946_v47, %v947_v50  ;;  %v951_v1 = vrot.slane %v18137_v25, 2 }
  0xdc   :  { %v792_v62 = vsel %vm765_vm4, %v787_v24, %v791_v48  ;;  %v953_v2 = vrot.slane %v18147_v37, 2  ;;  %v950_v12 = vsel %vm368_vm0, %v947_v50, %v949_v60  ;;  %v955_v14 = vrot.slane %v18153_v42, 2 }
  0xdd   :  { %14837 = vmatmul.mubr.msk.bf16.gmra.mrb[8].mxu0 %vm343_vm2, %v326_v21  ;;  %v796_v11 = vsel %vm765_vm4, %v791_v48, %v795_v61  ;;  %v957_v15 = vrot.slane %v18164_v51, 2  ;;  %v991_v19 = vsel %vm368_vm0, %v17276_v53, 0  ;;  %v952_v20 = vsel %vm368_vm0, %v949_v60, %v951_v1 }
  0xde   :  { %14840 = vmatprep.mubr.msk.bf16.mxu0 %vm343_vm2, %v334_v33  ;;  %v954_v21 = vsel %vm368_vm0, %v951_v1, %v953_v2  ;;  %v959_v22 = vrot.slane %v18169_v56, 2  ;;  %v956_v26 = vsel %vm368_vm0, %v953_v2, %v955_v14  ;;  %v337_v31 = vor.u32 %v335_v3, %v18183_v5 }
  0xdf   :  { %v958_v29 = vsel %vm368_vm0, %v955_v14, %v957_v15  ;;  %vm1261_vm5 = vcmask 261120   ;;  %vm3025_vm6 = vcmask 257024   ;;  %vm3712_vm7 = vcmask 523264  }
  0xe0   :  { %v960_v33 = vsel %vm368_vm0, %v957_v15, %v959_v22  ;;  %vm17851_vm8 = vmmov 0   ;;  %vm5505_vm9 = vcmask 519168   ;;  %vm12869_vm10 = vcmask 1040384  }
  0xe1   :  { %vm13095_vm11 = vcmask 9216  }
  0xe5   :  { %14841 = vmatmul.mubr.msk.bf16.gmra.mrb[12].mxu0 %vm343_vm2, %v337_v31 }
  0xe6   :  { %14846 = vmatprep.mubr.msk.bf16.mxu0 %vm343_vm2, %v18113_v6  ;;  %v18323_v6 = vld [vmem:[%s17881_s21] sm:$0xff]  }
  0xe7   :  { %16446 = vmatprep.subr.bf16.mxu1 %v18323_v6 }
  0xe8   :  { %16448 = vmatpush3.bf16.msra.mxu1 %v18323_v6 }
  0xed   :  { %14847 = vmatmul.mubr.msk.bf16.vlgmr.msra.gmra.mrb[0].mxu0 %vm343_vm2, %v18117_v9  ;;  %v17278_v9 = vld [vmem:[%s17881_s21 + $0x10] sm:$0xff]  }
  0xee   :  { %14863 = vmatpush3.bf16.msra.mxu0 %v18179_v0  ;;  %14850 = vmatprep.mubr.msk.bf16.mxu0 %vm343_vm2, %v18119_v10  ;;  %v604_v0 = vsel %vm601_vm3, %v602_v16, %v603_v4  ;;  %v18329_v10 = vld [vmem:[%s17881_s21 + $0x8] sm:$0xff]   ;;  %v17280_v16 = vld [vmem:[%s17881_s21 + $0x18] sm:$0xff]  }
  0xef   :  { %17220 = vmatprep.subr.msk.bf16.mxu0 %vm368_vm0, %v18171_v57  ;;  %16447 = vmatprep.subr.bf16.mxu1 %v18329_v10 }
  0xf0   :  { %16449 = vmatpush3.bf16.msra.mxu1 %v18329_v10 }
  0xf5   :  { %14851 = vmatmul.mubr.msk.bf16.gmra.mrb[4].mxu0 %vm343_vm2, %v18137_v25  ;;  %v606_v25 = vsel %vm601_vm3, %v603_v4, %v605_v7 }
  0xf6   :  { %14854 = vmatprep.mubr.msk.bf16.mxu0 %vm343_vm2, %v18147_v37  ;;  %v18336_v37 = vld [vmem:[%s17881_s21 + $0x20] sm:$0xff]  }
  0xf7   :  { %14956 = vmatprep.subr.bf16.mxu1 %v18336_v37 }
  0xfd   :  { %14855 = vmatmul.mubr.msk.bf16.gmra.mrb[8].mxu0 %vm343_vm2, %v18153_v42  ;;  %v18340_v42 = vld [vmem:[%s17871_s13] ss:$0 sm:$0xff] }
  0xfe   :  { %14858 = vmatprep.mubr.msk.bf16.mxu0 %vm343_vm2, %v18164_v51 }
 0x105   :  { %14859 = vmatmul.mubr.msk.bf16.gmra.mrb[12].mxu0 %vm343_vm2, %v18169_v56  ;;  %v18343_v56 = vld [vmem:[%s17876_s17] ss:$0 sm:$0xff] }
 0x106   :  { %14864 = vmatprep.mubr.msk.bf16.mxu0 %vm343_vm2, %v604_v0 }
 0x10d   :  { %14865 = vmatmul.mubr.msk.bf16.vlgmr.msra.gmra.mrb[0].mxu0 %vm343_vm2, %v606_v25 }
 0x10e   :  { %14881 = vmatpush3.bf16.msra.mxu0 %v18188_v8  ;;  %14868 = vmatprep.mubr.msk.bf16.mxu0 %vm343_vm2, %v18196_v17 }
 0x10f   :  { %17221 = vmatprep.subr.msk.bf16.mxu0 %vm368_vm0, %v17276_v53 }
 0x115   :  { %14869 = vmatmul.mubr.msk.bf16.gmra.mrb[4].mxu0 %vm343_vm2, %v18207_v27 }
 0x116   :  { %14872 = vmatprep.mubr.msk.bf16.mxu0 %vm343_vm2, %v18210_v28 }
 0x11d   :  { %14873 = vmatmul.mubr.msk.bf16.gmra.mrb[8].mxu0 %vm343_vm2, %v18218_v34 }
 0x11e   :  { %14876 = vmatprep.mubr.msk.bf16.mxu0 %vm343_vm2, %v18223_v13 }
 0x125   :  { %14877 = vmatmul.mubr.msk.bf16.gmra.mrb[12].mxu0 %vm343_vm2, %v615_v23 }
 0x126   :  { %14882 = vmatprep.mubr.msk.bf16.mxu0 %vm343_vm2, %v772_v46 }
 0x12d   :  { %14883 = vmatmul.mubr.msk.bf16.vlgmr.msra.gmra.mrb[0].mxu0 %vm343_vm2, %v776_v49 }
 0x12e   :  { %14899 = vmatpush3.bf16.msra.mxu0 %v991_v19  ;;  %14886 = vmatprep.mubr.msk.bf16.mxu0 %vm343_vm2, %v780_v36 }
 0x12f   :  { %14916 = vmatprep.subr.bf16.mxu0 %v17278_v9 }
 0x135   :  { %14887 = vmatmul.mubr.msk.bf16.gmra.mrb[4].mxu0 %vm343_vm2, %v784_v52 }
 0x136   :  { %14890 = vmatprep.mubr.msk.bf16.mxu0 %vm343_vm2, %v788_v59 }
 0x13d   :  { %14891 = vmatmul.mubr.msk.bf16.gmra.mrb[8].mxu0 %vm343_vm2, %v792_v62 }
 0x13e   :  { %14894 = vmatprep.mubr.msk.bf16.mxu0 %vm343_vm2, %v796_v11 }
 0x145   :  { %14895 = vmatmul.mubr.msk.bf16.gmra.mrb[12].mxu0 %vm343_vm2, %v795_v61 }
 0x146   :  { %14900 = vmatprep.mubr.msk.bf16.mxu0 %vm343_vm2, %v948_v63 }
 0x14d   :  { %14901 = vmatmul.mubr.msk.bf16.vlgmr.msra.gmra.mrb[0].mxu0 %vm343_vm2, %v950_v12 }
 0x14e   :  { %14904 = vmatprep.mubr.msk.bf16.mxu0 %vm343_vm2, %v952_v20  ;;  %14917 = vmatpush3.bf16.msra.mxu0 %v17278_v9 }
 0x14f   :  { %14918 = vmatprep.subr.bf16.mxu0 %v17280_v16 }
 0x152   :  { %14919 = vmatpush3.bf16.msra.mxu0 %v17280_v16 }
 0x153   :  { %14936 = vmatprep.subr.bf16.mxu0 %v18323_v6 }
 0x155   :  { %14905 = vmatmul.mubr.msk.bf16.gmra.mrb[4].mxu0 %vm343_vm2, %v954_v21 }
 0x156   :  { %14908 = vmatprep.mubr.msk.bf16.mxu0 %vm343_vm2, %v956_v26 }
 0x15d   :  { %14909 = vmatmul.mubr.msk.bf16.gmra.mrb[8].mxu0 %vm343_vm2, %v958_v29 }
 0x15e   :  { %14912 = vmatprep.mubr.msk.bf16.mxu0 %vm343_vm2, %v960_v33 }
 0x165   :  { %14913 = vmatmul.mubr.msk.bf16.gmra.mrb[12].mxu0 %vm343_vm2, %v959_v22 }
 0x220   :  { %v14902_v51 = vpop.f32.mrb[0].mxu0 }
 0x221   :  { %v1115_v57 = vmul.f32 %v14902_v51, %v18340_v42  ;;  %v1027_v3 = vpop.f32.mrb[1].mxu0 }
 0x222   :  { %v1113_v4 = vmul.f32 %v18340_v42, %v1027_v3  ;;  %v14903_v5 = vpop.f32.mrb[2].mxu0 }
 0x223   :  { %v1138_v7 = vadd.f32 %v18343_v56, %v1115_v57  ;;  %v1116_v8 = vmul.f32 %v14903_v5, %v18340_v42  ;;  %v1030_v17 = vpop.f32.mrb[3].mxu0 }
 0x224   :  { %v1136_v23 = vadd.f32 %v18343_v56, %v1113_v4  ;;  %v1114_v27 = vmul.f32 %v18340_v42, %v1030_v17  ;;  %v17282_v4 = vld [vmem:[%s17881_s21 + $0x28] sm:$0xff]  }
 0x225   :  { %v1139_v28 = vadd.f32 %v18343_v56, %v1116_v8  ;;  %v1154_v13 = vmax.f32 %v1138_v7, 0.0 }
 0x226   :  { %v1137_v34 = vadd.f32 %v18343_v56, %v1114_v27  ;;  %v1152_v38 = vmax.f32 %v1136_v23, 0.0 }
 0x227   :  { %v1155_v35 = vmax.f32 %v1139_v28, 0.0 }
 0x228   :  { %v1153_v39 = vmax.f32 %v1137_v34, 0.0  ;;  %v14906_v18 = vpop.f32.mrb[4].mxu0 }
 0x229   :  { %v18353_v32 = vpack.c.bf16 %v1155_v35, %v1154_v13  ;;  %v1119_v40 = vmul.f32 %v14906_v18, %v18340_v42  ;;  %v1043_v43 = vpop.f32.mrb[5].mxu0 }
 0x22a   :  { %v18356_v44 = vpack.c.bf16 %v1153_v39, %v1152_v38  ;;  %v1117_v45 = vmul.f32 %v18340_v42, %v1043_v43  ;;  %v14907_v46 = vpop.f32.mrb[6].mxu0 }
 0x22b   :  { %v1142_v49 = vadd.f32 %v18343_v56, %v1119_v40  ;;  %v1120_v53 = vmul.f32 %v14907_v46, %v18340_v42  ;;  %v1046_v54 = vpop.f32.mrb[7].mxu0  ;;  %v1194_v55 = vshll.u32 %v18353_v32, 16  ;;  %v1198_v47 = vshrl.u32 %v18353_v32, 16  ;;  %v18412_v46 = vld [vmem:[%s17881_s21 + $0x30] sm:$0xff]  }
 0x22c   :  { %v1140_v58 = vadd.f32 %v18343_v56, %v1117_v45  ;;  %v1118_v24 = vmul.f32 %v18340_v42, %v1046_v54  ;;  %v1187_v30 = vshrl.u32 %v18356_v44, 16  ;;  %v1189_v41 = vshll.u32 %v18356_v44, 16 }
 0x22d   :  { %v1143_v36 = vadd.f32 %v18343_v56, %v1120_v53  ;;  %v1196_v48 = vrot.slane %v1194_v55, 1  ;;  %v1520_v50 = vrot.slane %v18356_v44, 1  ;;  %v1158_v52 = vmax.f32 %v1142_v49, 0.0 }
 0x22e   :  { %v1141_v59 = vadd.f32 %v18343_v56, %v1118_v24  ;;  %v1191_v61 = vrot.slane %v1189_v41, 1  ;;  %v1521_v60 = vrot.slane %v18353_v32, 1  ;;  %v1156_v62 = vmax.f32 %v1140_v58, 0.0 }
 0x22f   :  { %v1159_v63 = vmax.f32 %v1143_v36, 0.0  ;;  %v18371_v1 = vrot.slane %v1187_v30, 1  ;;  %v18373_v2 = vrot.slane %v1189_v41, 2  ;;  %v1200_v15 = vor.u32 %v1198_v47, %v1196_v48 }
 0x230   :  { %v1157_v11 = vmax.f32 %v1141_v59, 0.0  ;;  %v14910_v12 = vpop.f32.mrb[8].mxu0  ;;  %v1192_v14 = vor.u32 %v1191_v61, %v1187_v30  ;;  %v18376_v19 = vsel %vm601_vm3, %v1520_v50, %v1521_v60  ;;  %v1690_v29 = vrot.slane %v1198_v47, 1 }
 0x231   :  { %v18378_v20 = vpack.c.bf16 %v1159_v63, %v1158_v52  ;;  %v1123_v21 = vmul.f32 %v14910_v12, %v18340_v42  ;;  %v1059_v22 = vpop.f32.mrb[9].mxu0  ;;  %v1689_v26 = vor.u32 %v18373_v2, %v18371_v1  ;;  %v1691_v9 = vrot.slane %v1194_v55, 2 }
 0x232   :  { %v18383_v31 = vpack.c.bf16 %v1157_v11, %v1156_v62  ;;  %v1121_v33 = vmul.f32 %v18340_v42, %v1059_v22  ;;  %v14911_v0 = vpop.f32.mrb[10].mxu0  ;;  %v1197_v25 = vsel %vm274_vm1, %v1192_v14, %v1196_v48  ;;  %v1870_v5 = vrot.slane %v18356_v44, 2 }
 0x233   :  { %v1146_v16 = vadd.f32 %v18343_v56, %v1123_v21  ;;  %v1124_v51 = vmul.f32 %v14911_v0, %v18340_v42  ;;  %v1062_v57 = vpop.f32.mrb[11].mxu0  ;;  %14920 = vmatprep.mubr.msk.bf16.mxu0 %vm1261_vm5, %v1197_v25  ;;  %v1210_v3 = vshll.u32 %v18378_v20, 16  ;;  %v1214_v34 = vshrl.u32 %v18378_v20, 16 }
 0x234   :  { %v1144_v7 = vadd.f32 %v18343_v56, %v1121_v33  ;;  %v1122_v8 = vmul.f32 %v18340_v42, %v1062_v57  ;;  %14944 = vmatprep.mubr.msk.bf16.mxu1 %vm1261_vm5, %v18383_v31  ;;  %v1202_v17 = vshll.u32 %v18383_v31, 16  ;;  %v1206_v23 = vshrl.u32 %v18383_v31, 16 }
 0x235   :  { %v1147_v27 = vadd.f32 %v18343_v56, %v1124_v51  ;;  %14945 = vmatmul.mubr.msk.bf16.vlgmr.msra.gmra.mrb[0].mxu1 %vm1261_vm5, %v18378_v20  ;;  %v1212_v28 = vrot.slane %v1210_v3, 1  ;;  %v1523_v13 = vrot.slane %v18383_v31, 1  ;;  %v1162_v35 = vmax.f32 %v1146_v16, 0.0 }
 0x236   :  { %v1160_v38 = vmax.f32 %v1144_v7, 0.0  ;;  %v1145_v39 = vadd.f32 %v18343_v56, %v1122_v8  ;;  %14957 = vmatpush3.bf16.msra.mxu1 %v18336_v37  ;;  %v1204_v18 = vrot.slane %v1202_v17, 1  ;;  %v1694_v43 = vrot.slane %v1206_v23, 1 }
 0x237   :  { %v1163_v40 = vmax.f32 %v1147_v27, 0.0  ;;  %14958 = vmatprep.subr.bf16.mxu1 %v17282_v4  ;;  %v18409_v45 = vsel %vm601_vm3, %v1521_v60, %v1523_v13  ;;  %v1525_v49 = vrot.slane %v18378_v20, 1  ;;  %v1216_v24 = vor.u32 %v1214_v34, %v1212_v28 }
 0x238   :  { %v1161_v53 = vmax.f32 %v1145_v39, 0.0  ;;  %v14914_v54 = vpop.f32.mrb[12].mxu0  ;;  %v1205_v55 = vsel %vm274_vm1, %v1200_v15, %v1204_v18  ;;  %v1208_v58 = vor.u32 %v1206_v23, %v1204_v18  ;;  %v1692_v48 = vor.u32 %v1691_v9, %v1690_v29 }
 0x239   :  { %v18416_v30 = vpack.c.bf16 %v1163_v40, %v1162_v35  ;;  %v1127_v37 = vmul.f32 %v14914_v54, %v18340_v42  ;;  %v1075_v41 = vpop.f32.mrb[13].mxu0  ;;  %14921 = vmatmul.mubr.msk.bf16.vlgmr.msra.gmra.mrb[16].mxu0 %vm1261_vm5, %v1205_v55  ;;  %v18421_v36 = vsel %vm601_vm3, %v1523_v13, %v1525_v49  ;;  %v1695_v61 = vrot.slane %v1202_v17, 2 }
 0x23a   :  { %v18423_v47 = vpack.c.bf16 %v1161_v53, %v1160_v38  ;;  %v1125_v50 = vmul.f32 %v18340_v42, %v1075_v41  ;;  %v14915_v52 = vpop.f32.mrb[14].mxu0  ;;  %v1213_v59 = vsel %vm274_vm1, %v1208_v58, %v1212_v28  ;;  %14959 = vmatpush3.bf16.msra.mxu1 %v17282_v4  ;;  %14937 = vmatpush3.bf16.msra.mxu0 %v18323_v6  ;;  %v1698_v12 = vrot.slane %v1214_v34, 1 }
 0x23b   :  { %v1150_v60 = vadd.f32 %v18343_v56, %v1127_v37  ;;  %v1128_v62 = vmul.f32 %v14915_v52, %v18340_v42  ;;  %v1078_v63 = vpop.f32.mrb[15].mxu0  ;;  %14924 = vmatprep.mubr.msk.bf16.mxu0 %vm1261_vm5, %v1213_v59  ;;  %v1226_v11 = vshll.u32 %v18416_v30, 16  ;;  %14976 = vmatprep.subr.bf16.mxu1 %v18412_v46  ;;  %v1230_v21 = vshrl.u32 %v18416_v30, 16 }
 0x23c   :  { %v1148_v14 = vadd.f32 %v18343_v56, %v1125_v50  ;;  %v1126_v15 = vmul.f32 %v18340_v42, %v1078_v63  ;;  %14948 = vmatprep.mubr.msk.bf16.mxu1 %vm1261_vm5, %v18423_v47  ;;  %v1218_v6 = vshll.u32 %v18423_v47, 16  ;;  %14938 = vmatprep.subr.bf16.mxu0 %v18329_v10  ;;  %v1222_v33 = vshrl.u32 %v18423_v47, 16 }
 0x23d   :  { %v1166_v22 = vmax.f32 %v1150_v60, 0.0  ;;  %v1151_v29 = vadd.f32 %v18343_v56, %v1128_v62  ;;  %14949 = vmatmul.mubr.msk.bf16.gmra.mrb[4].mxu1 %vm1261_vm5, %v18416_v30  ;;  %v1527_v0 = vrot.slane %v18423_v47, 1  ;;  %v1228_v9 = vrot.slane %v1226_v11, 1 }
 0x23e   :  { %v1149_v42 = vadd.f32 %v18343_v56, %v1126_v15  ;;  %v1220_v25 = vrot.slane %v1218_v6, 1  ;;  %14939 = vmatpush3.bf16.msra.mxu0 %v18329_v10  ;;  %v1529_v16 = vrot.slane %v18416_v30, 1  ;;  %v1164_v57 = vmax.f32 %v1148_v14, 0.0 }
 0x23f   :  { %v1175_v51 = vpack.c.bf16 %v1166_v22, %v1166_v22  ;;  %v1167_v4 = vmax.f32 %v1151_v29, 0.0  ;;  %v18449_v7 = vsel %vm601_vm3, %v1525_v49, %v1527_v0  ;;  %v18462_v10 = vsel %vm765_vm4, %v1689_v26, %v1692_v48 }
 0x240   :  { %v1165_v8 = vmax.f32 %v1149_v42, 0.0  ;;  %v1221_v17 = vsel %vm274_vm1, %v1216_v24, %v1220_v25  ;;  %v1224_v23 = vor.u32 %v1222_v33, %v1220_v25  ;;  %v18453_v27 = vsel %vm601_vm3, %v1527_v0, %v1529_v16 }
 0x241   :  { %v18455_v56 = vpack.c.bf16 %v1167_v4, %v1166_v22  ;;  %14925 = vmatmul.mubr.msk.bf16.gmra.mrb[20].mxu0 %vm1261_vm5, %v1221_v17  ;;  %v1696_v28 = vor.u32 %v1695_v61, %v1694_v43  ;;  %v1699_v34 = vrot.slane %v1210_v3, 2  ;;  %v1702_v38 = vrot.slane %v1222_v33, 1  ;;  %v17284_v33 = vld [vmem:[%s17881_s21 + $0x38] sm:$0xff]  }
 0x242   :  { %v18466_v13 = vpack.c.bf16 %v1165_v8, %v1164_v57  ;;  %v1229_v35 = vsel %vm274_vm1, %v1224_v23, %v1228_v9  ;;  %v1703_v39 = vrot.slane %v1218_v6, 2  ;;  %v1232_v53 = vor.u32 %v1230_v21, %v1228_v9  ;;  %v17285_v8 = vld [vmem:[%s17881_s21 + $0x40] sm:$0xff]  }
 0x243   :  { %14928 = vmatprep.mubr.msk.bf16.mxu0 %vm1261_vm5, %v1229_v35  ;;  %v1242_v18 = vshll.u32 %v18455_v56, 16  ;;  %v1246_v40 = vshrl.u32 %v18455_v56, 16  ;;  %v1533_v1 = vrot.slane %v18455_v56, 1  ;;  %v18474_v2 = vsel %vm765_vm4, %v1692_v48, %v1696_v28 }
 0x244   :  { %14952 = vmatprep.mubr.msk.bf16.mxu1 %vm1261_vm5, %v18466_v13  ;;  %v1234_v26 = vshll.u32 %v18466_v13, 16  ;;  %v1238_v3 = vshrl.u32 %v18466_v13, 16  ;;  %v1531_v43 = vrot.slane %v18466_v13, 1  ;;  %v1700_v49 = vor.u32 %v1699_v34, %v1698_v12 }
 0x245   :  { %14953 = vmatmul.mubr.msk.bf16.gmra.mrb[8].mxu1 %vm1261_vm5, %v1175_v51  ;;  %v1704_v54 = vor.u32 %v1703_v39, %v1702_v38  ;;  %v1706_v55 = vrot.slane %v1230_v21, 1  ;;  %v1707_v58 = vrot.slane %v1226_v11, 2  ;;  %v1244_v50 = vrot.slane %v1242_v18, 1 }
 0x246   :  { %14960 = vmatprep.mubr.msk.bf16.mxu1 %vm1261_vm5, %v18376_v19  ;;  %v1236_v24 = vrot.slane %v1234_v26, 1  ;;  %v1532_v37 = vsel %vm601_vm3, %v1529_v16, %v1531_v43  ;;  %v1534_v41 = vsel %vm601_vm3, %v1531_v43, %v1533_v1  ;;  %v1701_v48 = vsel %vm765_vm4, %v1696_v28, %v1700_v49 }
 0x247   :  { %v1705_v52 = vsel %vm765_vm4, %v1700_v49, %v1704_v54  ;;  %v1708_v59 = vor.u32 %v1707_v58, %v1706_v55  ;;  %v1710_v61 = vrot.slane %v1238_v3, 1  ;;  %v1711_v63 = vrot.slane %v1234_v26, 2 }
 0x248   :  { %v1237_v60 = vsel %vm274_vm1, %v1232_v53, %v1236_v24  ;;  %v1240_v62 = vor.u32 %v1238_v3, %v1236_v24  ;;  %v1714_v19 = vrot.slane %v1246_v40, 1  ;;  %v1715_v12 = vrot.slane %v1242_v18, 2  ;;  %v18571_v3 = vld [vmem:[%s17886_s25] ss:$0 sm:$0xff] }
 0x249   :  { %14929 = vmatmul.mubr.msk.bf16.gmra.mrb[24].mxu0 %vm1261_vm5, %v1237_v60  ;;  %v1709_v11 = vsel %vm765_vm4, %v1704_v54, %v1708_v59  ;;  %v1871_v14 = vrot.slane %v18353_v32, 2  ;;  %v1873_v15 = vrot.slane %v18383_v31, 2  ;;  %v1712_v21 = vor.u32 %v1711_v63, %v1710_v61  ;;  %v18574_v53 = vld [vmem:[%s17891_s29] ss:$0 sm:$0xff] }
 0x24a   :  { %v1245_v6 = vsel %vm274_vm1, %v1240_v62, %v1244_v50  ;;  %v1875_v22 = vrot.slane %v18378_v20, 2  ;;  %v1877_v29 = vrot.slane %v18423_v47, 2  ;;  %v1716_v0 = vor.u32 %v1715_v12, %v1714_v19 }
 0x24b   :  { %14932 = vmatprep.mubr.msk.bf16.mxu0 %vm1261_vm5, %v1245_v6  ;;  %v1872_v42 = vsel %vm368_vm0, %v1870_v5, %v1871_v14  ;;  %v1874_v25 = vsel %vm368_vm0, %v1871_v14, %v1873_v15  ;;  %v1879_v31 = vrot.slane %v18416_v30, 2  ;;  %v1713_v9 = vsel %vm765_vm4, %v1708_v59, %v1712_v21 }
 0x24c   :  { %v1876_v16 = vsel %vm368_vm0, %v1873_v15, %v1875_v22  ;;  %v1878_v20 = vsel %vm368_vm0, %v1875_v22, %v1877_v29  ;;  %v1881_v47 = vrot.slane %v18466_v13, 2  ;;  %v1717_v51 = vsel %vm765_vm4, %v1712_v21, %v1716_v0 }
 0x24d   :  { %14961 = vmatmul.mubr.msk.bf16.vlgmr.msra.gmra.mrb[12].mxu1 %vm1261_vm5, %v18409_v45  ;;  %v1880_v5 = vsel %vm368_vm0, %v1877_v29, %v1879_v31  ;;  %v1883_v57 = vrot.slane %v18455_v56, 2  ;;  %v1248_v4 = vor.u32 %v1246_v40, %v1244_v50  ;;  %v17288_v45 = vld [vmem:[#allocation6 + $0x18] sm:$0xff]  }
 0x24e   :  { %14964 = vmatprep.mubr.msk.bf16.mxu1 %vm1261_vm5, %v18421_v36  ;;  %14977 = vmatpush3.bf16.msra.mxu1 %v18412_v46  ;;  %v1882_v30 = vsel %vm368_vm0, %v1879_v31, %v1881_v47  ;;  %v18553_v46 = vld [vmem:[#allocation6] sm:$0xff]  }
 0x24f   :  { %14978 = vmatprep.subr.bf16.mxu1 %v17284_v33  ;;  %v1884_v17 = vsel %vm368_vm0, %v1881_v47, %v1883_v57 }
 0x251   :  { %14933 = vmatmul.mubr.msk.bf16.gmra.mrb[28].mxu0 %vm1261_vm5, %v1248_v4 }
 0x252   :  { %14940 = vmatprep.mubr.msk.bf16.mxu0 %vm1261_vm5, %v18356_v44  ;;  %14979 = vmatpush3.bf16.msra.mxu1 %v17284_v33  ;;  %v17286_v44 = vld [vmem:[%s17881_s21 + $0x48] sm:$0xff]  }
 0x253   :  { %14996 = vmatprep.subr.bf16.mxu1 %v17285_v8 }
 0x255   :  { %14965 = vmatmul.mubr.msk.bf16.gmra.mrb[0].mxu1 %vm1261_vm5, %v18449_v7 }
 0x256   :  { %14968 = vmatprep.mubr.msk.bf16.mxu1 %vm1261_vm5, %v18453_v27 }
 0x259   :  { %14941 = vmatmul.mubr.msk.bf16.vlgmr.msra.gmra.mrb[16].mxu0 %vm1261_vm5, %v18353_v32  ;;  %v17287_v32 = vld [vmem:[#allocation6 + $0x10] sm:$0xff]  }
 0x25a   :  { %15016 = vmatprep.subr.bf16.mxu0 %v17287_v32 }
 0x25b   :  { %15017 = vmatpush3.bf16.msra.mxu0 %v17287_v32 }
 0x25c   :  { %15018 = vmatprep.subr.bf16.mxu0 %v17288_v45 }
 0x25d   :  { %14969 = vmatmul.mubr.msk.bf16.gmra.mrb[4].mxu1 %vm1261_vm5, %v1532_v37 }
 0x25e   :  { %14972 = vmatprep.mubr.msk.bf16.mxu1 %vm1261_vm5, %v1534_v41 }
 0x25f   :  { %15019 = vmatpush3.bf16.msra.mxu0 %v17288_v45 }
 0x260   :  { %15036 = vmatprep.subr.bf16.mxu0 %v18553_v46 }
 0x265   :  { %14973 = vmatmul.mubr.msk.bf16.gmra.mrb[8].mxu1 %vm1261_vm5, %v1533_v1 }
 0x266   :  { %14980 = vmatprep.mubr.msk.bf16.mxu1 %vm1261_vm5, %v18462_v10 }
 0x26d   :  { %14981 = vmatmul.mubr.msk.bf16.vlgmr.msra.gmra.mrb[12].mxu1 %vm1261_vm5, %v18474_v2 }
 0x26e   :  { %14984 = vmatprep.mubr.msk.bf16.mxu1 %vm1261_vm5, %v1701_v48  ;;  %14997 = vmatpush3.bf16.msra.mxu1 %v17285_v8 }
 0x26f   :  { %14998 = vmatprep.subr.bf16.mxu1 %v17286_v44 }
 0x272   :  { %14999 = vmatpush3.bf16.msra.mxu1 %v17286_v44 }
 0x275   :  { %14985 = vmatmul.mubr.msk.bf16.gmra.mrb[0].mxu1 %vm1261_vm5, %v1705_v52 }
 0x276   :  { %14988 = vmatprep.mubr.msk.bf16.mxu1 %vm1261_vm5, %v1709_v11 }
 0x27d   :  { %14989 = vmatmul.mubr.msk.bf16.gmra.mrb[4].mxu1 %vm1261_vm5, %v1713_v9 }
 0x27e   :  { %14992 = vmatprep.mubr.msk.bf16.mxu1 %vm1261_vm5, %v1717_v51 }
 0x285   :  { %14993 = vmatmul.mubr.msk.bf16.gmra.mrb[8].mxu1 %vm1261_vm5, %v1716_v0 }
 0x286   :  { %15000 = vmatprep.mubr.msk.bf16.mxu1 %vm1261_vm5, %v1872_v42 }
 0x28d   :  { %15001 = vmatmul.mubr.msk.bf16.vlgmr.msra.gmra.mrb[12].mxu1 %vm1261_vm5, %v1874_v25 }
 0x28e   :  { %15004 = vmatprep.mubr.msk.bf16.mxu1 %vm1261_vm5, %v1876_v16 }
 0x295   :  { %15005 = vmatmul.mubr.msk.bf16.gmra.mrb[0].mxu1 %vm1261_vm5, %v1878_v20 }
 0x296   :  { %15008 = vmatprep.mubr.msk.bf16.mxu1 %vm1261_vm5, %v1880_v5 }
 0x29d   :  { %15009 = vmatmul.mubr.msk.bf16.gmra.mrb[4].mxu1 %vm1261_vm5, %v1882_v30 }
 0x29e   :  { %15012 = vmatprep.mubr.msk.bf16.mxu1 %vm1261_vm5, %v1884_v17 }
 0x2a5   :  { %15013 = vmatmul.mubr.msk.bf16.gmra.mrb[8].mxu1 %vm1261_vm5, %v1883_v57 }
 0x314   :  { %v14926_v36 = vpop.f32.mrb[20].mxu0 }
 0x315   :  { %v1336_v7 = vpop.f32.mrb[21].mxu0 }
 0x316   :  { %v14927_v23 = vpop.f32.mrb[22].mxu0 }
 0x317   :  { %v1339_v27 = vpop.f32.mrb[23].mxu0 }
 0x31c   :  { %v18556_v56 = vpop.f32.mrb[24].mxu0 }
 0x31d   :  { %v18558_v10 = vpop.f32.mrb[25].mxu0 }
 0x31e   :  { %v18560_v28 = vpop.f32.mrb[26].mxu0 }
 0x31f   :  { %v18562_v34 = vpop.f32.mrb[27].mxu0 }
 0x324   :  { %v18564_v13 = vpop.f32.mrb[28].mxu0 }
 0x325   :  { %v18566_v35 = vpop.f32.mrb[29].mxu0 }
 0x326   :  { %v14935_v38 = vpop.f32.mrb[30].mxu0 }
 0x327   :  { %v18568_v39 = vpop.f32.mrb[31].mxu0 }
 0x32c   :  { %v14942_v18 = vpop.f32.mrb[16].mxu0 }
 0x32d   :  { %v1445_v40 = vpop.f32.mrb[17].mxu0 }
 0x32e   :  { %v14943_v1 = vpop.f32.mrb[18].mxu0 }
 0x32f   :  { %v1448_v2 = vpop.f32.mrb[19].mxu0 }
 0x360   :  { %v15002_v26 = vpop.f32.mrb[12].mxu1 }
 0x361   :  { %v16450_v43 = vadd.f32 %v15002_v26, %v14942_v18  ;;  %v1955_v49 = vpop.f32.mrb[13].mxu1 }
 0x362   :  { %v16451_v54 = vadd.f32 %v1955_v49, %v1445_v40  ;;  %v15003_v55 = vpop.f32.mrb[14].mxu1 }
 0x363   :  { %v2041_v58 = vmul.f32 %v16450_v43, %v18571_v3  ;;  %v16452_v24 = vadd.f32 %v15003_v55, %v14943_v1  ;;  %v1958_v37 = vpop.f32.mrb[15].mxu1 }
 0x364   :  { %v2039_v41 = vmul.f32 %v16451_v54, %v18571_v3  ;;  %v16453_v48 = vadd.f32 %v1958_v37, %v1448_v2 }
 0x365   :  { %v2063_v50 = vadd.f32 %v18574_v53, %v2041_v58  ;;  %v2042_v52 = vmul.f32 %v16452_v24, %v18571_v3 }
 0x366   :  { %v2061_v59 = vadd.f32 %v18574_v53, %v2039_v41  ;;  %v2040_v61 = vmul.f32 %v16453_v48, %v18571_v3 }
 0x367   :  { %v2064_v60 = vadd.f32 %v18574_v53, %v2042_v52  ;;  %v2078_v19 = vmax.f32 %v2063_v50, 0.0 }
 0x368   :  { %v2062_v62 = vadd.f32 %v18574_v53, %v2040_v61  ;;  %v15006_v63 = vpop.f32.mrb[0].mxu1  ;;  %v2076_v15 = vmax.f32 %v2061_v59, 0.0 }
 0x369   :  { %v2079_v11 = vmax.f32 %v2064_v60, 0.0  ;;  %v16454_v12 = vadd.f32 %v15006_v63, %v14926_v36  ;;  %v1971_v14 = vpop.f32.mrb[1].mxu1 }
 0x36a   :  { %v2077_v6 = vmax.f32 %v2062_v62, 0.0  ;;  %v16455_v21 = vadd.f32 %v1971_v14, %v1336_v7  ;;  %v15007_v22 = vpop.f32.mrb[2].mxu1 }
 0x36b   :  { %v18584_v29 = vpack.c.bf16 %v2079_v11, %v2078_v19  ;;  %v2045_v33 = vmul.f32 %v16454_v12, %v18571_v3  ;;  %v16456_v0 = vadd.f32 %v15007_v22, %v14927_v23  ;;  %v1974_v42 = vpop.f32.mrb[3].mxu1 }
 0x36c   :  { %v18587_v25 = vpack.c.bf16 %v2077_v6, %v2076_v15  ;;  %v2043_v31 = vmul.f32 %v16455_v21, %v18571_v3  ;;  %v16457_v9 = vadd.f32 %v1974_v42, %v1339_v27 }
 0x36d   :  { %v2067_v16 = vadd.f32 %v18574_v53, %v2045_v33  ;;  %v2046_v20 = vmul.f32 %v16456_v0, %v18571_v3  ;;  %v2116_v47 = vshll.u32 %v18584_v29, 16  ;;  %v2120_v30 = vshrl.u32 %v18584_v29, 16 }
 0x36e   :  { %v2065_v51 = vadd.f32 %v18574_v53, %v2043_v31  ;;  %v2044_v5 = vmul.f32 %v16457_v9, %v18571_v3  ;;  %v2111_v57 = vshll.u32 %v18587_v25, 16  ;;  %v2109_v8 = vshrl.u32 %v18587_v25, 16 }
 0x36f   :  { %v2068_v4 = vadd.f32 %v18574_v53, %v2046_v20  ;;  %v2118_v17 = vrot.slane %v2116_v47, 1  ;;  %v2440_v44 = vrot.slane %v18587_v25, 1  ;;  %v2082_v32 = vmax.f32 %v2067_v16, 0.0  ;;  %v17290_v20 = vld [vmem:[#allocation6 + $0x8] sm:$0xff]  }
 0x370   :  { %v2066_v45 = vadd.f32 %v18574_v53, %v2044_v5  ;;  %v15010_v36 = vpop.f32.mrb[4].mxu1  ;;  %v2113_v7 = vrot.slane %v2111_v57, 1  ;;  %v2441_v23 = vrot.slane %v18584_v29, 1  ;;  %v2080_v27 = vmax.f32 %v2065_v51, 0.0 }
 0x371   :  { %v2083_v38 = vmax.f32 %v2068_v4, 0.0  ;;  %v16458_v18 = vadd.f32 %v15010_v36, %v18556_v56  ;;  %v1987_v40 = vpop.f32.mrb[5].mxu1  ;;  %v2122_v1 = vor.u32 %v2120_v30, %v2118_v17  ;;  %v18615_v56 = vrot.slane %v2109_v8, 1 }
 0x372   :  { %v2081_v2 = vmax.f32 %v2066_v45, 0.0  ;;  %v16459_v26 = vadd.f32 %v1987_v40, %v18558_v10  ;;  %v15011_v43 = vpop.f32.mrb[6].mxu1  ;;  %v2114_v49 = vor.u32 %v2113_v7, %v2109_v8  ;;  %v18609_v54 = vsel %vm601_vm3, %v2440_v44, %v2441_v23  ;;  %v18660_v40 = vld [vmem:[#allocation6 + $0x20] sm:$0xff]  }
 0x373   :  { %v18611_v55 = vpack.c.bf16 %v2083_v38, %v2082_v32  ;;  %v2049_v58 = vmul.f32 %v16458_v18, %v18571_v3  ;;  %v16460_v24 = vadd.f32 %v15011_v43, %v18560_v28  ;;  %v1990_v37 = vpop.f32.mrb[7].mxu1  ;;  %v18626_v28 = vrot.slane %v2111_v57, 2 }
 0x374   :  { %v18617_v41 = vpack.c.bf16 %v2081_v2, %v2080_v27  ;;  %v2047_v48 = vmul.f32 %v16459_v26, %v18571_v3  ;;  %v16461_v10 = vadd.f32 %v1990_v37, %v18562_v34  ;;  %v2119_v50 = vsel %vm274_vm1, %v2114_v49, %v2118_v17 }
 0x375   :  { %v2071_v52 = vadd.f32 %v18574_v53, %v2049_v58  ;;  %v2050_v59 = vmul.f32 %v16460_v24, %v18571_v3  ;;  %15020 = vmatprep.mubr.msk.bf16.mxu0 %vm1261_vm5, %v2119_v50  ;;  %v2132_v61 = vshll.u32 %v18611_v55, 16  ;;  %v2136_v12 = vshrl.u32 %v18611_v55, 16 }
 0x376   :  { %v2069_v60 = vadd.f32 %v18574_v53, %v2047_v48  ;;  %v2048_v62 = vmul.f32 %v16461_v10, %v18571_v3  ;;  %v2124_v63 = vshll.u32 %v18617_v41, 16  ;;  %v2128_v34 = vshrl.u32 %v18617_v41, 16 }
 0x377   :  { %v2086_v19 = vmax.f32 %v2071_v52, 0.0  ;;  %v2072_v11 = vadd.f32 %v18574_v53, %v2050_v59  ;;  %v2443_v14 = vrot.slane %v18617_v41, 1  ;;  %v2134_v33 = vrot.slane %v2132_v61, 1 }
 0x378   :  { %v2084_v15 = vmax.f32 %v2069_v60, 0.0  ;;  %v2070_v6 = vadd.f32 %v18574_v53, %v2048_v62  ;;  %v15014_v21 = vpop.f32.mrb[8].mxu1  ;;  %v2126_v22 = vrot.slane %v2124_v63, 1  ;;  %v2615_v9 = vrot.slane %v2124_v63, 2 }
 0x379   :  { %v2087_v0 = vmax.f32 %v2072_v11, 0.0  ;;  %v16462_v42 = vadd.f32 %v15014_v21, %v18564_v13  ;;  %v2003_v31 = vpop.f32.mrb[9].mxu1  ;;  %v2614_v16 = vrot.slane %v2128_v34, 1  ;;  %v18646_v13 = vsel %vm601_vm3, %v2441_v23, %v2443_v14 }
 0x37a   :  { %v2085_v51 = vmax.f32 %v2070_v6, 0.0  ;;  %v16463_v5 = vadd.f32 %v2003_v31, %v18566_v35  ;;  %v15015_v57 = vpop.f32.mrb[10].mxu1  ;;  %v2127_v4 = vsel %vm274_vm1, %v2122_v1, %v2126_v22  ;;  %v2130_v8 = vor.u32 %v2128_v34, %v2126_v22 }
 0x37b   :  { %v18641_v17 = vpack.c.bf16 %v2087_v0, %v2086_v19  ;;  %v2053_v44 = vmul.f32 %v16462_v42, %v18571_v3  ;;  %v2006_v32 = vpop.f32.mrb[11].mxu1  ;;  %15021 = vmatmul.mubr.msk.bf16.vlgmr.msra.gmra.mrb[32].mxu0 %vm1261_vm5, %v2127_v4  ;;  %v2445_v45 = vrot.slane %v18611_v55, 1  ;;  %v2138_v23 = vor.u32 %v2136_v12, %v2134_v33 }
 0x37c   :  { %v18649_v36 = vpack.c.bf16 %v2085_v51, %v2084_v15  ;;  %v2051_v35 = vmul.f32 %v16463_v5, %v18571_v3  ;;  %v16464_v7 = vadd.f32 %v2006_v32, %v18568_v39  ;;  %15037 = vmatpush3.bf16.msra.mxu0 %v18553_v46  ;;  %v2135_v27 = vsel %vm274_vm1, %v2130_v8, %v2134_v33 }
 0x37d   :  { %v2075_v38 = vadd.f32 %v18574_v53, %v2053_v44  ;;  %15024 = vmatprep.mubr.msk.bf16.mxu0 %vm1261_vm5, %v2135_v27  ;;  %v2148_v18 = vshll.u32 %v18641_v17, 16  ;;  %15038 = vmatprep.subr.bf16.mxu0 %v17290_v20  ;;  %v18663_v1 = vsel %vm601_vm3, %v2443_v14, %v2445_v45  ;;  %v2152_v26 = vshrl.u32 %v18641_v17, 16 }
 0x37e   :  { %v2073_v39 = vadd.f32 %v18574_v53, %v2051_v35  ;;  %v2052_v46 = vmul.f32 %v16464_v7, %v18571_v3  ;;  %v2140_v2 = vshll.u32 %v18649_v36, 16  ;;  %v2447_v58 = vrot.slane %v18649_v36, 1 }
 0x37f   :  { %v2090_v43 = vmax.f32 %v2075_v38, 0.0  ;;  %v2150_v49 = vrot.slane %v2148_v18, 1  ;;  %v2449_v24 = vrot.slane %v18641_v17, 1  ;;  %v2144_v10 = vshrl.u32 %v18649_v36, 16 }
 0x380   :  { %v2074_v37 = vadd.f32 %v18574_v53, %v2052_v46  ;;  %v2142_v48 = vrot.slane %v2140_v2, 1  ;;  %15039 = vmatpush3.bf16.msra.mxu0 %v17290_v20  ;;  %v2609_v50 = vor.u32 %v18626_v28, %v18615_v56  ;;  %v2088_v52 = vmax.f32 %v2073_v39, 0.0 }
 0x381   :  { %v18675_v3 = vpack.c.bf16 %v2090_v43, %v2090_v43  ;;  %15056 = vmatprep.subr.bf16.mxu0 %v18660_v40  ;;  %v18679_v59 = vsel %vm601_vm3, %v2445_v45, %v2447_v58  ;;  %v18682_v60 = vsel %vm601_vm3, %v2447_v58, %v2449_v24  ;;  %v2610_v34 = vrot.slane %v2120_v30, 1 }
 0x382   :  { %v2089_v62 = vmax.f32 %v2074_v37, 0.0  ;;  %v2143_v53 = vsel %vm274_vm1, %v2138_v23, %v2142_v48  ;;  %v2146_v63 = vor.u32 %v2144_v10, %v2142_v48  ;;  %v2154_v56 = vor.u32 %v2152_v26, %v2150_v49 }
 0x383   :  { %15025 = vmatmul.mubr.msk.bf16.gmra.mrb[36].mxu0 %vm1261_vm5, %v2143_v53  ;;  %v2164_v28 = vshll.u32 %v18675_v3, 16  ;;  %v2168_v19 = vshrl.u32 %v18675_v3, 16  ;;  %v2611_v11 = vrot.slane %v2116_v47, 2  ;;  %v2616_v6 = vor.u32 %v2615_v9, %v2614_v16 }
 0x384   :  { %v18692_v14 = vpack.c.bf16 %v2089_v62, %v2088_v52  ;;  %v2151_v15 = vsel %vm274_vm1, %v2146_v63, %v2150_v49  ;;  %v2618_v21 = vrot.slane %v2136_v12, 1  ;;  %v2453_v30 = vrot.slane %v18675_v3, 1 }
 0x385   :  { %15028 = vmatprep.mubr.msk.bf16.mxu0 %vm1261_vm5, %v2151_v15  ;;  %v2612_v22 = vor.u32 %v2611_v11, %v2610_v34  ;;  %v2619_v33 = vrot.slane %v2132_v61, 2  ;;  %v2622_v0 = vrot.slane %v2144_v10, 1  ;;  %v2623_v20 = vrot.slane %v2140_v2, 2 }
 0x386   :  { %v2156_v42 = vshll.u32 %v18692_v14, 16  ;;  %v2160_v47 = vshrl.u32 %v18692_v14, 16  ;;  %v2451_v31 = vrot.slane %v18692_v14, 1  ;;  %v2166_v9 = vrot.slane %v2164_v28, 1 }
 0x387   :  { %v18705_v16 = vsel %vm765_vm4, %v2609_v50, %v2612_v22  ;;  %v18708_v12 = vsel %vm765_vm4, %v2612_v22, %v2616_v6  ;;  %v2620_v51 = vor.u32 %v2619_v33, %v2618_v21  ;;  %v2624_v4 = vor.u32 %v2623_v20, %v2622_v0  ;;  %v17292_v22 = vld [vmem:[#allocation6 + $0x28] sm:$0xff]  }
 0x388   :  { %v2158_v5 = vrot.slane %v2156_v42, 1  ;;  %v18711_v57 = vsel %vm601_vm3, %v2449_v24, %v2451_v31  ;;  %v18716_v61 = vsel %vm601_vm3, %v2451_v31, %v2453_v30  ;;  %v2626_v44 = vrot.slane %v2152_v26, 1 }
 0x389   :  { %v18719_v8 = vsel %vm765_vm4, %v2616_v6, %v2620_v51  ;;  %v2627_v32 = vrot.slane %v2148_v18, 2  ;;  %v2630_v45 = vrot.slane %v2160_v47, 1  ;;  %v18723_v27 = vsel %vm765_vm4, %v2620_v51, %v2624_v4 }
 0x38a   :  { %v2159_v35 = vsel %vm274_vm1, %v2154_v56, %v2158_v5  ;;  %v2162_v7 = vor.u32 %v2160_v47, %v2158_v5  ;;  %v2631_v38 = vrot.slane %v2156_v42, 2  ;;  %v2634_v39 = vrot.slane %v2168_v19, 1 }
 0x38b   :  { %15029 = vmatmul.mubr.msk.bf16.gmra.mrb[40].mxu0 %vm1261_vm5, %v2159_v35  ;;  %v2628_v23 = vor.u32 %v2627_v32, %v2626_v44  ;;  %v2635_v46 = vrot.slane %v2164_v28, 2  ;;  %v2790_v2 = vrot.slane %v18587_v25, 2  ;;  %v2791_v18 = vrot.slane %v18584_v29, 2 }
 0x38c   :  { %v2167_v43 = vsel %vm274_vm1, %v2162_v7, %v2166_v9  ;;  %v2632_v49 = vor.u32 %v2631_v38, %v2630_v45  ;;  %v2793_v26 = vrot.slane %v18617_v41, 2  ;;  %v2795_v37 = vrot.slane %v18611_v55, 2 }
 0x38d   :  { %15032 = vmatprep.mubr.msk.bf16.mxu0 %vm1261_vm5, %v2167_v43  ;;  %v2629_v58 = vsel %vm765_vm4, %v2624_v4, %v2628_v23  ;;  %v2636_v24 = vor.u32 %v2635_v46, %v2634_v39  ;;  %v2797_v48 = vrot.slane %v18649_v36, 2  ;;  %v2792_v50 = vsel %vm368_vm0, %v2790_v2, %v2791_v18 }
 0x38e   :  { %v2633_v10 = vsel %vm765_vm4, %v2628_v23, %v2632_v49  ;;  %v2794_v52 = vsel %vm368_vm0, %v2791_v18, %v2793_v26  ;;  %v2799_v62 = vrot.slane %v18641_v17, 2  ;;  %v2796_v63 = vsel %vm368_vm0, %v2793_v26, %v2795_v37 }
 0x38f   :  { %v2637_v53 = vsel %vm765_vm4, %v2632_v49, %v2636_v24  ;;  %v2798_v34 = vsel %vm368_vm0, %v2795_v37, %v2797_v48  ;;  %v2801_v56 = vrot.slane %v18692_v14, 2  ;;  %v2803_v11 = vrot.slane %v18675_v3, 2 }
 0x390   :  { %v2800_v28 = vsel %vm368_vm0, %v2797_v48, %v2799_v62  ;;  %v2170_v15 = vor.u32 %v2168_v19, %v2166_v9  ;;  %v17293_v19 = vld [vmem:[#allocation6 + $0x30] sm:$0xff]  }
 0x391   :  { %v2802_v6 = vsel %vm368_vm0, %v2799_v62, %v2801_v56  ;;  %v2804_v21 = vsel %vm368_vm0, %v2801_v56, %v2803_v11 }
 0x393   :  { %15033 = vmatmul.mubr.msk.bf16.gmra.mrb[44].mxu0 %vm1261_vm5, %v2170_v15 }
 0x394   :  { %15040 = vmatprep.mubr.msk.bf16.mxu0 %vm1261_vm5, %v18587_v25  ;;  %v17295_v25 = vld [vmem:[#allocation6 + $0x40] sm:$0xff]  }
 0x39b   :  { %15041 = vmatmul.mubr.msk.bf16.vlgmr.msra.gmra.mrb[32].mxu0 %vm1261_vm5, %v18584_v29  ;;  %v17294_v29 = vld [vmem:[#allocation6 + $0x38] sm:$0xff]  }
 0x39c   :  { %15044 = vmatprep.mubr.msk.bf16.mxu0 %vm1261_vm5, %v18617_v41  ;;  %15057 = vmatpush3.bf16.msra.mxu0 %v18660_v40  ;;  %v17298_v41 = vld [vmem:[#allocation8 + $0x18] sm:$0xff]   ;;  %v18808_v40 = vld [vmem:[%s20552_s12] ss:$0 sm:$0xff] }
 0x39d   :  { %15058 = vmatprep.subr.bf16.mxu0 %v17292_v22 }
 0x3a0   :  { %15059 = vmatpush3.bf16.msra.mxu0 %v17292_v22 }
 0x3a1   :  { %15076 = vmatprep.subr.bf16.mxu0 %v17293_v19 }
 0x3a3   :  { %15045 = vmatmul.mubr.msk.bf16.gmra.mrb[36].mxu0 %vm1261_vm5, %v18611_v55  ;;  %v17297_v55 = vld [vmem:[#allocation8 + $0x10] sm:$0xff]  }
 0x3a4   :  { %15048 = vmatprep.mubr.msk.bf16.mxu0 %vm1261_vm5, %v18649_v36  ;;  %15116 = vmatprep.subr.bf16.mxu1 %v17297_v55 }
 0x3a5   :  { %15117 = vmatpush3.bf16.msra.mxu1 %v17297_v55  ;;  %v17300_v55 = vld [vmem:[#allocation8 + $0x8] sm:$0xff]  }
 0x3a6   :  { %15118 = vmatprep.subr.bf16.mxu1 %v17298_v41 }
 0x3a9   :  { %15119 = vmatpush3.bf16.msra.mxu1 %v17298_v41 }
 0x3ab   :  { %15049 = vmatmul.mubr.msk.bf16.gmra.mrb[40].mxu0 %vm1261_vm5, %v18641_v17  ;;  %v18801_v17 = vld [vmem:[#allocation8] sm:$0xff]  }
 0x3ac   :  { %15052 = vmatprep.mubr.msk.bf16.mxu0 %vm1261_vm5, %v18692_v14  ;;  %15128 = vmatprep.subr.bf16.mxu1 %v18801_v17 }
 0x3b3   :  { %15053 = vmatmul.mubr.msk.bf16.gmra.mrb[44].mxu0 %vm1261_vm5, %v18675_v3 }
 0x3b4   :  { %15060 = vmatprep.mubr.msk.bf16.mxu0 %vm1261_vm5, %v18609_v54  ;;  %v17296_v54 = vld [vmem:[#allocation6 + $0x48] sm:$0xff]  }
 0x3bb   :  { %15061 = vmatmul.mubr.msk.bf16.vlgmr.msra.gmra.mrb[32].mxu0 %vm1261_vm5, %v18646_v13  ;;  %v18805_v13 = vld [vmem:[%s20551_s30] ss:$0 sm:$0xff] }
 0x3bc   :  { %15064 = vmatprep.mubr.msk.bf16.mxu0 %vm1261_vm5, %v18663_v1  ;;  %15077 = vmatpush3.bf16.msra.mxu0 %v17293_v19 }
 0x3bd   :  { %15078 = vmatprep.subr.bf16.mxu0 %v17294_v29 }
 0x3c0   :  { %15079 = vmatpush3.bf16.msra.mxu0 %v17294_v29 }
 0x3c1   :  { %15096 = vmatprep.subr.bf16.mxu0 %v17295_v25 }
 0x3c3   :  { %15065 = vmatmul.mubr.msk.bf16.gmra.mrb[36].mxu0 %vm1261_vm5, %v18679_v59 }
 0x3c4   :  { %15068 = vmatprep.mubr.msk.bf16.mxu0 %vm1261_vm5, %v18682_v60 }
 0x3cb   :  { %15069 = vmatmul.mubr.msk.bf16.gmra.mrb[40].mxu0 %vm1261_vm5, %v18711_v57 }
 0x3cc   :  { %15072 = vmatprep.mubr.msk.bf16.mxu0 %vm1261_vm5, %v18716_v61 }
 0x3d3   :  { %15073 = vmatmul.mubr.msk.bf16.gmra.mrb[44].mxu0 %vm1261_vm5, %v2453_v30 }
 0x3d4   :  { %15080 = vmatprep.mubr.msk.bf16.mxu0 %vm1261_vm5, %v18705_v16 }
 0x3db   :  { %15081 = vmatmul.mubr.msk.bf16.vlgmr.msra.gmra.mrb[32].mxu0 %vm1261_vm5, %v18708_v12 }
 0x3dc   :  { %15084 = vmatprep.mubr.msk.bf16.mxu0 %vm1261_vm5, %v18719_v8  ;;  %15097 = vmatpush3.bf16.msra.mxu0 %v17295_v25 }
 0x3dd   :  { %15098 = vmatprep.subr.bf16.mxu0 %v17296_v54 }
 0x3e0   :  { %15099 = vmatpush3.bf16.msra.mxu0 %v17296_v54 }
 0x3e3   :  { %15085 = vmatmul.mubr.msk.bf16.gmra.mrb[36].mxu0 %vm1261_vm5, %v18723_v27 }
 0x3e4   :  { %15088 = vmatprep.mubr.msk.bf16.mxu0 %vm1261_vm5, %v2629_v58 }
 0x3eb   :  { %15089 = vmatmul.mubr.msk.bf16.gmra.mrb[40].mxu0 %vm1261_vm5, %v2633_v10 }
 0x3ec   :  { %15092 = vmatprep.mubr.msk.bf16.mxu0 %vm1261_vm5, %v2637_v53 }
 0x3f3   :  { %15093 = vmatmul.mubr.msk.bf16.gmra.mrb[44].mxu0 %vm1261_vm5, %v2636_v24 }
 0x3f4   :  { %15100 = vmatprep.mubr.msk.bf16.mxu0 %vm1261_vm5, %v2792_v50 }
 0x3fb   :  { %15101 = vmatmul.mubr.msk.bf16.vlgmr.msra.gmra.mrb[32].mxu0 %vm1261_vm5, %v2794_v52 }
 0x3fc   :  { %15104 = vmatprep.mubr.msk.bf16.mxu0 %vm1261_vm5, %v2796_v63 }
 0x403   :  { %15105 = vmatmul.mubr.msk.bf16.gmra.mrb[36].mxu0 %vm1261_vm5, %v2798_v34 }
 0x404   :  { %15108 = vmatprep.mubr.msk.bf16.mxu0 %vm1261_vm5, %v2800_v28 }
 0x40b   :  { %15109 = vmatmul.mubr.msk.bf16.gmra.mrb[40].mxu0 %vm1261_vm5, %v2802_v6 }
 0x40c   :  { %15112 = vmatprep.mubr.msk.bf16.mxu0 %vm1261_vm5, %v2804_v21 }
 0x413   :  { %15113 = vmatmul.mubr.msk.bf16.gmra.mrb[44].mxu0 %vm1261_vm5, %v2803_v11 }
 0x4ce   :  { %v15102_v36 = vpop.f32.mrb[32].mxu0 }
 0x4cf   :  { %v2961_v1 = vmul.f32 %v15102_v36, %v18805_v13  ;;  %v2875_v3 = vpop.f32.mrb[33].mxu0 }
 0x4d0   :  { %v2959_v59 = vmul.f32 %v18805_v13, %v2875_v3  ;;  %v15103_v60 = vpop.f32.mrb[34].mxu0 }
 0x4d1   :  { %v2983_v14 = vadd.f32 %v18808_v40, %v2961_v1  ;;  %v2962_v30 = vmul.f32 %v15103_v60, %v18805_v13  ;;  %v2878_v33 = vpop.f32.mrb[35].mxu0 }
 0x4d2   :  { %v2981_v0 = vadd.f32 %v18808_v40, %v2959_v59  ;;  %v2960_v42 = vmul.f32 %v18805_v13, %v2878_v33 }
 0x4d3   :  { %v2998_v47 = vmax.f32 %v2983_v14, 0.0  ;;  %v2984_v31 = vadd.f32 %v18808_v40, %v2962_v30  ;;  %v17301_v30 = vld [vmem:[#allocation8 + $0x20] sm:$0xff]  }
 0x4d4   :  { %v2996_v20 = vmax.f32 %v2981_v0, 0.0  ;;  %v2982_v9 = vadd.f32 %v18808_v40, %v2960_v42 }
 0x4d5   :  { %3013 = vst.msk [vmem:[#allocation2 + $0x10] sm:$0xff] %vm1261_vm5, %v2998_v47  ;;  %v2999_v16 = vmax.f32 %v2984_v31, 0.0 }
 0x4d6   :  { %3011 = vst.msk [vmem:[#allocation2] sm:$0xff] %vm1261_vm5, %v2996_v20  ;;  %v2997_v12 = vmax.f32 %v2982_v9, 0.0  ;;  %v15106_v51 = vpop.f32.mrb[36].mxu0 }
 0x4d7   :  { %3014 = vst.msk [vmem:[#allocation2 + $0x18] sm:$0xff] %vm1261_vm5, %v2999_v16  ;;  %v2965_v5 = vmul.f32 %v15106_v51, %v18805_v13  ;;  %v2891_v57 = vpop.f32.mrb[37].mxu0 }
 0x4d8   :  { %3012 = vst.msk [vmem:[#allocation2 + $0x8] sm:$0xff] %vm1261_vm5, %v2997_v12  ;;  %v2963_v61 = vmul.f32 %v18805_v13, %v2891_v57  ;;  %v15107_v4 = vpop.f32.mrb[38].mxu0  ;;  %v17302_v57 = vld [vmem:[#allocation8 + $0x28] sm:$0xff]  }
 0x4d9   :  { %v2987_v8 = vadd.f32 %v18808_v40, %v2965_v5  ;;  %v2966_v44 = vmul.f32 %v15107_v4, %v18805_v13  ;;  %v2894_v32 = vpop.f32.mrb[39].mxu0  ;;  %v17303_v4 = vld [vmem:[#allocation8 + $0x30] sm:$0xff]  }
 0x4da   :  { %v2985_v45 = vadd.f32 %v18808_v40, %v2963_v61  ;;  %v2964_v35 = vmul.f32 %v18805_v13, %v2894_v32 }
 0x4db   :  { %v3002_v7 = vmax.f32 %v2987_v8, 0.0  ;;  %v2988_v27 = vadd.f32 %v18808_v40, %v2966_v44 }
 0x4dc   :  { %v3000_v38 = vmax.f32 %v2985_v45, 0.0  ;;  %v2986_v23 = vadd.f32 %v18808_v40, %v2964_v35 }
 0x4dd   :  { %3017 = vst.msk [vmem:[#allocation2 + $0x30] sm:$0xff] %vm1261_vm5, %v3002_v7  ;;  %v3003_v39 = vmax.f32 %v2988_v27, 0.0 }
 0x4de   :  { %3015 = vst.msk [vmem:[#allocation2 + $0x20] sm:$0xff] %vm1261_vm5, %v3000_v38  ;;  %v3001_v46 = vmax.f32 %v2986_v23, 0.0  ;;  %v15110_v2 = vpop.f32.mrb[40].mxu0  ;;  %v3043_v43 = vld [vmem:[#allocation2 + $0x11] ss:$2 sm:$0xff] }
 0x4df   :  { %3018 = vst.msk [vmem:[#allocation2 + $0x38] sm:$0xff] %vm1261_vm5, %v3003_v39  ;;  %v2969_v49 = vmul.f32 %v15110_v2, %v18805_v13  ;;  %v2907_v18 = vpop.f32.mrb[41].mxu0  ;;  %v3041_v26 = vld [vmem:[#allocation2 + $0x1] ss:$2 sm:$0xff]  ;;  %v3029_v47 = vld [vmem:[#allocation2 + $0x10] ss:$2 sm:$0xff] }
 0x4e0   :  { %3016 = vst.msk [vmem:[#allocation2 + $0x28] sm:$0xff] %vm1261_vm5, %v3001_v46  ;;  %v2967_v58 = vmul.f32 %v18805_v13, %v2907_v18  ;;  %v15111_v24 = vpop.f32.mrb[42].mxu0  ;;  %v3104_v37 = vpack.c.bf16 %v3043_v43, %v3041_v26  ;;  %v3055_v45 = vld [vmem:[#allocation2 + $0x2] ss:$2 sm:$0xff] }
 0x4e1   :  { %v2991_v48 = vadd.f32 %v18808_v40, %v2969_v49  ;;  %v2970_v10 = vmul.f32 %v15111_v24, %v18805_v13  ;;  %v2910_v50 = vpop.f32.mrb[43].mxu0  ;;  %v17304_v46 = vld [vmem:[#allocation8 + $0x38] sm:$0xff]   ;;  %v17305_v43 = vld [vmem:[#allocation8 + $0x40] sm:$0xff]  }
 0x4e2   :  { %v2989_v52 = vadd.f32 %v18808_v40, %v2967_v58  ;;  %v2968_v62 = vmul.f32 %v18805_v13, %v2910_v50  ;;  %15120 = vmatprep.mubr.msk.bf16.mxu1 %vm1261_vm5, %v3104_v37  ;;  %v3069_v58 = vld [vmem:[#allocation2 + $0x3] ss:$2 sm:$0xff] }
 0x4e3   :  { %v3006_v53 = vmax.f32 %v2991_v48, 0.0  ;;  %v2992_v63 = vadd.f32 %v18808_v40, %v2970_v10 }
 0x4e4   :  { %v3004_v34 = vmax.f32 %v2989_v52, 0.0  ;;  %v2990_v56 = vadd.f32 %v18808_v40, %v2968_v62  ;;  %v17306_v62 = vld [vmem:[#allocation8 + $0x48] sm:$0xff]  }
 0x4e5   :  { %3021 = vst.msk [vmem:[#allocation2 + $0x50] sm:$0xff] %vm1261_vm5, %v3006_v53  ;;  %v3007_v28 = vmax.f32 %v2992_v63, 0.0  ;;  %v3057_v44 = vld [vmem:[#allocation2 + $0x12] ss:$2 sm:$0xff]  ;;  %v3071_v18 = vld [vmem:[#allocation2 + $0x13] ss:$2 sm:$0xff] }
 0x4e6   :  { %3019 = vst.msk [vmem:[#allocation2 + $0x40] sm:$0xff] %vm1261_vm5, %v3004_v34  ;;  %v3005_v11 = vmax.f32 %v2990_v56, 0.0  ;;  %v15114_v15 = vpop.f32.mrb[44].mxu0  ;;  %v3047_v6 = vld [vmem:[#allocation2 + $0x31] ss:$2 sm:$0xff]  ;;  %v3289_v35 = vpack.c.bf16 %v3057_v44, %v3055_v45  ;;  %v3393_v24 = vpack.c.bf16 %v3071_v18, %v3069_v58 }
 0x4e7   :  { %3022 = vst.msk [vmem:[#allocation2 + $0x58] sm:$0xff] %vm1261_vm5, %v3007_v28  ;;  %v2973_v21 = vmul.f32 %v15114_v15, %v18805_v13  ;;  %v2923_v22 = vpop.f32.mrb[45].mxu0  ;;  %v3045_v19 = vld [vmem:[#allocation2 + $0x21] ss:$2 sm:$0xff]  ;;  %v3031_v9 = vld [vmem:[#allocation2 + $0x20] ss:$2 sm:$0xff] }
 0x4e8   :  { %3020 = vst.msk [vmem:[#allocation2 + $0x48] sm:$0xff] %vm1261_vm5, %v3005_v11  ;;  %v2971_v29 = vmul.f32 %v18805_v13, %v2923_v22  ;;  %v15115_v25 = vpop.f32.mrb[46].mxu0  ;;  %v3105_v54 = vpack.c.bf16 %v3047_v6, %v3045_v19  ;;  %v3033_v16 = vld [vmem:[#allocation2 + $0x30] ss:$2 sm:$0xff]  ;;  %v3073_v10 = vld [vmem:[#allocation2 + $0x23] ss:$2 sm:$0xff] }
 0x4e9   :  { %v2995_v41 = vadd.f32 %v18808_v40, %v2973_v21  ;;  %v2926_v36 = vpop.f32.mrb[47].mxu0  ;;  %v3097_v5 = vpack.c.bf16 %v3033_v16, %v3031_v9  ;;  %v3059_v38 = vld [vmem:[#allocation2 + $0x22] ss:$2 sm:$0xff] }
 0x4ea   :  { %v2993_v1 = vadd.f32 %v18808_v40, %v2971_v29  ;;  %v2972_v3 = vmul.f32 %v18805_v13, %v2926_v36  ;;  %15121 = vmatmul.mubr.msk.bf16.vlgmr.msra.gmra.mrb[16].mxu1 %vm1261_vm5, %v3105_v54  ;;  %v3085_v34 = vld [vmem:[#allocation2 + $0x14] ss:$2 sm:$0xff]  ;;  %v3083_v28 = vld [vmem:[#allocation2 + $0x4] ss:$2 sm:$0xff] }
 0x4eb   :  { %v3010_v59 = vmax.f32 %v2995_v41, 0.0  ;;  %15129 = vmatpush3.bf16.msra.mxu1 %v18801_v17  ;;  %v3027_v17 = vld [vmem:[#allocation2] ss:$2 sm:$0xff]  ;;  %v3497_v11 = vpack.c.bf16 %v3085_v34, %v3083_v28  ;;  %v17309_v36 = vld [vmem:[#allocation9 + $0x30] sm:$0xff]  }
 0x4ec   :  { %v3008_v60 = vmax.f32 %v2993_v1, 0.0  ;;  %v2994_v14 = vadd.f32 %v18808_v40, %v2972_v3  ;;  %15130 = vmatprep.subr.bf16.mxu1 %v17300_v55  ;;  %v3096_v20 = vpack.c.bf16 %v3029_v47, %v3027_v17  ;;  %v3087_v21 = vld [vmem:[#allocation2 + $0x24] ss:$2 sm:$0xff]  ;;  %v17310_v1 = vld [vmem:[#allocation9 + $0x38] sm:$0xff]  }
 0x4ed   :  { %3026 = vst.msk [vmem:[#allocation2 + $0x70] sm:$0xf] %vm3025_vm6, %v3010_v59  ;;  %v3061_v7 = vld [vmem:[#allocation2 + $0x32] ss:$2 sm:$0xff]  ;;  %v3075_v37 = vld [vmem:[#allocation2 + $0x33] ss:$2 sm:$0xff] }
 0x4ee   :  { %3023 = vst.msk [vmem:[#allocation2 + $0x60] sm:$0xff] %vm1261_vm5, %v3008_v60  ;;  %v3009_v33 = vmax.f32 %v2994_v14, 0.0  ;;  %v3051_v0 = vld [vmem:[#allocation2 + $0x51] ss:$2 sm:$0xff]  ;;  %v3037_v51 = vld [vmem:[#allocation2 + $0x50] ss:$2 sm:$0xff]  ;;  %v3290_v23 = vpack.c.bf16 %v3061_v7, %v3059_v38  ;;  %v3394_v50 = vpack.c.bf16 %v3075_v37, %v3073_v10 }
 0x4ef   :  { %v3049_v42 = vld [vmem:[#allocation2 + $0x41] ss:$2 sm:$0xff]  ;;  %15131 = vmatpush3.bf16.msra.mxu1 %v17300_v55  ;;  %v3035_v12 = vld [vmem:[#allocation2 + $0x40] ss:$2 sm:$0xff]  ;;  %v17850_v60 = vmov 0.0  }
 0x4f0   :  { %3024 = vst.msk [vmem:[#allocation2 + $0x68] sm:$0xff] %vm1261_vm5, %v3009_v33  ;;  %v3106_v13 = vpack.c.bf16 %v3051_v0, %v3049_v42  ;;  %15140 = vmatprep.subr.bf16.mxu1 %v17301_v30  ;;  %v3098_v61 = vpack.c.bf16 %v3037_v51, %v3035_v12  ;;  %v3063_v39 = vld [vmem:[#allocation2 + $0x42] ss:$2 sm:$0xff]  ;;  %v3077_v52 = vld [vmem:[#allocation2 + $0x43] ss:$2 sm:$0xff]  ;;  %15256 = vmatprep.subr.bf16.mxu0 %v17850_v60 }
 0x4f1   :  { %v3089_v15 = vld [vmem:[#allocation2 + $0x34] ss:$2 sm:$0xff]  ;;  %v3091_v19 = vld [vmem:[#allocation2 + $0x44] ss:$2 sm:$0xff]  ;;  %15264 = vmatprep.mubr.msk.bf16.mxu0 %vm17851_vm8, %v17850_v60 }
 0x4f2   :  { %15124 = vmatprep.mubr.msk.bf16.mxu1 %vm1261_vm5, %v3106_v13  ;;  %v3498_v22 = vpack.c.bf16 %v3089_v15, %v3087_v21  ;;  %v17307_v55 = vld [vmem:[#allocation9 + $0x20] sm:$0xff]   ;;  %v17308_v41 = vld [vmem:[#allocation9 + $0x28] sm:$0xff]  }
 0x4f3   :  { %v18876_v3 = vld [vmem:[#allocation9] sm:$0xff]   ;;  %v17328_v14 = vld [vmem:[#allocation11 + $0x28] sm:$0xff]  }
 0x4f4   :  { %v17327_v59 = vld [vmem:[#allocation11 + $0x20] sm:$0xff]  }
 0x4f5   :  { %v3065_v27 = vld [vmem:[#allocation2 + $0x52] ss:$2 sm:$0xff]  ;;  %v3079_v48 = vld [vmem:[#allocation2 + $0x53] ss:$2 sm:$0xff]  ;;  %15257 = vmatpush3.bf16.msra.mxu0 %v17327_v59 }
 0x4f6   :  { %v3291_v2 = vpack.c.bf16 %v3065_v27, %v3063_v39  ;;  %v3395_v53 = vpack.c.bf16 %v3079_v48, %v3077_v52  ;;  %v3093_v6 = vld [vmem:[#allocation2 + $0x54] ss:$2 sm:$0xff]  ;;  %15258 = vmatprep.subr.bf16.mxu0 %v17850_v60 }
 0x4f7   :  { %v3053_v31 = vld [vmem:[#allocation2 + $0x61] ss:$2 sm:$0xff]  ;;  %v3039_v8 = vld [vmem:[#allocation2 + $0x60] ss:$2 sm:$0xff]  ;;  %v3499_v29 = vpack.c.bf16 %v3093_v6, %v3091_v19 }
 0x4f8   :  { %v3107_v40 = vpack.c.bf16 %v3053_v31, %v3053_v31  ;;  %v3099_v32 = vpack.c.bf16 %v3039_v8, %v3039_v8  ;;  %v3067_v49 = vld [vmem:[#allocation2 + $0x62] ss:$2 sm:$0xff]  ;;  %v3081_v63 = vld [vmem:[#allocation2 + $0x63] ss:$2 sm:$0xff]  ;;  %v13346_v0 = vld [vmem:[%s20554_s15] ss:$0 sm:$0xff] }
 0x4f9   :  { %v3292_v26 = vpack.c.bf16 %v3067_v49, %v3067_v49  ;;  %v3396_v56 = vpack.c.bf16 %v3081_v63, %v3081_v63  ;;  %v3095_v25 = vld [vmem:[#allocation2 + $0x64] ss:$2 sm:$0xff]  ;;  %15259 = vmatpush3.bf16.msra.mxu0 %v17328_v14 }
 0x4fa   :  { %15125 = vmatmul.mubr.msk.bf16.gmra.mrb[20].mxu1 %vm1261_vm5, %v3107_v40  ;;  %v3500_v54 = vpack.c.bf16 %v3095_v25, %v3095_v25  ;;  %15260 = vmatprep.subr.bf16.mxu0 %v17850_v60 }
 0x4fb   :  { %15132 = vmatprep.mubr.msk.bf16.mxu1 %vm1261_vm5, %v3096_v20 }
 0x502   :  { %15133 = vmatmul.mubr.msk.bf16.vlgmr.msra.gmra.mrb[16].mxu1 %vm1261_vm5, %v3097_v5 }
 0x503   :  { %15136 = vmatprep.mubr.msk.bf16.mxu1 %vm1261_vm5, %v3098_v61  ;;  %15141 = vmatpush3.bf16.msra.mxu1 %v17301_v30  ;;  %v13345_v30 = vld [vmem:[%s20553_s11] ss:$0 sm:$0xff] }
 0x504   :  { %15142 = vmatprep.subr.bf16.mxu1 %v17302_v57 }
 0x507   :  { %15143 = vmatpush3.bf16.msra.mxu1 %v17302_v57 }
 0x508   :  { %15152 = vmatprep.subr.bf16.mxu1 %v17303_v4 }
 0x50a   :  { %15137 = vmatmul.mubr.msk.bf16.gmra.mrb[20].mxu1 %vm1261_vm5, %v3099_v32 }
 0x50b   :  { %15144 = vmatprep.mubr.msk.bf16.mxu1 %vm1261_vm5, %v3289_v35 }
 0x512   :  { %15145 = vmatmul.mubr.msk.bf16.vlgmr.msra.gmra.mrb[16].mxu1 %vm1261_vm5, %v3290_v23 }
 0x513   :  { %15148 = vmatprep.mubr.msk.bf16.mxu1 %vm1261_vm5, %v3291_v2  ;;  %15153 = vmatpush3.bf16.msra.mxu1 %v17303_v4 }
 0x514   :  { %15154 = vmatprep.subr.bf16.mxu1 %v17304_v46 }
 0x517   :  { %15155 = vmatpush3.bf16.msra.mxu1 %v17304_v46 }
 0x518   :  { %15164 = vmatprep.subr.bf16.mxu1 %v17305_v43 }
 0x51a   :  { %15149 = vmatmul.mubr.msk.bf16.gmra.mrb[20].mxu1 %vm1261_vm5, %v3292_v26 }
 0x51b   :  { %15156 = vmatprep.mubr.msk.bf16.mxu1 %vm1261_vm5, %v3393_v24 }
 0x522   :  { %15157 = vmatmul.mubr.msk.bf16.vlgmr.msra.gmra.mrb[16].mxu1 %vm1261_vm5, %v3394_v50 }
 0x523   :  { %15160 = vmatprep.mubr.msk.bf16.mxu1 %vm1261_vm5, %v3395_v53  ;;  %15165 = vmatpush3.bf16.msra.mxu1 %v17305_v43 }
 0x524   :  { %15166 = vmatprep.subr.bf16.mxu1 %v17306_v62 }
 0x527   :  { %15167 = vmatpush3.bf16.msra.mxu1 %v17306_v62 }
 0x528   :  { %15176 = vmatprep.subr.bf16.mxu1 %v17307_v55 }
 0x52a   :  { %15161 = vmatmul.mubr.msk.bf16.gmra.mrb[20].mxu1 %vm1261_vm5, %v3396_v56 }
 0x52b   :  { %15168 = vmatprep.mubr.msk.bf16.mxu1 %vm1261_vm5, %v3497_v11 }
 0x532   :  { %15169 = vmatmul.mubr.msk.bf16.vlgmr.msra.gmra.mrb[16].mxu1 %vm1261_vm5, %v3498_v22 }
 0x533   :  { %15172 = vmatprep.mubr.msk.bf16.mxu1 %vm1261_vm5, %v3499_v29  ;;  %15177 = vmatpush3.bf16.msra.mxu1 %v17307_v55 }
 0x534   :  { %15178 = vmatprep.subr.bf16.mxu1 %v17308_v41 }
 0x537   :  { %15179 = vmatpush3.bf16.msra.mxu1 %v17308_v41 }
 0x538   :  { %15180 = vmatprep.subr.bf16.mxu1 %v17309_v36 }
 0x53a   :  { %15173 = vmatmul.mubr.msk.bf16.gmra.mrb[20].mxu1 %vm1261_vm5, %v3500_v54 }
 0x53b   :  { %15181 = vmatpush3.bf16.msra.mxu1 %v17309_v36 }
 0x53c   :  { %15182 = vmatprep.subr.bf16.mxu1 %v17310_v1 }
 0x53f   :  { %15183 = vmatpush3.bf16.msra.mxu1 %v17310_v1 }
 0x540   :  { %15192 = vmatprep.subr.bf16.mxu1 %v18876_v3 }
 0x605   :  { %v15170_v33 = vpop.f32.mrb[16].mxu1 }
 0x606   :  { %v3610_v42 = vmul.f32 %v15170_v33, %v13345_v30  ;;  %v3564_v13 = vpop.f32.mrb[17].mxu1 }
 0x607   :  { %v3608_v17 = vmul.f32 %v13345_v30, %v3564_v13  ;;  %v15171_v47 = vpop.f32.mrb[18].mxu1 }
 0x608   :  { %v3624_v31 = vadd.f32 %v13346_v0, %v3610_v42  ;;  %v3611_v40 = vmul.f32 %v15171_v47, %v13345_v30  ;;  %v3567_v20 = vpop.f32.mrb[19].mxu1 }
 0x609   :  { %v3622_v9 = vadd.f32 %v13346_v0, %v3608_v17  ;;  %v3609_v16 = vmul.f32 %v13345_v30, %v3567_v20  ;;  %v17312_v20 = vld [vmem:[#allocation9 + $0x8] sm:$0xff]  }
 0x60a   :  { %v3625_v12 = vadd.f32 %v13346_v0, %v3611_v40  ;;  %v3631_v5 = vmax.f32 %v3624_v31, 0.0 }
 0x60b   :  { %v3623_v51 = vadd.f32 %v13346_v0, %v3609_v16  ;;  %v3629_v61 = vmax.f32 %v3622_v9, 0.0 }
 0x60c   :  { %v3632_v57 = vmax.f32 %v3625_v12, 0.0 }
 0x60d   :  { %v3630_v4 = vmax.f32 %v3623_v51, 0.0  ;;  %v15174_v8 = vpop.f32.mrb[20].mxu1 }
 0x60e   :  { %v18884_v44 = vpack.c.bf16 %v3632_v57, %v3631_v5  ;;  %v3614_v32 = vmul.f32 %v15174_v8, %v13345_v30  ;;  %v3580_v45 = vpop.f32.mrb[21].mxu1 }
 0x60f   :  { %v18886_v35 = vpack.c.bf16 %v3630_v4, %v3629_v61  ;;  %v3612_v7 = vmul.f32 %v13345_v30, %v3580_v45  ;;  %v15175_v27 = vpop.f32.mrb[22].mxu1 }
 0x610   :  { %v3628_v38 = vadd.f32 %v13346_v0, %v3614_v32  ;;  %v3583_v23 = vpop.f32.mrb[23].mxu1  ;;  %v3665_v39 = vshll.u32 %v18884_v44, 16  ;;  %v3669_v46 = vshrl.u32 %v18884_v44, 16  ;;  %v3899_v2 = vrot.slane %v18884_v44, 1  ;;  %v17313_v32 = vld [vmem:[#allocation9 + $0x10] sm:$0xff]  }
 0x611   :  { %v3626_v43 = vadd.f32 %v13346_v0, %v3612_v7  ;;  %v3613_v49 = vmul.f32 %v13345_v30, %v3583_v23  ;;  %v3658_v18 = vshrl.u32 %v18886_v35, 16  ;;  %v3660_v26 = vshll.u32 %v18886_v35, 16  ;;  %v17316_v23 = vld [vmem:[#allocation9 + $0x48] sm:$0xff]  }
 0x612   :  { %v3635_v58 = vmax.f32 %v3628_v38, 0.0  ;;  %v3898_v24 = vrot.slane %v18886_v35, 1  ;;  %v4024_v50 = vrot.slane %v3669_v46, 1  ;;  %v3667_v62 = vrot.slane %v3665_v39, 1  ;;  %v17314_v38 = vld [vmem:[#allocation9 + $0x18] sm:$0xff]  }
 0x613   :  { %v3627_v37 = vadd.f32 %v13346_v0, %v3613_v49  ;;  %v3662_v48 = vrot.slane %v3660_v26, 1  ;;  %v4021_v10 = vrot.slane %v3658_v18, 1  ;;  %v4022_v63 = vrot.slane %v3660_v26, 2  ;;  %v17323_v49 = vld [vmem:[#allocation9 + $0x80] sm:$0xff]   ;;  %v17325_v26 = vld [vmem:[#allocation9 + $0x90] sm:$0xff]  }
 0x614   :  { %v18894_v52 = vpack.c.bf16 %v3635_v58, %v3635_v58  ;;  %v18897_v53 = vsel %vm601_vm3, %v3898_v24, %v3899_v2  ;;  %v3633_v34 = vmax.f32 %v3626_v43, 0.0  ;;  %v4025_v11 = vrot.slane %v3665_v39, 2  ;;  %v17317_v39 = vld [vmem:[#allocation9 + $0x50] sm:$0xff]   ;;  %v17322_v43 = vld [vmem:[#allocation9 + $0x78] sm:$0xff]  }
 0x615   :  { %v3634_v56 = vmax.f32 %v3627_v37, 0.0  ;;  %v3663_v28 = vor.u32 %v3662_v48, %v3658_v18  ;;  %v4023_v21 = vor.u32 %v4022_v63, %v4021_v10  ;;  %v4152_v22 = vrot.slane %v18886_v35, 2  ;;  %v17324_v18 = vld [vmem:[#allocation9 + $0x88] sm:$0xff]   ;;  %v17326_v58 = vld [vmem:[#allocation9 + $0x98] sm:$0xff]   ;;  %v17329_v24 = vld [vmem:[#allocation11 + $0x30] sm:$0xff]  }
 0x616   :  { %v3681_v15 = vshll.u32 %v18894_v52, 16  ;;  %v3685_v6 = vshrl.u32 %v18894_v52, 16  ;;  %v4026_v25 = vor.u32 %v4025_v11, %v4024_v50  ;;  %v4153_v54 = vrot.slane %v18884_v44, 2  ;;  %15261 = vmatpush3.bf16.msra.mxu0 %v17329_v24  ;;  %v17330_v37 = vld [vmem:[#allocation11 + $0x38] sm:$0xff]   ;;  %v13387_v48 = vld [vmem:[%s20555_s2] ss:$0 sm:$0xff] }
 0x617   :  { %v3638_v19 = vpack.c.bf16 %v3634_v56, %v3633_v34  ;;  %v3668_v29 = vsel %vm274_vm1, %v3663_v28, %v3667_v62  ;;  %v3671_v55 = vor.u32 %v3669_v46, %v3667_v62  ;;  %v3903_v41 = vrot.slane %v18894_v52, 1  ;;  %v17318_v46 = vld [vmem:[#allocation9 + $0x58] sm:$0xff]   ;;  %15262 = vmatprep.subr.bf16.mxu0 %v17850_v60  ;;  %v13388_v50 = vld [vmem:[%s20556_s20] ss:$0 sm:$0xff]  ;;  %v17332_v24 = vld [vmem:[#allocation11 + $0x8] sm:$0xff]  }
 0x618   :  { %15184 = vmatprep.mubr.msk.bf16.mxu1 %vm3712_vm7, %v3668_v29  ;;  %v4032_v36 = vrot.slane %v3685_v6, 1  ;;  %v18907_v30 = vsel %vm765_vm4, %v4023_v21, %v4026_v25  ;;  %v4033_v33 = vrot.slane %v3681_v15, 2  ;;  %v18910_v0 = vsel %vm368_vm0, %v4152_v22, %v4153_v54 }
 0x619   :  { %v3673_v1 = vshll.u32 %v3638_v19, 16  ;;  %v3677_v59 = vshrl.u32 %v3638_v19, 16  ;;  %v3901_v14 = vrot.slane %v3638_v19, 1  ;;  %v4155_v42 = vrot.slane %v3638_v19, 2 }
 0x61a   :  { %v4157_v13 = vrot.slane %v18894_v52, 2  ;;  %v3683_v57 = vrot.slane %v3681_v15, 1  ;;  %v4034_v4 = vor.u32 %v4033_v33, %v4032_v36  ;;  %15263 = vmatpush3.bf16.msra.mxu0 %v17330_v37 }
 0x61b   :  { %v3675_v17 = vrot.slane %v3673_v1, 1  ;;  %v4028_v47 = vrot.slane %v3677_v59, 1  ;;  %v3902_v31 = vsel %vm601_vm3, %v3899_v2, %v3901_v14  ;;  %v3904_v40 = vsel %vm601_vm3, %v3901_v14, %v3903_v41  ;;  %v17321_v2 = vld [vmem:[#allocation9 + $0x70] sm:$0xff]   ;;  %15276 = vmatprep.subr.bf16.mxu0 %v17850_v60 }
 0x61c   :  { %v4029_v9 = vrot.slane %v3673_v1, 2  ;;  %v18918_v16 = vsel %vm368_vm0, %v4153_v54, %v4155_v42  ;;  %v18923_v12 = vsel %vm368_vm0, %v4155_v42, %v4157_v13  ;;  %v3687_v27 = vor.u32 %v3685_v6, %v3683_v57 }
 0x61d   :  { %v3676_v51 = vsel %vm274_vm1, %v3671_v55, %v3675_v17  ;;  %v3679_v5 = vor.u32 %v3677_v59, %v3675_v17 }
 0x61e   :  { %15185 = vmatmul.mubr.msk.bf16.vlgmr.msra.gmra.mrb[24].mxu1 %vm3712_vm7, %v3676_v51  ;;  %v4030_v61 = vor.u32 %v4029_v9, %v4028_v47 }
 0x61f   :  { %15193 = vmatpush3.bf16.msra.mxu1 %v18876_v3  ;;  %v3684_v8 = vsel %vm274_vm1, %v3679_v5, %v3683_v57  ;;  %v17315_v3 = vld [vmem:[#allocation9 + $0x40] sm:$0xff]  }
 0x620   :  { %15188 = vmatprep.mubr.msk.bf16.mxu1 %vm3712_vm7, %v3684_v8  ;;  %15194 = vmatprep.subr.bf16.mxu1 %v17312_v20  ;;  %v4031_v45 = vsel %vm765_vm4, %v4026_v25, %v4030_v61  ;;  %v4035_v7 = vsel %vm765_vm4, %v4030_v61, %v4034_v4 }
 0x623   :  { %15195 = vmatpush3.bf16.msra.mxu1 %v17312_v20 }
 0x624   :  { %15196 = vmatprep.subr.bf16.mxu1 %v17313_v32 }
 0x626   :  { %15189 = vmatmul.mubr.msk.bf16.gmra.mrb[28].mxu1 %vm3712_vm7, %v3687_v27  ;;  %v17331_v27 = vld [vmem:[#allocation11] sm:$0xff]  }
 0x627   :  { %15197 = vmatpush3.bf16.msra.mxu1 %v17313_v32  ;;  %15200 = vmatprep.mubr.msk.bf16.mxu1 %vm3712_vm7, %v18886_v35  ;;  %v17319_v35 = vld [vmem:[#allocation9 + $0x60] sm:$0xff]  }
 0x628   :  { %15198 = vmatprep.subr.bf16.mxu1 %v17314_v38 }
 0x62b   :  { %15199 = vmatpush3.bf16.msra.mxu1 %v17314_v38 }
 0x62c   :  { %15208 = vmatprep.subr.bf16.mxu1 %v17315_v3 }
 0x62e   :  { %15201 = vmatmul.mubr.msk.bf16.vlgmr.msra.gmra.mrb[24].mxu1 %vm3712_vm7, %v18884_v44  ;;  %v17320_v44 = vld [vmem:[#allocation9 + $0x68] sm:$0xff]  }
 0x62f   :  { %15204 = vmatprep.mubr.msk.bf16.mxu1 %vm3712_vm7, %v3638_v19  ;;  %15209 = vmatpush3.bf16.msra.mxu1 %v17315_v3 }
 0x630   :  { %15210 = vmatprep.subr.bf16.mxu1 %v17316_v23 }
 0x633   :  { %15211 = vmatpush3.bf16.msra.mxu1 %v17316_v23 }
 0x634   :  { %15212 = vmatprep.subr.bf16.mxu1 %v17317_v39 }
 0x636   :  { %15205 = vmatmul.mubr.msk.bf16.gmra.mrb[28].mxu1 %vm3712_vm7, %v18894_v52 }
 0x637   :  { %15213 = vmatpush3.bf16.msra.mxu1 %v17317_v39  ;;  %15216 = vmatprep.mubr.msk.bf16.mxu1 %vm3712_vm7, %v18897_v53 }
 0x638   :  { %15214 = vmatprep.subr.bf16.mxu1 %v17318_v46 }
 0x63b   :  { %15215 = vmatpush3.bf16.msra.mxu1 %v17318_v46 }
 0x63c   :  { %15224 = vmatprep.subr.bf16.mxu1 %v17319_v35 }
 0x63e   :  { %15217 = vmatmul.mubr.msk.bf16.vlgmr.msra.gmra.mrb[24].mxu1 %vm3712_vm7, %v3902_v31 }
 0x63f   :  { %15220 = vmatprep.mubr.msk.bf16.mxu1 %vm3712_vm7, %v3904_v40  ;;  %15225 = vmatpush3.bf16.msra.mxu1 %v17319_v35 }
 0x640   :  { %15226 = vmatprep.subr.bf16.mxu1 %v17320_v44 }
 0x643   :  { %15227 = vmatpush3.bf16.msra.mxu1 %v17320_v44 }
 0x644   :  { %15228 = vmatprep.subr.bf16.mxu1 %v17321_v2 }
 0x646   :  { %15221 = vmatmul.mubr.msk.bf16.gmra.mrb[28].mxu1 %vm3712_vm7, %v3903_v41 }
 0x647   :  { %15229 = vmatpush3.bf16.msra.mxu1 %v17321_v2  ;;  %15232 = vmatprep.mubr.msk.bf16.mxu1 %vm3712_vm7, %v18907_v30 }
 0x648   :  { %15230 = vmatprep.subr.bf16.mxu1 %v17322_v43 }
 0x64b   :  { %15231 = vmatpush3.bf16.msra.mxu1 %v17322_v43 }
 0x64c   :  { %15240 = vmatprep.subr.bf16.mxu1 %v17323_v49 }
 0x64e   :  { %15233 = vmatmul.mubr.msk.bf16.vlgmr.msra.gmra.mrb[24].mxu1 %vm3712_vm7, %v4031_v45 }
 0x64f   :  { %15236 = vmatprep.mubr.msk.bf16.mxu1 %vm3712_vm7, %v4035_v7  ;;  %15241 = vmatpush3.bf16.msra.mxu1 %v17323_v49 }
 0x650   :  { %15242 = vmatprep.subr.bf16.mxu1 %v17324_v18 }
 0x653   :  { %15243 = vmatpush3.bf16.msra.mxu1 %v17324_v18 }
 0x654   :  { %15244 = vmatprep.subr.bf16.mxu1 %v17325_v26 }
 0x656   :  { %15237 = vmatmul.mubr.msk.bf16.gmra.mrb[28].mxu1 %vm3712_vm7, %v4034_v4 }
 0x657   :  { %15245 = vmatpush3.bf16.msra.mxu1 %v17325_v26  ;;  %15248 = vmatprep.mubr.msk.bf16.mxu1 %vm3712_vm7, %v18910_v0 }
 0x658   :  { %15246 = vmatprep.subr.bf16.mxu1 %v17326_v58 }
 0x65b   :  { %15247 = vmatpush3.bf16.msra.mxu1 %v17326_v58 }
 0x65c   :  { %15356 = vmatprep.subr.bf16.mxu1 %v17850_v60 }
 0x65e   :  { %15249 = vmatmul.mubr.msk.bf16.vlgmr.msra.gmra.mrb[24].mxu1 %vm3712_vm7, %v18918_v16 }
 0x65f   :  { %15252 = vmatprep.mubr.msk.bf16.mxu1 %vm3712_vm7, %v18923_v12 }
 0x666   :  { %15253 = vmatmul.mubr.msk.bf16.gmra.mrb[28].mxu1 %vm3712_vm7, %v4157_v13 }
 0x667   :  { %15364 = vmatprep.mubr.msk.bf16.mxu1 %vm17851_vm8, %v17850_v60 }
 0x731   :  { %v15250_v10 = vpop.f32.mrb[24].mxu1 }
 0x732   :  { %v4275_v52 = vmul.f32 %v15250_v10, %v13387_v48  ;;  %v4229_v62 = vpop.f32.mrb[25].mxu1 }
 0x733   :  { %v4273_v53 = vmul.f32 %v13387_v48, %v4229_v62  ;;  %v15251_v63 = vpop.f32.mrb[26].mxu1 }
 0x734   :  { %v4289_v34 = vadd.f32 %v13388_v50, %v4275_v52  ;;  %v4276_v56 = vmul.f32 %v15251_v63, %v13387_v48  ;;  %v4232_v28 = vpop.f32.mrb[27].mxu1 }
 0x735   :  { %v4287_v11 = vadd.f32 %v13388_v50, %v4273_v53  ;;  %v4274_v15 = vmul.f32 %v13387_v48, %v4232_v28 }
 0x736   :  { %v4290_v6 = vadd.f32 %v13388_v50, %v4276_v56  ;;  %v4296_v22 = vmax.f32 %v4289_v34, 0.0 }
 0x737   :  { %v4288_v21 = vadd.f32 %v13388_v50, %v4274_v15  ;;  %v4294_v29 = vmax.f32 %v4287_v11, 0.0 }
 0x738   :  { %v4297_v19 = vmax.f32 %v4290_v6, 0.0 }
 0x739   :  { %v4295_v25 = vmax.f32 %v4288_v21, 0.0  ;;  %v15254_v54 = vpop.f32.mrb[28].mxu1 }
 0x73a   :  { %v18970_v55 = vpack.c.bf16 %v4297_v19, %v4296_v22  ;;  %v4279_v41 = vmul.f32 %v15254_v54, %v13387_v48  ;;  %v4245_v36 = vpop.f32.mrb[29].mxu1  ;;  %v17333_v19 = vld [vmem:[#allocation11 + $0x10] sm:$0xff]  }
 0x73b   :  { %v18972_v1 = vpack.c.bf16 %v4295_v25, %v4294_v29  ;;  %v4277_v59 = vmul.f32 %v13387_v48, %v4245_v36  ;;  %v15255_v14 = vpop.f32.mrb[30].mxu1 }
 0x73c   :  { %v4293_v30 = vadd.f32 %v13388_v50, %v4279_v41  ;;  %v4248_v33 = vpop.f32.mrb[31].mxu1  ;;  %v4330_v0 = vshll.u32 %v18970_v55, 16  ;;  %v4334_v42 = vshrl.u32 %v18970_v55, 16  ;;  %v4541_v13 = vrot.slane %v18970_v55, 1  ;;  %v17334_v14 = vld [vmem:[#allocation11 + $0x18] sm:$0xff]  }
 0x73d   :  { %v4291_v17 = vadd.f32 %v13388_v50, %v4277_v59  ;;  %v4278_v47 = vmul.f32 %v13387_v48, %v4248_v33  ;;  %v4323_v31 = vshrl.u32 %v18972_v1, 16  ;;  %v4325_v40 = vshll.u32 %v18972_v1, 16  ;;  %v17336_v33 = vld [vmem:[#allocation11 + $0x48] sm:$0xff]  }
 0x73e   :  { %v4300_v20 = vmax.f32 %v4293_v30, 0.0  ;;  %v4540_v9 = vrot.slane %v18972_v1, 1  ;;  %v4655_v51 = vrot.slane %v4334_v42, 1  ;;  %v4332_v61 = vrot.slane %v4330_v0, 1  ;;  %v17335_v30 = vld [vmem:[#allocation11 + $0x40] sm:$0xff]  }
 0x73f   :  { %v4292_v16 = vadd.f32 %v13388_v50, %v4278_v47  ;;  %v4327_v12 = vrot.slane %v4325_v40, 1  ;;  %v4652_v5 = vrot.slane %v4323_v31, 1  ;;  %v4653_v8 = vrot.slane %v4325_v40, 2  ;;  %v17343_v47 = vld [vmem:[#allocation11 + $0x80] sm:$0xff]   ;;  %v17345_v40 = vld [vmem:[#allocation11 + $0x90] sm:$0xff]  }
 0x740   :  { %v4312_v57 = vpack.c.bf16 %v4300_v20, %v4300_v20  ;;  %v18981_v4 = vsel %vm601_vm3, %v4540_v9, %v4541_v13  ;;  %v4298_v32 = vmax.f32 %v4291_v17, 0.0  ;;  %v4656_v38 = vrot.slane %v4330_v0, 2  ;;  %v17337_v0 = vld [vmem:[#allocation11 + $0x50] sm:$0xff]   ;;  %v17342_v17 = vld [vmem:[#allocation11 + $0x78] sm:$0xff]   ;;  %v17347_v9 = vld [vmem:[#allocation12 + $0x20] sm:$0xff]  }
 0x741   :  { %v4299_v45 = vmax.f32 %v4292_v16, 0.0  ;;  %v4328_v7 = vor.u32 %v4327_v12, %v4323_v31  ;;  %v4654_v23 = vor.u32 %v4653_v8, %v4652_v5  ;;  %v4774_v46 = vrot.slane %v18972_v1, 2  ;;  %v17344_v31 = vld [vmem:[#allocation11 + $0x88] sm:$0xff]   ;;  %v17346_v20 = vld [vmem:[#allocation11 + $0x98] sm:$0xff]   ;;  %15357 = vmatpush3.bf16.msra.mxu1 %v17347_v9  ;;  %v17349_v12 = vld [vmem:[#allocation12 + $0x30] sm:$0xff]  }
 0x742   :  { %v4346_v3 = vshll.u32 %v4312_v57, 16  ;;  %v4663_v39 = vshrl.u32 %v4312_v57, 16  ;;  %v4657_v2 = vor.u32 %v4656_v38, %v4655_v51  ;;  %v4775_v43 = vrot.slane %v18970_v55, 2  ;;  %15358 = vmatprep.subr.bf16.mxu1 %v17850_v60  ;;  %v17348_v16 = vld [vmem:[#allocation12 + $0x28] sm:$0xff]   ;;  %v17350_v51 = vld [vmem:[#allocation12 + $0x38] sm:$0xff]  }
 0x743   :  { %v18984_v35 = vpack.c.bf16 %v4299_v45, %v4298_v32  ;;  %v4333_v44 = vsel %vm274_vm1, %v4328_v7, %v4332_v61  ;;  %v4336_v49 = vor.u32 %v4334_v42, %v4332_v61  ;;  %v4545_v18 = vrot.slane %v4312_v57, 1  ;;  %v17338_v42 = vld [vmem:[#allocation11 + $0x58] sm:$0xff]   ;;  %v13424_v5 = vld [vmem:[%s20557_s7] ss:$0 sm:$0xff] }
 0x744   :  { %15265 = vmatmul.mubr.msk.bf16.vlgmr.msra.gmra.mrb[48].mxu0 %vm3712_vm7, %v4333_v44  ;;  %v4665_v26 = vrot.slane %v4663_v39, 1  ;;  %v4666_v58 = vrot.slane %v4346_v3, 2  ;;  %v18995_v50 = vsel %vm765_vm4, %v4654_v23, %v4657_v2  ;;  %v18999_v62 = vsel %vm368_vm0, %v4774_v46, %v4775_v43  ;;  %v13425_v61 = vld [vmem:[%s20558_s10] ss:$0 sm:$0xff] }
 0x745   :  { %15277 = vmatpush3.bf16.msra.mxu0 %v17331_v27  ;;  %15268 = vmatprep.mubr.msk.bf16.mxu0 %vm17851_vm8, %v17850_v60  ;;  %v4338_v37 = vshll.u32 %v18984_v35, 16  ;;  %v4342_v48 = vshrl.u32 %v18984_v35, 16  ;;  %v4543_v10 = vrot.slane %v18984_v35, 1  ;;  %v4777_v53 = vrot.slane %v18984_v35, 2 }
 0x746   :  { %15278 = vmatprep.subr.bf16.mxu0 %v17850_v60  ;;  %v4667_v52 = vor.u32 %v4666_v58, %v4665_v26  ;;  %v4779_v63 = vrot.slane %v4312_v57, 2  ;;  %v4348_v25 = vrot.slane %v4346_v3, 1  ;;  %15359 = vmatpush3.bf16.msra.mxu1 %v17348_v16 }
 0x747   :  { %v4340_v34 = vrot.slane %v4338_v37, 1  ;;  %v4544_v56 = vsel %vm601_vm3, %v4541_v13, %v4543_v10  ;;  %v4546_v28 = vsel %vm601_vm3, %v4543_v10, %v4545_v18  ;;  %v4659_v11 = vrot.slane %v4342_v48, 1  ;;  %v17341_v13 = vld [vmem:[#allocation11 + $0x70] sm:$0xff]   ;;  %15360 = vmatprep.subr.bf16.mxu1 %v17850_v60 }
 0x748   :  { %v4660_v15 = vrot.slane %v4338_v37, 2  ;;  %v19005_v6 = vsel %vm368_vm0, %v4775_v43, %v4777_v53  ;;  %v19008_v21 = vsel %vm368_vm0, %v4777_v53, %v4779_v63 }
 0x749   :  { %15279 = vmatpush3.bf16.msra.mxu0 %v17332_v24  ;;  %v4341_v22 = vsel %vm274_vm1, %v4336_v49, %v4340_v34  ;;  %v4344_v29 = vor.u32 %v4342_v48, %v4340_v34 }
 0x74a   :  { %15280 = vmatprep.subr.bf16.mxu0 %v17850_v60  ;;  %v4661_v54 = vor.u32 %v4660_v15, %v4659_v11  ;;  %15361 = vmatpush3.bf16.msra.mxu1 %v17349_v12 }
 0x74b   :  { %v4349_v41 = vsel %vm274_vm1, %v4344_v29, %v4348_v25  ;;  %15362 = vmatprep.subr.bf16.mxu1 %v17850_v60 }
 0x74c   :  { %15269 = vmatmul.mubr.msk.bf16.gmra.mrb[52].mxu0 %vm3712_vm7, %v4341_v22  ;;  %v4662_v36 = vsel %vm765_vm4, %v4657_v2, %v4661_v54  ;;  %v4668_v59 = vsel %vm765_vm4, %v4661_v54, %v4667_v52 }
 0x74d   :  { %15281 = vmatpush3.bf16.msra.mxu0 %v17333_v19  ;;  %15272 = vmatprep.mubr.msk.bf16.mxu0 %vm17851_vm8, %v17850_v60 }
 0x74e   :  { %15282 = vmatprep.subr.bf16.mxu0 %v17850_v60  ;;  %15363 = vmatpush3.bf16.msra.mxu1 %v17350_v51 }
 0x74f   :  { %15376 = vmatprep.subr.bf16.mxu1 %v17850_v60 }
 0x751   :  { %15283 = vmatpush3.bf16.msra.mxu0 %v17334_v14  ;;  %v17351_v14 = vld [vmem:[#allocation12] sm:$0xff]  }
 0x752   :  { %15296 = vmatprep.subr.bf16.mxu0 %v17850_v60 }
 0x754   :  { %15273 = vmatmul.mubr.msk.bf16.gmra.mrb[56].mxu0 %vm3712_vm7, %v4349_v41 }
 0x755   :  { %15284 = vmatprep.mubr.msk.bf16.mxu0 %vm17851_vm8, %v17850_v60 }
 0x75c   :  { %15285 = vmatmul.mubr.msk.bf16.vlgmr.msra.gmra.mrb[48].mxu0 %vm3712_vm7, %v18972_v1  ;;  %v17339_v1 = vld [vmem:[#allocation11 + $0x60] sm:$0xff]  }
 0x75d   :  { %15297 = vmatpush3.bf16.msra.mxu0 %v17335_v30  ;;  %15288 = vmatprep.mubr.msk.bf16.mxu0 %vm17851_vm8, %v17850_v60 }
 0x75e   :  { %15298 = vmatprep.subr.bf16.mxu0 %v17850_v60 }
 0x761   :  { %15299 = vmatpush3.bf16.msra.mxu0 %v17336_v33 }
 0x762   :  { %15300 = vmatprep.subr.bf16.mxu0 %v17850_v60 }
 0x764   :  { %15289 = vmatmul.mubr.msk.bf16.gmra.mrb[52].mxu0 %vm3712_vm7, %v18970_v55  ;;  %v17340_v55 = vld [vmem:[#allocation11 + $0x68] sm:$0xff]  }
 0x765   :  { %15301 = vmatpush3.bf16.msra.mxu0 %v17337_v0  ;;  %15292 = vmatprep.mubr.msk.bf16.mxu0 %vm17851_vm8, %v17850_v60 }
 0x766   :  { %15302 = vmatprep.subr.bf16.mxu0 %v17850_v60 }
 0x769   :  { %15303 = vmatpush3.bf16.msra.mxu0 %v17338_v42 }
 0x76a   :  { %15316 = vmatprep.subr.bf16.mxu0 %v17850_v60 }
 0x76c   :  { %15293 = vmatmul.mubr.msk.bf16.gmra.mrb[56].mxu0 %vm3712_vm7, %v18984_v35 }
 0x76d   :  { %15304 = vmatprep.mubr.msk.bf16.mxu0 %vm17851_vm8, %v17850_v60 }
 0x774   :  { %15305 = vmatmul.mubr.msk.bf16.vlgmr.msra.gmra.mrb[48].mxu0 %vm3712_vm7, %v18981_v4 }
 0x775   :  { %15317 = vmatpush3.bf16.msra.mxu0 %v17339_v1  ;;  %15308 = vmatprep.mubr.msk.bf16.mxu0 %vm17851_vm8, %v17850_v60 }
 0x776   :  { %15318 = vmatprep.subr.bf16.mxu0 %v17850_v60 }
 0x779   :  { %15319 = vmatpush3.bf16.msra.mxu0 %v17340_v55 }
 0x77a   :  { %15320 = vmatprep.subr.bf16.mxu0 %v17850_v60 }
 0x77c   :  { %15309 = vmatmul.mubr.msk.bf16.gmra.mrb[52].mxu0 %vm3712_vm7, %v4544_v56 }
 0x77d   :  { %15321 = vmatpush3.bf16.msra.mxu0 %v17341_v13  ;;  %15312 = vmatprep.mubr.msk.bf16.mxu0 %vm17851_vm8, %v17850_v60 }
 0x77e   :  { %15322 = vmatprep.subr.bf16.mxu0 %v17850_v60 }
 0x781   :  { %15323 = vmatpush3.bf16.msra.mxu0 %v17342_v17 }
 0x782   :  { %15336 = vmatprep.subr.bf16.mxu0 %v17850_v60 }
 0x784   :  { %15313 = vmatmul.mubr.msk.bf16.gmra.mrb[56].mxu0 %vm3712_vm7, %v4546_v28 }
 0x785   :  { %15324 = vmatprep.mubr.msk.bf16.mxu0 %vm17851_vm8, %v17850_v60 }
 0x78c   :  { %15325 = vmatmul.mubr.msk.bf16.vlgmr.msra.gmra.mrb[48].mxu0 %vm3712_vm7, %v18995_v50 }
 0x78d   :  { %15337 = vmatpush3.bf16.msra.mxu0 %v17343_v47  ;;  %15328 = vmatprep.mubr.msk.bf16.mxu0 %vm17851_vm8, %v17850_v60 }
 0x78e   :  { %15338 = vmatprep.subr.bf16.mxu0 %v17850_v60 }
 0x791   :  { %15339 = vmatpush3.bf16.msra.mxu0 %v17344_v31  ;;  %v17352_v31 = vld [vmem:[#allocation12 + $0x8] sm:$0xff]  }
 0x792   :  { %15340 = vmatprep.subr.bf16.mxu0 %v17850_v60 }
 0x794   :  { %15329 = vmatmul.mubr.msk.bf16.gmra.mrb[52].mxu0 %vm3712_vm7, %v4662_v36 }
 0x795   :  { %15341 = vmatpush3.bf16.msra.mxu0 %v17345_v40  ;;  %15332 = vmatprep.mubr.msk.bf16.mxu0 %vm17851_vm8, %v17850_v60 }
 0x796   :  { %15342 = vmatprep.subr.bf16.mxu0 %v17850_v60 }
 0x799   :  { %15343 = vmatpush3.bf16.msra.mxu0 %v17346_v20 }
 0x79c   :  { %15333 = vmatmul.mubr.msk.bf16.gmra.mrb[56].mxu0 %vm3712_vm7, %v4668_v59 }
 0x79d   :  { %15344 = vmatprep.mubr.msk.bf16.mxu0 %vm17851_vm8, %v17850_v60 }
 0x7a4   :  { %15345 = vmatmul.mubr.msk.bf16.vlgmr.msra.gmra.mrb[48].mxu0 %vm3712_vm7, %v18999_v62 }
 0x7a5   :  { %15348 = vmatprep.mubr.msk.bf16.mxu0 %vm17851_vm8, %v17850_v60 }
 0x7ac   :  { %15349 = vmatmul.mubr.msk.bf16.gmra.mrb[52].mxu0 %vm3712_vm7, %v19005_v6 }
 0x7ad   :  { %15352 = vmatprep.mubr.msk.bf16.mxu0 %vm17851_vm8, %v17850_v60 }
 0x7b4   :  { %15353 = vmatmul.mubr.msk.bf16.gmra.mrb[56].mxu0 %vm3712_vm7, %v19008_v21 }
 0x877   :  { %v4848_v57 = vpop.f32.mrb[48].mxu0 }
 0x878   :  { %v4884_v4 = vmul.f32 %v13424_v5, %v4848_v57  ;;  %v15346_v8 = vpop.f32.mrb[49].mxu0  ;;  %v17353_v57 = vld [vmem:[#allocation12 + $0x10] sm:$0xff]  }
 0x879   :  { %v4851_v32 = vpop.f32.mrb[50].mxu0 }
 0x87a   :  { %v4897_v45 = vadd.f32 %v13425_v61, %v4884_v4  ;;  %v4885_v7 = vmul.f32 %v13424_v5, %v4851_v32  ;;  %v15347_v27 = vpop.f32.mrb[51].mxu0 }
 0x87b   :  { %v17354_v27 = vld [vmem:[#allocation12 + $0x18] sm:$0xff]  }
 0x87c   :  { %v4898_v38 = vadd.f32 %v13425_v61, %v4885_v7  ;;  %v4903_v3 = vmax.f32 %v4897_v45, 0.0 }
 0x87e   :  { %v4904_v23 = vmax.f32 %v4898_v38, 0.0 }
 0x87f   :  { %v4856_v39 = vpop.f32.mrb[52].mxu0 }
 0x880   :  { %v19082_v46 = vpack.c.bf16 %v4904_v23, %v4903_v3  ;;  %v4886_v35 = vmul.f32 %v13424_v5, %v4856_v39  ;;  %v15350_v44 = vpop.f32.mrb[53].mxu0  ;;  %v17355_v23 = vld [vmem:[#allocation12 + $0x40] sm:$0xff]   ;;  %v17356_v39 = vld [vmem:[#allocation12 + $0x48] sm:$0xff]  }
 0x881   :  { %v4859_v2 = vpop.f32.mrb[54].mxu0  ;;  %v17358_v44 = vld [vmem:[#allocation12 + $0x58] sm:$0xff]  }
 0x882   :  { %v4899_v43 = vadd.f32 %v13425_v61, %v4886_v35  ;;  %v4887_v49 = vmul.f32 %v13424_v5, %v4859_v2  ;;  %v15351_v18 = vpop.f32.mrb[55].mxu0  ;;  %v4930_v26 = vshrl.u32 %v19082_v46, 16  ;;  %v4932_v58 = vshll.u32 %v19082_v46, 16  ;;  %v17357_v35 = vld [vmem:[#allocation12 + $0x50] sm:$0xff]   ;;  %v17360_v2 = vld [vmem:[#allocation12 + $0x68] sm:$0xff]  }
 0x883   :  { %v5141_v19 = vrot.slane %v19082_v46, 1  ;;  %v5367_v25 = vrot.slane %v19082_v46, 2  ;;  %v17363_v18 = vld [vmem:[#allocation12 + $0x80] sm:$0xff]  }
 0x884   :  { %v4900_v24 = vadd.f32 %v13425_v61, %v4887_v49  ;;  %v5251_v37 = vrot.slane %v4930_v26, 1  ;;  %v5252_v48 = vrot.slane %v4932_v58, 2  ;;  %v4905_v10 = vmax.f32 %v4899_v43, 0.0  ;;  %v17361_v43 = vld [vmem:[#allocation12 + $0x70] sm:$0xff]   ;;  %v17362_v49 = vld [vmem:[#allocation12 + $0x78] sm:$0xff]  }
 0x885   :  { %v4934_v56 = vrot.slane %v4932_v58, 1  ;;  %v17365_v58 = vld [vmem:[#allocation12 + $0x90] sm:$0xff]  }
 0x886   :  { %v4906_v50 = vmax.f32 %v4900_v24, 0.0  ;;  %v5253_v62 = vor.u32 %v5252_v48, %v5251_v37  ;;  %v17366_v24 = vld [vmem:[#allocation12 + $0x98] sm:$0xff]   ;;  %v17367_v37 = vld [vmem:[#allocation14 + $0x20] sm:$0xff]   ;;  %v17368_v48 = vld [vmem:[#allocation14 + $0x28] sm:$0xff]  }
 0x887   :  { %v4864_v52 = vpop.f32.mrb[56].mxu0  ;;  %v4935_v36 = vor.u32 %v4934_v56, %v4930_v26  ;;  %v17364_v26 = vld [vmem:[#allocation12 + $0x88] sm:$0xff]   ;;  %15456 = vmatprep.subr.bf16.mxu0 %v17367_v37 }
 0x888   :  { %v19086_v53 = vpack.c.bf16 %v4906_v50, %v4905_v10  ;;  %v4888_v63 = vmul.f32 %v13424_v5, %v4864_v52  ;;  %v15354_v34 = vpop.f32.mrb[57].mxu0  ;;  %15457 = vmatpush3.bf16.msra.mxu0 %v17367_v37  ;;  %v17369_v10 = vld [vmem:[#allocation14 + $0x30] sm:$0xff]   ;;  %v17370_v50 = vld [vmem:[#allocation14 + $0x38] sm:$0xff]   ;;  %v17371_v52 = vld [vmem:[#allocation14] sm:$0xff]  }
 0x889   :  { %v4867_v28 = vpop.f32.mrb[58].mxu0  ;;  %15458 = vmatprep.subr.bf16.mxu0 %v17368_v48 }
 0x88a   :  { %v4901_v11 = vadd.f32 %v13425_v61, %v4888_v63  ;;  %v4889_v15 = vmul.f32 %v13424_v5, %v4867_v28  ;;  %v15355_v6 = vpop.f32.mrb[59].mxu0  ;;  %v4937_v21 = vshll.u32 %v19086_v53, 16  ;;  %v4941_v22 = vshrl.u32 %v19086_v53, 16  ;;  %v13462_v63 = vld [vmem:[%s20560_s16] ss:$0 sm:$0xff] }
 0x88b   :  { %v5142_v29 = vrot.slane %v19086_v53, 1  ;;  %v5368_v54 = vrot.slane %v19086_v53, 2 }
 0x88c   :  { %v4902_v41 = vadd.f32 %v13425_v61, %v4889_v15  ;;  %v4939_v59 = vrot.slane %v4937_v21, 1  ;;  %v5254_v30 = vrot.slane %v4941_v22, 1  ;;  %v5255_v0 = vrot.slane %v4937_v21, 2  ;;  %15459 = vmatpush3.bf16.msra.mxu0 %v17368_v48 }
 0x88d   :  { %v5143_v33 = vsel %vm601_vm3, %v5141_v19, %v5142_v29  ;;  %v19096_v42 = vsel %vm368_vm0, %v5367_v25, %v5368_v54  ;;  %v4907_v1 = vmax.f32 %v4901_v11, 0.0  ;;  %15460 = vmatprep.subr.bf16.mxu0 %v17369_v10 }
 0x88e   :  { %v4908_v55 = vmax.f32 %v4902_v41, 0.0  ;;  %v4940_v13 = vsel %vm274_vm1, %v4935_v36, %v4939_v59  ;;  %v5256_v17 = vor.u32 %v5255_v0, %v5254_v30  ;;  %v4943_v51 = vor.u32 %v4941_v22, %v4939_v59 }
 0x88f   :  { %15365 = vmatmul.mubr.msk.bf16.vlgmr.msra.gmra.mrb[32].mxu1 %vm3712_vm7, %v4940_v13 }
 0x890   :  { %v19100_v47 = vpack.c.bf16 %v4908_v55, %v4907_v1  ;;  %15377 = vmatpush3.bf16.msra.mxu1 %v17351_v14  ;;  %15368 = vmatprep.mubr.msk.bf16.mxu1 %vm17851_vm8, %v17850_v60  ;;  %v19106_v40 = vsel %vm765_vm4, %v5253_v62, %v5256_v17  ;;  %v13461_v62 = vld [vmem:[%s20559_s0] ss:$0 sm:$0xff] }
 0x891   :  { %15378 = vmatprep.subr.bf16.mxu1 %v17850_v60  ;;  %15461 = vmatpush3.bf16.msra.mxu0 %v17369_v10 }
 0x892   :  { %v4945_v20 = vshll.u32 %v19100_v47, 16  ;;  %v4949_v9 = vshrl.u32 %v19100_v47, 16  ;;  %v5144_v16 = vrot.slane %v19100_v47, 1  ;;  %v5370_v12 = vrot.slane %v19100_v47, 2  ;;  %15462 = vmatprep.subr.bf16.mxu0 %v17370_v50 }
 0x894   :  { %15379 = vmatpush3.bf16.msra.mxu1 %v17352_v31  ;;  %v4947_v5 = vrot.slane %v4945_v20, 1  ;;  %v5145_v61 = vsel %vm601_vm3, %v5142_v29, %v5144_v16  ;;  %v5258_v4 = vrot.slane %v4949_v9, 1  ;;  %v5259_v8 = vrot.slane %v4945_v20, 2 }
 0x895   :  { %15380 = vmatprep.subr.bf16.mxu1 %v17850_v60  ;;  %v19117_v32 = vsel %vm368_vm0, %v5368_v54, %v5370_v12  ;;  %15463 = vmatpush3.bf16.msra.mxu0 %v17370_v50 }
 0x896   :  { %v4948_v45 = vsel %vm274_vm1, %v4943_v51, %v4947_v5  ;;  %v19120_v7 = vor.u32 %v5259_v8, %v5258_v4  ;;  %v4951_v3 = vor.u32 %v4949_v9, %v4947_v5  ;;  %15468 = vmatprep.subr.bf16.mxu0 %v17371_v52  ;;  %v17372_v8 = vld [vmem:[#allocation14 + $0x8] sm:$0xff]  }
 0x897   :  { %15369 = vmatmul.mubr.msk.bf16.gmra.mrb[36].mxu1 %vm3712_vm7, %v4948_v45  ;;  %v17373_v45 = vld [vmem:[#allocation14 + $0x10] sm:$0xff]  }
 0x898   :  { %15381 = vmatpush3.bf16.msra.mxu1 %v17353_v57  ;;  %15372 = vmatprep.mubr.msk.bf16.mxu1 %vm17851_vm8, %v17850_v60  ;;  %v5261_v38 = vsel %vm765_vm4, %v5256_v17, %v19120_v7 }
 0x899   :  { %15382 = vmatprep.subr.bf16.mxu1 %v17850_v60 }
 0x89c   :  { %15383 = vmatpush3.bf16.msra.mxu1 %v17354_v27  ;;  %v17375_v27 = vld [vmem:[#allocation14 + $0x40] sm:$0xff]  }
 0x89d   :  { %15396 = vmatprep.subr.bf16.mxu1 %v17850_v60 }
 0x89f   :  { %15373 = vmatmul.mubr.msk.bf16.gmra.mrb[40].mxu1 %vm3712_vm7, %v4951_v3 }
 0x8a0   :  { %15384 = vmatprep.mubr.msk.bf16.mxu1 %vm17851_vm8, %v17850_v60 }
 0x8a7   :  { %15385 = vmatmul.mubr.msk.bf16.vlgmr.msra.gmra.mrb[32].mxu1 %vm3712_vm7, %v19082_v46  ;;  %v17359_v46 = vld [vmem:[#allocation12 + $0x60] sm:$0xff]  }
 0x8a8   :  { %15397 = vmatpush3.bf16.msra.mxu1 %v17355_v23  ;;  %15388 = vmatprep.mubr.msk.bf16.mxu1 %vm17851_vm8, %v17850_v60 }
 0x8a9   :  { %15398 = vmatprep.subr.bf16.mxu1 %v17850_v60 }
 0x8ac   :  { %15399 = vmatpush3.bf16.msra.mxu1 %v17356_v39 }
 0x8ad   :  { %15400 = vmatprep.subr.bf16.mxu1 %v17850_v60 }
 0x8af   :  { %15389 = vmatmul.mubr.msk.bf16.gmra.mrb[36].mxu1 %vm3712_vm7, %v19086_v53 }
 0x8b0   :  { %15401 = vmatpush3.bf16.msra.mxu1 %v17357_v35  ;;  %15392 = vmatprep.mubr.msk.bf16.mxu1 %vm17851_vm8, %v17850_v60  ;;  %v17376_v35 = vld [vmem:[#allocation14 + $0x48] sm:$0xff]  }
 0x8b1   :  { %15402 = vmatprep.subr.bf16.mxu1 %v17850_v60 }
 0x8b4   :  { %15403 = vmatpush3.bf16.msra.mxu1 %v17358_v44 }
 0x8b5   :  { %15416 = vmatprep.subr.bf16.mxu1 %v17850_v60 }
 0x8b7   :  { %15393 = vmatmul.mubr.msk.bf16.gmra.mrb[40].mxu1 %vm3712_vm7, %v19100_v47 }
 0x8b8   :  { %15404 = vmatprep.mubr.msk.bf16.mxu1 %vm17851_vm8, %v17850_v60 }
 0x8bf   :  { %15405 = vmatmul.mubr.msk.bf16.vlgmr.msra.gmra.mrb[32].mxu1 %vm3712_vm7, %v5143_v33 }
 0x8c0   :  { %15417 = vmatpush3.bf16.msra.mxu1 %v17359_v46  ;;  %15408 = vmatprep.mubr.msk.bf16.mxu1 %vm17851_vm8, %v17850_v60  ;;  %v17377_v46 = vld [vmem:[#allocation14 + $0x50] sm:$0xff]  }
 0x8c1   :  { %15418 = vmatprep.subr.bf16.mxu1 %v17850_v60 }
 0x8c4   :  { %15419 = vmatpush3.bf16.msra.mxu1 %v17360_v2  ;;  %v13605_v2 = vld [vmem:[%s17861_s5 + $0xa0] sm:$0xff] }
 0x8c5   :  { %15420 = vmatprep.subr.bf16.mxu1 %v17850_v60 }
 0x8c7   :  { %15409 = vmatmul.mubr.msk.bf16.gmra.mrb[36].mxu1 %vm3712_vm7, %v5145_v61 }
 0x8c8   :  { %15421 = vmatpush3.bf16.msra.mxu1 %v17361_v43  ;;  %15412 = vmatprep.mubr.msk.bf16.mxu1 %vm17851_vm8, %v17850_v60  ;;  %v13606_v43 = vld [vmem:[%s17861_s5 + $0xa8] sm:$0xff] }
 0x8c9   :  { %15422 = vmatprep.subr.bf16.mxu1 %v17850_v60 }
 0x8cc   :  { %15423 = vmatpush3.bf16.msra.mxu1 %v17362_v49  ;;  %v17378_v49 = vld [vmem:[#allocation14 + $0x58] sm:$0xff]  }
 0x8cd   :  { %15436 = vmatprep.subr.bf16.mxu1 %v17850_v60 }
 0x8cf   :  { %15413 = vmatmul.mubr.msk.bf16.gmra.mrb[40].mxu1 %vm3712_vm7, %v5144_v16 }
 0x8d0   :  { %15424 = vmatprep.mubr.msk.bf16.mxu1 %vm17851_vm8, %v17850_v60 }
 0x8d7   :  { %15425 = vmatmul.mubr.msk.bf16.vlgmr.msra.gmra.mrb[32].mxu1 %vm3712_vm7, %v19106_v40 }
 0x8d8   :  { %15437 = vmatpush3.bf16.msra.mxu1 %v17363_v18  ;;  %15428 = vmatprep.mubr.msk.bf16.mxu1 %vm17851_vm8, %v17850_v60  ;;  %v19204_v18 = vpack.c.bf16 %v13606_v43, %v13605_v2  ;;  %v13613_v2 = vld [vmem:[%s17861_s5 + $0xe0] sm:$0xff]  ;;  %v13614_v43 = vld [vmem:[%s17861_s5 + $0xe8] sm:$0xff] }
 0x8d9   :  { %15438 = vmatprep.subr.bf16.mxu1 %v17850_v60 }
 0x8da   :  { %v6646_v37 = vshrl.u32 %v19204_v18, 16 }
 0x8dc   :  { %15439 = vmatpush3.bf16.msra.mxu1 %v17364_v26  ;;  %v17379_v26 = vld [vmem:[#allocation14 + $0x60] sm:$0xff]   ;;  %v7118_v50 = vrot.slane %v6646_v37, 1 }
 0x8dd   :  { %15440 = vmatprep.subr.bf16.mxu1 %v17850_v60 }
 0x8df   :  { %15429 = vmatmul.mubr.msk.bf16.gmra.mrb[36].mxu1 %vm3712_vm7, %v5261_v38 }
 0x8e0   :  { %15441 = vmatpush3.bf16.msra.mxu1 %v17365_v58  ;;  %15432 = vmatprep.mubr.msk.bf16.mxu1 %vm17851_vm8, %v17850_v60 }
 0x8e1   :  { %15442 = vmatprep.subr.bf16.mxu1 %v17850_v60 }
 0x8e4   :  { %15443 = vmatpush3.bf16.msra.mxu1 %v17366_v24  ;;  %v6642_v24 = vshll.u32 %v19204_v18, 16 }
 0x8e5   :  { %15516 = vmatprep.subr.bf16.mxu1 %v17850_v60 }
 0x8e6   :  { %v7119_v10 = vrot.slane %v6642_v24, 2 }
 0x8e7   :  { %15433 = vmatmul.mubr.msk.bf16.gmra.mrb[40].mxu1 %vm3712_vm7, %v19120_v7  ;;  %v17374_v7 = vld [vmem:[#allocation14 + $0x18] sm:$0xff]  }
 0x8e8   :  { %15444 = vmatprep.mubr.msk.bf16.mxu1 %vm17851_vm8, %v17850_v60 }
 0x8ef   :  { %15445 = vmatmul.mubr.msk.bf16.vlgmr.msra.gmra.mrb[32].mxu1 %vm3712_vm7, %v19096_v42 }
 0x8f0   :  { %15448 = vmatprep.mubr.msk.bf16.mxu1 %vm17851_vm8, %v17850_v60 }
 0x8f7   :  { %15449 = vmatmul.mubr.msk.bf16.gmra.mrb[36].mxu1 %vm3712_vm7, %v19117_v32 }
 0x8f8   :  { %15452 = vmatprep.mubr.msk.bf16.mxu1 %vm17851_vm8, %v17850_v60 }
 0x8ff   :  { %15453 = vmatmul.mubr.msk.bf16.gmra.mrb[40].mxu1 %vm3712_vm7, %v5370_v12 }
 0x900   :  { %15532 = vmatprep.mubr.msk.bf16.mxu1 %vm17851_vm8, %v17850_v60 }
 0x9c2   :  { %v5439_v53 = vpop.f32.mrb[32].mxu1 }
 0x9c3   :  { %v5475_v34 = vmul.f32 %v13461_v62, %v5439_v53  ;;  %v15446_v56 = vpop.f32.mrb[33].mxu1  ;;  %v17380_v53 = vld [vmem:[#allocation14 + $0x68] sm:$0xff]  }
 0x9c4   :  { %v5442_v28 = vpop.f32.mrb[34].mxu1  ;;  %v17381_v56 = vld [vmem:[#allocation14 + $0x70] sm:$0xff]  }
 0x9c5   :  { %v5488_v11 = vadd.f32 %v13462_v63, %v5475_v34  ;;  %v5476_v15 = vmul.f32 %v13461_v62, %v5442_v28  ;;  %v15447_v6 = vpop.f32.mrb[35].mxu1  ;;  %v19214_v34 = vor.u32 %v7119_v10, %v7118_v50  ;;  %v17382_v28 = vld [vmem:[#allocation14 + $0x78] sm:$0xff]  }
 0x9c6   :  { %v13601_v6 = vld [vmem:[%s17861_s5 + $0x80] sm:$0xff]  ;;  %v13616_v10 = vld [vmem:[%s17861_s5 + $0xf8] sm:$0xff] }
 0x9c7   :  { %v5494_v21 = vmax.f32 %v5488_v11, 0.0  ;;  %v5489_v22 = vadd.f32 %v13462_v63, %v5476_v15  ;;  %v17383_v11 = vld [vmem:[#allocation14 + $0x80] sm:$0xff]  }
 0x9c9   :  { %5500 = vst.msk [vmem:[#allocation2] sm:$0xff] %vm3712_vm7, %v5494_v21  ;;  %v5495_v19 = vmax.f32 %v5489_v22, 0.0  ;;  %v13602_v21 = vld [vmem:[%s17861_s5 + $0x88] sm:$0xff] }
 0x9ca   :  { %v5447_v29 = vpop.f32.mrb[36].mxu1 }
 0x9cb   :  { %5501 = vst.msk [vmem:[#allocation2 + $0x8] sm:$0xff] %vm3712_vm7, %v5495_v19  ;;  %v5477_v25 = vmul.f32 %v13461_v62, %v5447_v29  ;;  %v15450_v54 = vpop.f32.mrb[37].mxu1 }
 0x9cc   :  { %v5450_v41 = vpop.f32.mrb[38].mxu1  ;;  %v19218_v54 = vpack.c.bf16 %v13602_v21, %v13601_v6 }
 0x9cd   :  { %v5490_v36 = vadd.f32 %v13462_v63, %v5477_v25  ;;  %v5478_v59 = vmul.f32 %v13461_v62, %v5450_v41  ;;  %v15451_v14 = vpop.f32.mrb[39].mxu1  ;;  %v17384_v25 = vld [vmem:[#allocation14 + $0x88] sm:$0xff]  }
 0x9ce   :  { %v17385_v14 = vld [vmem:[#allocation14 + $0x90] sm:$0xff]  }
 0x9cf   :  { %v5496_v30 = vmax.f32 %v5490_v36, 0.0  ;;  %v5491_v33 = vadd.f32 %v13462_v63, %v5478_v59  ;;  %v13603_v36 = vld [vmem:[%s17861_s5 + $0x90] sm:$0xff]  ;;  %v13604_v59 = vld [vmem:[%s17861_s5 + $0x98] sm:$0xff] }
 0x9d1   :  { %5502 = vst.msk [vmem:[#allocation2 + $0x10] sm:$0xff] %vm3712_vm7, %v5496_v30  ;;  %v5497_v0 = vmax.f32 %v5491_v33, 0.0  ;;  %v19224_v30 = vpack.c.bf16 %v13604_v59, %v13603_v36  ;;  %v6629_v33 = vshll.u32 %v19218_v54, 16 }
 0x9d2   :  { %v5455_v42 = vpop.f32.mrb[40].mxu1  ;;  %v5510_v16 = vld [vmem:[#allocation2 + $0x1] ss:$2 sm:$0xff]  ;;  %v5507_v4 = vld [vmem:[#allocation2] ss:$2 sm:$0xff] }
 0x9d3   :  { %5503 = vst.msk [vmem:[#allocation2 + $0x18] sm:$0xff] %vm3712_vm7, %v5497_v0  ;;  %v5479_v1 = vmul.f32 %v13461_v62, %v5455_v42  ;;  %v15454_v55 = vpop.f32.mrb[41].mxu1  ;;  %v17386_v0 = vld [vmem:[#allocation14 + $0x98] sm:$0xff]   ;;  %v6627_v42 = vshrl.u32 %v19218_v54, 16 }
 0x9d4   :  { %v5458_v13 = vpop.f32.mrb[42].mxu1  ;;  %v6634_v55 = vshll.u32 %v19224_v30, 16 }
 0x9d5   :  { %v5492_v17 = vadd.f32 %v13462_v63, %v5479_v1  ;;  %v5480_v47 = vmul.f32 %v13461_v62, %v5458_v13  ;;  %v15455_v31 = vpop.f32.mrb[43].mxu1  ;;  %v6631_v1 = vrot.slane %v6629_v33, 1  ;;  %v13607_v13 = vld [vmem:[%s17861_s5 + $0xb0] sm:$0xff] }
 0x9d7   :  { %v5498_v40 = vmax.f32 %v5492_v17, 0.0  ;;  %v5493_v20 = vadd.f32 %v13462_v63, %v5480_v47  ;;  %v13608_v17 = vld [vmem:[%s17861_s5 + $0xb8] sm:$0xff]  ;;  %v17387_v47 = vld [vmem:[#allocation3 + $0x8] sm:$0x3f]   ;;  %v6632_v31 = vor.u32 %v6631_v1, %v6627_v42 }
 0x9d8   :  { %v5513_v39 = vld [vmem:[#allocation2 + $0x2] ss:$2 sm:$0xff]  ;;  %v5516_v62 = vld [vmem:[#allocation2 + $0x3] ss:$2 sm:$0xff] }
 0x9d9   :  { %5504 = vst.msk [vmem:[#allocation2 + $0x20] sm:$0xff] %vm3712_vm7, %v5498_v40  ;;  %v5499_v9 = vmax.f32 %v5493_v20, 0.0  ;;  %v5519_v29 = vld [vmem:[#allocation2 + $0x4] ss:$2 sm:$0xff]  ;;  %v6636_v40 = vrot.slane %v6634_v55, 1  ;;  %v19237_v20 = vpack.c.bf16 %v13608_v17, %v13607_v13 }
 0x9da   :  { %v5511_v12 = vld [vmem:[#allocation2 + $0x11] ss:$2 sm:$0xff]  ;;  %v5508_v5 = vld [vmem:[#allocation2 + $0x10] ss:$2 sm:$0xff] }
 0x9db   :  { %5506 = vst.msk [vmem:[#allocation2 + $0x28] sm:$0xf] %vm5505_vm9, %v5499_v9  ;;  %v5532_v51 = vpack.c.bf16 %v5511_v12, %v5510_v16  ;;  %v5522_v32 = vpack.c.bf16 %v5508_v5, %v5507_v4  ;;  %v6638_v16 = vshrl.u32 %v19224_v30, 16  ;;  %v13609_v12 = vld [vmem:[%s17861_s5 + $0xc0] sm:$0xff]  ;;  %v17388_v4 = vld [vmem:[#allocation3] sm:$0x3f]  }
 0x9dd   :  { %15464 = vmatprep.mubr.msk.bf16.mxu0 %vm3712_vm7, %v5532_v51  ;;  %v13610_v51 = vld [vmem:[%s17861_s5 + $0xc8] sm:$0xff] }
 0x9e0   :  { %v5512_v57 = vld [vmem:[#allocation2 + $0x21] ss:$2 sm:$0xf]  ;;  %v5509_v38 = vld [vmem:[#allocation2 + $0x20] ss:$2 sm:$0xf] }
 0x9e1   :  { %v5533_v61 = vpack.c.bf16 %v5512_v57, %v5512_v57  ;;  %v5514_v3 = vld [vmem:[#allocation2 + $0x12] ss:$2 sm:$0xff]  ;;  %v5523_v23 = vpack.c.bf16 %v5509_v38, %v5509_v38  ;;  %v5517_v48 = vld [vmem:[#allocation2 + $0x13] ss:$2 sm:$0xff]  ;;  %v6719_v57 = vsel %vm368_vm0, %v17387_v47, 0  ;;  %v6640_v38 = vor.u32 %v6638_v16, %v6636_v40 }
 0x9e2   :  { %v5699_v44 = vpack.c.bf16 %v5514_v3, %v5513_v39  ;;  %v5515_v58 = vld [vmem:[#allocation2 + $0x22] ss:$2 sm:$0xf]  ;;  %v5791_v63 = vpack.c.bf16 %v5517_v48, %v5516_v62  ;;  %v5518_v15 = vld [vmem:[#allocation2 + $0x23] ss:$2 sm:$0xf] }
 0x9e3   :  { %15465 = vmatmul.mubr.msk.bf16.vlgmr.msra.gmra.mrb[60].mxu0 %vm3712_vm7, %v5533_v61  ;;  %v5520_v22 = vld [vmem:[#allocation2 + $0x14] ss:$2 sm:$0xff]  ;;  %v5792_v19 = vpack.c.bf16 %v5518_v15, %v5518_v15  ;;  %v5521_v9 = vld [vmem:[#allocation2 + $0x24] ss:$2 sm:$0xf]  ;;  %v6637_v61 = vsel %vm274_vm1, %v6632_v31, %v6636_v40 }
 0x9e4   :  { %15469 = vmatpush3.bf16.msra.mxu0 %v17371_v52  ;;  %15476 = vmatprep.mubr.msk.bf16.mxu0 %vm3712_vm7, %v5522_v32  ;;  %v5700_v52 = vpack.c.bf16 %v5515_v58, %v5515_v58  ;;  %v5883_v41 = vpack.c.bf16 %v5520_v22, %v5519_v29  ;;  %v5884_v5 = vpack.c.bf16 %v5521_v9, %v5521_v9  ;;  %v13611_v32 = vld [vmem:[%s17861_s5 + $0xd0] sm:$0xff]  ;;  %v6949_v9 = vrot.slane %v19218_v54, 1 }
 0x9e5   :  { %15470 = vmatprep.subr.bf16.mxu0 %v17372_v8  ;;  %v13615_v48 = vld [vmem:[%s17861_s5 + $0xf0] sm:$0xff] }
 0x9e8   :  { %15471 = vmatpush3.bf16.msra.mxu0 %v17372_v8  ;;  %v6650_v8 = vshll.u32 %v19237_v20, 16 }
 0x9e9   :  { %15472 = vmatprep.subr.bf16.mxu0 %v17373_v45 }
 0x9ec   :  { %15473 = vmatpush3.bf16.msra.mxu0 %v17373_v45  ;;  %v13612_v45 = vld [vmem:[%s17861_s5 + $0xd8] sm:$0xff]  ;;  %s20561_s5 = sld [smem:[#allocation36_spill]] }
 0x9ed   :  { %15474 = vmatprep.subr.bf16.mxu0 %v17374_v7  ;;  %v19261_v39 = vpack.c.bf16 %v13612_v45, %v13611_v32  ;;  %v17391_v45 = vld [vmem:[#allocation3 + $0x20] sm:$0x3f]  }
 0x9ef   :  { %v6670_v15 = vshrl.u32 %v19261_v39, 16 }
 0x9f0   :  { %15475 = vmatpush3.bf16.msra.mxu0 %v17374_v7  ;;  %v6644_v7 = vrot.slane %v6642_v24, 1  ;;  %v6666_v24 = vshll.u32 %v19261_v39, 16 }
 0x9f1   :  { %15480 = vmatprep.subr.bf16.mxu0 %v17375_v27 }
 0x9f2   :  { %v6648_v3 = vor.u32 %v6646_v37, %v6644_v7  ;;  %v17389_v37 = vld [vmem:[#allocation3 + $0x10] sm:$0x3f]   ;;  %v17392_v1 = vld [vmem:[%s20561_s5 + $0x40] sm:$0xff]   ;;  %v17394_v31 = vld [vmem:[%s20561_s5 + $0x50] sm:$0xff]  }
 0x9f3   :  { %15477 = vmatmul.mubr.msk.bf16.vlgmr.msra.gmra.mrb[60].mxu0 %vm3712_vm7, %v5523_v23  ;;  %v6652_v23 = vrot.slane %v6650_v8, 1  ;;  %15517 = vmatpush3.bf16.msra.mxu1 %v17392_v1  ;;  %v17393_v13 = vld [vmem:[%s20561_s5 + $0x48] sm:$0xff]   ;;  %v6994_v17 = vsel %vm368_vm0, %v17389_v37, 0  ;;  %v17395_v40 = vld [vmem:[%s20561_s5 + $0x58] sm:$0xff]  }
 0x9f4   :  { %15481 = vmatpush3.bf16.msra.mxu0 %v17375_v27  ;;  %15488 = vmatprep.mubr.msk.bf16.mxu0 %vm3712_vm7, %v5699_v44  ;;  %v19251_v27 = vpack.c.bf16 %v13610_v51, %v13609_v12  ;;  %v6645_v44 = vsel %vm274_vm1, %v6640_v38, %v6644_v7  ;;  %v6950_v12 = vrot.slane %v19224_v30, 1  ;;  %v6958_v38 = vrot.slane %v19261_v39, 1 }
 0x9f5   :  { %15482 = vmatprep.subr.bf16.mxu0 %v17376_v35  ;;  %15518 = vmatprep.subr.bf16.mxu1 %v17850_v60 }
 0x9f6   :  { %v6662_v58 = vshrl.u32 %v19251_v27, 16  ;;  %v6951_v51 = vsel %vm601_vm3, %v6949_v9, %v6950_v12  ;;  %v6956_v7 = vrot.slane %v19251_v27, 1 }
 0x9f7   :  { %15519 = vmatpush3.bf16.msra.mxu1 %v17393_v13 }
 0x9f8   :  { %15483 = vmatpush3.bf16.msra.mxu0 %v17376_v35  ;;  %v6658_v35 = vshll.u32 %v19251_v27, 16  ;;  %15520 = vmatprep.subr.bf16.mxu1 %v17850_v60 }
 0x9f9   :  { %15484 = vmatprep.subr.bf16.mxu0 %v17377_v46 }
 0x9fa   :  { %v6660_v50 = vrot.slane %v6658_v35, 1 }
 0x9fb   :  { %15521 = vmatpush3.bf16.msra.mxu1 %v17394_v31  ;;  %v7292_v31 = vrot.slane %v19204_v18, 2 }
 0x9fc   :  { %15485 = vmatpush3.bf16.msra.mxu0 %v17377_v46  ;;  %v6654_v46 = vshrl.u32 %v19237_v20, 16  ;;  %15522 = vmatprep.subr.bf16.mxu1 %v17850_v60 }
 0x9fd   :  { %15486 = vmatprep.subr.bf16.mxu0 %v17378_v49 }
 0x9fe   :  { %v6656_v62 = vor.u32 %v6654_v46, %v6652_v23 }
 0x9ff   :  { %15523 = vmatpush3.bf16.msra.mxu1 %v17395_v40  ;;  %v7294_v40 = vrot.slane %v19237_v20, 2 }
 0xa00   :  { %15487 = vmatpush3.bf16.msra.mxu0 %v17378_v49  ;;  %v6840_v49 = vsel %vm368_vm0, %v17388_v4, 0  ;;  %15524 = vmatprep.subr.bf16.mxu1 %v17850_v60 }
 0xa01   :  { %15492 = vmatprep.subr.bf16.mxu0 %v17379_v26 }
 0xa03   :  { %15489 = vmatmul.mubr.msk.bf16.vlgmr.msra.gmra.mrb[60].mxu0 %vm3712_vm7, %v5700_v52  ;;  %v19277_v52 = vpack.c.bf16 %v13614_v43, %v13613_v2 }
 0xa04   :  { %15493 = vmatpush3.bf16.msra.mxu0 %v17379_v26  ;;  %15500 = vmatprep.mubr.msk.bf16.mxu0 %vm3712_vm7, %v5791_v63  ;;  %v6653_v26 = vsel %vm274_vm1, %v6648_v3, %v6652_v23  ;;  %v6668_v63 = vrot.slane %v6666_v24, 1  ;;  %v6959_v23 = vsel %vm601_vm3, %v6956_v7, %v6958_v38 }
 0xa05   :  { %15494 = vmatprep.subr.bf16.mxu0 %v17380_v53  ;;  %v6678_v21 = vshrl.u32 %v19277_v52, 16 }
 0xa06   :  { %v6672_v29 = vor.u32 %v6670_v15, %v6668_v63 }
 0xa08   :  { %15495 = vmatpush3.bf16.msra.mxu0 %v17380_v53  ;;  %v6664_v53 = vor.u32 %v6662_v58, %v6660_v50 }
 0xa09   :  { %15496 = vmatprep.subr.bf16.mxu0 %v17381_v56 }
 0xa0a   :  { %v6669_v6 = vsel %vm274_vm1, %v6664_v53, %v6668_v63  ;;  %v17396_v53 = vld [vmem:[%s20561_s5 + $0x60] sm:$0xff]  }
 0xa0b   :  { %15525 = vmatpush3.bf16.msra.mxu1 %v17396_v53 }
 0xa0c   :  { %15497 = vmatpush3.bf16.msra.mxu0 %v17381_v56  ;;  %v19286_v56 = vpack.c.bf16 %v13616_v10, %v13615_v48  ;;  %v7114_v48 = vrot.slane %v6638_v16, 1  ;;  %v7115_v10 = vrot.slane %v6634_v55, 2  ;;  %v17397_v16 = vld [vmem:[%s20561_s5 + $0x68] sm:$0xff]   ;;  %15526 = vmatprep.subr.bf16.mxu1 %v17850_v60 }
 0xa0d   :  { %15498 = vmatprep.subr.bf16.mxu0 %v17382_v28 }
 0xa0e   :  { %v6682_v22 = vshll.u32 %v19286_v56, 16  ;;  %v6962_v2 = vrot.slane %v19286_v56, 1 }
 0xa0f   :  { %15527 = vmatpush3.bf16.msra.mxu1 %v17397_v16 }
 0xa10   :  { %15499 = vmatpush3.bf16.msra.mxu0 %v17382_v28  ;;  %v6674_v28 = vshll.u32 %v19277_v52, 16  ;;  %15528 = vmatprep.subr.bf16.mxu1 %v17850_v60  ;;  %v7139_v1 = vrot.slane %v6682_v22, 2 }
 0xa11   :  { %15504 = vmatprep.subr.bf16.mxu0 %v17383_v11 }
 0xa13   :  { %15501 = vmatmul.mubr.msk.bf16.vlgmr.msra.gmra.mrb[60].mxu0 %vm3712_vm7, %v5792_v19  ;;  %v6676_v19 = vrot.slane %v6674_v28, 1 }
 0xa14   :  { %15505 = vmatpush3.bf16.msra.mxu0 %v17383_v11  ;;  %15512 = vmatprep.mubr.msk.bf16.mxu0 %vm3712_vm7, %v5883_v41  ;;  %v6661_v11 = vsel %vm274_vm1, %v6656_v62, %v6660_v50  ;;  %v6684_v41 = vrot.slane %v6682_v22, 1  ;;  %v7116_v62 = vor.u32 %v7115_v10, %v7114_v48 }
 0xa15   :  { %15506 = vmatprep.subr.bf16.mxu0 %v17384_v25  ;;  %v6677_v36 = vsel %vm274_vm1, %v6672_v29, %v6676_v19 }
 0xa18   :  { %15507 = vmatpush3.bf16.msra.mxu0 %v17384_v25  ;;  %v6680_v25 = vor.u32 %v6678_v21, %v6676_v19  ;;  %v7334_v19 = vsel %vm368_vm0, %v17391_v45, 0 }
 0xa19   :  { %15508 = vmatprep.subr.bf16.mxu0 %v17385_v14 }
 0xa1a   :  { %v6685_v59 = vsel %vm274_vm1, %v6680_v25, %v6684_v41  ;;  %v7130_v25 = vrot.slane %v6670_v15, 1  ;;  %v7134_v15 = vrot.slane %v6678_v21, 1 }
 0xa1c   :  { %15509 = vmatpush3.bf16.msra.mxu0 %v17385_v14  ;;  %v6686_v14 = vshrl.u32 %v19286_v56, 16 }
 0xa1d   :  { %15510 = vmatprep.subr.bf16.mxu0 %v17386_v0 }
 0xa20   :  { %15511 = vmatpush3.bf16.msra.mxu0 %v17386_v0  ;;  %v6688_v0 = vor.u32 %v6686_v14, %v6684_v41  ;;  %v7131_v41 = vrot.slane %v6666_v24, 2  ;;  %v7135_v24 = vrot.slane %v6674_v28, 2  ;;  %v7289_v28 = vrot.slane %v19218_v54, 2 }
 0xa21   :  { %17222 = vmatprep.subr.msk.bf16.mxu0 %vm368_vm0, %v17387_v47  ;;  %v17390_v47 = vld [vmem:[#allocation3 + $0x18] sm:$0x3f]  }
 0xa22   :  { %v7136_v13 = vor.u32 %v7135_v24, %v7134_v15  ;;  %v17401_v15 = vld [vmem:[%s20561_s5 + $0x8] sm:$0xff]   ;;  %v17402_v24 = vld [vmem:[%s20561_s5 + $0x10] sm:$0xff]  }
 0xa23   :  { %15513 = vmatmul.mubr.msk.bf16.vlgmr.msra.gmra.mrb[60].mxu0 %vm3712_vm7, %v5884_v5  ;;  %v6952_v5 = vrot.slane %v19204_v18, 1 }
 0xa24   :  { %15617 = vmatpush3.bf16.msra.mxu0 %v6719_v57  ;;  %15618 = vmatprep.mubr.msk.bf16.mxu0 %vm343_vm2, %v6637_v61  ;;  %v6954_v57 = vrot.slane %v19237_v20, 1 }
 0xa25   :  { %17223 = vmatprep.subr.msk.bf16.mxu0 %vm368_vm0, %v17388_v4  ;;  %v6953_v61 = vsel %vm601_vm3, %v6950_v12, %v6952_v5  ;;  %v7172_v4 = vsel %vm368_vm0, %v17390_v47, 0  ;;  %v7295_v12 = vsel %vm368_vm0, %v7292_v31, %v7294_v40 }
 0xa26   :  { %v6955_v32 = vsel %vm601_vm3, %v6952_v5, %v6954_v57  ;;  %v6957_v3 = vsel %vm601_vm3, %v6954_v57, %v6956_v7  ;;  %v7302_v5 = vrot.slane %v19286_v56, 2 }
 0xa2b   :  { %15619 = vmatmul.mubr.msk.bf16.vlgmr.msra.gmra.mrb[64].mxu0 %vm343_vm2, %v6645_v44  ;;  %v6960_v44 = vrot.slane %v19277_v52, 1 }
 0xa2c   :  { %15635 = vmatpush3.bf16.msra.mxu0 %v6840_v49  ;;  %15622 = vmatprep.mubr.msk.bf16.mxu0 %vm343_vm2, %v6653_v26  ;;  %v7111_v26 = vrot.slane %v6627_v42, 1  ;;  %v7122_v42 = vrot.slane %v6654_v46, 1  ;;  %v7121_v46 = vsel %vm765_vm4, %v7116_v62, %v19214_v34 }
 0xa2d   :  { %17224 = vmatprep.subr.msk.bf16.mxu0 %vm368_vm0, %v17389_v37  ;;  %v6961_v43 = vsel %vm601_vm3, %v6958_v38, %v6960_v44  ;;  %v6963_v49 = vsel %vm601_vm3, %v6960_v44, %v6962_v2  ;;  %v7112_v37 = vrot.slane %v6629_v33, 2  ;;  %v7123_v33 = vrot.slane %v6650_v8, 2 }
 0xa2e   :  { %v7126_v8 = vrot.slane %v6662_v58, 1  ;;  %v7132_v58 = vor.u32 %v7131_v41, %v7130_v25 }
 0xa2f   :  { %v7113_v50 = vor.u32 %v7112_v37, %v7111_v26  ;;  %v7124_v55 = vor.u32 %v7123_v33, %v7122_v42 }
 0xa31   :  { %v7117_v63 = vsel %vm765_vm4, %v7113_v50, %v7116_v62  ;;  %v7125_v29 = vsel %vm765_vm4, %v19214_v34, %v7124_v55 }
 0xa33   :  { %15623 = vmatmul.mubr.msk.bf16.gmra.mrb[68].mxu0 %vm343_vm2, %v6661_v11  ;;  %v17398_v11 = vld [vmem:[%s20561_s5 + $0x70] sm:$0xff]  }
 0xa34   :  { %15626 = vmatprep.mubr.msk.bf16.mxu0 %vm343_vm2, %v6669_v6  ;;  %v7127_v6 = vrot.slane %v6658_v35, 2  ;;  %15529 = vmatpush3.bf16.msra.mxu1 %v17398_v11 }
 0xa35   :  { %15530 = vmatprep.subr.bf16.mxu1 %v17850_v60 }
 0xa36   :  { %v7128_v35 = vor.u32 %v7127_v6, %v7126_v8 }
 0xa38   :  { %v7129_v34 = vsel %vm765_vm4, %v7124_v55, %v7128_v35 }
 0xa3b   :  { %15627 = vmatmul.mubr.msk.bf16.gmra.mrb[72].mxu0 %vm343_vm2, %v6677_v36  ;;  %v17399_v36 = vld [vmem:[%s20561_s5 + $0x78] sm:$0xff]  }
 0xa3c   :  { %15630 = vmatprep.mubr.msk.bf16.mxu0 %vm343_vm2, %v6685_v59  ;;  %15531 = vmatpush3.bf16.msra.mxu1 %v17399_v36  ;;  %v7133_v59 = vsel %vm765_vm4, %v7128_v35, %v7132_v58  ;;  %v17400_v36 = vld [vmem:[%s20561_s5] sm:$0xff]  }
 0xa3d   :  { %15536 = vmatprep.subr.bf16.mxu1 %v17850_v60 }
 0xa43   :  { %15631 = vmatmul.mubr.msk.bf16.gmra.mrb[76].mxu0 %vm343_vm2, %v6688_v0  ;;  %v7138_v0 = vrot.slane %v6686_v14, 1  ;;  %v7290_v14 = vrot.slane %v19224_v30, 2 }
 0xa44   :  { %15636 = vmatprep.mubr.msk.bf16.mxu0 %vm343_vm2, %v19218_v54  ;;  %v7296_v54 = vrot.slane %v19251_v27, 2 }
 0xa45   :  { %v7291_v22 = vsel %vm368_vm0, %v7289_v28, %v7290_v14  ;;  %v7293_v9 = vsel %vm368_vm0, %v7290_v14, %v7292_v31  ;;  %v17410_v28 = vld [vmem:[%s20561_s5 + $0x90] sm:$0xff]   ;;  %v17411_v14 = vld [vmem:[%s20561_s5 + $0x98] sm:$0xff]   ;;  %v17413_v31 = vld [vmem:[%s20561_s5 + $0xa8] sm:$0xff]  }
 0xa4b   :  { %15637 = vmatmul.mubr.msk.bf16.vlgmr.msra.gmra.mrb[64].mxu0 %vm343_vm2, %v19224_v30  ;;  %v7298_v30 = vrot.slane %v19261_v39, 2 }
 0xa4c   :  { %15653 = vmatpush3.bf16.msra.mxu0 %v6994_v17  ;;  %15640 = vmatprep.mubr.msk.bf16.mxu0 %vm343_vm2, %v19204_v18  ;;  %v7140_v17 = vor.u32 %v7139_v1, %v7138_v0  ;;  %v17404_v0 = vld [vmem:[%s20561_s5 + $0x20] sm:$0xff]   ;;  %v17405_v1 = vld [vmem:[%s20561_s5 + $0x28] sm:$0xff]  }
 0xa4d   :  { %17225 = vmatprep.subr.msk.bf16.mxu0 %vm368_vm0, %v17390_v47  ;;  %v7137_v47 = vsel %vm765_vm4, %v7132_v58, %v7136_v13  ;;  %v7299_v18 = vsel %vm368_vm0, %v7296_v54, %v7298_v30 }
 0xa4e   :  { %v7141_v21 = vsel %vm765_vm4, %v7136_v13, %v7140_v17  ;;  %v17406_v13 = vld [vmem:[%s20561_s5 + $0x30] sm:$0xff]  }
 0xa53   :  { %15641 = vmatmul.mubr.msk.bf16.gmra.mrb[68].mxu0 %vm343_vm2, %v19237_v20  ;;  %v7300_v20 = vrot.slane %v19277_v52, 2 }
 0xa54   :  { %15644 = vmatprep.mubr.msk.bf16.mxu0 %vm343_vm2, %v19251_v27  ;;  %v13493_v27 = vld [vmem:[%s20562_s18] ss:$0 sm:$0xff] }
 0xa55   :  { %v7301_v57 = vsel %vm368_vm0, %v7298_v30, %v7300_v20  ;;  %v17418_v30 = vld [vmem:[%s20561_s5 + $0xd0] sm:$0xff]  }
 0xa5b   :  { %15645 = vmatmul.mubr.msk.bf16.gmra.mrb[72].mxu0 %vm343_vm2, %v19261_v39 }
 0xa5c   :  { %15648 = vmatprep.mubr.msk.bf16.mxu0 %vm343_vm2, %v19277_v52 }
 0xa63   :  { %15649 = vmatmul.mubr.msk.bf16.gmra.mrb[76].mxu0 %vm343_vm2, %v19286_v56 }
 0xa64   :  { %15654 = vmatprep.mubr.msk.bf16.mxu0 %vm343_vm2, %v6951_v51  ;;  %v7297_v51 = vsel %vm368_vm0, %v7294_v40, %v7296_v54  ;;  %v17414_v40 = vld [vmem:[%s20561_s5 + $0xb0] sm:$0xff]   ;;  %v17417_v54 = vld [vmem:[%s20561_s5 + $0xc8] sm:$0xff]  }
 0xa6b   :  { %15655 = vmatmul.mubr.msk.bf16.vlgmr.msra.gmra.mrb[64].mxu0 %vm343_vm2, %v6953_v61  ;;  %v7303_v61 = vsel %vm368_vm0, %v7300_v20, %v7302_v5  ;;  %v17421_v20 = vld [vmem:[%s20561_s5 + $0xe8] sm:$0xff]  }
 0xa6c   :  { %15671 = vmatpush3.bf16.msra.mxu0 %v7172_v4  ;;  %15658 = vmatprep.mubr.msk.bf16.mxu0 %vm343_vm2, %v6955_v32  ;;  %v13494_v4 = vld [vmem:[%s20563_s9] ss:$0 sm:$0xff] }
 0xa6d   :  { %17226 = vmatprep.subr.msk.bf16.mxu0 %vm368_vm0, %v17391_v45 }
 0xa73   :  { %15659 = vmatmul.mubr.msk.bf16.gmra.mrb[68].mxu0 %vm343_vm2, %v6957_v3 }
 0xa74   :  { %15662 = vmatprep.mubr.msk.bf16.mxu0 %vm343_vm2, %v6959_v23 }
 0xa7b   :  { %15663 = vmatmul.mubr.msk.bf16.gmra.mrb[72].mxu0 %vm343_vm2, %v6961_v43 }
 0xa7c   :  { %15666 = vmatprep.mubr.msk.bf16.mxu0 %vm343_vm2, %v6963_v49 }
 0xa83   :  { %15667 = vmatmul.mubr.msk.bf16.gmra.mrb[76].mxu0 %vm343_vm2, %v6962_v2 }
 0xa84   :  { %15672 = vmatprep.mubr.msk.bf16.mxu0 %vm343_vm2, %v7117_v63 }
 0xa8b   :  { %15673 = vmatmul.mubr.msk.bf16.vlgmr.msra.gmra.mrb[64].mxu0 %vm343_vm2, %v7121_v46 }
 0xa8c   :  { %15689 = vmatpush3.bf16.msra.mxu0 %v7334_v19  ;;  %15676 = vmatprep.mubr.msk.bf16.mxu0 %vm343_vm2, %v7125_v29 }
 0xa93   :  { %15677 = vmatmul.mubr.msk.bf16.gmra.mrb[68].mxu0 %vm343_vm2, %v7129_v34 }
 0xa94   :  { %15680 = vmatprep.mubr.msk.bf16.mxu0 %vm343_vm2, %v7133_v59  ;;  %v17403_v59 = vld [vmem:[%s20561_s5 + $0x18] sm:$0xff]  }
 0xa9b   :  { %15681 = vmatmul.mubr.msk.bf16.gmra.mrb[72].mxu0 %vm343_vm2, %v7137_v47  ;;  %v17408_v47 = vld [vmem:[%s20561_s5 + $0x80] sm:$0xff]  }
 0xa9c   :  { %15684 = vmatprep.mubr.msk.bf16.mxu0 %vm343_vm2, %v7141_v21  ;;  %v17409_v21 = vld [vmem:[%s20561_s5 + $0x88] sm:$0xff]  }
 0xaa3   :  { %15685 = vmatmul.mubr.msk.bf16.gmra.mrb[76].mxu0 %vm343_vm2, %v7140_v17  ;;  %v17407_v17 = vld [vmem:[%s20561_s5 + $0x38] sm:$0xff]  }
 0xaa4   :  { %15690 = vmatprep.mubr.msk.bf16.mxu0 %vm343_vm2, %v7291_v22  ;;  %v17412_v22 = vld [vmem:[%s20561_s5 + $0xa0] sm:$0xff]  }
 0xaab   :  { %15691 = vmatmul.mubr.msk.bf16.vlgmr.msra.gmra.mrb[64].mxu0 %vm343_vm2, %v7293_v9  ;;  %v17415_v9 = vld [vmem:[%s20561_s5 + $0xb8] sm:$0xff]  }
 0xaac   :  { %15694 = vmatprep.mubr.msk.bf16.mxu0 %vm343_vm2, %v7295_v12  ;;  %v17416_v12 = vld [vmem:[%s20561_s5 + $0xc0] sm:$0xff]  }
 0xab3   :  { %15695 = vmatmul.mubr.msk.bf16.gmra.mrb[68].mxu0 %vm343_vm2, %v7297_v51  ;;  %v17419_v51 = vld [vmem:[%s20561_s5 + $0xd8] sm:$0xff]  }
 0xab4   :  { %15698 = vmatprep.mubr.msk.bf16.mxu0 %vm343_vm2, %v7299_v18  ;;  %v17420_v18 = vld [vmem:[%s20561_s5 + $0xe0] sm:$0xff]  }
 0xabb   :  { %15699 = vmatmul.mubr.msk.bf16.gmra.mrb[72].mxu0 %vm343_vm2, %v7301_v57  ;;  %v17423_v57 = vld [vmem:[%s20561_s5 + $0xf8] sm:$0xff]  }
 0xabc   :  { %15702 = vmatprep.mubr.msk.bf16.mxu0 %vm343_vm2, %v7303_v61  ;;  %v17424_v61 = vld [vmem:[%s20561_s5 + $0x100] sm:$0xff]  }
 0xac3   :  { %15703 = vmatmul.mubr.msk.bf16.gmra.mrb[76].mxu0 %vm343_vm2, %v7302_v5  ;;  %v17422_v5 = vld [vmem:[%s20561_s5 + $0xf0] sm:$0xff]  }
 0xaf6   :  { %v15514_v39 = vpop.f32.mrb[60].mxu0 }
 0xaf7   :  { %v5984_v32 = vmul.f32 %v15514_v39, %v13493_v27  ;;  %v5958_v45 = vpop.f32.mrb[61].mxu0  ;;  %v17426_v39 = vld [vmem:[%s20561_s5 + $0x110] sm:$0xff]  }
 0xaf8   :  { %v5982_v7 = vmul.f32 %v13493_v27, %v5958_v45  ;;  %v15515_v38 = vpop.f32.mrb[62].mxu0  ;;  %v17429_v45 = vld [vmem:[%s20561_s5 + $0x128] sm:$0xff]  }
 0xaf9   :  { %v5994_v52 = vadd.f32 %v13494_v4, %v5984_v32  ;;  %v5961_v3 = vpop.f32.mrb[63].mxu0  ;;  %v17428_v32 = vld [vmem:[%s20561_s5 + $0x120] sm:$0xff]  }
 0xafa   :  { %v5992_v56 = vadd.f32 %v13494_v4, %v5982_v7  ;;  %v5983_v23 = vmul.f32 %v13493_v27, %v5961_v3  ;;  %v17425_v27 = vld [vmem:[%s20561_s5 + $0x108] sm:$0xff]   ;;  %v19520_v7 = vld [vmem:[%s17871_s13] ss:$0 sm:$0xff]  ;;  %v17430_v3 = vld [vmem:[%s20561_s5 + $0x130] sm:$0xff]   ;;  %s20564_s13 = sld [smem:[#allocation37_spill]] }
 0xafb   :  { %v5997_v44 = vmax.f32 %v5994_v52, 0.0  ;;  %v19523_v52 = vld [vmem:[%s17876_s17] ss:$0 sm:$0xff]  ;;  %s20565_s17 = sld [smem:[#allocation38_spill]] }
 0xafc   :  { %v5993_v2 = vadd.f32 %v13494_v4, %v5983_v23  ;;  %v5995_v49 = vmax.f32 %v5992_v56, 0.0  ;;  %v17427_v4 = vld [vmem:[%s20561_s5 + $0x118] sm:$0xff]  }
 0xafd   :  { %v6015_v43 = vpack.c.bf16 %v5997_v44, %v5997_v44 }
 0xafe   :  { %v5996_v26 = vmax.f32 %v5993_v2, 0.0 }
 0xaff   :  { %v6041_v37 = vshll.u32 %v6015_v43, 16  ;;  %v6358_v48 = vshrl.u32 %v6015_v43, 16  ;;  %v6244_v50 = vrot.slane %v6015_v43, 1  ;;  %v6474_v11 = vrot.slane %v6015_v43, 2 }
 0xb00   :  { %v5998_v10 = vpack.c.bf16 %v5996_v26, %v5995_v49 }
 0xb01   :  { %v6360_v62 = vrot.slane %v6358_v48, 1  ;;  %v6361_v53 = vrot.slane %v6041_v37, 2  ;;  %v6043_v41 = vrot.slane %v6041_v37, 1 }
 0xb02   :  { %v6034_v63 = vshrl.u32 %v5998_v10, 16  ;;  %v6036_v42 = vshll.u32 %v5998_v10, 16  ;;  %v6243_v33 = vrot.slane %v5998_v10, 1  ;;  %v6473_v16 = vrot.slane %v5998_v10, 2 }
 0xb03   :  { %v6362_v55 = vor.u32 %v6361_v53, %v6360_v62  ;;  %v17432_v62 = vld [vmem:[%s17881_s21 + $0x10] sm:$0xff]  }
 0xb04   :  { %v6038_v46 = vrot.slane %v6036_v42, 1  ;;  %v6245_v8 = vsel %vm601_vm3, %v6243_v33, %v6244_v50  ;;  %v6355_v6 = vrot.slane %v6034_v63, 1  ;;  %v6356_v19 = vrot.slane %v6036_v42, 2 }
 0xb05   :  { %v19445_v29 = vsel %vm368_vm0, %v6473_v16, %v6474_v11 }
 0xb06   :  { %v6039_v25 = vor.u32 %v6038_v46, %v6034_v63  ;;  %v6357_v35 = vor.u32 %v6356_v19, %v6355_v6  ;;  %v17433_v6 = vld [vmem:[%s17881_s21 + $0x18] sm:$0xff]  }
 0xb08   :  { %v6044_v58 = vsel %vm274_vm1, %v6039_v25, %v6043_v41  ;;  %v19450_v34 = vsel %vm765_vm4, %v6357_v35, %v6362_v55 }
 0xb09   :  { %15533 = vmatmul.mubr.bf16.vlgmr.msra.gmra.mrb[44].mxu1 %v6044_v58 }
 0xb0a   :  { %15537 = vmatpush3.bf16.msra.mxu1 %v17400_v36  ;;  %15552 = vmatprep.mubr.msk.bf16.mxu1 %vm17851_vm8, %v17850_v60 }
 0xb0b   :  { %15538 = vmatprep.subr.bf16.mxu1 %v17850_v60 }
 0xb0e   :  { %15539 = vmatpush3.bf16.msra.mxu1 %v17401_v15 }
 0xb0f   :  { %15540 = vmatprep.subr.bf16.mxu1 %v17850_v60 }
 0xb12   :  { %15541 = vmatpush3.bf16.msra.mxu1 %v17402_v24 }
 0xb13   :  { %15542 = vmatprep.subr.bf16.mxu1 %v17850_v60 }
 0xb16   :  { %15543 = vmatpush3.bf16.msra.mxu1 %v17403_v59 }
 0xb17   :  { %15544 = vmatprep.subr.bf16.mxu1 %v17850_v60 }
 0xb1a   :  { %15545 = vmatpush3.bf16.msra.mxu1 %v17404_v0 }
 0xb1b   :  { %15546 = vmatprep.subr.bf16.mxu1 %v17850_v60 }
 0xb1e   :  { %15547 = vmatpush3.bf16.msra.mxu1 %v17405_v1 }
 0xb1f   :  { %15548 = vmatprep.subr.bf16.mxu1 %v17850_v60 }
 0xb22   :  { %15549 = vmatpush3.bf16.msra.mxu1 %v17406_v13 }
 0xb23   :  { %15550 = vmatprep.subr.bf16.mxu1 %v17850_v60 }
 0xb26   :  { %15551 = vmatpush3.bf16.msra.mxu1 %v17407_v17  ;;  %v19555_v17 = vld [vmem:[%s17881_s21] sm:$0xff]  }
 0xb27   :  { %15556 = vmatprep.subr.bf16.mxu1 %v17850_v60 }
 0xb29   :  { %15553 = vmatmul.mubr.bf16.vlgmr.msra.gmra.mrb[44].mxu1 %v5998_v10  ;;  %v17431_v10 = vld [vmem:[%s20561_s5 + $0x138] sm:$0xff]  }
 0xb2a   :  { %15557 = vmatpush3.bf16.msra.mxu1 %v17408_v47  ;;  %15572 = vmatprep.mubr.msk.bf16.mxu1 %vm17851_vm8, %v17850_v60 }
 0xb2b   :  { %15558 = vmatprep.subr.bf16.mxu1 %v17850_v60 }
 0xb2e   :  { %15559 = vmatpush3.bf16.msra.mxu1 %v17409_v21 }
 0xb2f   :  { %15560 = vmatprep.subr.bf16.mxu1 %v17850_v60 }
 0xb32   :  { %15561 = vmatpush3.bf16.msra.mxu1 %v17410_v28 }
 0xb33   :  { %15562 = vmatprep.subr.bf16.mxu1 %v17850_v60 }
 0xb36   :  { %15563 = vmatpush3.bf16.msra.mxu1 %v17411_v14 }
 0xb37   :  { %15564 = vmatprep.subr.bf16.mxu1 %v17850_v60 }
 0xb3a   :  { %15565 = vmatpush3.bf16.msra.mxu1 %v17412_v22 }
 0xb3b   :  { %15566 = vmatprep.subr.bf16.mxu1 %v17850_v60 }
 0xb3e   :  { %15567 = vmatpush3.bf16.msra.mxu1 %v17413_v31 }
 0xb3f   :  { %15568 = vmatprep.subr.bf16.mxu1 %v17850_v60 }
 0xb42   :  { %15569 = vmatpush3.bf16.msra.mxu1 %v17414_v40 }
 0xb43   :  { %15570 = vmatprep.subr.bf16.mxu1 %v17850_v60 }
 0xb46   :  { %15571 = vmatpush3.bf16.msra.mxu1 %v17415_v9 }
 0xb47   :  { %15576 = vmatprep.subr.bf16.mxu1 %v17850_v60 }
 0xb49   :  { %15573 = vmatmul.mubr.bf16.vlgmr.msra.gmra.mrb[44].mxu1 %v6245_v8 }
 0xb4a   :  { %15577 = vmatpush3.bf16.msra.mxu1 %v17416_v12  ;;  %15592 = vmatprep.mubr.msk.bf16.mxu1 %vm17851_vm8, %v17850_v60 }
 0xb4b   :  { %15578 = vmatprep.subr.bf16.mxu1 %v17850_v60 }
 0xb4e   :  { %15579 = vmatpush3.bf16.msra.mxu1 %v17417_v54 }
 0xb4f   :  { %15580 = vmatprep.subr.bf16.mxu1 %v17850_v60 }
 0xb52   :  { %15581 = vmatpush3.bf16.msra.mxu1 %v17418_v30 }
 0xb53   :  { %15582 = vmatprep.subr.bf16.mxu1 %v17850_v60 }
 0xb56   :  { %15583 = vmatpush3.bf16.msra.mxu1 %v17419_v51 }
 0xb57   :  { %15584 = vmatprep.subr.bf16.mxu1 %v17850_v60 }
 0xb5a   :  { %15585 = vmatpush3.bf16.msra.mxu1 %v17420_v18 }
 0xb5b   :  { %15586 = vmatprep.subr.bf16.mxu1 %v17850_v60 }
 0xb5e   :  { %15587 = vmatpush3.bf16.msra.mxu1 %v17421_v20 }
 0xb5f   :  { %15588 = vmatprep.subr.bf16.mxu1 %v17850_v60 }
 0xb62   :  { %15589 = vmatpush3.bf16.msra.mxu1 %v17422_v5 }
 0xb63   :  { %15590 = vmatprep.subr.bf16.mxu1 %v17850_v60 }
 0xb66   :  { %15591 = vmatpush3.bf16.msra.mxu1 %v17423_v57 }
 0xb67   :  { %15596 = vmatprep.subr.bf16.mxu1 %v17850_v60 }
 0xb69   :  { %15593 = vmatmul.mubr.bf16.vlgmr.msra.gmra.mrb[44].mxu1 %v19450_v34 }
 0xb6a   :  { %15597 = vmatpush3.bf16.msra.mxu1 %v17424_v61  ;;  %15612 = vmatprep.mubr.msk.bf16.mxu1 %vm17851_vm8, %v17850_v60 }
 0xb6b   :  { %15598 = vmatprep.subr.bf16.mxu1 %v17850_v60 }
 0xb6e   :  { %15599 = vmatpush3.bf16.msra.mxu1 %v17425_v27 }
 0xb6f   :  { %15600 = vmatprep.subr.bf16.mxu1 %v17850_v60 }
 0xb72   :  { %15601 = vmatpush3.bf16.msra.mxu1 %v17426_v39 }
 0xb73   :  { %15602 = vmatprep.subr.bf16.mxu1 %v17850_v60 }
 0xb76   :  { %15603 = vmatpush3.bf16.msra.mxu1 %v17427_v4 }
 0xb77   :  { %15604 = vmatprep.subr.bf16.mxu1 %v17850_v60 }
 0xb7a   :  { %15605 = vmatpush3.bf16.msra.mxu1 %v17428_v32 }
 0xb7b   :  { %15606 = vmatprep.subr.bf16.mxu1 %v17850_v60 }
 0xb7e   :  { %15607 = vmatpush3.bf16.msra.mxu1 %v17429_v45  ;;  %v15692_v38 = vpop.f32.mrb[64].mxu0 }
 0xb7f   :  { %v7458_v56 = vmul.f32 %v15692_v38, %v19520_v7  ;;  %v7370_v23 = vpop.f32.mrb[65].mxu0  ;;  %15608 = vmatprep.subr.bf16.mxu1 %v17850_v60 }
 0xb80   :  { %v7456_v44 = vmul.f32 %v19520_v7, %v7370_v23  ;;  %v15693_v2 = vpop.f32.mrb[66].mxu0 }
 0xb81   :  { %v7481_v43 = vadd.f32 %v19523_v52, %v7458_v56  ;;  %v7459_v49 = vmul.f32 %v15693_v2, %v19520_v7  ;;  %v7373_v26 = vpop.f32.mrb[67].mxu0 }
 0xb82   :  { %v7479_v37 = vadd.f32 %v19523_v52, %v7456_v44  ;;  %15609 = vmatpush3.bf16.msra.mxu1 %v17430_v3  ;;  %v7457_v48 = vmul.f32 %v19520_v7, %v7373_v26 }
 0xb83   :  { %v7482_v50 = vadd.f32 %v19523_v52, %v7459_v49  ;;  %15610 = vmatprep.subr.bf16.mxu1 %v17850_v60  ;;  %v7497_v63 = vmax.f32 %v7481_v43, 0.0 }
 0xb84   :  { %v7480_v53 = vadd.f32 %v19523_v52, %v7457_v48  ;;  %v7495_v33 = vmax.f32 %v7479_v37, 0.0 }
 0xb85   :  { %v7498_v42 = vmax.f32 %v7482_v50, 0.0 }
 0xb86   :  { %v7496_v16 = vmax.f32 %v7480_v53, 0.0  ;;  %15611 = vmatpush3.bf16.msra.mxu1 %v17431_v10  ;;  %v15696_v55 = vpop.f32.mrb[68].mxu0 }
 0xb87   :  { %v19538_v11 = vpack.c.bf16 %v7498_v42, %v7497_v63  ;;  %v7462_v46 = vmul.f32 %v15696_v55, %v19520_v7  ;;  %v7386_v8 = vpop.f32.mrb[69].mxu0  ;;  %15706 = vmatprep.subr.bf16.mxu1 %v17432_v62 }
 0xb88   :  { %v19542_v19 = vpack.c.bf16 %v7496_v16, %v7495_v33  ;;  %v7460_v25 = vmul.f32 %v19520_v7, %v7386_v8  ;;  %v15697_v41 = vpop.f32.mrb[70].mxu0  ;;  %v17435_v8 = vld [vmem:[%s17881_s21 + $0x8] sm:$0xff]  }
 0xb89   :  { %v7485_v36 = vadd.f32 %v19523_v52, %v7462_v46  ;;  %15613 = vmatmul.mubr.bf16.vlgmr.msra.gmra.mrb[44].mxu1 %v19445_v29  ;;  %v7463_v35 = vmul.f32 %v15697_v41, %v19520_v7  ;;  %v7389_v58 = vpop.f32.mrb[71].mxu0  ;;  %v7536_v34 = vshll.u32 %v19538_v11, 16  ;;  %v7540_v28 = vshrl.u32 %v19538_v11, 16 }
 0xb8a   :  { %v7483_v15 = vadd.f32 %v19523_v52, %v7460_v25  ;;  %v7461_v24 = vmul.f32 %v19520_v7, %v7389_v58  ;;  %15707 = vmatpush3.bf16.msra.mxu1 %v17432_v62  ;;  %v7529_v59 = vshrl.u32 %v19542_v19, 16  ;;  %v7531_v0 = vshll.u32 %v19542_v19, 16 }
 0xb8b   :  { %v7486_v1 = vadd.f32 %v19523_v52, %v7463_v35  ;;  %v7538_v13 = vrot.slane %v7536_v34, 1  ;;  %15708 = vmatprep.subr.bf16.mxu1 %v17433_v6  ;;  %v7860_v29 = vrot.slane %v19542_v19, 1  ;;  %v7861_v14 = vrot.slane %v19538_v11, 1 }
 0xb8c   :  { %v7484_v47 = vadd.f32 %v19523_v52, %v7461_v24  ;;  %v7533_v21 = vrot.slane %v7531_v0, 1  ;;  %v7501_v22 = vmax.f32 %v7485_v36, 0.0  ;;  %v19561_v40 = vrot.slane %v7529_v59, 1 }
 0xb8d   :  { %v7502_v31 = vmax.f32 %v7486_v1, 0.0  ;;  %v19563_v9 = vrot.slane %v7531_v0, 2  ;;  %v7499_v12 = vmax.f32 %v7483_v15, 0.0  ;;  %v19566_v18 = vsel %vm601_vm3, %v7860_v29, %v7861_v14 }
 0xb8e   :  { %v7500_v54 = vmax.f32 %v7484_v47, 0.0  ;;  %v15700_v30 = vpop.f32.mrb[72].mxu0  ;;  %v7534_v51 = vor.u32 %v7533_v21, %v7529_v59  ;;  %15709 = vmatpush3.bf16.msra.mxu1 %v17433_v6  ;;  %v7542_v61 = vor.u32 %v7540_v28, %v7538_v13  ;;  %v8029_v38 = vrot.slane %v7540_v28, 1 }
 0xb8f   :  { %v19568_v20 = vpack.c.bf16 %v7502_v31, %v7501_v22  ;;  %v7466_v5 = vmul.f32 %v15700_v30, %v19520_v7  ;;  %v7402_v57 = vpop.f32.mrb[73].mxu0  ;;  %15726 = vmatprep.subr.bf16.mxu1 %v19555_v17  ;;  %v8028_v27 = vor.u32 %v19563_v9, %v19561_v40  ;;  %v8030_v2 = vrot.slane %v7536_v34, 2 }
 0xb90   :  { %v19574_v39 = vpack.c.bf16 %v7500_v54, %v7499_v12  ;;  %v7464_v4 = vmul.f32 %v19520_v7, %v7402_v57  ;;  %v15701_v32 = vpop.f32.mrb[74].mxu0  ;;  %v7539_v45 = vsel %vm274_vm1, %v7534_v51, %v7538_v13  ;;  %v19617_v12 = vld [vmem:[%s17881_s21 + $0x20] sm:$0xff]   ;;  %v8208_v54 = vrot.slane %v19542_v19, 2 }
 0xb91   :  { %v7489_v3 = vadd.f32 %v19523_v52, %v7466_v5  ;;  %v7467_v56 = vmul.f32 %v15701_v32, %v19520_v7  ;;  %v7405_v23 = vpop.f32.mrb[75].mxu0  ;;  %15710 = vmatprep.mubr.msk.bf16.mxu1 %vm1261_vm5, %v7539_v45  ;;  %v7552_v44 = vshll.u32 %v19568_v20, 16  ;;  %v7556_v50 = vshrl.u32 %v19568_v20, 16 }
 0xb92   :  { %v7487_v43 = vadd.f32 %v19523_v52, %v7464_v4  ;;  %v7465_v49 = vmul.f32 %v19520_v7, %v7405_v23  ;;  %v7544_v26 = vshll.u32 %v19574_v39, 16  ;;  %v7548_v37 = vshrl.u32 %v19574_v39, 16 }
 0xb93   :  { %v7505_v48 = vmax.f32 %v7489_v3, 0.0  ;;  %v7490_v10 = vadd.f32 %v19523_v52, %v7467_v56  ;;  %v7863_v62 = vrot.slane %v19574_v39, 1  ;;  %v7554_v33 = vrot.slane %v7552_v44, 1 }
 0xb94   :  { %v7488_v53 = vadd.f32 %v19523_v52, %v7465_v49  ;;  %v7546_v63 = vrot.slane %v7544_v26, 1  ;;  %v8034_v42 = vrot.slane %v7544_v26, 2  ;;  %v7503_v16 = vmax.f32 %v7487_v43, 0.0 }
 0xb95   :  { %v7506_v55 = vmax.f32 %v7490_v10, 0.0  ;;  %v8033_v46 = vrot.slane %v7548_v37, 1  ;;  %v19594_v6 = vsel %vm601_vm3, %v7861_v14, %v7863_v62  ;;  %v7865_v58 = vrot.slane %v19568_v20, 1 }
 0xb96   :  { %v7504_v25 = vmax.f32 %v7488_v53, 0.0  ;;  %v15704_v41 = vpop.f32.mrb[76].mxu0  ;;  %v7547_v36 = vsel %vm274_vm1, %v7542_v61, %v7546_v63  ;;  %v7550_v35 = vor.u32 %v7548_v37, %v7546_v63  ;;  %v8031_v59 = vor.u32 %v8030_v2, %v8029_v38 }
 0xb97   :  { %v19598_v34 = vpack.c.bf16 %v7506_v55, %v7505_v48  ;;  %v7470_v15 = vmul.f32 %v15704_v41, %v19520_v7  ;;  %v7418_v24 = vpop.f32.mrb[77].mxu0  ;;  %15711 = vmatmul.mubr.msk.bf16.vlgmr.msra.gmra.mrb[48].mxu1 %vm1261_vm5, %v7547_v36  ;;  %v19602_v0 = vor.u32 %v8034_v42, %v8033_v46  ;;  %v19610_v21 = vsel %vm601_vm3, %v7863_v62, %v7865_v58 }
 0xb98   :  { %v19604_v1 = vpack.c.bf16 %v7504_v25, %v7503_v16  ;;  %v7468_v13 = vmul.f32 %v19520_v7, %v7418_v24  ;;  %v15705_v29 = vpop.f32.mrb[78].mxu0  ;;  %15727 = vmatpush3.bf16.msra.mxu1 %v19555_v17  ;;  %v7555_v47 = vsel %vm274_vm1, %v7550_v35, %v7554_v33  ;;  %v7558_v51 = vor.u32 %v7556_v50, %v7554_v33 }
 0xb99   :  { %v7493_v28 = vadd.f32 %v19523_v52, %v7470_v15  ;;  %v7471_v14 = vmul.f32 %v15705_v29, %v19520_v7  ;;  %v7421_v22 = vpop.f32.mrb[79].mxu0  ;;  %15714 = vmatprep.mubr.msk.bf16.mxu1 %vm1261_vm5, %v7555_v47  ;;  %v7568_v31 = vshll.u32 %v19598_v34, 16  ;;  %15728 = vmatprep.subr.bf16.mxu1 %v17435_v8  ;;  %v7572_v4 = vshrl.u32 %v19598_v34, 16 }
 0xb9a   :  { %v7491_v17 = vadd.f32 %v19523_v52, %v7468_v13  ;;  %v7469_v30 = vmul.f32 %v19520_v7, %v7421_v22  ;;  %v7560_v5 = vshll.u32 %v19604_v1, 16  ;;  %v7564_v61 = vshrl.u32 %v19604_v1, 16 }
 0xb9b   :  { %v7494_v57 = vadd.f32 %v19523_v52, %v7471_v14  ;;  %v7867_v32 = vrot.slane %v19604_v1, 1  ;;  %v19629_v45 = vmax.f32 %v7493_v28, 0.0  ;;  %v7869_v7 = vrot.slane %v19598_v34, 1 }
 0xb9c   :  { %v7492_v38 = vadd.f32 %v19523_v52, %v7469_v30  ;;  %v7562_v3 = vrot.slane %v7560_v5, 1  ;;  %15729 = vmatpush3.bf16.msra.mxu1 %v17435_v8  ;;  %v7507_v56 = vmax.f32 %v7491_v17, 0.0  ;;  %v7570_v2 = vrot.slane %v7568_v31, 1 }
 0xb9d   :  { %v7510_v23 = vmax.f32 %v7494_v57, 0.0  ;;  %15746 = vmatprep.subr.bf16.mxu1 %v19617_v12  ;;  %v19635_v43 = vsel %vm601_vm3, %v7865_v58, %v7867_v32  ;;  %v19639_v48 = vsel %vm601_vm3, %v7867_v32, %v7869_v7  ;;  %v19649_v10 = vsel %vm765_vm4, %v8028_v27, %v8031_v59 }
 0xb9e   :  { %v7508_v49 = vmax.f32 %v7492_v38, 0.0  ;;  %v7563_v26 = vsel %vm274_vm1, %v7558_v51, %v7562_v3  ;;  %v7566_v37 = vor.u32 %v7564_v61, %v7562_v3  ;;  %v19653_v62 = vsel %vm765_vm4, %v8031_v59, %v19602_v0 }
 0xb9f   :  { %v19642_v52 = vpack.c.bf16 %v7510_v23, %v19629_v45  ;;  %15715 = vmatmul.mubr.msk.bf16.gmra.mrb[52].mxu1 %vm1261_vm5, %v7563_v26  ;;  %v8037_v53 = vrot.slane %v7556_v50, 1  ;;  %v8038_v33 = vrot.slane %v7552_v44, 2  ;;  %v8041_v16 = vrot.slane %v7564_v61, 1 }
 0xba0   :  { %v19657_v63 = vpack.c.bf16 %v7508_v49, %v7507_v56  ;;  %v7571_v42 = vsel %vm274_vm1, %v7566_v37, %v7570_v2  ;;  %v8042_v55 = vrot.slane %v7560_v5, 2  ;;  %v7574_v41 = vor.u32 %v7572_v4, %v7570_v2 }
 0xba1   :  { %15718 = vmatprep.mubr.msk.bf16.mxu1 %vm1261_vm5, %v7571_v42  ;;  %v7584_v40 = vshll.u32 %v19642_v52, 16  ;;  %v7588_v9 = vshrl.u32 %v19642_v52, 16  ;;  %v7873_v27 = vrot.slane %v19642_v52, 1  ;;  %v8039_v25 = vor.u32 %v8038_v33, %v8037_v53 }
 0xba2   :  { %v7576_v46 = vshll.u32 %v19657_v63, 16  ;;  %v7580_v50 = vshrl.u32 %v19657_v63, 16  ;;  %v7871_v8 = vrot.slane %v19657_v63, 1  ;;  %v8043_v36 = vor.u32 %v8042_v55, %v8041_v16  ;;  %v17443_v55 = vld [vmem:[#allocation6 + $0x18] sm:$0xff]  }
 0xba3   :  { %v8045_v44 = vrot.slane %v7572_v4, 1  ;;  %v8046_v35 = vrot.slane %v7568_v31, 2  ;;  %v19675_v59 = vsel %vm765_vm4, %v19602_v0, %v8039_v25  ;;  %v7586_v13 = vrot.slane %v7584_v40, 1 }
 0xba4   :  { %v7578_v58 = vrot.slane %v7576_v46, 1  ;;  %v7872_v15 = vsel %vm601_vm3, %v7869_v7, %v7871_v8  ;;  %v7874_v24 = vsel %vm601_vm3, %v7871_v8, %v7873_v27  ;;  %v19678_v29 = vsel %vm765_vm4, %v8039_v25, %v8043_v36  ;;  %v19776_v25 = vld [vmem:[%s17891_s29] ss:$0 sm:$0xff] }
 0xba5   :  { %v8047_v47 = vor.u32 %v8046_v35, %v8045_v44  ;;  %v8049_v28 = vrot.slane %v7580_v50, 1  ;;  %v8050_v31 = vrot.slane %v7576_v46, 2  ;;  %v8053_v17 = vrot.slane %v7588_v9, 1  ;;  %v19769_v46 = vld [vmem:[#allocation6] sm:$0xff]  }
 0xba6   :  { %v7579_v14 = vsel %vm274_vm1, %v7574_v41, %v7578_v58  ;;  %v7582_v22 = vor.u32 %v7580_v50, %v7578_v58  ;;  %v8054_v51 = vrot.slane %v7584_v40, 2  ;;  %v8209_v0 = vrot.slane %v19538_v11, 2  ;;  %v17437_v40 = vld [vmem:[%s17881_s21 + $0x28] sm:$0xff]   ;;  %v19773_v50 = vld [vmem:[%s17886_s25] ss:$0 sm:$0xff] }
 0xba7   :  { %15719 = vmatmul.mubr.msk.bf16.gmra.mrb[56].mxu1 %vm1261_vm5, %v7579_v14  ;;  %v19683_v30 = vsel %vm765_vm4, %v8043_v36, %v8047_v47  ;;  %v8211_v5 = vrot.slane %v19574_v39, 2  ;;  %v8051_v61 = vor.u32 %v8050_v31, %v8049_v28  ;;  %v8213_v4 = vrot.slane %v19568_v20, 2 }
 0xba8   :  { %v7587_v57 = vsel %vm274_vm1, %v7582_v22, %v7586_v13  ;;  %v8215_v32 = vrot.slane %v19604_v1, 2  ;;  %v8055_v38 = vor.u32 %v8054_v51, %v8053_v17  ;;  %v8210_v3 = vsel %vm368_vm0, %v8208_v54, %v8209_v0 }
 0xba9   :  { %15722 = vmatprep.mubr.msk.bf16.mxu1 %vm1261_vm5, %v7587_v57  ;;  %v8212_v7 = vsel %vm368_vm0, %v8209_v0, %v8211_v5  ;;  %v8217_v56 = vrot.slane %v19598_v34, 2  ;;  %v8052_v23 = vsel %vm765_vm4, %v8047_v47, %v8051_v61  ;;  %v8214_v2 = vsel %vm368_vm0, %v8211_v5, %v8213_v4 }
 0xbaa   :  { %v8216_v49 = vsel %vm368_vm0, %v8213_v4, %v8215_v32  ;;  %v8219_v26 = vrot.slane %v19657_v63, 2  ;;  %v8056_v37 = vsel %vm765_vm4, %v8051_v61, %v8055_v38  ;;  %v8221_v42 = vrot.slane %v19642_v52, 2 }
 0xbab   :  { %v8218_v53 = vsel %vm368_vm0, %v8215_v32, %v8217_v56  ;;  %v7590_v33 = vor.u32 %v7588_v9, %v7586_v13  ;;  %v17438_v9 = vld [vmem:[%s17881_s21 + $0x30] sm:$0xff]  }
 0xbac   :  { %v8220_v54 = vsel %vm368_vm0, %v8217_v56, %v8219_v26  ;;  %v8222_v16 = vsel %vm368_vm0, %v8219_v26, %v8221_v42 }
 0xbaf   :  { %15723 = vmatmul.mubr.msk.bf16.gmra.mrb[60].mxu1 %vm1261_vm5, %v7590_v33 }
 0xbb0   :  { %15730 = vmatprep.mubr.msk.bf16.mxu1 %vm1261_vm5, %v19542_v19  ;;  %v17439_v19 = vld [vmem:[%s17881_s21 + $0x38] sm:$0xff]  }
 0xbb7   :  { %15731 = vmatmul.mubr.msk.bf16.vlgmr.msra.gmra.mrb[48].mxu1 %vm1261_vm5, %v19538_v11  ;;  %v7518_v11 = vpack.c.bf16 %v19629_v45, %v19629_v45 }
 0xbb8   :  { %15734 = vmatprep.mubr.msk.bf16.mxu1 %vm1261_vm5, %v19574_v39  ;;  %15747 = vmatpush3.bf16.msra.mxu1 %v19617_v12  ;;  %v17441_v39 = vld [vmem:[%s17881_s21 + $0x48] sm:$0xff]  }
 0xbb9   :  { %15748 = vmatprep.subr.bf16.mxu1 %v17437_v40 }
 0xbbc   :  { %15749 = vmatpush3.bf16.msra.mxu1 %v17437_v40 }
 0xbbd   :  { %15766 = vmatprep.subr.bf16.mxu1 %v17438_v9 }
 0xbbf   :  { %15735 = vmatmul.mubr.msk.bf16.gmra.mrb[52].mxu1 %vm1261_vm5, %v19568_v20  ;;  %v17440_v20 = vld [vmem:[%s17881_s21 + $0x40] sm:$0xff]   ;;  %s17852_s21 = smov [#allocation17]  }
 0xbc0   :  { %15738 = vmatprep.mubr.msk.bf16.mxu1 %vm1261_vm5, %v19604_v1  ;;  %v13600_v1 = vld [vmem:[%s20565_s17] ss:$0 sm:$0xff]  ;;  %s13103_s25 = sshll.u32 %s17852_s21, 4  ;;  %s13104_s25 = int_to_ptr.vmem [resolvable:$true] %s13103_s25 }
 0xbc1   :  { %s17774_s29 = scalar_lea.vmem %s13104_s25, 32  ;;  %p17779_p9 = scmp.lt.s32.totalorder %s13104_s25, %s13104_s25 }
 0xbc2   :  { %p17775_p8 = scmp.ne.s32.totalorder %s13104_s25, %s17774_s29  ;;  %p17780_p10 = scmp.lt.s32.totalorder %s17774_s29, %s17774_s29 }
 0xbc4   :  { %p17781_p11 = por %p17780_p10, %p17779_p9 }
 0xbc6   :  { %p17782_p12 = pnand %p17781_p11, %p17775_p8 }
 0xbc7   :  { %15739 = vmatmul.mubr.msk.bf16.gmra.mrb[56].mxu1 %vm1261_vm5, %v19598_v34 }
 0xbc8   :  { %15742 = vmatprep.mubr.msk.bf16.mxu1 %vm1261_vm5, %v19657_v63 }
 0xbcf   :  { %15743 = vmatmul.mubr.msk.bf16.gmra.mrb[60].mxu1 %vm1261_vm5, %v7518_v11 }
 0xbd0   :  { %15750 = vmatprep.mubr.msk.bf16.mxu1 %vm1261_vm5, %v19566_v18  ;;  %v17442_v18 = vld [vmem:[#allocation6 + $0x10] sm:$0xff]  }
 0xbd1   :  { %15806 = vmatprep.subr.bf16.mxu0 %v17442_v18 }
 0xbd2   :  { %15807 = vmatpush3.bf16.msra.mxu0 %v17442_v18 }
 0xbd3   :  { %15808 = vmatprep.subr.bf16.mxu0 %v17443_v55 }
 0xbd6   :  { %15809 = vmatpush3.bf16.msra.mxu0 %v17443_v55 }
 0xbd7   :  { %15751 = vmatmul.mubr.msk.bf16.vlgmr.msra.gmra.mrb[48].mxu1 %vm1261_vm5, %v19594_v6  ;;  %v13599_v6 = vld [vmem:[%s20564_s13] ss:$0 sm:$0xff]  ;;  %15826 = vmatprep.subr.bf16.mxu0 %v19769_v46 }
 0xbd8   :  { %15754 = vmatprep.mubr.msk.bf16.mxu1 %vm1261_vm5, %v19610_v21  ;;  %15767 = vmatpush3.bf16.msra.mxu1 %v17438_v9 }
 0xbd9   :  { %15768 = vmatprep.subr.bf16.mxu1 %v17439_v19 }
 0xbdc   :  { %15769 = vmatpush3.bf16.msra.mxu1 %v17439_v19 }
 0xbdd   :  { %15786 = vmatprep.subr.bf16.mxu1 %v17440_v20 }
 0xbdf   :  { %15755 = vmatmul.mubr.msk.bf16.gmra.mrb[52].mxu1 %vm1261_vm5, %v19635_v43 }
 0xbe0   :  { %15758 = vmatprep.mubr.msk.bf16.mxu1 %vm1261_vm5, %v19639_v48 }
 0xbe7   :  { %15759 = vmatmul.mubr.msk.bf16.gmra.mrb[56].mxu1 %vm1261_vm5, %v7872_v15 }
 0xbe8   :  { %15762 = vmatprep.mubr.msk.bf16.mxu1 %vm1261_vm5, %v7874_v24 }
 0xbef   :  { %15763 = vmatmul.mubr.msk.bf16.gmra.mrb[60].mxu1 %vm1261_vm5, %v7873_v27 }
 0xbf0   :  { %15770 = vmatprep.mubr.msk.bf16.mxu1 %vm1261_vm5, %v19649_v10 }
 0xbf7   :  { %15771 = vmatmul.mubr.msk.bf16.vlgmr.msra.gmra.mrb[48].mxu1 %vm1261_vm5, %v19653_v62 }
 0xbf8   :  { %15774 = vmatprep.mubr.msk.bf16.mxu1 %vm1261_vm5, %v19675_v59  ;;  %15787 = vmatpush3.bf16.msra.mxu1 %v17440_v20 }
 0xbf9   :  { %15788 = vmatprep.subr.bf16.mxu1 %v17441_v39 }
 0xbfc   :  { %15789 = vmatpush3.bf16.msra.mxu1 %v17441_v39 }
 0xbff   :  { %15775 = vmatmul.mubr.msk.bf16.gmra.mrb[52].mxu1 %vm1261_vm5, %v19678_v29 }
 0xc00   :  { %15778 = vmatprep.mubr.msk.bf16.mxu1 %vm1261_vm5, %v19683_v30 }
 0xc07   :  { %15779 = vmatmul.mubr.msk.bf16.gmra.mrb[56].mxu1 %vm1261_vm5, %v8052_v23 }
 0xc08   :  { %15782 = vmatprep.mubr.msk.bf16.mxu1 %vm1261_vm5, %v8056_v37 }
 0xc0f   :  { %15783 = vmatmul.mubr.msk.bf16.gmra.mrb[60].mxu1 %vm1261_vm5, %v8055_v38 }
 0xc10   :  { %15790 = vmatprep.mubr.msk.bf16.mxu1 %vm1261_vm5, %v8210_v3 }
 0xc17   :  { %15791 = vmatmul.mubr.msk.bf16.vlgmr.msra.gmra.mrb[48].mxu1 %vm1261_vm5, %v8212_v7 }
 0xc18   :  { %15794 = vmatprep.mubr.msk.bf16.mxu1 %vm1261_vm5, %v8214_v2 }
 0xc1f   :  { %15795 = vmatmul.mubr.msk.bf16.gmra.mrb[52].mxu1 %vm1261_vm5, %v8216_v49 }
 0xc20   :  { %15798 = vmatprep.mubr.msk.bf16.mxu1 %vm1261_vm5, %v8218_v53 }
 0xc27   :  { %15799 = vmatmul.mubr.msk.bf16.gmra.mrb[56].mxu1 %vm1261_vm5, %v8220_v54 }
 0xc28   :  { %15802 = vmatprep.mubr.msk.bf16.mxu1 %vm1261_vm5, %v8222_v16 }
 0xc2f   :  { %15803 = vmatmul.mubr.msk.bf16.gmra.mrb[60].mxu1 %vm1261_vm5, %v8221_v42 }
 0xc5c   :  { %v6559_v34 = vpop.f32.mrb[44].mxu1 }
 0xc5d   :  { %v6575_v21 = vmul.f32 %v13599_v6, %v6559_v34  ;;  %v15614_v12 = vpop.f32.mrb[45].mxu1 }
 0xc5e   :  { %v6562_v45 = vpop.f32.mrb[46].mxu1 }
 0xc5f   :  { %v6584_v43 = vadd.f32 %v13600_v1, %v6575_v21  ;;  %v6576_v48 = vmul.f32 %v13599_v6, %v6562_v45  ;;  %v15615_v52 = vpop.f32.mrb[47].mxu1 }
 0xc61   :  { %v6585_v10 = vadd.f32 %v13600_v1, %v6576_v48  ;;  %v6586_v62 = vmax.f32 %v6584_v43, 0.0 }
 0xc63   :  { %v6587_v63 = vmax.f32 %v6585_v10, 0.0 }
 0xc65   :  { %v19767_v27 = vadd.f32 %v6587_v63, %v6586_v62 }
 0xcea   :  { %v15792_v8 = vpop.f32.mrb[48].mxu1 }
 0xceb   :  { %v8379_v41 = vmul.f32 %v15792_v8, %v19773_v50  ;;  %v8293_v36 = vpop.f32.mrb[49].mxu1 }
 0xcec   :  { %v8377_v44 = vmul.f32 %v19773_v50, %v8293_v36  ;;  %v15793_v35 = vpop.f32.mrb[50].mxu1 }
 0xced   :  { %v8401_v58 = vadd.f32 %v19776_v25, %v8379_v41  ;;  %v8380_v15 = vmul.f32 %v15793_v35, %v19773_v50  ;;  %v8296_v24 = vpop.f32.mrb[51].mxu1 }
 0xcee   :  { %v8399_v59 = vadd.f32 %v19776_v25, %v8377_v44  ;;  %v8378_v13 = vmul.f32 %v19773_v50, %v8296_v24 }
 0xcef   :  { %v8402_v29 = vadd.f32 %v19776_v25, %v8380_v15  ;;  %v8416_v28 = vmax.f32 %v8401_v58, 0.0 }
 0xcf0   :  { %v8400_v47 = vadd.f32 %v19776_v25, %v8378_v13  ;;  %v8414_v22 = vmax.f32 %v8399_v59, 0.0 }
 0xcf1   :  { %v8417_v14 = vmax.f32 %v8402_v29, 0.0 }
 0xcf2   :  { %v8415_v31 = vmax.f32 %v8400_v47, 0.0  ;;  %v15796_v17 = vpop.f32.mrb[52].mxu1 }
 0xcf3   :  { %v19786_v30 = vpack.c.bf16 %v8417_v14, %v8416_v28  ;;  %v8383_v51 = vmul.f32 %v15796_v17, %v19773_v50  ;;  %v8309_v0 = vpop.f32.mrb[53].mxu1 }
 0xcf4   :  { %v19789_v5 = vpack.c.bf16 %v8415_v31, %v8414_v22  ;;  %v8381_v57 = vmul.f32 %v19773_v50, %v8309_v0  ;;  %v15797_v61 = vpop.f32.mrb[54].mxu1  ;;  %v17445_v0 = vld [vmem:[#allocation6 + $0x8] sm:$0xff]  }
 0xcf5   :  { %v8405_v4 = vadd.f32 %v19776_v25, %v8383_v51  ;;  %v8384_v32 = vmul.f32 %v15797_v61, %v19773_v50  ;;  %v8312_v38 = vpop.f32.mrb[55].mxu1  ;;  %v8453_v3 = vshll.u32 %v19786_v30, 16  ;;  %v8457_v37 = vshrl.u32 %v19786_v30, 16 }
 0xcf6   :  { %v8403_v7 = vadd.f32 %v19776_v25, %v8381_v57  ;;  %v8382_v56 = vmul.f32 %v19773_v50, %v8312_v38  ;;  %v8446_v23 = vshrl.u32 %v19789_v5, 16  ;;  %v8448_v2 = vshll.u32 %v19789_v5, 16 }
 0xcf7   :  { %v8406_v49 = vadd.f32 %v19776_v25, %v8384_v32  ;;  %v8455_v26 = vrot.slane %v8453_v3, 1  ;;  %v8776_v53 = vrot.slane %v19789_v5, 1  ;;  %v8420_v42 = vmax.f32 %v8405_v4, 0.0 }
 0xcf8   :  { %v8404_v54 = vadd.f32 %v19776_v25, %v8382_v56  ;;  %v8450_v33 = vrot.slane %v8448_v2, 1  ;;  %v8777_v16 = vrot.slane %v19786_v30, 1  ;;  %v8418_v40 = vmax.f32 %v8403_v7, 0.0 }
 0xcf9   :  { %v8421_v9 = vmax.f32 %v8406_v49, 0.0  ;;  %v8942_v11 = vrot.slane %v8446_v23, 1  ;;  %v8943_v19 = vrot.slane %v8448_v2, 2  ;;  %v8459_v6 = vor.u32 %v8457_v37, %v8455_v26 }
 0xcfa   :  { %v8419_v20 = vmax.f32 %v8404_v54, 0.0  ;;  %v15800_v18 = vpop.f32.mrb[56].mxu1  ;;  %v8451_v39 = vor.u32 %v8450_v33, %v8446_v23  ;;  %v19805_v34 = vsel %vm601_vm3, %v8776_v53, %v8777_v16  ;;  %v8945_v43 = vrot.slane %v8457_v37, 1 }
 0xcfb   :  { %v19807_v1 = vpack.c.bf16 %v8421_v9, %v8420_v42  ;;  %v8387_v21 = vmul.f32 %v15800_v18, %v19773_v50  ;;  %v8325_v12 = vpop.f32.mrb[57].mxu1  ;;  %v8944_v45 = vor.u32 %v8943_v19, %v8942_v11  ;;  %v8946_v63 = vrot.slane %v8453_v3, 2  ;;  %v19852_v19 = vld [vmem:[#allocation6 + $0x20] sm:$0xff]  }
 0xcfc   :  { %v19810_v48 = vpack.c.bf16 %v8419_v20, %v8418_v40  ;;  %v8385_v52 = vmul.f32 %v19773_v50, %v8325_v12  ;;  %v15801_v10 = vpop.f32.mrb[58].mxu1  ;;  %v8456_v62 = vsel %vm274_vm1, %v8451_v39, %v8455_v26  ;;  %v9124_v44 = vrot.slane %v19789_v5, 2 }
 0xcfd   :  { %v8409_v55 = vadd.f32 %v19776_v25, %v8387_v21  ;;  %v8388_v8 = vmul.f32 %v15801_v10, %v19773_v50  ;;  %v8328_v41 = vpop.f32.mrb[59].mxu1  ;;  %15810 = vmatprep.mubr.msk.bf16.mxu0 %vm1261_vm5, %v8456_v62  ;;  %v8469_v36 = vshll.u32 %v19807_v1, 16  ;;  %v8473_v29 = vshrl.u32 %v19807_v1, 16 }
 0xcfe   :  { %v8407_v35 = vadd.f32 %v19776_v25, %v8385_v52  ;;  %v8386_v58 = vmul.f32 %v19773_v50, %v8328_v41  ;;  %v8461_v15 = vshll.u32 %v19810_v48, 16  ;;  %v8465_v24 = vshrl.u32 %v19810_v48, 16 }
 0xcff   :  { %v8424_v59 = vmax.f32 %v8409_v55, 0.0  ;;  %v8410_v13 = vadd.f32 %v19776_v25, %v8388_v8  ;;  %v8779_v47 = vrot.slane %v19810_v48, 1  ;;  %v8471_v31 = vrot.slane %v8469_v36, 1 }
 0xd00   :  { %v8422_v28 = vmax.f32 %v8407_v35, 0.0  ;;  %v8408_v14 = vadd.f32 %v19776_v25, %v8386_v58  ;;  %v8463_v22 = vrot.slane %v8461_v15, 1  ;;  %v8949_v51 = vrot.slane %v8465_v24, 1 }
 0xd01   :  { %v8425_v17 = vmax.f32 %v8410_v13, 0.0  ;;  %v19830_v57 = vsel %vm601_vm3, %v8777_v16, %v8779_v47  ;;  %v8781_v61 = vrot.slane %v19807_v1, 1  ;;  %v8947_v7 = vor.u32 %v8946_v63, %v8945_v43 }
 0xd02   :  { %v8423_v4 = vmax.f32 %v8408_v14, 0.0  ;;  %v15804_v32 = vpop.f32.mrb[60].mxu1  ;;  %v8464_v38 = vsel %vm274_vm1, %v8459_v6, %v8463_v22  ;;  %v8467_v3 = vor.u32 %v8465_v24, %v8463_v22  ;;  %v8950_v26 = vrot.slane %v8461_v15, 2 }
 0xd03   :  { %v19834_v56 = vpack.c.bf16 %v8425_v17, %v8424_v59  ;;  %v8391_v23 = vmul.f32 %v15804_v32, %v19773_v50  ;;  %v8341_v2 = vpop.f32.mrb[61].mxu1  ;;  %15811 = vmatmul.mubr.msk.bf16.vlgmr.msra.gmra.mrb[80].mxu0 %vm1261_vm5, %v8464_v38  ;;  %v19839_v49 = vsel %vm601_vm3, %v8779_v47, %v8781_v61  ;;  %v19847_v33 = vsel %vm765_vm4, %v8944_v45, %v8947_v7 }
 0xd04   :  { %v19841_v37 = vpack.c.bf16 %v8423_v4, %v8422_v28  ;;  %v8389_v53 = vmul.f32 %v19773_v50, %v8341_v2  ;;  %v15805_v42 = vpop.f32.mrb[62].mxu1  ;;  %15827 = vmatpush3.bf16.msra.mxu0 %v19769_v46  ;;  %v8472_v54 = vsel %vm274_vm1, %v8467_v3, %v8471_v31  ;;  %v8475_v9 = vor.u32 %v8473_v29, %v8471_v31 }
 0xd05   :  { %v8413_v16 = vadd.f32 %v19776_v25, %v8391_v23  ;;  %v8344_v40 = vpop.f32.mrb[63].mxu1  ;;  %15814 = vmatprep.mubr.msk.bf16.mxu0 %vm1261_vm5, %v8472_v54  ;;  %v8485_v11 = vshll.u32 %v19834_v56, 16  ;;  %15828 = vmatprep.subr.bf16.mxu0 %v17445_v0  ;;  %v8785_v20 = vrot.slane %v19834_v56, 1  ;;  %v8489_v6 = vshrl.u32 %v19834_v56, 16 }
 0xd06   :  { %v8411_v46 = vadd.f32 %v19776_v25, %v8389_v53  ;;  %v8390_v18 = vmul.f32 %v19773_v50, %v8344_v40  ;;  %v8477_v39 = vshll.u32 %v19841_v37, 16  ;;  %v8783_v45 = vrot.slane %v19841_v37, 1 }
 0xd07   :  { %v8428_v21 = vmax.f32 %v8413_v16, 0.0  ;;  %v8487_v12 = vrot.slane %v8485_v11, 1  ;;  %v8951_v43 = vor.u32 %v8950_v26, %v8949_v51  ;;  %v8481_v63 = vshrl.u32 %v19841_v37, 16 }
 0xd08   :  { %v8426_v52 = vmax.f32 %v8411_v46, 0.0  ;;  %v8412_v10 = vadd.f32 %v19776_v25, %v8390_v18  ;;  %v8479_v62 = vrot.slane %v8477_v39, 1  ;;  %15829 = vmatpush3.bf16.msra.mxu0 %v17445_v0  ;;  %v19866_v50 = vsel %vm601_vm3, %v8781_v61, %v8783_v45 }
 0xd09   :  { %v19862_v55 = vpack.c.bf16 %v8428_v21, %v8428_v21  ;;  %15846 = vmatprep.subr.bf16.mxu0 %v19852_v19  ;;  %v19869_v8 = vsel %vm601_vm3, %v8783_v45, %v8785_v20  ;;  %v8953_v41 = vrot.slane %v8473_v29, 1  ;;  %v19873_v25 = vsel %vm765_vm4, %v8947_v7, %v8951_v43 }
 0xd0a   :  { %v8427_v35 = vmax.f32 %v8412_v10, 0.0  ;;  %v8480_v58 = vsel %vm274_vm1, %v8475_v9, %v8479_v62  ;;  %v8483_v15 = vor.u32 %v8481_v63, %v8479_v62  ;;  %v8491_v24 = vor.u32 %v8489_v6, %v8487_v12 }
 0xd0b   :  { %15815 = vmatmul.mubr.msk.bf16.gmra.mrb[84].mxu0 %vm1261_vm5, %v8480_v58  ;;  %v8501_v59 = vshll.u32 %v19862_v55, 16  ;;  %v8505_v13 = vshrl.u32 %v19862_v55, 16  ;;  %v8954_v47 = vrot.slane %v8469_v36, 2  ;;  %v8957_v14 = vrot.slane %v8481_v63, 1 }
 0xd0c   :  { %v8435_v28 = vpack.c.bf16 %v8427_v35, %v8426_v52  ;;  %v8488_v29 = vsel %vm274_vm1, %v8483_v15, %v8487_v12  ;;  %v8958_v22 = vrot.slane %v8477_v39, 2  ;;  %v8789_v31 = vrot.slane %v19862_v55, 1 }
 0xd0d   :  { %15818 = vmatprep.mubr.msk.bf16.mxu0 %vm1261_vm5, %v8488_v29  ;;  %v8955_v17 = vor.u32 %v8954_v47, %v8953_v41  ;;  %v8961_v51 = vrot.slane %v8489_v6, 1  ;;  %v8962_v0 = vrot.slane %v8485_v11, 2  ;;  %v8503_v3 = vrot.slane %v8501_v59, 1  ;;  %v17447_v29 = vld [vmem:[#allocation6 + $0x28] sm:$0xff]  }
 0xd0e   :  { %v8493_v61 = vshll.u32 %v8435_v28, 16  ;;  %v8497_v4 = vshrl.u32 %v8435_v28, 16  ;;  %v8787_v32 = vrot.slane %v8435_v28, 1  ;;  %v8959_v38 = vor.u32 %v8958_v22, %v8957_v14  ;;  %v17448_v14 = vld [vmem:[#allocation6 + $0x30] sm:$0xff]  }
 0xd0f   :  { %v19884_v7 = vsel %vm765_vm4, %v8951_v43, %v8955_v17  ;;  %v8963_v36 = vor.u32 %v8962_v0, %v8961_v51  ;;  %v8969_v23 = vrot.slane %v8505_v13, 1  ;;  %v8970_v9 = vrot.slane %v8501_v59, 2 }
 0xd10   :  { %v8495_v2 = vrot.slane %v8493_v61, 1  ;;  %v8788_v26 = vsel %vm601_vm3, %v8785_v20, %v8787_v32  ;;  %v8790_v53 = vsel %vm601_vm3, %v8787_v32, %v8789_v31  ;;  %v19891_v42 = vsel %vm765_vm4, %v8955_v17, %v8959_v38 }
 0xd11   :  { %v19894_v54 = vsel %vm765_vm4, %v8959_v38, %v8963_v36  ;;  %v8965_v16 = vrot.slane %v8497_v4, 1  ;;  %v8966_v40 = vrot.slane %v8493_v61, 2  ;;  %v9125_v18 = vrot.slane %v19786_v30, 2 }
 0xd12   :  { %v8496_v11 = vsel %vm274_vm1, %v8491_v24, %v8495_v2  ;;  %v8499_v46 = vor.u32 %v8497_v4, %v8495_v2  ;;  %v9127_v20 = vrot.slane %v19810_v48, 2  ;;  %v8971_v6 = vor.u32 %v8970_v9, %v8969_v23 }
 0xd13   :  { %15819 = vmatmul.mubr.msk.bf16.gmra.mrb[88].mxu0 %vm1261_vm5, %v8496_v11  ;;  %v8967_v39 = vor.u32 %v8966_v40, %v8965_v16  ;;  %v9129_v21 = vrot.slane %v19807_v1, 2  ;;  %v9131_v12 = vrot.slane %v19841_v37, 2  ;;  %v9126_v43 = vsel %vm368_vm0, %v9124_v44, %v9125_v18 }
 0xd14   :  { %v8504_v45 = vsel %vm274_vm1, %v8499_v46, %v8503_v3  ;;  %v9128_v52 = vsel %vm368_vm0, %v9125_v18, %v9127_v20  ;;  %v9133_v10 = vrot.slane %v19834_v56, 2  ;;  %v9135_v15 = vrot.slane %v8435_v28, 2 }
 0xd15   :  { %15822 = vmatprep.mubr.msk.bf16.mxu0 %vm1261_vm5, %v8504_v45  ;;  %v8968_v62 = vsel %vm765_vm4, %v8963_v36, %v8967_v39  ;;  %v8972_v63 = vsel %vm765_vm4, %v8967_v39, %v8971_v6  ;;  %v9130_v41 = vsel %vm368_vm0, %v9127_v20, %v9129_v21  ;;  %v9132_v35 = vsel %vm368_vm0, %v9129_v21, %v9131_v12 }
 0xd16   :  { %v9134_v58 = vsel %vm368_vm0, %v9131_v12, %v9133_v10  ;;  %v9137_v24 = vrot.slane %v19862_v55, 2  ;;  %v9136_v44 = vsel %vm368_vm0, %v9133_v10, %v9135_v15  ;;  %v8507_v47 = vor.u32 %v8505_v13, %v8503_v3 }
 0xd18   :  { %v9138_v59 = vsel %vm368_vm0, %v9135_v15, %v9137_v24 }
 0xd1b   :  { %15823 = vmatmul.mubr.msk.bf16.gmra.mrb[92].mxu0 %vm1261_vm5, %v8507_v47 }
 0xd1c   :  { %15830 = vmatprep.mubr.msk.bf16.mxu0 %vm1261_vm5, %v19789_v5  ;;  %v17450_v5 = vld [vmem:[#allocation6 + $0x40] sm:$0xff]  }
 0xd23   :  { %15831 = vmatmul.mubr.msk.bf16.vlgmr.msra.gmra.mrb[80].mxu0 %vm1261_vm5, %v19786_v30  ;;  %v17449_v30 = vld [vmem:[#allocation6 + $0x38] sm:$0xff]  }
 0xd24   :  { %15834 = vmatprep.mubr.msk.bf16.mxu0 %vm1261_vm5, %v19810_v48  ;;  %15847 = vmatpush3.bf16.msra.mxu0 %v19852_v19  ;;  %v17453_v48 = vld [vmem:[#allocation8 + $0x18] sm:$0xff]  }
 0xd25   :  { %15848 = vmatprep.subr.bf16.mxu0 %v17447_v29 }
 0xd28   :  { %15849 = vmatpush3.bf16.msra.mxu0 %v17447_v29 }
 0xd29   :  { %15866 = vmatprep.subr.bf16.mxu0 %v17448_v14 }
 0xd2b   :  { %15835 = vmatmul.mubr.msk.bf16.gmra.mrb[84].mxu0 %vm1261_vm5, %v19807_v1  ;;  %v17452_v1 = vld [vmem:[#allocation8 + $0x10] sm:$0xff]  }
 0xd2c   :  { %15838 = vmatprep.mubr.msk.bf16.mxu0 %vm1261_vm5, %v19841_v37  ;;  %15906 = vmatprep.subr.bf16.mxu1 %v17452_v1  ;;  %v19980_v37 = vld [vmem:[%s20552_s12] ss:$0 sm:$0xff] }
 0xd2d   :  { %15907 = vmatpush3.bf16.msra.mxu1 %v17452_v1 }
 0xd2e   :  { %15908 = vmatprep.subr.bf16.mxu1 %v17453_v48 }
 0xd31   :  { %15909 = vmatpush3.bf16.msra.mxu1 %v17453_v48 }
 0xd33   :  { %15839 = vmatmul.mubr.msk.bf16.gmra.mrb[88].mxu0 %vm1261_vm5, %v19834_v56  ;;  %v19977_v56 = vld [vmem:[%s20551_s30] ss:$0 sm:$0xff] }
 0xd34   :  { %15842 = vmatprep.mubr.msk.bf16.mxu0 %vm1261_vm5, %v8435_v28 }
 0xd3b   :  { %15843 = vmatmul.mubr.msk.bf16.gmra.mrb[92].mxu0 %vm1261_vm5, %v19862_v55 }
 0xd3c   :  { %15850 = vmatprep.mubr.msk.bf16.mxu0 %vm1261_vm5, %v19805_v34  ;;  %v17451_v34 = vld [vmem:[#allocation6 + $0x48] sm:$0xff]  }
 0xd43   :  { %15851 = vmatmul.mubr.msk.bf16.vlgmr.msra.gmra.mrb[80].mxu0 %vm1261_vm5, %v19830_v57  ;;  %v19973_v57 = vld [vmem:[#allocation8] sm:$0xff]  }
 0xd44   :  { %15854 = vmatprep.mubr.msk.bf16.mxu0 %vm1261_vm5, %v19839_v49  ;;  %15867 = vmatpush3.bf16.msra.mxu0 %v17448_v14 }
 0xd45   :  { %15868 = vmatprep.subr.bf16.mxu0 %v17449_v30  ;;  %15918 = vmatprep.subr.bf16.mxu1 %v19973_v57 }
 0xd48   :  { %15869 = vmatpush3.bf16.msra.mxu0 %v17449_v30 }
 0xd49   :  { %15886 = vmatprep.subr.bf16.mxu0 %v17450_v5 }
 0xd4b   :  { %15855 = vmatmul.mubr.msk.bf16.gmra.mrb[84].mxu0 %vm1261_vm5, %v19866_v50 }
 0xd4c   :  { %15858 = vmatprep.mubr.msk.bf16.mxu0 %vm1261_vm5, %v19869_v8 }
 0xd53   :  { %15859 = vmatmul.mubr.msk.bf16.gmra.mrb[88].mxu0 %vm1261_vm5, %v8788_v26 }
 0xd54   :  { %15862 = vmatprep.mubr.msk.bf16.mxu0 %vm1261_vm5, %v8790_v53 }
 0xd5b   :  { %15863 = vmatmul.mubr.msk.bf16.gmra.mrb[92].mxu0 %vm1261_vm5, %v8789_v31 }
 0xd5c   :  { %15870 = vmatprep.mubr.msk.bf16.mxu0 %vm1261_vm5, %v19847_v33 }
 0xd63   :  { %15871 = vmatmul.mubr.msk.bf16.vlgmr.msra.gmra.mrb[80].mxu0 %vm1261_vm5, %v19873_v25 }
 0xd64   :  { %15874 = vmatprep.mubr.msk.bf16.mxu0 %vm1261_vm5, %v19884_v7  ;;  %15887 = vmatpush3.bf16.msra.mxu0 %v17450_v5 }
 0xd65   :  { %15888 = vmatprep.subr.bf16.mxu0 %v17451_v34 }
 0xd68   :  { %15889 = vmatpush3.bf16.msra.mxu0 %v17451_v34 }
 0xd69   :  { %16046 = vmatprep.subr.bf16.mxu0 %v17850_v60 }
 0xd6b   :  { %15875 = vmatmul.mubr.msk.bf16.gmra.mrb[84].mxu0 %vm1261_vm5, %v19891_v42 }
 0xd6c   :  { %15878 = vmatprep.mubr.msk.bf16.mxu0 %vm1261_vm5, %v19894_v54 }
 0xd73   :  { %15879 = vmatmul.mubr.msk.bf16.gmra.mrb[88].mxu0 %vm1261_vm5, %v8968_v62 }
 0xd74   :  { %15882 = vmatprep.mubr.msk.bf16.mxu0 %vm1261_vm5, %v8972_v63 }
 0xd7b   :  { %15883 = vmatmul.mubr.msk.bf16.gmra.mrb[92].mxu0 %vm1261_vm5, %v8971_v6 }
 0xd7c   :  { %15890 = vmatprep.mubr.msk.bf16.mxu0 %vm1261_vm5, %v9126_v43 }
 0xd83   :  { %15891 = vmatmul.mubr.msk.bf16.vlgmr.msra.gmra.mrb[80].mxu0 %vm1261_vm5, %v9128_v52 }
 0xd84   :  { %15894 = vmatprep.mubr.msk.bf16.mxu0 %vm1261_vm5, %v9130_v41 }
 0xd8b   :  { %15895 = vmatmul.mubr.msk.bf16.gmra.mrb[84].mxu0 %vm1261_vm5, %v9132_v35 }
 0xd8c   :  { %15898 = vmatprep.mubr.msk.bf16.mxu0 %vm1261_vm5, %v9134_v58 }
 0xd93   :  { %15899 = vmatmul.mubr.msk.bf16.gmra.mrb[88].mxu0 %vm1261_vm5, %v9136_v44 }
 0xd94   :  { %15902 = vmatprep.mubr.msk.bf16.mxu0 %vm1261_vm5, %v9138_v59 }
 0xd9b   :  { %15903 = vmatmul.mubr.msk.bf16.gmra.mrb[92].mxu0 %vm1261_vm5, %v9137_v24 }
 0xd9c   :  { %16054 = vmatprep.mubr.msk.bf16.mxu0 %vm17851_vm8, %v17850_v60 }
 0xe56   :  { %v15892_v49 = vpop.f32.mrb[80].mxu0 }
 0xe57   :  { %v9295_v33 = vmul.f32 %v15892_v49, %v19977_v56  ;;  %v9209_v19 = vpop.f32.mrb[81].mxu0  ;;  %v17455_v49 = vld [vmem:[#allocation8 + $0x8] sm:$0xff]  }
 0xe58   :  { %v9293_v55 = vmul.f32 %v19977_v56, %v9209_v19  ;;  %v15893_v50 = vpop.f32.mrb[82].mxu0 }
 0xe59   :  { %v9317_v8 = vadd.f32 %v19980_v37, %v9295_v33  ;;  %v9296_v25 = vmul.f32 %v15893_v50, %v19977_v56  ;;  %v9212_v13 = vpop.f32.mrb[83].mxu0 }
 0xe5a   :  { %v9315_v28 = vadd.f32 %v19980_v37, %v9293_v55  ;;  %v9294_v22 = vmul.f32 %v19977_v56, %v9212_v13 }
 0xe5b   :  { %v9332_v31 = vmax.f32 %v9317_v8, 0.0  ;;  %v9318_v17 = vadd.f32 %v19980_v37, %v9296_v25 }
 0xe5c   :  { %v9330_v51 = vmax.f32 %v9315_v28, 0.0  ;;  %v9316_v0 = vadd.f32 %v19980_v37, %v9294_v22  ;;  %v17456_v28 = vld [vmem:[#allocation8 + $0x20] sm:$0xff]  }
 0xe5d   :  { %9347 = vst.msk [vmem:[#allocation2 + $0x10] sm:$0xff] %vm1261_vm5, %v9332_v31  ;;  %v9333_v61 = vmax.f32 %v9318_v17, 0.0 }
 0xe5e   :  { %9345 = vst.msk [vmem:[#allocation2] sm:$0xff] %vm1261_vm5, %v9330_v51  ;;  %v9331_v4 = vmax.f32 %v9316_v0, 0.0  ;;  %v15896_v32 = vpop.f32.mrb[84].mxu0 }
 0xe5f   :  { %9348 = vst.msk [vmem:[#allocation2 + $0x18] sm:$0xff] %vm1261_vm5, %v9333_v61  ;;  %v9299_v38 = vmul.f32 %v15896_v32, %v19977_v56  ;;  %v9225_v3 = vpop.f32.mrb[85].mxu0 }
 0xe60   :  { %9346 = vst.msk [vmem:[#allocation2 + $0x8] sm:$0xff] %vm1261_vm5, %v9331_v4  ;;  %v9297_v7 = vmul.f32 %v19977_v56, %v9225_v3  ;;  %v15897_v36 = vpop.f32.mrb[86].mxu0 }
 0xe61   :  { %v9321_v23 = vadd.f32 %v19980_v37, %v9299_v38  ;;  %v9300_v2 = vmul.f32 %v15897_v36, %v19977_v56  ;;  %v9228_v26 = vpop.f32.mrb[87].mxu0  ;;  %v17457_v36 = vld [vmem:[#allocation8 + $0x28] sm:$0xff]  }
 0xe62   :  { %v9319_v53 = vadd.f32 %v19980_v37, %v9297_v7  ;;  %v9298_v42 = vmul.f32 %v19977_v56, %v9228_v26 }
 0xe63   :  { %v9336_v54 = vmax.f32 %v9321_v23, 0.0  ;;  %v9322_v16 = vadd.f32 %v19980_v37, %v9300_v2  ;;  %v17458_v2 = vld [vmem:[#allocation8 + $0x30] sm:$0xff]  }
 0xe64   :  { %v9334_v40 = vmax.f32 %v9319_v53, 0.0  ;;  %v9320_v9 = vadd.f32 %v19980_v37, %v9298_v42 }
 0xe65   :  { %9351 = vst.msk [vmem:[#allocation2 + $0x30] sm:$0xff] %vm1261_vm5, %v9336_v54  ;;  %v9337_v11 = vmax.f32 %v9322_v16, 0.0 }
 0xe66   :  { %9349 = vst.msk [vmem:[#allocation2 + $0x20] sm:$0xff] %vm1261_vm5, %v9334_v40  ;;  %v9335_v46 = vmax.f32 %v9320_v9, 0.0  ;;  %v15900_v18 = vpop.f32.mrb[88].mxu0  ;;  %v9368_v20 = vld [vmem:[#allocation2 + $0x11] ss:$2 sm:$0xff] }
 0xe67   :  { %9352 = vst.msk [vmem:[#allocation2 + $0x38] sm:$0xff] %vm1261_vm5, %v9337_v11  ;;  %v9303_v39 = vmul.f32 %v15900_v18, %v19977_v56  ;;  %v9241_v6 = vpop.f32.mrb[89].mxu0  ;;  %v9367_v21 = vld [vmem:[#allocation2 + $0x1] ss:$2 sm:$0xff]  ;;  %v9361_v51 = vld [vmem:[#allocation2 + $0x10] ss:$2 sm:$0xff] }
 0xe68   :  { %9350 = vst.msk [vmem:[#allocation2 + $0x28] sm:$0xff] %vm1261_vm5, %v9335_v46  ;;  %v9301_v12 = vmul.f32 %v19977_v56, %v9241_v6  ;;  %v15901_v45 = vpop.f32.mrb[90].mxu0  ;;  %v9403_v43 = vpack.c.bf16 %v9368_v20, %v9367_v21  ;;  %v9374_v54 = vld [vmem:[#allocation2 + $0x2] ss:$2 sm:$0xff] }
 0xe69   :  { %v9325_v52 = vadd.f32 %v19980_v37, %v9303_v39  ;;  %v9304_v10 = vmul.f32 %v15901_v45, %v19977_v56  ;;  %v9244_v62 = vpop.f32.mrb[91].mxu0  ;;  %v17459_v20 = vld [vmem:[#allocation8 + $0x38] sm:$0xff]   ;;  %v17460_v6 = vld [vmem:[#allocation8 + $0x40] sm:$0xff]  }
 0xe6a   :  { %v9323_v63 = vadd.f32 %v19980_v37, %v9301_v12  ;;  %v9302_v41 = vmul.f32 %v19977_v56, %v9244_v62  ;;  %15910 = vmatprep.mubr.msk.bf16.mxu1 %vm1261_vm5, %v9403_v43  ;;  %v9381_v43 = vld [vmem:[#allocation2 + $0x3] ss:$2 sm:$0xff] }
 0xe6b   :  { %v9340_v35 = vmax.f32 %v9325_v52, 0.0  ;;  %v9326_v58 = vadd.f32 %v19980_v37, %v9304_v10 }
 0xe6c   :  { %v9338_v15 = vmax.f32 %v9323_v63, 0.0  ;;  %v9324_v24 = vadd.f32 %v19980_v37, %v9302_v41 }
 0xe6d   :  { %9355 = vst.msk [vmem:[#allocation2 + $0x50] sm:$0xff] %vm1261_vm5, %v9340_v35  ;;  %v9341_v44 = vmax.f32 %v9326_v58, 0.0  ;;  %v9375_v53 = vld [vmem:[#allocation2 + $0x12] ss:$2 sm:$0xff]  ;;  %v9382_v12 = vld [vmem:[#allocation2 + $0x13] ss:$2 sm:$0xff] }
 0xe6e   :  { %9353 = vst.msk [vmem:[#allocation2 + $0x40] sm:$0xff] %vm1261_vm5, %v9338_v15  ;;  %v9339_v59 = vmax.f32 %v9324_v24, 0.0  ;;  %v15904_v47 = vpop.f32.mrb[92].mxu0  ;;  %v9370_v29 = vld [vmem:[#allocation2 + $0x31] ss:$2 sm:$0xff]  ;;  %v9587_v16 = vpack.c.bf16 %v9375_v53, %v9374_v54  ;;  %v9690_v52 = vpack.c.bf16 %v9382_v12, %v9381_v43 }
 0xe6f   :  { %9356 = vst.msk [vmem:[#allocation2 + $0x58] sm:$0xff] %vm1261_vm5, %v9341_v44  ;;  %v9307_v14 = vmul.f32 %v15904_v47, %v19977_v56  ;;  %v9257_v30 = vpop.f32.mrb[93].mxu0  ;;  %v9369_v5 = vld [vmem:[#allocation2 + $0x21] ss:$2 sm:$0xff]  ;;  %v9362_v4 = vld [vmem:[#allocation2 + $0x20] ss:$2 sm:$0xff] }
 0xe70   :  { %9354 = vst.msk [vmem:[#allocation2 + $0x48] sm:$0xff] %vm1261_vm5, %v9339_v59  ;;  %v9305_v34 = vmul.f32 %v19977_v56, %v9257_v30  ;;  %v15905_v1 = vpop.f32.mrb[94].mxu0  ;;  %v9404_v48 = vpack.c.bf16 %v9370_v29, %v9369_v5  ;;  %v9363_v32 = vld [vmem:[#allocation2 + $0x30] ss:$2 sm:$0xff]  ;;  %v9383_v63 = vld [vmem:[#allocation2 + $0x23] ss:$2 sm:$0xff] }
 0xe71   :  { %v9329_v33 = vadd.f32 %v19980_v37, %v9307_v14  ;;  %v9260_v19 = vpop.f32.mrb[95].mxu0  ;;  %v9396_v7 = vpack.c.bf16 %v9363_v32, %v9362_v4  ;;  %v9376_v11 = vld [vmem:[#allocation2 + $0x22] ss:$2 sm:$0xff]  ;;  %v17461_v58 = vld [vmem:[#allocation8 + $0x48] sm:$0xff]  }
 0xe72   :  { %v9327_v55 = vadd.f32 %v19980_v37, %v9305_v34  ;;  %v9306_v50 = vmul.f32 %v19977_v56, %v9260_v19  ;;  %15911 = vmatmul.mubr.msk.bf16.vlgmr.msra.gmra.mrb[64].mxu1 %vm1261_vm5, %v9404_v48  ;;  %v9389_v44 = vld [vmem:[#allocation2 + $0x14] ss:$2 sm:$0xff]  ;;  %v9388_v47 = vld [vmem:[#allocation2 + $0x4] ss:$2 sm:$0xff] }
 0xe73   :  { %v9344_v8 = vmax.f32 %v9329_v33, 0.0  ;;  %15919 = vmatpush3.bf16.msra.mxu1 %v19973_v57  ;;  %v9360_v57 = vld [vmem:[#allocation2] ss:$2 sm:$0xff]  ;;  %v9793_v29 = vpack.c.bf16 %v9389_v44, %v9388_v47 }
 0xe74   :  { %v9342_v25 = vmax.f32 %v9327_v55, 0.0  ;;  %v9328_v13 = vadd.f32 %v19980_v37, %v9306_v50  ;;  %15920 = vmatprep.subr.bf16.mxu1 %v17455_v49  ;;  %v9395_v61 = vpack.c.bf16 %v9361_v51, %v9360_v57  ;;  %v9390_v5 = vld [vmem:[#allocation2 + $0x24] ss:$2 sm:$0xff] }
 0xe75   :  { %9359 = vst.msk [vmem:[#allocation2 + $0x70] sm:$0xf] %vm3025_vm6, %v9344_v8  ;;  %v9377_v40 = vld [vmem:[#allocation2 + $0x32] ss:$2 sm:$0xff]  ;;  %v9384_v10 = vld [vmem:[#allocation2 + $0x33] ss:$2 sm:$0xff] }
 0xe76   :  { %9357 = vst.msk [vmem:[#allocation2 + $0x60] sm:$0xff] %vm1261_vm5, %v9342_v25  ;;  %v9343_v22 = vmax.f32 %v9328_v13, 0.0  ;;  %v9372_v31 = vld [vmem:[#allocation2 + $0x51] ss:$2 sm:$0xff]  ;;  %v9365_v3 = vld [vmem:[#allocation2 + $0x50] ss:$2 sm:$0xff]  ;;  %v9588_v46 = vpack.c.bf16 %v9377_v40, %v9376_v11  ;;  %v9691_v41 = vpack.c.bf16 %v9384_v10, %v9383_v63 }
 0xe77   :  { %v9371_v17 = vld [vmem:[#allocation2 + $0x41] ss:$2 sm:$0xff]  ;;  %15921 = vmatpush3.bf16.msra.mxu1 %v17455_v49  ;;  %v9364_v38 = vld [vmem:[#allocation2 + $0x40] ss:$2 sm:$0xff]  ;;  %v17464_v50 = vld [vmem:[#allocation9 + $0x30] sm:$0xff]  }
 0xe78   :  { %9358 = vst.msk [vmem:[#allocation2 + $0x68] sm:$0xff] %vm1261_vm5, %v9343_v22  ;;  %v9405_v56 = vpack.c.bf16 %v9372_v31, %v9371_v17  ;;  %15930 = vmatprep.subr.bf16.mxu1 %v17456_v28  ;;  %v9397_v23 = vpack.c.bf16 %v9365_v3, %v9364_v38  ;;  %v9378_v18 = vld [vmem:[#allocation2 + $0x42] ss:$2 sm:$0xff]  ;;  %v9385_v35 = vld [vmem:[#allocation2 + $0x43] ss:$2 sm:$0xff]  ;;  %v17465_v8 = vld [vmem:[#allocation9 + $0x38] sm:$0xff]  }
 0xe79   :  { %v9391_v14 = vld [vmem:[#allocation2 + $0x34] ss:$2 sm:$0xff]  ;;  %v9392_v1 = vld [vmem:[#allocation2 + $0x44] ss:$2 sm:$0xff] }
 0xe7a   :  { %15914 = vmatprep.mubr.msk.bf16.mxu1 %vm1261_vm5, %v9405_v56  ;;  %v9794_v34 = vpack.c.bf16 %v9391_v14, %v9390_v5  ;;  %v17462_v19 = vld [vmem:[#allocation9 + $0x20] sm:$0xff]   ;;  %v17463_v55 = vld [vmem:[#allocation9 + $0x28] sm:$0xff]  }
 0xe7b   :  { %v20048_v25 = vld [vmem:[#allocation9] sm:$0xff]  }
 0xe7c   :  { %v17482_v13 = vld [vmem:[#allocation11 + $0x20] sm:$0xff]  }
 0xe7d   :  { %v9379_v9 = vld [vmem:[#allocation2 + $0x52] ss:$2 sm:$0xff]  ;;  %v9386_v62 = vld [vmem:[#allocation2 + $0x53] ss:$2 sm:$0xff]  ;;  %16047 = vmatpush3.bf16.msra.mxu0 %v17482_v13 }
 0xe7e   :  { %v9589_v39 = vpack.c.bf16 %v9379_v9, %v9378_v18  ;;  %v9692_v15 = vpack.c.bf16 %v9386_v62, %v9385_v35  ;;  %v9393_v30 = vld [vmem:[#allocation2 + $0x54] ss:$2 sm:$0xff]  ;;  %16048 = vmatprep.subr.bf16.mxu0 %v17850_v60 }
 0xe7f   :  { %v9373_v0 = vld [vmem:[#allocation2 + $0x61] ss:$2 sm:$0xff]  ;;  %v9366_v26 = vld [vmem:[#allocation2 + $0x60] ss:$2 sm:$0xff]  ;;  %v9795_v48 = vpack.c.bf16 %v9393_v30, %v9392_v1 }
 0xe80   :  { %v9406_v37 = vpack.c.bf16 %v9373_v0, %v9373_v0  ;;  %v9398_v42 = vpack.c.bf16 %v9366_v26, %v9366_v26  ;;  %v9380_v21 = vld [vmem:[#allocation2 + $0x62] ss:$2 sm:$0xff]  ;;  %v9387_v24 = vld [vmem:[#allocation2 + $0x63] ss:$2 sm:$0xff]  ;;  %v13814_v22 = vld [vmem:[%s20553_s11] ss:$0 sm:$0xff] }
 0xe81   :  { %v9590_v45 = vpack.c.bf16 %v9380_v21, %v9380_v21  ;;  %v9693_v59 = vpack.c.bf16 %v9387_v24, %v9387_v24  ;;  %v9394_v49 = vld [vmem:[#allocation2 + $0x64] ss:$2 sm:$0xff]  ;;  %v13815_v17 = vld [vmem:[%s20554_s15] ss:$0 sm:$0xff] }
 0xe82   :  { %15915 = vmatmul.mubr.msk.bf16.gmra.mrb[68].mxu1 %vm1261_vm5, %v9406_v37  ;;  %v9796_v33 = vpack.c.bf16 %v9394_v49, %v9394_v49 }
 0xe83   :  { %15922 = vmatprep.mubr.msk.bf16.mxu1 %vm1261_vm5, %v9395_v61 }
 0xe8a   :  { %15923 = vmatmul.mubr.msk.bf16.vlgmr.msra.gmra.mrb[64].mxu1 %vm1261_vm5, %v9396_v7 }
 0xe8b   :  { %15926 = vmatprep.mubr.msk.bf16.mxu1 %vm1261_vm5, %v9397_v23  ;;  %15931 = vmatpush3.bf16.msra.mxu1 %v17456_v28  ;;  %v17483_v28 = vld [vmem:[#allocation11 + $0x28] sm:$0xff]  }
 0xe8c   :  { %15932 = vmatprep.subr.bf16.mxu1 %v17457_v36  ;;  %16049 = vmatpush3.bf16.msra.mxu0 %v17483_v28 }
 0xe8d   :  { %16050 = vmatprep.subr.bf16.mxu0 %v17850_v60 }
 0xe8f   :  { %15933 = vmatpush3.bf16.msra.mxu1 %v17457_v36 }
 0xe90   :  { %15942 = vmatprep.subr.bf16.mxu1 %v17458_v2 }
 0xe92   :  { %15927 = vmatmul.mubr.msk.bf16.gmra.mrb[68].mxu1 %vm1261_vm5, %v9398_v42 }
 0xe93   :  { %15934 = vmatprep.mubr.msk.bf16.mxu1 %vm1261_vm5, %v9587_v16 }
 0xe9a   :  { %15935 = vmatmul.mubr.msk.bf16.vlgmr.msra.gmra.mrb[64].mxu1 %vm1261_vm5, %v9588_v46 }
 0xe9b   :  { %15938 = vmatprep.mubr.msk.bf16.mxu1 %vm1261_vm5, %v9589_v39  ;;  %15943 = vmatpush3.bf16.msra.mxu1 %v17458_v2 }
 0xe9c   :  { %15944 = vmatprep.subr.bf16.mxu1 %v17459_v20 }
 0xe9f   :  { %15945 = vmatpush3.bf16.msra.mxu1 %v17459_v20 }
 0xea0   :  { %15954 = vmatprep.subr.bf16.mxu1 %v17460_v6 }
 0xea2   :  { %15939 = vmatmul.mubr.msk.bf16.gmra.mrb[68].mxu1 %vm1261_vm5, %v9590_v45 }
 0xea3   :  { %15946 = vmatprep.mubr.msk.bf16.mxu1 %vm1261_vm5, %v9690_v52 }
 0xeaa   :  { %15947 = vmatmul.mubr.msk.bf16.vlgmr.msra.gmra.mrb[64].mxu1 %vm1261_vm5, %v9691_v41 }
 0xeab   :  { %15950 = vmatprep.mubr.msk.bf16.mxu1 %vm1261_vm5, %v9692_v15  ;;  %15955 = vmatpush3.bf16.msra.mxu1 %v17460_v6 }
 0xeac   :  { %15956 = vmatprep.subr.bf16.mxu1 %v17461_v58 }
 0xeaf   :  { %15957 = vmatpush3.bf16.msra.mxu1 %v17461_v58 }
 0xeb0   :  { %15966 = vmatprep.subr.bf16.mxu1 %v17462_v19 }
 0xeb2   :  { %15951 = vmatmul.mubr.msk.bf16.gmra.mrb[68].mxu1 %vm1261_vm5, %v9693_v59 }
 0xeb3   :  { %15958 = vmatprep.mubr.msk.bf16.mxu1 %vm1261_vm5, %v9793_v29 }
 0xeba   :  { %15959 = vmatmul.mubr.msk.bf16.vlgmr.msra.gmra.mrb[64].mxu1 %vm1261_vm5, %v9794_v34 }
 0xebb   :  { %15962 = vmatprep.mubr.msk.bf16.mxu1 %vm1261_vm5, %v9795_v48  ;;  %15967 = vmatpush3.bf16.msra.mxu1 %v17462_v19 }
 0xebc   :  { %15968 = vmatprep.subr.bf16.mxu1 %v17463_v55 }
 0xebf   :  { %15969 = vmatpush3.bf16.msra.mxu1 %v17463_v55 }
 0xec0   :  { %15970 = vmatprep.subr.bf16.mxu1 %v17464_v50 }
 0xec2   :  { %15963 = vmatmul.mubr.msk.bf16.gmra.mrb[68].mxu1 %vm1261_vm5, %v9796_v33 }
 0xec3   :  { %15971 = vmatpush3.bf16.msra.mxu1 %v17464_v50 }
 0xec4   :  { %15972 = vmatprep.subr.bf16.mxu1 %v17465_v8 }
 0xec7   :  { %15973 = vmatpush3.bf16.msra.mxu1 %v17465_v8 }
 0xec8   :  { %15982 = vmatprep.subr.bf16.mxu1 %v20048_v25 }
 0xf8d   :  { %v15960_v31 = vpop.f32.mrb[64].mxu1 }
 0xf8e   :  { %v9905_v56 = vmul.f32 %v15960_v31, %v13814_v22  ;;  %v9859_v57 = vpop.f32.mrb[65].mxu1 }
 0xf8f   :  { %v9903_v51 = vmul.f32 %v13814_v22, %v9859_v57  ;;  %v15961_v0 = vpop.f32.mrb[66].mxu1 }
 0xf90   :  { %v9919_v37 = vadd.f32 %v13815_v17, %v9905_v56  ;;  %v9906_v61 = vmul.f32 %v15961_v0, %v13814_v22  ;;  %v9862_v4 = vpop.f32.mrb[67].mxu1 }
 0xf91   :  { %v9917_v32 = vadd.f32 %v13815_v17, %v9903_v51  ;;  %v9904_v38 = vmul.f32 %v13814_v22, %v9862_v4 }
 0xf92   :  { %v9920_v3 = vadd.f32 %v13815_v17, %v9906_v61  ;;  %v9926_v36 = vmax.f32 %v9919_v37, 0.0 }
 0xf93   :  { %v9918_v7 = vadd.f32 %v13815_v17, %v9904_v38  ;;  %v9924_v2 = vmax.f32 %v9917_v32, 0.0  ;;  %v17467_v32 = vld [vmem:[#allocation9 + $0x8] sm:$0xff]  }
 0xf94   :  { %v9927_v23 = vmax.f32 %v9920_v3, 0.0 }
 0xf95   :  { %v9925_v26 = vmax.f32 %v9918_v7, 0.0  ;;  %v15964_v53 = vpop.f32.mrb[68].mxu1 }
 0xf96   :  { %v20055_v42 = vpack.c.bf16 %v9927_v23, %v9926_v36  ;;  %v9909_v54 = vmul.f32 %v15964_v53, %v13814_v22  ;;  %v9875_v16 = vpop.f32.mrb[69].mxu1 }
 0xf97   :  { %v20057_v40 = vpack.c.bf16 %v9925_v26, %v9924_v2  ;;  %v9907_v9 = vmul.f32 %v13814_v22, %v9875_v16  ;;  %v15965_v11 = vpop.f32.mrb[70].mxu1  ;;  %v17468_v16 = vld [vmem:[#allocation9 + $0x10] sm:$0xff]  }
 0xf98   :  { %v9923_v46 = vadd.f32 %v13815_v17, %v9909_v54  ;;  %v9878_v18 = vpop.f32.mrb[71].mxu1  ;;  %v9959_v20 = vshll.u32 %v20055_v42, 16  ;;  %v9963_v39 = vshrl.u32 %v20055_v42, 16  ;;  %v10191_v6 = vrot.slane %v20055_v42, 1 }
 0xf99   :  { %v9921_v21 = vadd.f32 %v13815_v17, %v9907_v9  ;;  %v9908_v12 = vmul.f32 %v13814_v22, %v9878_v18  ;;  %v9952_v45 = vshrl.u32 %v20057_v40, 16  ;;  %v9954_v43 = vshll.u32 %v20057_v40, 16  ;;  %v17469_v18 = vld [vmem:[#allocation9 + $0x18] sm:$0xff]  }
 0xf9a   :  { %v9930_v52 = vmax.f32 %v9923_v46, 0.0  ;;  %v10190_v10 = vrot.slane %v20057_v40, 1  ;;  %v10315_v35 = vrot.slane %v9963_v39, 1  ;;  %v9961_v15 = vrot.slane %v9959_v20, 1 }
 0xf9b   :  { %v9922_v62 = vadd.f32 %v13815_v17, %v9908_v12  ;;  %v9956_v63 = vrot.slane %v9954_v43, 1  ;;  %v10312_v41 = vrot.slane %v9952_v45, 1  ;;  %v10313_v44 = vrot.slane %v9954_v43, 2  ;;  %v17477_v12 = vld [vmem:[#allocation9 + $0x78] sm:$0xff]   ;;  %v17479_v43 = vld [vmem:[#allocation9 + $0x88] sm:$0xff]  }
 0xf9c   :  { %v20065_v58 = vpack.c.bf16 %v9930_v52, %v9930_v52  ;;  %v20068_v24 = vsel %vm601_vm3, %v10190_v10, %v10191_v6  ;;  %v9928_v59 = vmax.f32 %v9921_v21, 0.0  ;;  %v10316_v14 = vrot.slane %v9959_v20, 2  ;;  %v17471_v20 = vld [vmem:[#allocation9 + $0x48] sm:$0xff]   ;;  %v17476_v21 = vld [vmem:[#allocation9 + $0x70] sm:$0xff]   ;;  %v17481_v10 = vld [vmem:[#allocation9 + $0x98] sm:$0xff]  }
 0xf9d   :  { %v9929_v47 = vmax.f32 %v9922_v62, 0.0  ;;  %v9957_v29 = vor.u32 %v9956_v63, %v9952_v45  ;;  %v10314_v34 = vor.u32 %v10313_v44, %v10312_v41  ;;  %v10442_v1 = vrot.slane %v20057_v40, 2  ;;  %v17478_v45 = vld [vmem:[#allocation9 + $0x80] sm:$0xff]   ;;  %v17480_v52 = vld [vmem:[#allocation9 + $0x90] sm:$0xff]   ;;  %v17485_v63 = vld [vmem:[#allocation11 + $0x38] sm:$0xff]  }
 0xf9e   :  { %v9975_v30 = vshll.u32 %v20065_v58, 16  ;;  %v9979_v5 = vshrl.u32 %v20065_v58, 16  ;;  %v10317_v33 = vor.u32 %v10316_v14, %v10315_v35  ;;  %v10443_v19 = vrot.slane %v20055_v42, 2  ;;  %v17484_v62 = vld [vmem:[#allocation11 + $0x30] sm:$0xff]   ;;  %v13856_v41 = vld [vmem:[%s20555_s2] ss:$0 sm:$0xff] }
 0xf9f   :  { %v9933_v48 = vpack.c.bf16 %v9929_v47, %v9928_v59  ;;  %v9962_v49 = vsel %vm274_vm1, %v9957_v29, %v9961_v15  ;;  %v9965_v55 = vor.u32 %v9963_v39, %v9961_v15  ;;  %v10195_v50 = vrot.slane %v20065_v58, 1  ;;  %v17472_v39 = vld [vmem:[#allocation9 + $0x50] sm:$0xff]   ;;  %16051 = vmatpush3.bf16.msra.mxu0 %v17484_v62  ;;  %v13857_v15 = vld [vmem:[%s20556_s20] ss:$0 sm:$0xff] }
 0xfa0   :  { %15974 = vmatprep.mubr.msk.bf16.mxu1 %vm3712_vm7, %v9962_v49  ;;  %v10323_v8 = vrot.slane %v9979_v5, 1  ;;  %v20078_v31 = vsel %vm765_vm4, %v10314_v34, %v10317_v33  ;;  %v10324_v17 = vrot.slane %v9975_v30, 2  ;;  %v20081_v56 = vsel %vm368_vm0, %v10442_v1, %v10443_v19  ;;  %16052 = vmatprep.subr.bf16.mxu0 %v17850_v60 }
 0xfa1   :  { %v9967_v13 = vshll.u32 %v9933_v48, 16  ;;  %v9971_v28 = vshrl.u32 %v9933_v48, 16  ;;  %v10193_v22 = vrot.slane %v9933_v48, 1  ;;  %v10445_v57 = vrot.slane %v9933_v48, 2 }
 0xfa2   :  { %v10447_v51 = vrot.slane %v20065_v58, 2  ;;  %v9977_v2 = vrot.slane %v9975_v30, 1  ;;  %v10325_v53 = vor.u32 %v10324_v17, %v10323_v8 }
 0xfa3   :  { %v9969_v0 = vrot.slane %v9967_v13, 1  ;;  %v10319_v37 = vrot.slane %v9971_v28, 1  ;;  %v10194_v61 = vsel %vm601_vm3, %v10191_v6, %v10193_v22  ;;  %v10196_v4 = vsel %vm601_vm3, %v10193_v22, %v10195_v50  ;;  %v17473_v6 = vld [vmem:[#allocation9 + $0x58] sm:$0xff]   ;;  %16053 = vmatpush3.bf16.msra.mxu0 %v17485_v63  ;;  %v17487_v63 = vld [vmem:[#allocation11 + $0x8] sm:$0xff]  }
 0xfa4   :  { %v10320_v38 = vrot.slane %v9967_v13, 2  ;;  %v20089_v3 = vsel %vm368_vm0, %v10443_v19, %v10445_v57  ;;  %v20094_v7 = vsel %vm368_vm0, %v10445_v57, %v10447_v51  ;;  %v9981_v46 = vor.u32 %v9979_v5, %v9977_v2  ;;  %16066 = vmatprep.subr.bf16.mxu0 %v17850_v60 }
 0xfa5   :  { %v9970_v36 = vsel %vm274_vm1, %v9965_v55, %v9969_v0  ;;  %v9973_v23 = vor.u32 %v9971_v28, %v9969_v0 }
 0xfa6   :  { %15975 = vmatmul.mubr.msk.bf16.vlgmr.msra.gmra.mrb[72].mxu1 %vm3712_vm7, %v9970_v36  ;;  %v10321_v26 = vor.u32 %v10320_v38, %v10319_v37 }
 0xfa7   :  { %15983 = vmatpush3.bf16.msra.mxu1 %v20048_v25  ;;  %v9978_v54 = vsel %vm274_vm1, %v9973_v23, %v9977_v2  ;;  %v17470_v25 = vld [vmem:[#allocation9 + $0x40] sm:$0xff]  }
 0xfa8   :  { %15978 = vmatprep.mubr.msk.bf16.mxu1 %vm3712_vm7, %v9978_v54  ;;  %15984 = vmatprep.subr.bf16.mxu1 %v17467_v32  ;;  %v10322_v9 = vsel %vm765_vm4, %v10317_v33, %v10321_v26  ;;  %v10326_v11 = vsel %vm765_vm4, %v10321_v26, %v10325_v53 }
 0xfab   :  { %15985 = vmatpush3.bf16.msra.mxu1 %v17467_v32 }
 0xfac   :  { %15986 = vmatprep.subr.bf16.mxu1 %v17468_v16 }
 0xfae   :  { %15979 = vmatmul.mubr.msk.bf16.gmra.mrb[76].mxu1 %vm3712_vm7, %v9981_v46 }
 0xfaf   :  { %15987 = vmatpush3.bf16.msra.mxu1 %v17468_v16  ;;  %15990 = vmatprep.mubr.msk.bf16.mxu1 %vm3712_vm7, %v20057_v40  ;;  %v17474_v40 = vld [vmem:[#allocation9 + $0x60] sm:$0xff]  }
 0xfb0   :  { %15988 = vmatprep.subr.bf16.mxu1 %v17469_v18 }
 0xfb3   :  { %15989 = vmatpush3.bf16.msra.mxu1 %v17469_v18  ;;  %v17486_v18 = vld [vmem:[#allocation11] sm:$0xff]  }
 0xfb4   :  { %15998 = vmatprep.subr.bf16.mxu1 %v17470_v25 }
 0xfb6   :  { %15991 = vmatmul.mubr.msk.bf16.vlgmr.msra.gmra.mrb[72].mxu1 %vm3712_vm7, %v20055_v42  ;;  %v17475_v42 = vld [vmem:[#allocation9 + $0x68] sm:$0xff]  }
 0xfb7   :  { %15994 = vmatprep.mubr.msk.bf16.mxu1 %vm3712_vm7, %v9933_v48  ;;  %15999 = vmatpush3.bf16.msra.mxu1 %v17470_v25 }
 0xfb8   :  { %16000 = vmatprep.subr.bf16.mxu1 %v17471_v20 }
 0xfbb   :  { %16001 = vmatpush3.bf16.msra.mxu1 %v17471_v20 }
 0xfbc   :  { %16002 = vmatprep.subr.bf16.mxu1 %v17472_v39 }
 0xfbe   :  { %15995 = vmatmul.mubr.msk.bf16.gmra.mrb[76].mxu1 %vm3712_vm7, %v20065_v58 }
 0xfbf   :  { %16003 = vmatpush3.bf16.msra.mxu1 %v17472_v39  ;;  %16006 = vmatprep.mubr.msk.bf16.mxu1 %vm3712_vm7, %v20068_v24 }
 0xfc0   :  { %16004 = vmatprep.subr.bf16.mxu1 %v17473_v6 }
 0xfc3   :  { %16005 = vmatpush3.bf16.msra.mxu1 %v17473_v6 }
 0xfc4   :  { %16014 = vmatprep.subr.bf16.mxu1 %v17474_v40 }
 0xfc6   :  { %16007 = vmatmul.mubr.msk.bf16.vlgmr.msra.gmra.mrb[72].mxu1 %vm3712_vm7, %v10194_v61 }
 0xfc7   :  { %16010 = vmatprep.mubr.msk.bf16.mxu1 %vm3712_vm7, %v10196_v4  ;;  %16015 = vmatpush3.bf16.msra.mxu1 %v17474_v40 }
 0xfc8   :  { %16016 = vmatprep.subr.bf16.mxu1 %v17475_v42 }
 0xfcb   :  { %16017 = vmatpush3.bf16.msra.mxu1 %v17475_v42 }
 0xfcc   :  { %16018 = vmatprep.subr.bf16.mxu1 %v17476_v21 }
 0xfce   :  { %16011 = vmatmul.mubr.msk.bf16.gmra.mrb[76].mxu1 %vm3712_vm7, %v10195_v50 }
 0xfcf   :  { %16019 = vmatpush3.bf16.msra.mxu1 %v17476_v21  ;;  %16022 = vmatprep.mubr.msk.bf16.mxu1 %vm3712_vm7, %v20078_v31 }
 0xfd0   :  { %16020 = vmatprep.subr.bf16.mxu1 %v17477_v12 }
 0xfd3   :  { %16021 = vmatpush3.bf16.msra.mxu1 %v17477_v12 }
 0xfd4   :  { %16030 = vmatprep.subr.bf16.mxu1 %v17478_v45 }
 0xfd6   :  { %16023 = vmatmul.mubr.msk.bf16.vlgmr.msra.gmra.mrb[72].mxu1 %vm3712_vm7, %v10322_v9 }
 0xfd7   :  { %16026 = vmatprep.mubr.msk.bf16.mxu1 %vm3712_vm7, %v10326_v11  ;;  %16031 = vmatpush3.bf16.msra.mxu1 %v17478_v45 }
 0xfd8   :  { %16032 = vmatprep.subr.bf16.mxu1 %v17479_v43 }
 0xfdb   :  { %16033 = vmatpush3.bf16.msra.mxu1 %v17479_v43 }
 0xfdc   :  { %16034 = vmatprep.subr.bf16.mxu1 %v17480_v52 }
 0xfde   :  { %16027 = vmatmul.mubr.msk.bf16.gmra.mrb[76].mxu1 %vm3712_vm7, %v10325_v53 }
 0xfdf   :  { %16035 = vmatpush3.bf16.msra.mxu1 %v17480_v52  ;;  %16038 = vmatprep.mubr.msk.bf16.mxu1 %vm3712_vm7, %v20081_v56 }
 0xfe0   :  { %16036 = vmatprep.subr.bf16.mxu1 %v17481_v10 }
 0xfe3   :  { %16037 = vmatpush3.bf16.msra.mxu1 %v17481_v10 }
 0xfe4   :  { %16146 = vmatprep.subr.bf16.mxu1 %v17850_v60 }
 0xfe6   :  { %16039 = vmatmul.mubr.msk.bf16.vlgmr.msra.gmra.mrb[72].mxu1 %vm3712_vm7, %v20089_v3 }
 0xfe7   :  { %16042 = vmatprep.mubr.msk.bf16.mxu1 %vm3712_vm7, %v20094_v7 }
 0xfee   :  { %16043 = vmatmul.mubr.msk.bf16.gmra.mrb[76].mxu1 %vm3712_vm7, %v10447_v51 }
 0xfef   :  { %16154 = vmatprep.mubr.msk.bf16.mxu1 %vm17851_vm8, %v17850_v60 }
0x10b9   :  { %v16040_v35 = vpop.f32.mrb[72].mxu1 }
0x10ba   :  { %v10565_v24 = vmul.f32 %v16040_v35, %v13856_v41  ;;  %v10519_v44 = vpop.f32.mrb[73].mxu1 }
0x10bb   :  { %v10563_v59 = vmul.f32 %v13856_v41, %v10519_v44  ;;  %v16041_v58 = vpop.f32.mrb[74].mxu1 }
0x10bc   :  { %v10579_v47 = vadd.f32 %v13857_v15, %v10565_v24  ;;  %v10566_v29 = vmul.f32 %v16041_v58, %v13856_v41  ;;  %v10522_v14 = vpop.f32.mrb[75].mxu1 }
0x10bd   :  { %v10577_v30 = vadd.f32 %v13857_v15, %v10563_v59  ;;  %v10564_v5 = vmul.f32 %v13856_v41, %v10522_v14 }
0x10be   :  { %v10580_v34 = vadd.f32 %v13857_v15, %v10566_v29  ;;  %v10586_v48 = vmax.f32 %v10579_v47, 0.0 }
0x10bf   :  { %v10578_v1 = vadd.f32 %v13857_v15, %v10564_v5  ;;  %v10584_v33 = vmax.f32 %v10577_v30, 0.0 }
0x10c0   :  { %v10587_v49 = vmax.f32 %v10580_v34, 0.0 }
0x10c1   :  { %v10585_v19 = vmax.f32 %v10578_v1, 0.0  ;;  %v16044_v55 = vpop.f32.mrb[76].mxu1 }
0x10c2   :  { %v20139_v50 = vpack.c.bf16 %v10587_v49, %v10586_v48  ;;  %v10569_v8 = vmul.f32 %v16044_v55, %v13856_v41  ;;  %v10535_v13 = vpop.f32.mrb[77].mxu1 }
0x10c3   :  { %v20141_v28 = vpack.c.bf16 %v10585_v19, %v10584_v33  ;;  %v10567_v22 = vmul.f32 %v13856_v41, %v10535_v13  ;;  %v16045_v31 = vpop.f32.mrb[78].mxu1  ;;  %v17488_v33 = vld [vmem:[#allocation11 + $0x10] sm:$0xff]  }
0x10c4   :  { %v10583_v17 = vadd.f32 %v13857_v15, %v10569_v8  ;;  %v10538_v56 = vpop.f32.mrb[79].mxu1  ;;  %v10619_v57 = vshll.u32 %v20139_v50, 16  ;;  %v10623_v51 = vshrl.u32 %v20139_v50, 16  ;;  %v10829_v0 = vrot.slane %v20139_v50, 1 }
0x10c5   :  { %v10581_v37 = vadd.f32 %v13857_v15, %v10567_v22  ;;  %v10568_v61 = vmul.f32 %v13856_v41, %v10538_v56  ;;  %v10612_v4 = vshrl.u32 %v20141_v28, 16  ;;  %v10614_v32 = vshll.u32 %v20141_v28, 16  ;;  %v17490_v56 = vld [vmem:[#allocation11 + $0x40] sm:$0xff]  }
0x10c6   :  { %v10590_v38 = vmax.f32 %v10583_v17, 0.0  ;;  %v10828_v3 = vrot.slane %v20141_v28, 1  ;;  %v10942_v23 = vrot.slane %v10623_v51, 1  ;;  %v10621_v53 = vrot.slane %v10619_v57, 1  ;;  %v17489_v17 = vld [vmem:[#allocation11 + $0x18] sm:$0xff]  }
0x10c7   :  { %v10582_v7 = vadd.f32 %v13857_v15, %v10568_v61  ;;  %v10616_v36 = vrot.slane %v10614_v32, 1  ;;  %v10939_v2 = vrot.slane %v10612_v4, 1  ;;  %v10940_v16 = vrot.slane %v10614_v32, 2  ;;  %v17497_v61 = vld [vmem:[#allocation11 + $0x78] sm:$0xff]   ;;  %v17499_v32 = vld [vmem:[#allocation11 + $0x88] sm:$0xff]  }
0x10c8   :  { %v10602_v26 = vpack.c.bf16 %v10590_v38, %v10590_v38  ;;  %v20150_v54 = vsel %vm601_vm3, %v10828_v3, %v10829_v0  ;;  %v10588_v9 = vmax.f32 %v10581_v37, 0.0  ;;  %v10943_v25 = vrot.slane %v10619_v57, 2  ;;  %v17491_v57 = vld [vmem:[#allocation11 + $0x48] sm:$0xff]   ;;  %v17496_v37 = vld [vmem:[#allocation11 + $0x70] sm:$0xff]   ;;  %v17501_v3 = vld [vmem:[#allocation11 + $0x98] sm:$0xff]  }
0x10c9   :  { %v10589_v11 = vmax.f32 %v10582_v7, 0.0  ;;  %v10617_v46 = vor.u32 %v10616_v36, %v10612_v4  ;;  %v10941_v39 = vor.u32 %v10940_v16, %v10939_v2  ;;  %v11060_v40 = vrot.slane %v20141_v28, 2  ;;  %v17498_v4 = vld [vmem:[#allocation11 + $0x80] sm:$0xff]   ;;  %v17500_v38 = vld [vmem:[#allocation11 + $0x90] sm:$0xff]   ;;  %v17503_v36 = vld [vmem:[#allocation12 + $0x28] sm:$0xff]  }
0x10ca   :  { %v10635_v20 = vshll.u32 %v10602_v26, 16  ;;  %v10950_v6 = vshrl.u32 %v10602_v26, 16  ;;  %v10944_v12 = vor.u32 %v10943_v25, %v10942_v23  ;;  %v11061_v45 = vrot.slane %v20139_v50, 2  ;;  %v17502_v7 = vld [vmem:[#allocation12 + $0x20] sm:$0xff]   ;;  %v17504_v23 = vld [vmem:[#allocation12 + $0x30] sm:$0xff]   ;;  %v17505_v2 = vld [vmem:[#allocation12 + $0x38] sm:$0xff]  }
0x10cb   :  { %v20153_v42 = vpack.c.bf16 %v10589_v11, %v10588_v9  ;;  %v10622_v21 = vsel %vm274_vm1, %v10617_v46, %v10621_v53  ;;  %v10625_v43 = vor.u32 %v10623_v51, %v10621_v53  ;;  %v10833_v52 = vrot.slane %v10602_v26, 1  ;;  %v17492_v51 = vld [vmem:[#allocation11 + $0x50] sm:$0xff]   ;;  %16147 = vmatpush3.bf16.msra.mxu1 %v17502_v7 }
0x10cc   :  { %16055 = vmatmul.mubr.msk.bf16.vlgmr.msra.gmra.mrb[96].mxu0 %vm3712_vm7, %v10622_v21  ;;  %v10952_v10 = vrot.slane %v10950_v6, 1  ;;  %v10953_v62 = vrot.slane %v10635_v20, 2  ;;  %v20164_v24 = vsel %vm765_vm4, %v10941_v39, %v10944_v12  ;;  %v20168_v59 = vsel %vm368_vm0, %v11060_v40, %v11061_v45  ;;  %16148 = vmatprep.subr.bf16.mxu1 %v17850_v60 }
0x10cd   :  { %16067 = vmatpush3.bf16.msra.mxu0 %v17486_v18  ;;  %16058 = vmatprep.mubr.msk.bf16.mxu0 %vm17851_vm8, %v17850_v60  ;;  %v10627_v41 = vshll.u32 %v20153_v42, 16  ;;  %v10631_v35 = vshrl.u32 %v20153_v42, 16  ;;  %v10831_v15 = vrot.slane %v20153_v42, 1  ;;  %v11063_v58 = vrot.slane %v20153_v42, 2 }
0x10ce   :  { %16068 = vmatprep.subr.bf16.mxu0 %v17850_v60  ;;  %v10954_v44 = vor.u32 %v10953_v62, %v10952_v10  ;;  %v11065_v47 = vrot.slane %v10602_v26, 2  ;;  %v10637_v55 = vrot.slane %v10635_v20, 1  ;;  %v13893_v26 = vld [vmem:[%s20557_s7] ss:$0 sm:$0xff] }
0x10cf   :  { %v10629_v29 = vrot.slane %v10627_v41, 1  ;;  %v10832_v14 = vsel %vm601_vm3, %v10829_v0, %v10831_v15  ;;  %v10834_v30 = vsel %vm601_vm3, %v10831_v15, %v10833_v52  ;;  %v10946_v5 = vrot.slane %v10631_v35, 1  ;;  %v17493_v0 = vld [vmem:[#allocation11 + $0x58] sm:$0xff]   ;;  %16149 = vmatpush3.bf16.msra.mxu1 %v17503_v36 }
0x10d0   :  { %v10947_v34 = vrot.slane %v10627_v41, 2  ;;  %v20174_v1 = vsel %vm368_vm0, %v11061_v45, %v11063_v58  ;;  %v20177_v48 = vsel %vm368_vm0, %v11063_v58, %v11065_v47  ;;  %16150 = vmatprep.subr.bf16.mxu1 %v17850_v60 }
0x10d1   :  { %16069 = vmatpush3.bf16.msra.mxu0 %v17487_v63  ;;  %v10630_v49 = vsel %vm274_vm1, %v10625_v43, %v10629_v29  ;;  %v10633_v19 = vor.u32 %v10631_v35, %v10629_v29 }
0x10d2   :  { %16070 = vmatprep.subr.bf16.mxu0 %v17850_v60  ;;  %v10948_v8 = vor.u32 %v10947_v34, %v10946_v5 }
0x10d3   :  { %v10638_v13 = vsel %vm274_vm1, %v10633_v19, %v10637_v55  ;;  %16151 = vmatpush3.bf16.msra.mxu1 %v17504_v23 }
0x10d4   :  { %16059 = vmatmul.mubr.msk.bf16.gmra.mrb[100].mxu0 %vm3712_vm7, %v10630_v49  ;;  %v10949_v22 = vsel %vm765_vm4, %v10944_v12, %v10948_v8  ;;  %v10955_v31 = vsel %vm765_vm4, %v10948_v8, %v10954_v44  ;;  %16152 = vmatprep.subr.bf16.mxu1 %v17850_v60 }
0x10d5   :  { %16071 = vmatpush3.bf16.msra.mxu0 %v17488_v33  ;;  %16062 = vmatprep.mubr.msk.bf16.mxu0 %vm17851_vm8, %v17850_v60 }
0x10d6   :  { %16072 = vmatprep.subr.bf16.mxu0 %v17850_v60 }
0x10d7   :  { %16153 = vmatpush3.bf16.msra.mxu1 %v17505_v2 }
0x10d8   :  { %16166 = vmatprep.subr.bf16.mxu1 %v17850_v60 }
0x10d9   :  { %16073 = vmatpush3.bf16.msra.mxu0 %v17489_v17 }
0x10da   :  { %16086 = vmatprep.subr.bf16.mxu0 %v17850_v60 }
0x10dc   :  { %16063 = vmatmul.mubr.msk.bf16.gmra.mrb[104].mxu0 %vm3712_vm7, %v10638_v13 }
0x10dd   :  { %16074 = vmatprep.mubr.msk.bf16.mxu0 %vm17851_vm8, %v17850_v60 }
0x10e4   :  { %16075 = vmatmul.mubr.msk.bf16.vlgmr.msra.gmra.mrb[96].mxu0 %vm3712_vm7, %v20141_v28  ;;  %v17494_v28 = vld [vmem:[#allocation11 + $0x60] sm:$0xff]  }
0x10e5   :  { %16087 = vmatpush3.bf16.msra.mxu0 %v17490_v56  ;;  %16078 = vmatprep.mubr.msk.bf16.mxu0 %vm17851_vm8, %v17850_v60  ;;  %v17506_v56 = vld [vmem:[#allocation12] sm:$0xff]  }
0x10e6   :  { %16088 = vmatprep.subr.bf16.mxu0 %v17850_v60 }
0x10e9   :  { %16089 = vmatpush3.bf16.msra.mxu0 %v17491_v57 }
0x10ea   :  { %16090 = vmatprep.subr.bf16.mxu0 %v17850_v60 }
0x10ec   :  { %16079 = vmatmul.mubr.msk.bf16.gmra.mrb[100].mxu0 %vm3712_vm7, %v20139_v50  ;;  %v17495_v50 = vld [vmem:[#allocation11 + $0x68] sm:$0xff]  }
0x10ed   :  { %16091 = vmatpush3.bf16.msra.mxu0 %v17492_v51  ;;  %16082 = vmatprep.mubr.msk.bf16.mxu0 %vm17851_vm8, %v17850_v60 }
0x10ee   :  { %16092 = vmatprep.subr.bf16.mxu0 %v17850_v60 }
0x10f1   :  { %16093 = vmatpush3.bf16.msra.mxu0 %v17493_v0 }
0x10f2   :  { %16106 = vmatprep.subr.bf16.mxu0 %v17850_v60 }
0x10f4   :  { %16083 = vmatmul.mubr.msk.bf16.gmra.mrb[104].mxu0 %vm3712_vm7, %v20153_v42 }
0x10f5   :  { %16094 = vmatprep.mubr.msk.bf16.mxu0 %vm17851_vm8, %v17850_v60 }
0x10fc   :  { %16095 = vmatmul.mubr.msk.bf16.vlgmr.msra.gmra.mrb[96].mxu0 %vm3712_vm7, %v20150_v54  ;;  %v13894_v54 = vld [vmem:[%s20558_s10] ss:$0 sm:$0xff] }
0x10fd   :  { %16107 = vmatpush3.bf16.msra.mxu0 %v17494_v28  ;;  %16098 = vmatprep.mubr.msk.bf16.mxu0 %vm17851_vm8, %v17850_v60 }
0x10fe   :  { %16108 = vmatprep.subr.bf16.mxu0 %v17850_v60 }
0x1101   :  { %16109 = vmatpush3.bf16.msra.mxu0 %v17495_v50 }
0x1102   :  { %16110 = vmatprep.subr.bf16.mxu0 %v17850_v60 }
0x1104   :  { %16099 = vmatmul.mubr.msk.bf16.gmra.mrb[100].mxu0 %vm3712_vm7, %v10832_v14 }
0x1105   :  { %16111 = vmatpush3.bf16.msra.mxu0 %v17496_v37  ;;  %16102 = vmatprep.mubr.msk.bf16.mxu0 %vm17851_vm8, %v17850_v60 }
0x1106   :  { %16112 = vmatprep.subr.bf16.mxu0 %v17850_v60 }
0x1109   :  { %16113 = vmatpush3.bf16.msra.mxu0 %v17497_v61 }
0x110a   :  { %16126 = vmatprep.subr.bf16.mxu0 %v17850_v60 }
0x110c   :  { %16103 = vmatmul.mubr.msk.bf16.gmra.mrb[104].mxu0 %vm3712_vm7, %v10834_v30 }
0x110d   :  { %16114 = vmatprep.mubr.msk.bf16.mxu0 %vm17851_vm8, %v17850_v60 }
0x1114   :  { %16115 = vmatmul.mubr.msk.bf16.vlgmr.msra.gmra.mrb[96].mxu0 %vm3712_vm7, %v20164_v24 }
0x1115   :  { %16127 = vmatpush3.bf16.msra.mxu0 %v17498_v4  ;;  %16118 = vmatprep.mubr.msk.bf16.mxu0 %vm17851_vm8, %v17850_v60 }
0x1116   :  { %16128 = vmatprep.subr.bf16.mxu0 %v17850_v60 }
0x1119   :  { %16129 = vmatpush3.bf16.msra.mxu0 %v17499_v32 }
0x111a   :  { %16130 = vmatprep.subr.bf16.mxu0 %v17850_v60 }
0x111c   :  { %16119 = vmatmul.mubr.msk.bf16.gmra.mrb[100].mxu0 %vm3712_vm7, %v10949_v22 }
0x111d   :  { %16131 = vmatpush3.bf16.msra.mxu0 %v17500_v38  ;;  %16122 = vmatprep.mubr.msk.bf16.mxu0 %vm17851_vm8, %v17850_v60  ;;  %v17507_v38 = vld [vmem:[#allocation12 + $0x8] sm:$0xff]  }
0x111e   :  { %16132 = vmatprep.subr.bf16.mxu0 %v17850_v60 }
0x1121   :  { %16133 = vmatpush3.bf16.msra.mxu0 %v17501_v3 }
0x1124   :  { %16123 = vmatmul.mubr.msk.bf16.gmra.mrb[104].mxu0 %vm3712_vm7, %v10955_v31 }
0x1125   :  { %16134 = vmatprep.mubr.msk.bf16.mxu0 %vm17851_vm8, %v17850_v60 }
0x112c   :  { %16135 = vmatmul.mubr.msk.bf16.vlgmr.msra.gmra.mrb[96].mxu0 %vm3712_vm7, %v20168_v59 }
0x112d   :  { %16138 = vmatprep.mubr.msk.bf16.mxu0 %vm17851_vm8, %v17850_v60 }
0x1134   :  { %16139 = vmatmul.mubr.msk.bf16.gmra.mrb[100].mxu0 %vm3712_vm7, %v20174_v1 }
0x1135   :  { %16142 = vmatprep.mubr.msk.bf16.mxu0 %vm17851_vm8, %v17850_v60 }
0x113c   :  { %16143 = vmatmul.mubr.msk.bf16.gmra.mrb[104].mxu0 %vm3712_vm7, %v20177_v48 }
0x11ff   :  { %v11134_v53 = vpop.f32.mrb[96].mxu0 }
0x1200   :  { %v11170_v16 = vmul.f32 %v13893_v26, %v11134_v53  ;;  %v16136_v9 = vpop.f32.mrb[97].mxu0 }
0x1201   :  { %v11137_v11 = vpop.f32.mrb[98].mxu0 }
0x1202   :  { %v11183_v46 = vadd.f32 %v13894_v54, %v11170_v16  ;;  %v11171_v18 = vmul.f32 %v13893_v26, %v11137_v11  ;;  %v16137_v25 = vpop.f32.mrb[99].mxu0 }
0x1204   :  { %v11184_v20 = vadd.f32 %v13894_v54, %v11171_v18  ;;  %v11189_v39 = vmax.f32 %v11183_v46, 0.0 }
0x1206   :  { %v11190_v6 = vmax.f32 %v11184_v20, 0.0  ;;  %v17509_v20 = vld [vmem:[#allocation12 + $0x18] sm:$0xff]  }
0x1207   :  { %v11142_v40 = vpop.f32.mrb[100].mxu0 }
0x1208   :  { %v20251_v42 = vpack.c.bf16 %v11190_v6, %v11189_v39  ;;  %v11172_v21 = vmul.f32 %v13893_v26, %v11142_v40  ;;  %v16140_v12 = vpop.f32.mrb[101].mxu0  ;;  %v17510_v40 = vld [vmem:[#allocation12 + $0x40] sm:$0xff]  }
0x1209   :  { %v11145_v45 = vpop.f32.mrb[102].mxu0  ;;  %v17512_v12 = vld [vmem:[#allocation12 + $0x50] sm:$0xff]  }
0x120a   :  { %v11185_v43 = vadd.f32 %v13894_v54, %v11172_v21  ;;  %v11173_v52 = vmul.f32 %v13893_v26, %v11145_v45  ;;  %v16141_v10 = vpop.f32.mrb[103].mxu0  ;;  %v11215_v62 = vshrl.u32 %v20251_v42, 16  ;;  %v11217_v63 = vshll.u32 %v20251_v42, 16  ;;  %v17511_v21 = vld [vmem:[#allocation12 + $0x48] sm:$0xff]   ;;  %v17513_v45 = vld [vmem:[#allocation12 + $0x58] sm:$0xff]  }
0x120b   :  { %v11425_v19 = vrot.slane %v20251_v42, 1  ;;  %v11649_v8 = vrot.slane %v20251_v42, 2  ;;  %v17517_v10 = vld [vmem:[#allocation12 + $0x78] sm:$0xff]  }
0x120c   :  { %v11186_v41 = vadd.f32 %v13894_v54, %v11173_v52  ;;  %v11534_v35 = vrot.slane %v11215_v62, 1  ;;  %v11535_v15 = vrot.slane %v11217_v63, 2  ;;  %v11191_v24 = vmax.f32 %v11185_v43, 0.0  ;;  %v17515_v43 = vld [vmem:[#allocation12 + $0x68] sm:$0xff]   ;;  %v17516_v52 = vld [vmem:[#allocation12 + $0x70] sm:$0xff]  }
0x120d   :  { %v11219_v30 = vrot.slane %v11217_v63, 1  ;;  %v17519_v63 = vld [vmem:[#allocation12 + $0x88] sm:$0xff]  }
0x120e   :  { %v11192_v44 = vmax.f32 %v11186_v41, 0.0  ;;  %v11536_v58 = vor.u32 %v11535_v15, %v11534_v35  ;;  %v17520_v41 = vld [vmem:[#allocation12 + $0x90] sm:$0xff]   ;;  %v17521_v35 = vld [vmem:[#allocation12 + $0x98] sm:$0xff]   ;;  %v17522_v15 = vld [vmem:[#allocation14 + $0x20] sm:$0xff]  }
0x120f   :  { %v11150_v59 = vpop.f32.mrb[104].mxu0  ;;  %v11220_v31 = vor.u32 %v11219_v30, %v11215_v62  ;;  %v17518_v62 = vld [vmem:[#allocation12 + $0x80] sm:$0xff]   ;;  %16246 = vmatprep.subr.bf16.mxu0 %v17522_v15  ;;  %v17545_v30 = vld [vmem:[%s20561_s5 + $0x58] sm:$0xff]  }
0x1210   :  { %v20255_v47 = vpack.c.bf16 %v11192_v44, %v11191_v24  ;;  %v11174_v29 = vmul.f32 %v13893_v26, %v11150_v59  ;;  %v16144_v14 = vpop.f32.mrb[105].mxu0  ;;  %v17523_v24 = vld [vmem:[#allocation14 + $0x28] sm:$0xff]   ;;  %16247 = vmatpush3.bf16.msra.mxu0 %v17522_v15  ;;  %v17524_v44 = vld [vmem:[#allocation14 + $0x30] sm:$0xff]   ;;  %v17525_v59 = vld [vmem:[#allocation14 + $0x38] sm:$0xff]  }
0x1211   :  { %v11153_v5 = vpop.f32.mrb[106].mxu0  ;;  %16248 = vmatprep.subr.bf16.mxu0 %v17523_v24  ;;  %v17544_v14 = vld [vmem:[%s20561_s5 + $0x50] sm:$0xff]  }
0x1212   :  { %v11187_v34 = vadd.f32 %v13894_v54, %v11174_v29  ;;  %v11175_v1 = vmul.f32 %v13893_v26, %v11153_v5  ;;  %v16145_v48 = vpop.f32.mrb[107].mxu0  ;;  %v11222_v49 = vshll.u32 %v20255_v47, 16  ;;  %v11226_v33 = vshrl.u32 %v20255_v47, 16  ;;  %v17543_v29 = vld [vmem:[%s20561_s5 + $0x48] sm:$0xff]   ;;  %v13930_v5 = vld [vmem:[%s20559_s0] ss:$0 sm:$0xff] }
0x1213   :  { %v11426_v55 = vrot.slane %v20255_v47, 1  ;;  %v11650_v13 = vrot.slane %v20255_v47, 2 }
0x1214   :  { %v11188_v22 = vadd.f32 %v13894_v54, %v11175_v1  ;;  %v11224_v17 = vrot.slane %v11222_v49, 1  ;;  %v11537_v57 = vrot.slane %v11226_v33, 1  ;;  %v11538_v0 = vrot.slane %v11222_v49, 2  ;;  %v17508_v54 = vld [vmem:[#allocation12 + $0x10] sm:$0xff]   ;;  %16249 = vmatpush3.bf16.msra.mxu0 %v17523_v24  ;;  %v13931_v1 = vld [vmem:[%s20560_s16] ss:$0 sm:$0xff] }
0x1215   :  { %v11427_v51 = vsel %vm601_vm3, %v11425_v19, %v11426_v55  ;;  %v20265_v28 = vsel %vm368_vm0, %v11649_v8, %v11650_v13  ;;  %v11193_v50 = vmax.f32 %v11187_v34, 0.0  ;;  %16250 = vmatprep.subr.bf16.mxu0 %v17524_v44 }
0x1216   :  { %v11194_v37 = vmax.f32 %v11188_v22, 0.0  ;;  %v11225_v61 = vsel %vm274_vm1, %v11220_v31, %v11224_v17  ;;  %v11539_v4 = vor.u32 %v11538_v0, %v11537_v57  ;;  %v11228_v26 = vor.u32 %v11226_v33, %v11224_v17 }
0x1217   :  { %16155 = vmatmul.mubr.msk.bf16.vlgmr.msra.gmra.mrb[80].mxu1 %vm3712_vm7, %v11225_v61 }
0x1218   :  { %v20269_v32 = vpack.c.bf16 %v11194_v37, %v11193_v50  ;;  %16167 = vmatpush3.bf16.msra.mxu1 %v17506_v56  ;;  %16158 = vmatprep.mubr.msk.bf16.mxu1 %vm17851_vm8, %v17850_v60  ;;  %v20275_v3 = vsel %vm765_vm4, %v11536_v58, %v11539_v4  ;;  %v20358_v58 = vld [vmem:[#allocation14] sm:$0xff]  }
0x1219   :  { %16168 = vmatprep.subr.bf16.mxu1 %v17850_v60  ;;  %16251 = vmatpush3.bf16.msra.mxu0 %v17524_v44 }
0x121a   :  { %v11230_v7 = vshll.u32 %v20269_v32, 16  ;;  %v11234_v36 = vshrl.u32 %v20269_v32, 16  ;;  %v11428_v23 = vrot.slane %v20269_v32, 1  ;;  %v11652_v2 = vrot.slane %v20269_v32, 2  ;;  %16252 = vmatprep.subr.bf16.mxu0 %v17525_v59 }
0x121c   :  { %16169 = vmatpush3.bf16.msra.mxu1 %v17507_v38  ;;  %v11232_v53 = vrot.slane %v11230_v7, 1  ;;  %v11429_v16 = vsel %vm601_vm3, %v11426_v55, %v11428_v23  ;;  %v11541_v9 = vrot.slane %v11234_v36, 1  ;;  %v11542_v11 = vrot.slane %v11230_v7, 2 }
0x121d   :  { %16170 = vmatprep.subr.bf16.mxu1 %v17850_v60  ;;  %v20286_v46 = vsel %vm368_vm0, %v11650_v13, %v11652_v2  ;;  %16253 = vmatpush3.bf16.msra.mxu0 %v17525_v59 }
0x121e   :  { %v11233_v18 = vsel %vm274_vm1, %v11228_v26, %v11232_v53  ;;  %v20289_v25 = vor.u32 %v11542_v11, %v11541_v9  ;;  %v11236_v6 = vor.u32 %v11234_v36, %v11232_v53  ;;  %16258 = vmatprep.subr.bf16.mxu0 %v20358_v58 }
0x121f   :  { %16159 = vmatmul.mubr.msk.bf16.gmra.mrb[84].mxu1 %vm3712_vm7, %v11233_v18 }
0x1220   :  { %16171 = vmatpush3.bf16.msra.mxu1 %v17508_v54  ;;  %16162 = vmatprep.mubr.msk.bf16.mxu1 %vm17851_vm8, %v17850_v60  ;;  %v11544_v39 = vsel %vm765_vm4, %v11539_v4, %v20289_v25 }
0x1221   :  { %16172 = vmatprep.subr.bf16.mxu1 %v17850_v60 }
0x1224   :  { %16173 = vmatpush3.bf16.msra.mxu1 %v17509_v20 }
0x1225   :  { %16186 = vmatprep.subr.bf16.mxu1 %v17850_v60 }
0x1227   :  { %16163 = vmatmul.mubr.msk.bf16.gmra.mrb[88].mxu1 %vm3712_vm7, %v11236_v6 }
0x1228   :  { %16174 = vmatprep.mubr.msk.bf16.mxu1 %vm17851_vm8, %v17850_v60 }
0x122f   :  { %16175 = vmatmul.mubr.msk.bf16.vlgmr.msra.gmra.mrb[80].mxu1 %vm3712_vm7, %v20251_v42  ;;  %v17514_v42 = vld [vmem:[#allocation12 + $0x60] sm:$0xff]  }
0x1230   :  { %16187 = vmatpush3.bf16.msra.mxu1 %v17510_v40  ;;  %16178 = vmatprep.mubr.msk.bf16.mxu1 %vm17851_vm8, %v17850_v60  ;;  %v17528_v40 = vld [vmem:[#allocation14 + $0x10] sm:$0xff]  }
0x1231   :  { %16188 = vmatprep.subr.bf16.mxu1 %v17850_v60 }
0x1234   :  { %16189 = vmatpush3.bf16.msra.mxu1 %v17511_v21  ;;  %v17529_v21 = vld [vmem:[#allocation14 + $0x18] sm:$0xff]  }
0x1235   :  { %16190 = vmatprep.subr.bf16.mxu1 %v17850_v60 }
0x1237   :  { %16179 = vmatmul.mubr.msk.bf16.gmra.mrb[84].mxu1 %vm3712_vm7, %v20255_v47  ;;  %v17542_v47 = vld [vmem:[%s20561_s5 + $0x40] sm:$0xff]  }
0x1238   :  { %16191 = vmatpush3.bf16.msra.mxu1 %v17512_v12  ;;  %16182 = vmatprep.mubr.msk.bf16.mxu1 %vm17851_vm8, %v17850_v60  ;;  %v17530_v12 = vld [vmem:[#allocation14 + $0x40] sm:$0xff]  }
0x1239   :  { %16192 = vmatprep.subr.bf16.mxu1 %v17850_v60 }
0x123c   :  { %16193 = vmatpush3.bf16.msra.mxu1 %v17513_v45 }
0x123d   :  { %16206 = vmatprep.subr.bf16.mxu1 %v17850_v60 }
0x123f   :  { %16183 = vmatmul.mubr.msk.bf16.gmra.mrb[88].mxu1 %vm3712_vm7, %v20269_v32 }
0x1240   :  { %16194 = vmatprep.mubr.msk.bf16.mxu1 %vm17851_vm8, %v17850_v60 }
0x1247   :  { %16195 = vmatmul.mubr.msk.bf16.vlgmr.msra.gmra.mrb[80].mxu1 %vm3712_vm7, %v11427_v51 }
0x1248   :  { %16207 = vmatpush3.bf16.msra.mxu1 %v17514_v42  ;;  %16198 = vmatprep.mubr.msk.bf16.mxu1 %vm17851_vm8, %v17850_v60 }
0x1249   :  { %16208 = vmatprep.subr.bf16.mxu1 %v17850_v60 }
0x124c   :  { %16209 = vmatpush3.bf16.msra.mxu1 %v17515_v43 }
0x124d   :  { %16210 = vmatprep.subr.bf16.mxu1 %v17850_v60 }
0x124f   :  { %16199 = vmatmul.mubr.msk.bf16.gmra.mrb[84].mxu1 %vm3712_vm7, %v11429_v16 }
0x1250   :  { %16211 = vmatpush3.bf16.msra.mxu1 %v17516_v52  ;;  %16202 = vmatprep.mubr.msk.bf16.mxu1 %vm17851_vm8, %v17850_v60 }
0x1251   :  { %16212 = vmatprep.subr.bf16.mxu1 %v17850_v60 }
0x1254   :  { %16213 = vmatpush3.bf16.msra.mxu1 %v17517_v10  ;;  %v17531_v10 = vld [vmem:[#allocation14 + $0x48] sm:$0xff]  }
0x1255   :  { %16226 = vmatprep.subr.bf16.mxu1 %v17850_v60 }
0x1257   :  { %16203 = vmatmul.mubr.msk.bf16.gmra.mrb[88].mxu1 %vm3712_vm7, %v11428_v23 }
0x1258   :  { %16214 = vmatprep.mubr.msk.bf16.mxu1 %vm17851_vm8, %v17850_v60 }
0x125f   :  { %16215 = vmatmul.mubr.msk.bf16.vlgmr.msra.gmra.mrb[80].mxu1 %vm3712_vm7, %v20275_v3 }
0x1260   :  { %16227 = vmatpush3.bf16.msra.mxu1 %v17518_v62  ;;  %16218 = vmatprep.mubr.msk.bf16.mxu1 %vm17851_vm8, %v17850_v60 }
0x1261   :  { %16228 = vmatprep.subr.bf16.mxu1 %v17850_v60 }
0x1264   :  { %16229 = vmatpush3.bf16.msra.mxu1 %v17519_v63  ;;  %v17532_v63 = vld [vmem:[#allocation14 + $0x50] sm:$0xff]  }
0x1265   :  { %16230 = vmatprep.subr.bf16.mxu1 %v17850_v60 }
0x1267   :  { %16219 = vmatmul.mubr.msk.bf16.gmra.mrb[84].mxu1 %vm3712_vm7, %v11544_v39  ;;  %v17527_v39 = vld [vmem:[#allocation14 + $0x8] sm:$0xff]  }
0x1268   :  { %16231 = vmatpush3.bf16.msra.mxu1 %v17520_v41  ;;  %16222 = vmatprep.mubr.msk.bf16.mxu1 %vm17851_vm8, %v17850_v60  ;;  %v17533_v41 = vld [vmem:[#allocation14 + $0x58] sm:$0xff]  }
0x1269   :  { %16232 = vmatprep.subr.bf16.mxu1 %v17850_v60 }
0x126c   :  { %16233 = vmatpush3.bf16.msra.mxu1 %v17521_v35  ;;  %v17534_v35 = vld [vmem:[#allocation14 + $0x60] sm:$0xff]  }
0x126d   :  { %16306 = vmatprep.subr.bf16.mxu1 %v17850_v60 }
0x126f   :  { %16223 = vmatmul.mubr.msk.bf16.gmra.mrb[88].mxu1 %vm3712_vm7, %v20289_v25 }
0x1270   :  { %16234 = vmatprep.mubr.msk.bf16.mxu1 %vm17851_vm8, %v17850_v60 }
0x1277   :  { %16235 = vmatmul.mubr.msk.bf16.vlgmr.msra.gmra.mrb[80].mxu1 %vm3712_vm7, %v20265_v28 }
0x1278   :  { %16238 = vmatprep.mubr.msk.bf16.mxu1 %vm17851_vm8, %v17850_v60  ;;  %16307 = vmatpush3.bf16.msra.mxu1 %v17542_v47 }
0x1279   :  { %16308 = vmatprep.subr.bf16.mxu1 %v17850_v60 }
0x127c   :  { %16309 = vmatpush3.bf16.msra.mxu1 %v17543_v29  ;;  %v17536_v29 = vld [vmem:[#allocation14 + $0x70] sm:$0xff]  }
0x127d   :  { %16310 = vmatprep.subr.bf16.mxu1 %v17850_v60 }
0x127f   :  { %16239 = vmatmul.mubr.msk.bf16.gmra.mrb[84].mxu1 %vm3712_vm7, %v20286_v46 }
0x1280   :  { %16242 = vmatprep.mubr.msk.bf16.mxu1 %vm17851_vm8, %v17850_v60  ;;  %16311 = vmatpush3.bf16.msra.mxu1 %v17544_v14  ;;  %v17537_v14 = vld [vmem:[#allocation14 + $0x78] sm:$0xff]  }
0x1281   :  { %16312 = vmatprep.subr.bf16.mxu1 %v17850_v60 }
0x1284   :  { %16313 = vmatpush3.bf16.msra.mxu1 %v17545_v30  ;;  %v17538_v30 = vld [vmem:[#allocation14 + $0x80] sm:$0xff]  }
0x1285   :  { %16314 = vmatprep.subr.bf16.mxu1 %v17850_v60 }
0x1287   :  { %16243 = vmatmul.mubr.msk.bf16.gmra.mrb[88].mxu1 %vm3712_vm7, %v11652_v2 }
0x1288   :  { %16322 = vmatprep.mubr.msk.bf16.mxu1 %vm17851_vm8, %v17850_v60 }
0x134a   :  { %v11721_v34 = vpop.f32.mrb[80].mxu1 }
0x134b   :  { %v11757_v48 = vmul.f32 %v13930_v5, %v11721_v34  ;;  %v16236_v49 = vpop.f32.mrb[81].mxu1 }
0x134c   :  { %v11724_v33 = vpop.f32.mrb[82].mxu1  ;;  %v17539_v49 = vld [vmem:[#allocation14 + $0x88] sm:$0xff]  }
0x134d   :  { %v11770_v19 = vadd.f32 %v13931_v1, %v11757_v48  ;;  %v11758_v55 = vmul.f32 %v13930_v5, %v11724_v33  ;;  %v16237_v8 = vpop.f32.mrb[83].mxu1 }
0x134f   :  { %v11776_v13 = vmax.f32 %v11770_v19, 0.0  ;;  %v11771_v22 = vadd.f32 %v13931_v1, %v11758_v55  ;;  %v17540_v19 = vld [vmem:[#allocation14 + $0x90] sm:$0xff]   ;;  %v17541_v55 = vld [vmem:[#allocation14 + $0x98] sm:$0xff]  }
0x1351   :  { %11782 = vst.msk [vmem:[#allocation2] sm:$0xff] %vm3712_vm7, %v11776_v13  ;;  %v11777_v31 = vmax.f32 %v11771_v22, 0.0  ;;  %v17546_v22 = vld [vmem:[%s20561_s5 + $0x60] sm:$0xff]  }
0x1352   :  { %v11729_v17 = vpop.f32.mrb[84].mxu1  ;;  %16315 = vmatpush3.bf16.msra.mxu1 %v17546_v22  ;;  %v17569_v22 = vld [vmem:[%s20561_s5 + $0xd8] sm:$0xff]  }
0x1353   :  { %11783 = vst.msk [vmem:[#allocation2 + $0x8] sm:$0xff] %vm3712_vm7, %v11777_v31  ;;  %v11759_v56 = vmul.f32 %v13930_v5, %v11729_v17  ;;  %v16240_v57 = vpop.f32.mrb[85].mxu1  ;;  %v17547_v31 = vld [vmem:[%s20561_s5 + $0x68] sm:$0xff]   ;;  %16316 = vmatprep.subr.bf16.mxu1 %v17850_v60  ;;  %v17548_v17 = vld [vmem:[%s20561_s5 + $0x70] sm:$0xff]  }
0x1354   :  { %v11732_v51 = vpop.f32.mrb[86].mxu1  ;;  %v13962_v57 = vld [vmem:[%s20562_s18] ss:$0 sm:$0xff] }
0x1355   :  { %v11772_v0 = vadd.f32 %v13931_v1, %v11759_v56  ;;  %v11760_v28 = vmul.f32 %v13930_v5, %v11732_v51  ;;  %v16241_v50 = vpop.f32.mrb[87].mxu1  ;;  %v17549_v56 = vld [vmem:[%s20561_s5 + $0x78] sm:$0xff]  }
0x1356   :  { %16317 = vmatpush3.bf16.msra.mxu1 %v17547_v31  ;;  %v17570_v31 = vld [vmem:[%s20561_s5 + $0xe0] sm:$0xff]  }
0x1357   :  { %v11778_v37 = vmax.f32 %v11772_v0, 0.0  ;;  %v11773_v61 = vadd.f32 %v13931_v1, %v11760_v28  ;;  %16318 = vmatprep.subr.bf16.mxu1 %v17850_v60  ;;  %v13963_v0 = vld [vmem:[%s20563_s9] ss:$0 sm:$0xff] }
0x1359   :  { %11784 = vst.msk [vmem:[#allocation2 + $0x10] sm:$0xff] %vm3712_vm7, %v11778_v37  ;;  %v11779_v4 = vmax.f32 %v11773_v61, 0.0 }
0x135a   :  { %v11737_v32 = vpop.f32.mrb[88].mxu1  ;;  %v11791_v16 = vld [vmem:[#allocation2 + $0x1] ss:$2 sm:$0xff]  ;;  %v11788_v20 = vld [vmem:[#allocation2] ss:$2 sm:$0xff]  ;;  %16319 = vmatpush3.bf16.msra.mxu1 %v17548_v17 }
0x135b   :  { %11785 = vst.msk [vmem:[#allocation2 + $0x18] sm:$0xff] %vm3712_vm7, %v11779_v4  ;;  %v11761_v38 = vmul.f32 %v13930_v5, %v11737_v32  ;;  %v16244_v3 = vpop.f32.mrb[89].mxu1  ;;  %16320 = vmatprep.subr.bf16.mxu1 %v17850_v60  ;;  %v17571_v17 = vld [vmem:[%s20561_s5 + $0xe8] sm:$0xff]  }
0x135c   :  { %v11740_v7 = vpop.f32.mrb[90].mxu1 }
0x135d   :  { %v11774_v36 = vadd.f32 %v13931_v1, %v11761_v38  ;;  %v11762_v23 = vmul.f32 %v13930_v5, %v11740_v7  ;;  %v16245_v2 = vpop.f32.mrb[91].mxu1 }
0x135e   :  { %16321 = vmatpush3.bf16.msra.mxu1 %v17549_v56  ;;  %v17572_v56 = vld [vmem:[%s20561_s5 + $0xf0] sm:$0xff]  }
0x135f   :  { %v11780_v26 = vmax.f32 %v11774_v36, 0.0  ;;  %v11775_v53 = vadd.f32 %v13931_v1, %v11762_v23  ;;  %16326 = vmatprep.subr.bf16.mxu1 %v17850_v60 }
0x1360   :  { %v11794_v52 = vld [vmem:[#allocation2 + $0x2] ss:$2 sm:$0xff]  ;;  %v11797_v59 = vld [vmem:[#allocation2 + $0x3] ss:$2 sm:$0xff] }
0x1361   :  { %11786 = vst.msk [vmem:[#allocation2 + $0x20] sm:$0xff] %vm3712_vm7, %v11780_v26  ;;  %v11781_v54 = vmax.f32 %v11775_v53, 0.0  ;;  %v11800_v48 = vld [vmem:[#allocation2 + $0x4] ss:$2 sm:$0xff] }
0x1362   :  { %v11792_v9 = vld [vmem:[#allocation2 + $0x11] ss:$2 sm:$0xff]  ;;  %v11789_v46 = vld [vmem:[#allocation2 + $0x10] ss:$2 sm:$0xff] }
0x1363   :  { %11787 = vst.msk [vmem:[#allocation2 + $0x28] sm:$0xf] %vm5505_vm9, %v11781_v54  ;;  %v11813_v11 = vpack.c.bf16 %v11792_v9, %v11791_v16  ;;  %v11803_v6 = vpack.c.bf16 %v11789_v46, %v11788_v20 }
0x1365   :  { %16254 = vmatprep.mubr.msk.bf16.mxu0 %vm3712_vm7, %v11813_v11 }
0x1368   :  { %v11793_v18 = vld [vmem:[#allocation2 + $0x21] ss:$2 sm:$0xf]  ;;  %v11790_v45 = vld [vmem:[#allocation2 + $0x20] ss:$2 sm:$0xf] }
0x1369   :  { %v11814_v25 = vpack.c.bf16 %v11793_v18, %v11793_v18  ;;  %v11795_v42 = vld [vmem:[#allocation2 + $0x12] ss:$2 sm:$0xff]  ;;  %v11804_v43 = vpack.c.bf16 %v11790_v45, %v11790_v45  ;;  %v11798_v24 = vld [vmem:[#allocation2 + $0x13] ss:$2 sm:$0xff] }
0x136a   :  { %v11979_v62 = vpack.c.bf16 %v11795_v42, %v11794_v52  ;;  %v11796_v15 = vld [vmem:[#allocation2 + $0x22] ss:$2 sm:$0xf]  ;;  %v12070_v47 = vpack.c.bf16 %v11798_v24, %v11797_v59  ;;  %v11799_v5 = vld [vmem:[#allocation2 + $0x23] ss:$2 sm:$0xf] }
0x136b   :  { %16255 = vmatmul.mubr.msk.bf16.vlgmr.msra.gmra.mrb[108].mxu0 %vm3712_vm7, %v11814_v25  ;;  %v11980_v44 = vpack.c.bf16 %v11796_v15, %v11796_v15  ;;  %v11801_v34 = vld [vmem:[#allocation2 + $0x14] ss:$2 sm:$0xff]  ;;  %v12071_v1 = vpack.c.bf16 %v11799_v5, %v11799_v5  ;;  %v11802_v8 = vld [vmem:[#allocation2 + $0x24] ss:$2 sm:$0xf] }
0x136c   :  { %16259 = vmatpush3.bf16.msra.mxu0 %v20358_v58  ;;  %16266 = vmatprep.mubr.msk.bf16.mxu0 %vm3712_vm7, %v11803_v6  ;;  %v17535_v58 = vld [vmem:[#allocation14 + $0x68] sm:$0xff]   ;;  %v12161_v33 = vpack.c.bf16 %v11801_v34, %v11800_v48  ;;  %v12162_v13 = vpack.c.bf16 %v11802_v8, %v11802_v8  ;;  %v17582_v15 = vld [vmem:[#allocation15] sm:$0xff]   ;;  %v17553_v59 = vld [vmem:[%s20561_s5 + $0x18] sm:$0xff]  }
0x136d   :  { %16260 = vmatprep.subr.bf16.mxu0 %v17527_v39  ;;  %v17551_v24 = vld [vmem:[%s20561_s5 + $0x8] sm:$0xff]   ;;  %v17560_v34 = vld [vmem:[%s20561_s5 + $0x90] sm:$0xff]   ;;  %v17562_v48 = vld [vmem:[%s20561_s5 + $0xa0] sm:$0xff]  }
0x136e   :  { %v17559_v5 = vld [vmem:[%s20561_s5 + $0x88] sm:$0xff]  }
0x136f   :  { %v17567_v8 = vld [vmem:[%s20561_s5 + $0xc8] sm:$0xff]  }
0x1370   :  { %16261 = vmatpush3.bf16.msra.mxu0 %v17527_v39 }
0x1371   :  { %16262 = vmatprep.subr.bf16.mxu0 %v17528_v40 }
0x1374   :  { %16263 = vmatpush3.bf16.msra.mxu0 %v17528_v40 }
0x1375   :  { %16264 = vmatprep.subr.bf16.mxu0 %v17529_v21 }
0x1378   :  { %16265 = vmatpush3.bf16.msra.mxu0 %v17529_v21 }
0x1379   :  { %16270 = vmatprep.subr.bf16.mxu0 %v17530_v12 }
0x137b   :  { %16267 = vmatmul.mubr.msk.bf16.vlgmr.msra.gmra.mrb[108].mxu0 %vm3712_vm7, %v11804_v43 }
0x137c   :  { %16271 = vmatpush3.bf16.msra.mxu0 %v17530_v12  ;;  %16278 = vmatprep.mubr.msk.bf16.mxu0 %vm3712_vm7, %v11979_v62  ;;  %v17550_v62 = vld [vmem:[%s20561_s5] sm:$0xff]  }
0x137d   :  { %16272 = vmatprep.subr.bf16.mxu0 %v17531_v10 }
0x1380   :  { %16273 = vmatpush3.bf16.msra.mxu0 %v17531_v10 }
0x1381   :  { %16274 = vmatprep.subr.bf16.mxu0 %v17532_v63 }
0x1384   :  { %16275 = vmatpush3.bf16.msra.mxu0 %v17532_v63 }
0x1385   :  { %16276 = vmatprep.subr.bf16.mxu0 %v17533_v41 }
0x1388   :  { %16277 = vmatpush3.bf16.msra.mxu0 %v17533_v41 }
0x1389   :  { %16282 = vmatprep.subr.bf16.mxu0 %v17534_v35 }
0x138b   :  { %16279 = vmatmul.mubr.msk.bf16.vlgmr.msra.gmra.mrb[108].mxu0 %vm3712_vm7, %v11980_v44  ;;  %v17552_v44 = vld [vmem:[%s20561_s5 + $0x10] sm:$0xff]  }
0x138c   :  { %16283 = vmatpush3.bf16.msra.mxu0 %v17534_v35  ;;  %16290 = vmatprep.mubr.msk.bf16.mxu0 %vm3712_vm7, %v12070_v47  ;;  %v17555_v47 = vld [vmem:[%s20561_s5 + $0x28] sm:$0xff]  }
0x138d   :  { %16284 = vmatprep.subr.bf16.mxu0 %v17535_v58 }
0x1390   :  { %16285 = vmatpush3.bf16.msra.mxu0 %v17535_v58  ;;  %v17554_v58 = vld [vmem:[%s20561_s5 + $0x20] sm:$0xff]  }
0x1391   :  { %16286 = vmatprep.subr.bf16.mxu0 %v17536_v29 }
0x1394   :  { %16287 = vmatpush3.bf16.msra.mxu0 %v17536_v29  ;;  %v17556_v29 = vld [vmem:[%s20561_s5 + $0x30] sm:$0xff]  }
0x1395   :  { %16288 = vmatprep.subr.bf16.mxu0 %v17537_v14 }
0x1398   :  { %16289 = vmatpush3.bf16.msra.mxu0 %v17537_v14  ;;  %v17557_v14 = vld [vmem:[%s20561_s5 + $0x38] sm:$0xff]  }
0x1399   :  { %16294 = vmatprep.subr.bf16.mxu0 %v17538_v30 }
0x139b   :  { %16291 = vmatmul.mubr.msk.bf16.vlgmr.msra.gmra.mrb[108].mxu0 %vm3712_vm7, %v12071_v1  ;;  %v17561_v1 = vld [vmem:[%s20561_s5 + $0x98] sm:$0xff]  }
0x139c   :  { %16295 = vmatpush3.bf16.msra.mxu0 %v17538_v30  ;;  %16302 = vmatprep.mubr.msk.bf16.mxu0 %vm3712_vm7, %v12161_v33  ;;  %v17558_v30 = vld [vmem:[%s20561_s5 + $0x80] sm:$0xff]   ;;  %v17564_v33 = vld [vmem:[%s20561_s5 + $0xb0] sm:$0xff]  }
0x139d   :  { %16296 = vmatprep.subr.bf16.mxu0 %v17539_v49 }
0x13a0   :  { %16297 = vmatpush3.bf16.msra.mxu0 %v17539_v49  ;;  %v17563_v49 = vld [vmem:[%s20561_s5 + $0xa8] sm:$0xff]  }
0x13a1   :  { %16298 = vmatprep.subr.bf16.mxu0 %v17540_v19 }
0x13a4   :  { %16299 = vmatpush3.bf16.msra.mxu0 %v17540_v19  ;;  %v17565_v19 = vld [vmem:[%s20561_s5 + $0xb8] sm:$0xff]  }
0x13a5   :  { %16300 = vmatprep.subr.bf16.mxu0 %v17541_v55 }
0x13a8   :  { %16301 = vmatpush3.bf16.msra.mxu0 %v17541_v55  ;;  %v17566_v55 = vld [vmem:[%s20561_s5 + $0xc0] sm:$0xff]  }
0x13a9   :  { %16406 = vmatprep.subr.bf16.mxu0 %v17850_v60 }
0x13ab   :  { %16303 = vmatmul.mubr.msk.bf16.vlgmr.msra.gmra.mrb[108].mxu0 %vm3712_vm7, %v12162_v13  ;;  %v17568_v13 = vld [vmem:[%s20561_s5 + $0xd0] sm:$0xff]  }
0x13ac   :  { %16422 = vmatprep.mubr.msk.bf16.mxu0 %vm17851_vm8, %v17850_v60  ;;  %16407 = vmatpush3.bf16.msra.mxu0 %v17582_v15 }
0x13ad   :  { %16408 = vmatprep.subr.bf16.mxu0 %v17850_v60 }
0x147e   :  { %v16304_v51 = vpop.f32.mrb[108].mxu0 }
0x147f   :  { %v12261_v28 = vmul.f32 %v16304_v51, %v13962_v57  ;;  %v12235_v50 = vpop.f32.mrb[109].mxu0  ;;  %v17574_v51 = vld [vmem:[%s20561_s5 + $0x100] sm:$0xff]  }
0x1480   :  { %v12259_v37 = vmul.f32 %v13962_v57, %v12235_v50  ;;  %v16305_v61 = vpop.f32.mrb[110].mxu0  ;;  %v17577_v50 = vld [vmem:[%s20561_s5 + $0x118] sm:$0xff]  }
0x1481   :  { %v12271_v4 = vadd.f32 %v13963_v0, %v12261_v28  ;;  %v12238_v32 = vpop.f32.mrb[111].mxu0  ;;  %v17576_v28 = vld [vmem:[%s20561_s5 + $0x110] sm:$0xff]   ;;  %v17579_v61 = vld [vmem:[%s20561_s5 + $0x128] sm:$0xff]  }
0x1482   :  { %v12269_v38 = vadd.f32 %v13963_v0, %v12259_v37  ;;  %v12260_v3 = vmul.f32 %v13962_v57, %v12238_v32  ;;  %v17573_v57 = vld [vmem:[%s20561_s5 + $0xf8] sm:$0xff]   ;;  %v17578_v37 = vld [vmem:[%s20561_s5 + $0x120] sm:$0xff]  }
0x1483   :  { %v12274_v7 = vmax.f32 %v12271_v4, 0.0  ;;  %v17580_v4 = vld [vmem:[%s20561_s5 + $0x130] sm:$0xff]   ;;  %v17581_v32 = vld [vmem:[%s20561_s5 + $0x138] sm:$0xff]  }
0x1484   :  { %v12270_v36 = vadd.f32 %v13963_v0, %v12260_v3  ;;  %v12272_v2 = vmax.f32 %v12269_v38, 0.0  ;;  %v17575_v0 = vld [vmem:[%s20561_s5 + $0x108] sm:$0xff]   ;;  %v17584_v3 = vld [vmem:[#allocation15 + $0x10] sm:$0xff]  }
0x1485   :  { %v12292_v23 = vpack.c.bf16 %v12274_v7, %v12274_v7  ;;  %v17583_v38 = vld [vmem:[#allocation15 + $0x8] sm:$0xff]   ;;  %v17585_v7 = vld [vmem:[#allocation15 + $0x18] sm:$0xff]  }
0x1486   :  { %v12273_v26 = vmax.f32 %v12270_v36, 0.0  ;;  %16409 = vmatpush3.bf16.msra.mxu0 %v17583_v38  ;;  %v17586_v36 = vld [vmem:[#allocation15 + $0x20] sm:$0xff]  }
0x1487   :  { %v12317_v53 = vshll.u32 %v12292_v23, 16  ;;  %v12632_v54 = vshrl.u32 %v12292_v23, 16  ;;  %v12519_v9 = vrot.slane %v12292_v23, 1  ;;  %v12747_v40 = vrot.slane %v12292_v23, 2  ;;  %16410 = vmatprep.subr.bf16.mxu0 %v17850_v60  ;;  %v17587_v23 = vld [vmem:[#allocation15 + $0x28] sm:$0xff]  }
0x1488   :  { %v12275_v16 = vpack.c.bf16 %v12273_v26, %v12272_v2  ;;  %v17588_v2 = vld [vmem:[#allocation15 + $0x30] sm:$0xff]   ;;  %v17589_v26 = vld [vmem:[#allocation15 + $0x38] sm:$0xff]  }
0x1489   :  { %v12634_v11 = vrot.slane %v12632_v54, 1  ;;  %v12635_v46 = vrot.slane %v12317_v53, 2  ;;  %v12319_v10 = vrot.slane %v12317_v53, 1  ;;  %v14068_v53 = vld [vmem:[%s20564_s13] ss:$0 sm:$0xff]  ;;  %v6589_v54 = vrot.slane %v19767_v27, 4 }
0x148a   :  { %v12310_v18 = vshrl.u32 %v12275_v16, 16  ;;  %v12312_v25 = vshll.u32 %v12275_v16, 16  ;;  %v12518_v20 = vrot.slane %v12275_v16, 1  ;;  %v12746_v39 = vrot.slane %v12275_v16, 2  ;;  %16411 = vmatpush3.bf16.msra.mxu0 %v17584_v3 }
0x148b   :  { %v12636_v6 = vor.u32 %v12635_v46, %v12634_v11  ;;  %16412 = vmatprep.subr.bf16.mxu0 %v17850_v60 }
0x148c   :  { %v12314_v21 = vrot.slane %v12312_v25, 1  ;;  %v20402_v12 = vsel %vm601_vm3, %v12518_v20, %v12519_v9  ;;  %v12629_v45 = vrot.slane %v12310_v18, 1  ;;  %v12630_v42 = vrot.slane %v12312_v25, 2  ;;  %v14069_v9 = vld [vmem:[%s20565_s17] ss:$0 sm:$0xff] }
0x148d   :  { %v20405_v43 = vsel %vm368_vm0, %v12746_v39, %v12747_v40  ;;  %v6590_v25 = vadd.f32 %v6589_v54, %v19767_v27 }
0x148e   :  { %v12315_v52 = vor.u32 %v12314_v21, %v12310_v18  ;;  %v12631_v63 = vor.u32 %v12630_v42, %v12629_v45  ;;  %16413 = vmatpush3.bf16.msra.mxu0 %v17585_v7 }
0x148f   :  { %16414 = vmatprep.subr.bf16.mxu0 %v17850_v60  ;;  %v6591_v21 = vrot.slane %v6590_v25, 2 }
0x1490   :  { %v12320_v41 = vsel %vm274_vm1, %v12315_v52, %v12319_v10  ;;  %v20410_v35 = vsel %vm765_vm4, %v12631_v63, %v12636_v6 }
0x1491   :  { %16323 = vmatmul.mubr.bf16.vlgmr.msra.gmra.mrb[92].mxu1 %v12320_v41 }
0x1492   :  { %16327 = vmatpush3.bf16.msra.mxu1 %v17550_v62  ;;  %16342 = vmatprep.mubr.msk.bf16.mxu1 %vm17851_vm8, %v17850_v60 }
0x1493   :  { %16328 = vmatprep.subr.bf16.mxu1 %v17850_v60  ;;  %16415 = vmatpush3.bf16.msra.mxu0 %v17586_v36 }
0x1494   :  { %16416 = vmatprep.subr.bf16.mxu0 %v17850_v60 }
0x1496   :  { %16329 = vmatpush3.bf16.msra.mxu1 %v17551_v24 }
0x1497   :  { %16330 = vmatprep.subr.bf16.mxu1 %v17850_v60  ;;  %16417 = vmatpush3.bf16.msra.mxu0 %v17587_v23 }
0x1498   :  { %16418 = vmatprep.subr.bf16.mxu0 %v17850_v60 }
0x149a   :  { %16331 = vmatpush3.bf16.msra.mxu1 %v17552_v44 }
0x149b   :  { %16332 = vmatprep.subr.bf16.mxu1 %v17850_v60  ;;  %16419 = vmatpush3.bf16.msra.mxu0 %v17588_v2 }
0x149c   :  { %16420 = vmatprep.subr.bf16.mxu0 %v17850_v60 }
0x149e   :  { %16333 = vmatpush3.bf16.msra.mxu1 %v17553_v59 }
0x149f   :  { %16334 = vmatprep.subr.bf16.mxu1 %v17850_v60  ;;  %16421 = vmatpush3.bf16.msra.mxu0 %v17589_v26 }
0x14a0   :  { %16426 = vmatprep.subr.bf16.mxu0 %v17850_v60 }
0x14a2   :  { %16335 = vmatpush3.bf16.msra.mxu1 %v17554_v58  ;;  %v17590_v58 = vld [vmem:[%s18011_s14] sm:$0xff]  }
0x14a3   :  { %16336 = vmatprep.subr.bf16.mxu1 %v17850_v60 }
0x14a6   :  { %16337 = vmatpush3.bf16.msra.mxu1 %v17555_v47 }
0x14a7   :  { %16338 = vmatprep.subr.bf16.mxu1 %v17850_v60 }
0x14aa   :  { %16339 = vmatpush3.bf16.msra.mxu1 %v17556_v29  ;;  %v17591_v29 = vld [vmem:[%s18011_s14 + $0x8] sm:$0xff]  }
0x14ab   :  { %16340 = vmatprep.subr.bf16.mxu1 %v17850_v60 }
0x14ae   :  { %16341 = vmatpush3.bf16.msra.mxu1 %v17557_v14  ;;  %v17592_v14 = vld [vmem:[%s18011_s14 + $0x10] sm:$0xff]  }
0x14af   :  { %16346 = vmatprep.subr.bf16.mxu1 %v17850_v60 }
0x14b1   :  { %16343 = vmatmul.mubr.bf16.vlgmr.msra.gmra.mrb[92].mxu1 %v12275_v16 }
0x14b2   :  { %16347 = vmatpush3.bf16.msra.mxu1 %v17558_v30  ;;  %16362 = vmatprep.mubr.msk.bf16.mxu1 %vm17851_vm8, %v17850_v60  ;;  %v17593_v30 = vld [vmem:[%s18011_s14 + $0x18] sm:$0xff]  }
0x14b3   :  { %16348 = vmatprep.subr.bf16.mxu1 %v17850_v60 }
0x14b6   :  { %16349 = vmatpush3.bf16.msra.mxu1 %v17559_v5  ;;  %v17594_v5 = vld [vmem:[%s18011_s14 + $0x20] sm:$0xff]  }
0x14b7   :  { %16350 = vmatprep.subr.bf16.mxu1 %v17850_v60 }
0x14ba   :  { %16351 = vmatpush3.bf16.msra.mxu1 %v17560_v34  ;;  %v17595_v34 = vld [vmem:[%s18011_s14 + $0x28] sm:$0xff]  }
0x14bb   :  { %16352 = vmatprep.subr.bf16.mxu1 %v17850_v60 }
0x14be   :  { %16353 = vmatpush3.bf16.msra.mxu1 %v17561_v1  ;;  %v17596_v1 = vld [vmem:[%s18011_s14 + $0x30] sm:$0xff]  }
0x14bf   :  { %16354 = vmatprep.subr.bf16.mxu1 %v17850_v60 }
0x14c2   :  { %16355 = vmatpush3.bf16.msra.mxu1 %v17562_v48  ;;  %v17597_v48 = vld [vmem:[%s18011_s14 + $0x38] sm:$0xff]  }
0x14c3   :  { %16356 = vmatprep.subr.bf16.mxu1 %v17850_v60 }
0x14c6   :  { %16357 = vmatpush3.bf16.msra.mxu1 %v17563_v49  ;;  %v14070_v49 = vld [vmem:[%s18006_s4] ss:$0 sm:$0xff] }
0x14c7   :  { %16358 = vmatprep.subr.bf16.mxu1 %v17850_v60 }
0x14ca   :  { %16359 = vmatpush3.bf16.msra.mxu1 %v17564_v33 }
0x14cb   :  { %16360 = vmatprep.subr.bf16.mxu1 %v17850_v60 }
0x14ce   :  { %16361 = vmatpush3.bf16.msra.mxu1 %v17565_v19 }
0x14cf   :  { %16366 = vmatprep.subr.bf16.mxu1 %v17850_v60 }
0x14d1   :  { %16363 = vmatmul.mubr.bf16.vlgmr.msra.gmra.mrb[92].mxu1 %v20402_v12 }
0x14d2   :  { %16367 = vmatpush3.bf16.msra.mxu1 %v17566_v55  ;;  %16382 = vmatprep.mubr.msk.bf16.mxu1 %vm17851_vm8, %v17850_v60 }
0x14d3   :  { %16368 = vmatprep.subr.bf16.mxu1 %v17850_v60 }
0x14d6   :  { %16369 = vmatpush3.bf16.msra.mxu1 %v17567_v8 }
0x14d7   :  { %16370 = vmatprep.subr.bf16.mxu1 %v17850_v60 }
0x14da   :  { %16371 = vmatpush3.bf16.msra.mxu1 %v17568_v13 }
0x14db   :  { %16372 = vmatprep.subr.bf16.mxu1 %v17850_v60 }
0x14de   :  { %16373 = vmatpush3.bf16.msra.mxu1 %v17569_v22 }
0x14df   :  { %16374 = vmatprep.subr.bf16.mxu1 %v17850_v60 }
0x14e2   :  { %16375 = vmatpush3.bf16.msra.mxu1 %v17570_v31  ;;  %v14079_v31 = vld [vmem:[%s18016_s24] ss:$0 sm:$0xff] }
0x14e3   :  { %16376 = vmatprep.subr.bf16.mxu1 %v17850_v60 }
0x14e6   :  { %16377 = vmatpush3.bf16.msra.mxu1 %v17571_v17 }
0x14e7   :  { %16378 = vmatprep.subr.bf16.mxu1 %v17850_v60 }
0x14ea   :  { %16379 = vmatpush3.bf16.msra.mxu1 %v17572_v56 }
0x14eb   :  { %16380 = vmatprep.subr.bf16.mxu1 %v17850_v60 }
0x14ee   :  { %16381 = vmatpush3.bf16.msra.mxu1 %v17573_v57 }
0x14ef   :  { %16386 = vmatprep.subr.bf16.mxu1 %v17850_v60 }
0x14f1   :  { %16383 = vmatmul.mubr.bf16.vlgmr.msra.gmra.mrb[92].mxu1 %v20410_v35 }
0x14f2   :  { %16387 = vmatpush3.bf16.msra.mxu1 %v17574_v51  ;;  %16402 = vmatprep.mubr.msk.bf16.mxu1 %vm17851_vm8, %v17850_v60 }
0x14f3   :  { %16388 = vmatprep.subr.bf16.mxu1 %v17850_v60 }
0x14f6   :  { %16389 = vmatpush3.bf16.msra.mxu1 %v17575_v0 }
0x14f7   :  { %16390 = vmatprep.subr.bf16.mxu1 %v17850_v60 }
0x14fa   :  { %16391 = vmatpush3.bf16.msra.mxu1 %v17576_v28 }
0x14fb   :  { %16392 = vmatprep.subr.bf16.mxu1 %v17850_v60 }
0x14fe   :  { %16393 = vmatpush3.bf16.msra.mxu1 %v17577_v50 }
0x14ff   :  { %16394 = vmatprep.subr.bf16.mxu1 %v17850_v60 }
0x1502   :  { %16395 = vmatpush3.bf16.msra.mxu1 %v17578_v37 }
0x1503   :  { %16396 = vmatprep.subr.bf16.mxu1 %v17850_v60 }
0x1506   :  { %16397 = vmatpush3.bf16.msra.mxu1 %v17579_v61 }
0x1507   :  { %16398 = vmatprep.subr.bf16.mxu1 %v17850_v60 }
0x150a   :  { %16399 = vmatpush3.bf16.msra.mxu1 %v17580_v4 }
0x150b   :  { %16400 = vmatprep.subr.bf16.mxu1 %v17850_v60 }
0x150e   :  { %16401 = vmatpush3.bf16.msra.mxu1 %v17581_v32 }
0x1511   :  { %16403 = vmatmul.mubr.bf16.vlgmr.msra.gmra.mrb[92].mxu1 %v20405_v43  ;;  %v6592_v43 = vadd.f32 %v6591_v21, %v6590_v25 }
0x1513   :  { %v6593_v62 = vrot.slane %v6592_v43, 1 }
0x1515   :  { %v6594_v35 = vadd.f32 %v6593_v62, %v6592_v43 }
0x1517   :  { %v6596_v24 = vmul.f32 0.0625, %v6594_v35 }
0x15e4   :  { %v12832_v16 = vpop.f32.mrb[92].mxu1 }
0x15e5   :  { %v12848_v11 = vmul.f32 %v14068_v53, %v12832_v16  ;;  %v16404_v46 = vpop.f32.mrb[93].mxu1 }
0x15e6   :  { %v12835_v18 = vpop.f32.mrb[94].mxu1 }
0x15e7   :  { %v12857_v20 = vadd.f32 %v14069_v9, %v12848_v11  ;;  %v12849_v39 = vmul.f32 %v14068_v53, %v12835_v18  ;;  %v16405_v6 = vpop.f32.mrb[95].mxu1 }
0x15e9   :  { %v12858_v40 = vadd.f32 %v14069_v9, %v12849_v39  ;;  %v12859_v12 = vmax.f32 %v12857_v20, 0.0 }
0x15eb   :  { %v12860_v45 = vmax.f32 %v12858_v40, 0.0 }
0x15ed   :  { %v12861_v42 = vadd.f32 %v12860_v45, %v12859_v12 }
0x15ef   :  { %v12862_v52 = vrot.slane %v12861_v42, 4 }
0x15f1   :  { %v12863_v10 = vadd.f32 %v12862_v52, %v12861_v42 }
0x15f3   :  { %v12864_v63 = vrot.slane %v12863_v10, 2 }
0x15f5   :  { %v12865_v41 = vadd.f32 %v12864_v63, %v12863_v10 }
0x15f7   :  { %v12866_v15 = vrot.slane %v12865_v41, 1 }
0x15f9   :  { %v12867_v27 = vadd.f32 %v12866_v15, %v12865_v41 }
0x15fb   :  { %v12868_v44 = vmul.f32 0.0625, %v12867_v27 }
0x15fd   :  { %v12870_v59 = vsel %vm12869_vm10, %v6596_v24, %v12868_v44 }
0x15fe   :  { %v12871_v47 = vpack.c.bf16 %v12870_v59, %v12870_v59 }
0x1600   :  { %16423 = vmatmul.mubr.bf16.vlgmr.msra.gmra.mrb[112].mxu0 %v12871_v47 }
0x1601   :  { %16427 = vmatpush3.bf16.msra.mxu0 %v17590_v58  ;;  %16442 = vmatprep.mubr.msk.bf16.mxu0 %vm17851_vm8, %v17850_v60 }
0x1602   :  { %16428 = vmatprep.subr.bf16.mxu0 %v17850_v60 }
0x1605   :  { %16429 = vmatpush3.bf16.msra.mxu0 %v17591_v29 }
0x1606   :  { %16430 = vmatprep.subr.bf16.mxu0 %v17850_v60 }
0x1609   :  { %16431 = vmatpush3.bf16.msra.mxu0 %v17592_v14 }
0x160a   :  { %16432 = vmatprep.subr.bf16.mxu0 %v17850_v60 }
0x160d   :  { %16433 = vmatpush3.bf16.msra.mxu0 %v17593_v30 }
0x160e   :  { %16434 = vmatprep.subr.bf16.mxu0 %v17850_v60 }
0x1611   :  { %16435 = vmatpush3.bf16.msra.mxu0 %v17594_v5 }
0x1612   :  { %16436 = vmatprep.subr.bf16.mxu0 %v17850_v60 }
0x1615   :  { %16437 = vmatpush3.bf16.msra.mxu0 %v17595_v34 }
0x1616   :  { %16438 = vmatprep.subr.bf16.mxu0 %v17850_v60 }
0x1619   :  { %16439 = vmatpush3.bf16.msra.mxu0 %v17596_v1 }
0x161a   :  { %16440 = vmatprep.subr.bf16.mxu0 %v17850_v60 }
0x161d   :  { %16441 = vmatpush3.bf16.msra.mxu0 %v17597_v48 }
0x16d3   :  { %v12977_v33 = vpop.f32.mrb[112].mxu0 }
0x16d4   :  { %v12978_v19 = vadd.f32 %v14070_v49, %v12977_v33  ;;  %v16424_v55 = vpop.f32.mrb[113].mxu0 }
0x16d5   :  { %v12980_v8 = vpop.f32.mrb[114].mxu0 }
0x16d6   :  { %v12983_v13 = vpack.c.bf16 %v12978_v19, %v12978_v19  ;;  %v16425_v22 = vpop.f32.mrb[115].mxu0 }
0x16d8   :  { %16443 = vmatmul.mubr.bf16.vlgmr.msra.gmra.mrb[116].mxu0 %v12983_v13 }
0x17ab   :  { %v13089_v17 = vpop.f32.mrb[116].mxu0 }
0x17ac   :  { %v13090_v56 = vadd.f32 %v14079_v31, %v13089_v17  ;;  %v16444_v57 = vpop.f32.mrb[117].mxu0 }
0x17ad   :  { %v13092_v51 = vpop.f32.mrb[118].mxu0 }
0x17ae   :  { %v16445_v60 = vpop.f32.mrb[119].mxu0  ;;  %13096 = vst.msk [vmem:[#allocation17] sm:$0x3] %vm13095_vm11, %v13090_v56 }
0x17af   :  { %17785 = shalt.err (!%p17782_p12)
}
0x17b0   :  { %s17786_s14 = scalar_lea.hbm %s18021_s8, 32 }
0x17b1   :  { %p17787_p13 = scmp.ne.s32.totalorder %s18021_s8, %s17786_s14  ;;  %p17790_p0 = scmp.lt.u32.totalorder %s17786_s14, %s18021_s8 }
0x17b3   :  { %p17792_p1 = pnand %p17790_p0, %p17787_p13 }
0x17b5   :  { %17795 = shalt.err (!%p17792_p1)
}
0x17b6   :  { %13106 = dma.vmem_to_hbm [thread:$0]  %s13104_s25, 32, %s18021_s8, [#allocation5]  }
0x17b7   :  { %17806 = dma.done.wait [#allocation5], 32  }
0x17b8   :  { %17807 = vsyncadd [#allocation5], 4294967264 }
0x17b9   :  { %13110 = vsyncpa [#allocation4], 1 }
0x17ba   :  { %13111 = vsyncpa [#allocation7], 1 }
0x17bb   :  { %13112 = vsyncpa [#allocation10], 1 }
0x17bc   :  { %13113 = vsyncpa [#allocation13], 1 }
0x17bd   :  { %13114 = vsyncpa [#allocation16], 1 }
0x17be   :  { %13115 = vsyncpa [#allocation5], 1 }

</bundles_post_ra>
